<compile_context>
chip_gen: v7x
topology: tpu7x:2x2x1
jax: 0.10.0
libtpu: 0.0.40
codegen_flags: <defaults>
</compile_context>

<pallas_src>
import functools

import jax
import jax.numpy as jnp
from jax import lax
from jax.experimental import pallas as pl
from jax.experimental.pallas import tpu as pltpu

EPS = 1e-5


# ---------------------------------------------------------------------------
# Fused 3x (Conv1d(k=5,pad=2) + folded-BN + ReLU) -- one batch per grid step.
# Output is written time-major: (T, B*512) bf16, column block b per batch.
# ---------------------------------------------------------------------------
def conv_stack_kernel(x_ref, w0_ref, b0_ref, w1_ref, b1_ref, w2_ref, b2_ref,
                      o_ref, buf_a, buf_b, *, T):
    # x_ref : (T+4, C0p)  time-halo-padded, lane-padded input slab (bf16)
    # wN_ref: (5, Cin, 512) bf16 (BN folded);  bN_ref: (1, 512) f32
    # o_ref : (T, 512) bf16
    # buf_a, buf_b: (T+4, 512) bf16 VMEM ping-pong slabs (zero halo rows)
    K = w0_ref.shape[0]
    Cmid = w1_ref.shape[1]

    def conv_relu(read, w_ref, b_ref):
        Cout = w_ref.shape[-1]
        acc = jnp.zeros((T, Cout), jnp.float32)
        for k in range(K):                       # conv = K shifted MXU matmuls
            acc = acc + jnp.dot(read(k), w_ref[k],
                                preferred_element_type=jnp.float32)
        return jnp.maximum(acc + b_ref[...], 0.0)

    zero_halo = jnp.zeros((2, Cmid), jnp.bfloat16)

    # layer 0: reads the halo-padded kernel input (already bf16) directly
    y = conv_relu(lambda k: x_ref[k:k + T, :], w0_ref, b0_ref)
    buf_a[0:2, :] = zero_halo
    buf_a[T + 2:T + 4, :] = zero_halo
    buf_a[2:T + 2, :] = y.astype(jnp.bfloat16)

    # layer 1
    y = conv_relu(lambda k: buf_a[k:k + T, :], w1_ref, b1_ref)
    buf_b[0:2, :] = zero_halo
    buf_b[T + 2:T + 4, :] = zero_halo
    buf_b[2:T + 2, :] = y.astype(jnp.bfloat16)

    # layer 2
    y = conv_relu(lambda k: buf_b[k:k + T, :], w2_ref, b2_ref)
    o_ref[...] = y.astype(o_ref.dtype)


def conv_stack(x_pad, w0, b0, w1, b1, w2, b2):
    # x_pad: (B, T+4, C0p) bf16  ->  (T, B*512) bf16 (time-major)
    B, Tp, C0p = x_pad.shape
    T = Tp - 4
    Cmid = w1.shape[1]
    Cout = w2.shape[-1]
    kernel = functools.partial(conv_stack_kernel, T=T)
    return pl.pallas_call(
        kernel,
        out_shape=jax.ShapeDtypeStruct((T, B * Cout), jnp.bfloat16),
        grid=(B,),
        in_specs=[
            pl.BlockSpec((None, Tp, C0p), lambda b: (b, 0, 0)),
            pl.BlockSpec(w0.shape, lambda b: (0, 0, 0)),
            pl.BlockSpec(b0.shape, lambda b: (0, 0)),
            pl.BlockSpec(w1.shape, lambda b: (0, 0, 0)),
            pl.BlockSpec(b1.shape, lambda b: (0, 0)),
            pl.BlockSpec(w2.shape, lambda b: (0, 0, 0)),
            pl.BlockSpec(b2.shape, lambda b: (0, 0)),
        ],
        # time-major output: rows = time, column block b = batch element b
        out_specs=pl.BlockSpec((T, Cout), lambda b: (0, b)),
        scratch_shapes=[pltpu.VMEM((Tp, Cmid), jnp.bfloat16),
                        pltpu.VMEM((Tp, Cmid), jnp.bfloat16)],
        compiler_params=pltpu.CompilerParams(
            dimension_semantics=("parallel",),       # v7x: shard B over 2 TCs
            vmem_limit_bytes=32 * 1024 * 1024),
    )(x_pad, w0, b0, w1, b1, w2, b2)


# ---------------------------------------------------------------------------
# One bidirectional LSTM layer, both directions + whole batch in one call.
# Input / output are time-major flat: row index = t*B + b.
# ---------------------------------------------------------------------------
def bilstm_kernel(x_ref, wih_ref, whh_ref, b_ref, o_ref, xw_ref, *, T, B, U):
    # x_ref  : (T*B, Din)  bf16 (or f32, cast below)
    # wih_ref: (Din, 8H) bf16  [fwd i,f,o,g | bwd i,f,o,g];  b_ref: (1, 8H) f32
    # whh_ref: (2H, 8H)  bf16 block-diagonal [whh_f | 0 ; 0 | whh_b]
    # o_ref  : (T*B, 2H) f32  [fwd hidden | bwd hidden]
    # xw_ref : VMEM scratch (T*B, 8H) f32
    H = whh_ref.shape[0] // 2

    # Hoisted input projection: one large bf16 MXU matmul for all timesteps,
    # batches and both directions (bias added once, f32 accumulation).
    xw_ref[...] = jnp.dot(x_ref[...].astype(jnp.bfloat16), wih_ref[...],
                          preferred_element_type=jnp.float32) + b_ref[...]

    whh = whh_ref[...]                                   # (2H, 8H) bf16

    def chunk(c, carry):
        h_f, c_f, h_b, c_b = carry
        hs_f = []
        hs_b = []
        for i in range(U):                               # static unroll
            t = c * U + i
            tb = T - 1 - t
            row_f = pl.multiple_of(t * B, B)
            row_b = pl.multiple_of(tb * B, B)
            xw_f = xw_ref[pl.ds(row_f, B), 0:4 * H]
            xw_b = xw_ref[pl.ds(row_b, B), 4 * H:8 * H]
            # single MXU push per step: (B,2H) x block-diag (2H,8H)
            h_cat = jnp.concatenate([h_f, h_b], axis=-1).astype(jnp.bfloat16)
            rec = jnp.dot(h_cat, whh, preferred_element_type=jnp.float32)
            pre = jnp.concatenate([xw_f, xw_b], axis=-1) + rec    # (B, 8H)
            sig = jax.nn.sigmoid(pre)                    # one EUP push
            tnh = jnp.tanh(pre)                          # one EUP push
            c_f = sig[:, H:2 * H] * c_f + sig[:, 0:H] * tnh[:, 3 * H:4 * H]
            c_b = sig[:, 5 * H:6 * H] * c_b + sig[:, 4 * H:5 * H] * tnh[:, 7 * H:8 * H]
            h_f = sig[:, 2 * H:3 * H] * jnp.tanh(c_f)
            h_b = sig[:, 6 * H:7 * H] * jnp.tanh(c_b)
            hs_f.append(h_f)
            hs_b.append(h_b)
        # dense chunked stores: U*B contiguous rows per direction
        row_sf = pl.multiple_of(c * (U * B), U * B)
        o_ref[pl.ds(row_sf, U * B), 0:H] = jnp.concatenate(hs_f, axis=0)
        row_sb = pl.multiple_of(T * B - (c + 1) * (U * B), U * B)
        o_ref[pl.ds(row_sb, U * B), H:2 * H] = jnp.concatenate(hs_b[::-1], axis=0)
        return h_f, c_f, h_b, c_b

    z = jnp.zeros((B, H), jnp.float32)
    lax.fori_loop(0, T // U, chunk, (z, z, z, z))


def _lstm_chunk(T):
    for u in (8, 4, 2, 1):
        if T % u == 0:
            return u
    return 1


def bilstm_layer(x_tb, wih, whh_blk, bias, *, T, B):
    # x_tb: (T*B, Din) time-major  ->  (T*B, 2H) time-major (f32)
    TB, Din = x_tb.shape
    H = whh_blk.shape[0] // 2
    U = _lstm_chunk(T)
    kernel = functools.partial(bilstm_kernel, T=T, B=B, U=U)
    return pl.pallas_call(
        kernel,
        out_shape=jax.ShapeDtypeStruct((TB, 2 * H), jnp.float32),
        grid=(1,),
        in_specs=[
            pl.BlockSpec((TB, Din), lambda i: (0, 0)),
            pl.BlockSpec(wih.shape, lambda i: (0, 0)),
            pl.BlockSpec(whh_blk.shape, lambda i: (0, 0)),
            pl.BlockSpec(bias.shape, lambda i: (0, 0)),
        ],
        out_specs=pl.BlockSpec((TB, 2 * H), lambda i: (0, 0)),
        scratch_shapes=[pltpu.VMEM((TB, 8 * H), jnp.float32)],
        compiler_params=pltpu.CompilerParams(
            dimension_semantics=("arbitrary",),
            vmem_limit_bytes=32 * 1024 * 1024),
    )(x_tb, wih, whh_blk, bias)


# ---------------------------------------------------------------------------
# Encoder forward (Pallas path)
# ---------------------------------------------------------------------------
def encoder_forward(prep, x, c_org, dim_neck, freq):
    # x: (B, 1, T, 80), c_org: (B, dim_emb)
    B, _, T, _ = x.shape
    assert T % freq == 0, "codes extraction requires T to be a multiple of freq"
    E = c_org.shape[-1]
    feats = x[:, 0, :, :]                                        # (B, T, 80)
    c = jnp.broadcast_to(c_org[:, None, :], (B, T, E))
    h = jnp.concatenate([feats, c], axis=-1)                     # (B, T, 80+E)
    C0p = prep['conv0_w'].shape[1]
    # time halo (pad=2) + lane-pad channels; padded weight rows are zero.
    h = jnp.pad(h, ((0, 0), (2, 2), (0, C0p - h.shape[-1]))).astype(jnp.bfloat16)

    conv_out = conv_stack(h,
                          prep['conv0_w'], prep['conv0_b'],
                          prep['conv1_w'], prep['conv1_b'],
                          prep['conv2_w'], prep['conv2_b'])      # (T, B*512) bf16

    # time-major flat layout (row = t*B + b) -- contiguous reshape, no transpose
    seq = conv_out.reshape(T * B, -1)
    H = dim_neck
    for l in range(2):
        seq = bilstm_layer(seq, prep[f'lstm{l}_wih'], prep[f'lstm{l}_whh'],
                           prep[f'lstm{l}_b'], T=T, B=B)         # (T*B, 2H)

    out = seq.reshape(T, B, 2 * H)
    codes = []
    for i in range(0, T, freq):
        codes.append(jnp.concatenate([out[i + freq - 1, :, :H],
                                      out[i, :, H:]], axis=-1))  # (B, 2H)
    return codes


# ---------------------------------------------------------------------------
# Parameter prep: fold BN into conv, pack LSTM weights, cast MXU operands bf16
# ---------------------------------------------------------------------------
def prepare_params(raw):
    p = {}
    for i in range(3):
        w = raw[f'conv{i}_w']                       # (5, Cin, 512) f32
        b = raw[f'conv{i}_b']                       # (1, 512)
        scale = raw[f'bn{i}_gamma'] * lax.rsqrt(raw[f'bn{i}_var'] + EPS)
        wf = w * scale                              # per-Cout scale
        bf = (b - raw[f'bn{i}_mean']) * scale + raw[f'bn{i}_beta']
        if i == 0:
            C0 = wf.shape[1]
            C0p = ((C0 + 127) // 128) * 128
            # zero weight rows for lane-padded input channels (explicit)
            wf = jnp.pad(wf, ((0, 0), (0, C0p - C0), (0, 0)))
        p[f'conv{i}_w'] = wf.astype(jnp.bfloat16)   # bf16 MXU operands
        p[f'conv{i}_b'] = bf                        # keep epilogue in f32
    for l in range(2):
        wih_f = raw[f'lstm{l}_fwd_wih']             # (Din, 4H), gate order i,f,o,g
        wih_b = raw[f'lstm{l}_bwd_wih']
        whh_f = raw[f'lstm{l}_fwd_whh']             # (H, 4H)
        whh_b = raw[f'lstm{l}_bwd_whh']
        H = whh_f.shape[0]
        p[f'lstm{l}_wih'] = jnp.concatenate([wih_f, wih_b],
                                            axis=1).astype(jnp.bfloat16)
        p[f'lstm{l}_b'] = jnp.concatenate([raw[f'lstm{l}_fwd_b'],
                                           raw[f'lstm{l}_bwd_b']], axis=1)
        z = jnp.zeros((H, 4 * H), jnp.float32)
        whh_blk = jnp.concatenate(
            [jnp.concatenate([whh_f, z], axis=1),
             jnp.concatenate([z, whh_b], axis=1)], axis=0)       # (2H, 8H)
        p[f'lstm{l}_whh'] = whh_blk.astype(jnp.bfloat16)
    return p


# ---------------------------------------------------------------------------
# Pure-JAX reference (same math / same prepared params) for validation
# ---------------------------------------------------------------------------
def ref_forward(prep, x, c_org, dim_neck, freq):
    B, _, T, _ = x.shape
    E = c_org.shape[-1]
    feats = x[:, 0, :, :]
    c = jnp.broadcast_to(c_org[:, None, :], (B, T, E))
    h = jnp.concatenate([feats, c], axis=-1)
    C0p = prep['conv0_w'].shape[1]
    h = jnp.pad(h, ((0, 0), (0, 0), (0, C0p - h.shape[-1]))).astype(jnp.bfloat16)

    def conv_relu_ref(hh, w, b):
        K = w.shape[0]
        Tt = hh.shape[1]
        hp = jnp.pad(hh, ((0, 0), (2, 2), (0, 0)))
        acc = jnp.zeros((hh.shape[0], Tt, w.shape[-1]), jnp.float32)
        for k in range(K):
            acc = acc + jnp.einsum('btc,cd->btd', hp[:, k:k + Tt, :], w[k],
                                   preferred_element_type=jnp.float32)
        return jnp.maximum(acc + b, 0.0).astype(jnp.bfloat16)

    for i in range(3):
        h = conv_relu_ref(h, prep[f'conv{i}_w'], prep[f'conv{i}_b'])

    H = dim_neck
    seq = h                                                      # (B, T, 512)
    for l in range(2):
        wih = prep[f'lstm{l}_wih']
        whh = prep[f'lstm{l}_whh']
        bias = prep[f'lstm{l}_b']
        xw = jnp.einsum('btd,dg->btg', seq.astype(jnp.bfloat16), wih,
                        preferred_element_type=jnp.float32) + bias
        z = jnp.zeros((B, H), jnp.float32)
        h_f, c_f, h_b, c_b = z, z, z, z
        outs_f = [None] * T
        outs_b = [None] * T
        for t in range(T):
            tb = T - 1 - t
            h_cat = jnp.concatenate([h_f, h_b], axis=-1).astype(jnp.bfloat16)
            rec = jnp.dot(h_cat, whh, preferred_element_type=jnp.float32)
            pre = jnp.concatenate([xw[:, t, 0:4 * H], xw[:, tb, 4 * H:8 * H]],
                                  axis=-1) + rec
            sig = jax.nn.sigmoid(pre)
            tnh = jnp.tanh(pre)
            c_f = sig[:, H:2 * H] * c_f + sig[:, 0:H] * tnh[:, 3 * H:4 * H]
            c_b = sig[:, 5 * H:6 * H] * c_b + sig[:, 4 * H:5 * H] * tnh[:, 7 * H:8 * H]
            h_f = sig[:, 2 * H:3 * H] * jnp.tanh(c_f)
            h_b = sig[:, 6 * H:7 * H] * jnp.tanh(c_b)
            outs_f[t] = h_f
            outs_b[tb] = h_b
        seq = jnp.concatenate([jnp.stack(outs_f, axis=1),
                               jnp.stack(outs_b, axis=1)], axis=-1)

    codes = []
    for i in range(0, T, freq):
        codes.append(jnp.concatenate([seq[:, i + freq - 1, :H],
                                      seq[:, i, H:]], axis=-1))
    return codes


# ---------------------------------------------------------------------------
# Deterministic synthetic parameters (shapes follow Encoder.__init__)
# ---------------------------------------------------------------------------
def init_params(key, dim_neck, dim_emb):
    H = dim_neck
    C0 = 80 + dim_emb
    keys = iter(jax.random.split(key, 64))

    def nrm(shape, scale):
        return scale * jax.random.normal(next(keys), shape, jnp.float32)

    p = {}
    cins = [C0, 512, 512]
    for i in range(3):
        p[f'conv{i}_w'] = nrm((5, cins[i], 512), 0.02)
        p[f'conv{i}_b'] = nrm((1, 512), 0.05)
        p[f'bn{i}_gamma'] = 1.0 + nrm((1, 512), 0.1)
        p[f'bn{i}_beta'] = nrm((1, 512), 0.1)
        p[f'bn{i}_mean'] = nrm((1, 512), 0.1)
        p[f'bn{i}_var'] = 0.9 + jnp.abs(nrm((1, 512), 0.1))

    dins = [512, 2 * H]
    for l in range(2):
        for d in ('fwd', 'bwd'):
            p[f'lstm{l}_{d}_wih'] = nrm((dins[l], 4 * H), 0.05)   # gate order i,f,o,g
            p[f'lstm{l}_{d}_whh'] = nrm((H, 4 * H), 0.1)
            p[f'lstm{l}_{d}_b'] = nrm((1, 4 * H), 0.1)            # b_ih + b_hh summed
    return p


if __name__ == "__main__":
    dim_neck, dim_emb, freq = 8, 16, 4
    B, T, n_mel = 2, 16, 80

    key = jax.random.PRNGKey(0)
    k_x, k_c, k_p = jax.random.split(key, 3)
    x = jax.random.normal(k_x, (B, 1, T, n_mel), jnp.float32)
    c_org = jax.random.normal(k_c, (B, dim_emb), jnp.float32)

    raw_params = init_params(k_p, dim_neck, dim_emb)
    prep = prepare_params(raw_params)

    fwd = jax.jit(functools.partial(encoder_forward,
                                    dim_neck=dim_neck, freq=freq))
    codes = fwd(prep, x, c_org)
    codes = [jax.block_until_ready(c) for c in codes]

    ref_codes = ref_forward(prep, x, c_org, dim_neck, freq)
    for a, b in zip(codes, ref_codes):
        assert a.shape == (B, 2 * dim_neck)
        assert bool(jnp.allclose(a, b, atol=1e-2, rtol=1e-2)), \
            f"max diff {float(jnp.max(jnp.abs(a - b)))}"

    print("KERNEL_OK")
</pallas_src>

<mosaic_0001>
module attributes {stable_mosaic.version = 11 : i64} {
  func.func @conv_stack_kernel(%arg0: i32, %arg1: memref<1x20x128xbf16, #tpu.memory_space<vmem>>, %arg2: memref<5x128x512xbf16, #tpu.memory_space<vmem>>, %arg3: memref<1x512xf32, #tpu.memory_space<vmem>>, %arg4: memref<5x512x512xbf16, #tpu.memory_space<vmem>>, %arg5: memref<1x512xf32, #tpu.memory_space<vmem>>, %arg6: memref<5x512x512xbf16, #tpu.memory_space<vmem>>, %arg7: memref<1x512xf32, #tpu.memory_space<vmem>>, %arg8: memref<16x512xbf16, #tpu.memory_space<vmem>>, %arg9: memref<20x512xbf16, #tpu.memory_space<vmem>>, %arg10: memref<20x512xbf16, #tpu.memory_space<vmem>>) attributes {dimension_semantics = [#tpu.dimension_semantics<parallel>], iteration_bounds = array<i64: 2>, scalar_prefetch = 0 : i64, scratch_operands = 2 : i64, tpu.core_type = #tpu.core_type<tc>, window_params = [{transform_indices = @transform_0, window_bounds = array<i64: 1, 20, 128>}, {pipeline_mode = #tpu.pipeline_mode<synchronous>, transform_indices = @transform_1, window_bounds = array<i64: 5, 128, 512>}, {pipeline_mode = #tpu.pipeline_mode<synchronous>, transform_indices = @transform_2, window_bounds = array<i64: 1, 512>}, {pipeline_mode = #tpu.pipeline_mode<synchronous>, transform_indices = @transform_3, window_bounds = array<i64: 5, 512, 512>}, {pipeline_mode = #tpu.pipeline_mode<synchronous>, transform_indices = @transform_4, window_bounds = array<i64: 1, 512>}, {pipeline_mode = #tpu.pipeline_mode<synchronous>, transform_indices = @transform_5, window_bounds = array<i64: 5, 512, 512>}, {pipeline_mode = #tpu.pipeline_mode<synchronous>, transform_indices = @transform_6, window_bounds = array<i64: 1, 512>}, {transform_indices = @transform_7, window_bounds = array<i64: 16, 512>}]} {
    %cst = arith.constant 0.000000e+00 : bf16
    %0 = vector.broadcast %cst : bf16 to vector<2x512xbf16>
    %cst_0 = arith.constant 0.000000e+00 : f32
    %1 = vector.broadcast %cst_0 : f32 to vector<16x512xf32>
    %c0 = arith.constant 0 : index
    %c0_1 = arith.constant 0 : index
    %c0_2 = arith.constant 0 : index
    %2 = vector.load %arg1[%c0, %c0_1, %c0_2] : memref<1x20x128xbf16, #tpu.memory_space<vmem>>, vector<1x16x128xbf16>
    %3 = vector.shape_cast %2 : vector<1x16x128xbf16> to vector<16x128xbf16>
    %c0_3 = arith.constant 0 : index
    %c0_4 = arith.constant 0 : index
    %c0_5 = arith.constant 0 : index
    %4 = vector.load %arg2[%c0_3, %c0_4, %c0_5] : memref<5x128x512xbf16, #tpu.memory_space<vmem>>, vector<1x128x512xbf16>
    %5 = vector.shape_cast %4 : vector<1x128x512xbf16> to vector<128x512xbf16>
    %cst_6 = arith.constant dense<0.000000e+00> : vector<16x512xf32>
    %6 = tpu.matmul %3, %5, %cst_6 {dimension_numbers = #tpu.dot_dimension_numbers<[1], [0], [0], [1], [0, 0, 1, 1], [], []>} : vector<16x128xbf16>, vector<128x512xbf16>, vector<16x512xf32> -> vector<16x512xf32>
    %7 = arith.addf %1, %6 : vector<16x512xf32>
    %c0_7 = arith.constant 0 : index
    %c1 = arith.constant 1 : index
    %c0_8 = arith.constant 0 : index
    %8 = vector.load %arg1[%c0_7, %c1, %c0_8] : memref<1x20x128xbf16, #tpu.memory_space<vmem>>, vector<1x16x128xbf16>
    %9 = vector.shape_cast %8 : vector<1x16x128xbf16> to vector<16x128xbf16>
    %c1_9 = arith.constant 1 : index
    %c0_10 = arith.constant 0 : index
    %c0_11 = arith.constant 0 : index
    %10 = vector.load %arg2[%c1_9, %c0_10, %c0_11] : memref<5x128x512xbf16, #tpu.memory_space<vmem>>, vector<1x128x512xbf16>
    %11 = vector.shape_cast %10 : vector<1x128x512xbf16> to vector<128x512xbf16>
    %cst_12 = arith.constant dense<0.000000e+00> : vector<16x512xf32>
    %12 = tpu.matmul %9, %11, %cst_12 {dimension_numbers = #tpu.dot_dimension_numbers<[1], [0], [0], [1], [0, 0, 1, 1], [], []>} : vector<16x128xbf16>, vector<128x512xbf16>, vector<16x512xf32> -> vector<16x512xf32>
    %13 = arith.addf %7, %12 : vector<16x512xf32>
    %c0_13 = arith.constant 0 : index
    %c2 = arith.constant 2 : index
    %c0_14 = arith.constant 0 : index
    %14 = vector.load %arg1[%c0_13, %c2, %c0_14] : memref<1x20x128xbf16, #tpu.memory_space<vmem>>, vector<1x16x128xbf16>
    %15 = vector.shape_cast %14 : vector<1x16x128xbf16> to vector<16x128xbf16>
    %c2_15 = arith.constant 2 : index
    %c0_16 = arith.constant 0 : index
    %c0_17 = arith.constant 0 : index
    %16 = vector.load %arg2[%c2_15, %c0_16, %c0_17] : memref<5x128x512xbf16, #tpu.memory_space<vmem>>, vector<1x128x512xbf16>
    %17 = vector.shape_cast %16 : vector<1x128x512xbf16> to vector<128x512xbf16>
    %cst_18 = arith.constant dense<0.000000e+00> : vector<16x512xf32>
    %18 = tpu.matmul %15, %17, %cst_18 {dimension_numbers = #tpu.dot_dimension_numbers<[1], [0], [0], [1], [0, 0, 1, 1], [], []>} : vector<16x128xbf16>, vector<128x512xbf16>, vector<16x512xf32> -> vector<16x512xf32>
    %19 = arith.addf %13, %18 : vector<16x512xf32>
    %c0_19 = arith.constant 0 : index
    %c3 = arith.constant 3 : index
    %c0_20 = arith.constant 0 : index
    %20 = vector.load %arg1[%c0_19, %c3, %c0_20] : memref<1x20x128xbf16, #tpu.memory_space<vmem>>, vector<1x16x128xbf16>
    %21 = vector.shape_cast %20 : vector<1x16x128xbf16> to vector<16x128xbf16>
    %c3_21 = arith.constant 3 : index
    %c0_22 = arith.constant 0 : index
    %c0_23 = arith.constant 0 : index
    %22 = vector.load %arg2[%c3_21, %c0_22, %c0_23] : memref<5x128x512xbf16, #tpu.memory_space<vmem>>, vector<1x128x512xbf16>
    %23 = vector.shape_cast %22 : vector<1x128x512xbf16> to vector<128x512xbf16>
    %cst_24 = arith.constant dense<0.000000e+00> : vector<16x512xf32>
    %24 = tpu.matmul %21, %23, %cst_24 {dimension_numbers = #tpu.dot_dimension_numbers<[1], [0], [0], [1], [0, 0, 1, 1], [], []>} : vector<16x128xbf16>, vector<128x512xbf16>, vector<16x512xf32> -> vector<16x512xf32>
    %25 = arith.addf %19, %24 : vector<16x512xf32>
    %c0_25 = arith.constant 0 : index
    %c4 = arith.constant 4 : index
    %c0_26 = arith.constant 0 : index
    %26 = vector.load %arg1[%c0_25, %c4, %c0_26] : memref<1x20x128xbf16, #tpu.memory_space<vmem>>, vector<1x16x128xbf16>
    %27 = vector.shape_cast %26 : vector<1x16x128xbf16> to vector<16x128xbf16>
    %c4_27 = arith.constant 4 : index
    %c0_28 = arith.constant 0 : index
    %c0_29 = arith.constant 0 : index
    %28 = vector.load %arg2[%c4_27, %c0_28, %c0_29] : memref<5x128x512xbf16, #tpu.memory_space<vmem>>, vector<1x128x512xbf16>
    %29 = vector.shape_cast %28 : vector<1x128x512xbf16> to vector<128x512xbf16>
    %cst_30 = arith.constant dense<0.000000e+00> : vector<16x512xf32>
    %30 = tpu.matmul %27, %29, %cst_30 {dimension_numbers = #tpu.dot_dimension_numbers<[1], [0], [0], [1], [0, 0, 1, 1], [], []>} : vector<16x128xbf16>, vector<128x512xbf16>, vector<16x512xf32> -> vector<16x512xf32>
    %31 = arith.addf %25, %30 : vector<16x512xf32>
    %c0_31 = arith.constant 0 : index
    %c0_32 = arith.constant 0 : index
    %32 = vector.load %arg3[%c0_31, %c0_32] : memref<1x512xf32, #tpu.memory_space<vmem>>, vector<1x512xf32>
    %33 = vector.broadcast %32 : vector<1x512xf32> to vector<16x512xf32>
    %34 = arith.addf %31, %33 : vector<16x512xf32>
    %cst_33 = arith.constant 0.000000e+00 : f32
    %35 = vector.broadcast %cst_33 : f32 to vector<16x512xf32>
    %36 = arith.maximumf %34, %35 : vector<16x512xf32>
    %c0_34 = arith.constant 0 : index
    %c0_35 = arith.constant 0 : index
    %37 = vector.load %arg9[%c0_34, %c0_35] : memref<20x512xbf16, #tpu.memory_space<vmem>>, vector<2x512xbf16>
    tpu.vector_store %arg9[%c0_34, %c0_35], %0 {strides = array<i32>} : memref<20x512xbf16, #tpu.memory_space<vmem>>, vector<2x512xbf16>,
    %c18 = arith.constant 18 : index
    %c0_36 = arith.constant 0 : index
    %38 = vector.load %arg9[%c18, %c0_36] : memref<20x512xbf16, #tpu.memory_space<vmem>>, vector<2x512xbf16>
    tpu.vector_store %arg9[%c18, %c0_36], %0 {strides = array<i32>} : memref<20x512xbf16, #tpu.memory_space<vmem>>, vector<2x512xbf16>,
    %39 = arith.truncf %36 : vector<16x512xf32> to vector<16x512xbf16>
    %c2_37 = arith.constant 2 : index
    %c0_38 = arith.constant 0 : index
    %40 = vector.load %arg9[%c2_37, %c0_38] : memref<20x512xbf16, #tpu.memory_space<vmem>>, vector<16x512xbf16>
    tpu.vector_store %arg9[%c2_37, %c0_38], %39 {strides = array<i32>} : memref<20x512xbf16, #tpu.memory_space<vmem>>, vector<16x512xbf16>,
    %cst_39 = arith.constant 0.000000e+00 : f32
    %41 = vector.broadcast %cst_39 : f32 to vector<16x512xf32>
    %c0_40 = arith.constant 0 : index
    %c0_41 = arith.constant 0 : index
    %42 = vector.load %arg9[%c0_40, %c0_41] : memref<20x512xbf16, #tpu.memory_space<vmem>>, vector<16x512xbf16>
    %c0_42 = arith.constant 0 : index
    %c0_43 = arith.constant 0 : index
    %c0_44 = arith.constant 0 : index
    %43 = vector.load %arg4[%c0_42, %c0_43, %c0_44] : memref<5x512x512xbf16, #tpu.memory_space<vmem>>, vector<1x512x512xbf16>
    %44 = vector.shape_cast %43 : vector<1x512x512xbf16> to vector<512x512xbf16>
    %cst_45 = arith.constant dense<0.000000e+00> : vector<16x512xf32>
    %45 = tpu.matmul %42, %44, %cst_45 {dimension_numbers = #tpu.dot_dimension_numbers<[1], [0], [0], [1], [0, 0, 1, 1], [], []>} : vector<16x512xbf16>, vector<512x512xbf16>, vector<16x512xf32> -> vector<16x512xf32>
    %46 = arith.addf %41, %45 : vector<16x512xf32>
    %c1_46 = arith.constant 1 : index
    %c0_47 = arith.constant 0 : index
    %47 = vector.load %arg9[%c1_46, %c0_47] : memref<20x512xbf16, #tpu.memory_space<vmem>>, vector<16x512xbf16>
    %c1_48 = arith.constant 1 : index
    %c0_49 = arith.constant 0 : index
    %c0_50 = arith.constant 0 : index
    %48 = vector.load %arg4[%c1_48, %c0_49, %c0_50] : memref<5x512x512xbf16, #tpu.memory_space<vmem>>, vector<1x512x512xbf16>
    %49 = vector.shape_cast %48 : vector<1x512x512xbf16> to vector<512x512xbf16>
    %cst_51 = arith.constant dense<0.000000e+00> : vector<16x512xf32>
    %50 = tpu.matmul %47, %49, %cst_51 {dimension_numbers = #tpu.dot_dimension_numbers<[1], [0], [0], [1], [0, 0, 1, 1], [], []>} : vector<16x512xbf16>, vector<512x512xbf16>, vector<16x512xf32> -> vector<16x512xf32>
    %51 = arith.addf %46, %50 : vector<16x512xf32>
    %c2_52 = arith.constant 2 : index
    %c0_53 = arith.constant 0 : index
    %52 = vector.load %arg9[%c2_52, %c0_53] : memref<20x512xbf16, #tpu.memory_space<vmem>>, vector<16x512xbf16>
    %c2_54 = arith.constant 2 : index
    %c0_55 = arith.constant 0 : index
    %c0_56 = arith.constant 0 : index
    %53 = vector.load %arg4[%c2_54, %c0_55, %c0_56] : memref<5x512x512xbf16, #tpu.memory_space<vmem>>, vector<1x512x512xbf16>
    %54 = vector.shape_cast %53 : vector<1x512x512xbf16> to vector<512x512xbf16>
    %cst_57 = arith.constant dense<0.000000e+00> : vector<16x512xf32>
    %55 = tpu.matmul %52, %54, %cst_57 {dimension_numbers = #tpu.dot_dimension_numbers<[1], [0], [0], [1], [0, 0, 1, 1], [], []>} : vector<16x512xbf16>, vector<512x512xbf16>, vector<16x512xf32> -> vector<16x512xf32>
    %56 = arith.addf %51, %55 : vector<16x512xf32>
    %c3_58 = arith.constant 3 : index
    %c0_59 = arith.constant 0 : index
    %57 = vector.load %arg9[%c3_58, %c0_59] : memref<20x512xbf16, #tpu.memory_space<vmem>>, vector<16x512xbf16>
    %c3_60 = arith.constant 3 : index
    %c0_61 = arith.constant 0 : index
    %c0_62 = arith.constant 0 : index
    %58 = vector.load %arg4[%c3_60, %c0_61, %c0_62] : memref<5x512x512xbf16, #tpu.memory_space<vmem>>, vector<1x512x512xbf16>
    %59 = vector.shape_cast %58 : vector<1x512x512xbf16> to vector<512x512xbf16>
    %cst_63 = arith.constant dense<0.000000e+00> : vector<16x512xf32>
    %60 = tpu.matmul %57, %59, %cst_63 {dimension_numbers = #tpu.dot_dimension_numbers<[1], [0], [0], [1], [0, 0, 1, 1], [], []>} : vector<16x512xbf16>, vector<512x512xbf16>, vector<16x512xf32> -> vector<16x512xf32>
    %61 = arith.addf %56, %60 : vector<16x512xf32>
    %c4_64 = arith.constant 4 : index
    %c0_65 = arith.constant 0 : index
    %62 = vector.load %arg9[%c4_64, %c0_65] : memref<20x512xbf16, #tpu.memory_space<vmem>>, vector<16x512xbf16>
    %c4_66 = arith.constant 4 : index
    %c0_67 = arith.constant 0 : index
    %c0_68 = arith.constant 0 : index
    %63 = vector.load %arg4[%c4_66, %c0_67, %c0_68] : memref<5x512x512xbf16, #tpu.memory_space<vmem>>, vector<1x512x512xbf16>
    %64 = vector.shape_cast %63 : vector<1x512x512xbf16> to vector<512x512xbf16>
    %cst_69 = arith.constant dense<0.000000e+00> : vector<16x512xf32>
    %65 = tpu.matmul %62, %64, %cst_69 {dimension_numbers = #tpu.dot_dimension_numbers<[1], [0], [0], [1], [0, 0, 1, 1], [], []>} : vector<16x512xbf16>, vector<512x512xbf16>, vector<16x512xf32> -> vector<16x512xf32>
    %66 = arith.addf %61, %65 : vector<16x512xf32>
    %c0_70 = arith.constant 0 : index
    %c0_71 = arith.constant 0 : index
    %67 = vector.load %arg5[%c0_70, %c0_71] : memref<1x512xf32, #tpu.memory_space<vmem>>, vector<1x512xf32>
    %68 = vector.broadcast %67 : vector<1x512xf32> to vector<16x512xf32>
    %69 = arith.addf %66, %68 : vector<16x512xf32>
    %cst_72 = arith.constant 0.000000e+00 : f32
    %70 = vector.broadcast %cst_72 : f32 to vector<16x512xf32>
    %71 = arith.maximumf %69, %70 : vector<16x512xf32>
    %c0_73 = arith.constant 0 : index
    %c0_74 = arith.constant 0 : index
    %72 = vector.load %arg10[%c0_73, %c0_74] : memref<20x512xbf16, #tpu.memory_space<vmem>>, vector<2x512xbf16>
    tpu.vector_store %arg10[%c0_73, %c0_74], %0 {strides = array<i32>} : memref<20x512xbf16, #tpu.memory_space<vmem>>, vector<2x512xbf16>,
    %c18_75 = arith.constant 18 : index
    %c0_76 = arith.constant 0 : index
    %73 = vector.load %arg10[%c18_75, %c0_76] : memref<20x512xbf16, #tpu.memory_space<vmem>>, vector<2x512xbf16>
    tpu.vector_store %arg10[%c18_75, %c0_76], %0 {strides = array<i32>} : memref<20x512xbf16, #tpu.memory_space<vmem>>, vector<2x512xbf16>,
    %74 = arith.truncf %71 : vector<16x512xf32> to vector<16x512xbf16>
    %c2_77 = arith.constant 2 : index
    %c0_78 = arith.constant 0 : index
    %75 = vector.load %arg10[%c2_77, %c0_78] : memref<20x512xbf16, #tpu.memory_space<vmem>>, vector<16x512xbf16>
    tpu.vector_store %arg10[%c2_77, %c0_78], %74 {strides = array<i32>} : memref<20x512xbf16, #tpu.memory_space<vmem>>, vector<16x512xbf16>,
    %cst_79 = arith.constant 0.000000e+00 : f32
    %76 = vector.broadcast %cst_79 : f32 to vector<16x512xf32>
    %c0_80 = arith.constant 0 : index
    %c0_81 = arith.constant 0 : index
    %77 = vector.load %arg10[%c0_80, %c0_81] : memref<20x512xbf16, #tpu.memory_space<vmem>>, vector<16x512xbf16>
    %c0_82 = arith.constant 0 : index
    %c0_83 = arith.constant 0 : index
    %c0_84 = arith.constant 0 : index
    %78 = vector.load %arg6[%c0_82, %c0_83, %c0_84] : memref<5x512x512xbf16, #tpu.memory_space<vmem>>, vector<1x512x512xbf16>
    %79 = vector.shape_cast %78 : vector<1x512x512xbf16> to vector<512x512xbf16>
    %cst_85 = arith.constant dense<0.000000e+00> : vector<16x512xf32>
    %80 = tpu.matmul %77, %79, %cst_85 {dimension_numbers = #tpu.dot_dimension_numbers<[1], [0], [0], [1], [0, 0, 1, 1], [], []>} : vector<16x512xbf16>, vector<512x512xbf16>, vector<16x512xf32> -> vector<16x512xf32>
    %81 = arith.addf %76, %80 : vector<16x512xf32>
    %c1_86 = arith.constant 1 : index
    %c0_87 = arith.constant 0 : index
    %82 = vector.load %arg10[%c1_86, %c0_87] : memref<20x512xbf16, #tpu.memory_space<vmem>>, vector<16x512xbf16>
    %c1_88 = arith.constant 1 : index
    %c0_89 = arith.constant 0 : index
    %c0_90 = arith.constant 0 : index
    %83 = vector.load %arg6[%c1_88, %c0_89, %c0_90] : memref<5x512x512xbf16, #tpu.memory_space<vmem>>, vector<1x512x512xbf16>
    %84 = vector.shape_cast %83 : vector<1x512x512xbf16> to vector<512x512xbf16>
    %cst_91 = arith.constant dense<0.000000e+00> : vector<16x512xf32>
    %85 = tpu.matmul %82, %84, %cst_91 {dimension_numbers = #tpu.dot_dimension_numbers<[1], [0], [0], [1], [0, 0, 1, 1], [], []>} : vector<16x512xbf16>, vector<512x512xbf16>, vector<16x512xf32> -> vector<16x512xf32>
    %86 = arith.addf %81, %85 : vector<16x512xf32>
    %c2_92 = arith.constant 2 : index
    %c0_93 = arith.constant 0 : index
    %87 = vector.load %arg10[%c2_92, %c0_93] : memref<20x512xbf16, #tpu.memory_space<vmem>>, vector<16x512xbf16>
    %c2_94 = arith.constant 2 : index
    %c0_95 = arith.constant 0 : index
    %c0_96 = arith.constant 0 : index
    %88 = vector.load %arg6[%c2_94, %c0_95, %c0_96] : memref<5x512x512xbf16, #tpu.memory_space<vmem>>, vector<1x512x512xbf16>
    %89 = vector.shape_cast %88 : vector<1x512x512xbf16> to vector<512x512xbf16>
    %cst_97 = arith.constant dense<0.000000e+00> : vector<16x512xf32>
    %90 = tpu.matmul %87, %89, %cst_97 {dimension_numbers = #tpu.dot_dimension_numbers<[1], [0], [0], [1], [0, 0, 1, 1], [], []>} : vector<16x512xbf16>, vector<512x512xbf16>, vector<16x512xf32> -> vector<16x512xf32>
    %91 = arith.addf %86, %90 : vector<16x512xf32>
    %c3_98 = arith.constant 3 : index
    %c0_99 = arith.constant 0 : index
    %92 = vector.load %arg10[%c3_98, %c0_99] : memref<20x512xbf16, #tpu.memory_space<vmem>>, vector<16x512xbf16>
    %c3_100 = arith.constant 3 : index
    %c0_101 = arith.constant 0 : index
    %c0_102 = arith.constant 0 : index
    %93 = vector.load %arg6[%c3_100, %c0_101, %c0_102] : memref<5x512x512xbf16, #tpu.memory_space<vmem>>, vector<1x512x512xbf16>
    %94 = vector.shape_cast %93 : vector<1x512x512xbf16> to vector<512x512xbf16>
    %cst_103 = arith.constant dense<0.000000e+00> : vector<16x512xf32>
    %95 = tpu.matmul %92, %94, %cst_103 {dimension_numbers = #tpu.dot_dimension_numbers<[1], [0], [0], [1], [0, 0, 1, 1], [], []>} : vector<16x512xbf16>, vector<512x512xbf16>, vector<16x512xf32> -> vector<16x512xf32>
    %96 = arith.addf %91, %95 : vector<16x512xf32>
    %c4_104 = arith.constant 4 : index
    %c0_105 = arith.constant 0 : index
    %97 = vector.load %arg10[%c4_104, %c0_105] : memref<20x512xbf16, #tpu.memory_space<vmem>>, vector<16x512xbf16>
    %c4_106 = arith.constant 4 : index
    %c0_107 = arith.constant 0 : index
    %c0_108 = arith.constant 0 : index
    %98 = vector.load %arg6[%c4_106, %c0_107, %c0_108] : memref<5x512x512xbf16, #tpu.memory_space<vmem>>, vector<1x512x512xbf16>
    %99 = vector.shape_cast %98 : vector<1x512x512xbf16> to vector<512x512xbf16>
    %cst_109 = arith.constant dense<0.000000e+00> : vector<16x512xf32>
    %100 = tpu.matmul %97, %99, %cst_109 {dimension_numbers = #tpu.dot_dimension_numbers<[1], [0], [0], [1], [0, 0, 1, 1], [], []>} : vector<16x512xbf16>, vector<512x512xbf16>, vector<16x512xf32> -> vector<16x512xf32>
    %101 = arith.addf %96, %100 : vector<16x512xf32>
    %c0_110 = arith.constant 0 : index
    %c0_111 = arith.constant 0 : index
    %102 = vector.load %arg7[%c0_110, %c0_111] : memref<1x512xf32, #tpu.memory_space<vmem>>, vector<1x512xf32>
    %103 = vector.broadcast %102 : vector<1x512xf32> to vector<16x512xf32>
    %104 = arith.addf %101, %103 : vector<16x512xf32>
    %cst_112 = arith.constant 0.000000e+00 : f32
    %105 = vector.broadcast %cst_112 : f32 to vector<16x512xf32>
    %106 = arith.maximumf %104, %105 : vector<16x512xf32>
    %107 = arith.truncf %106 : vector<16x512xf32> to vector<16x512xbf16>
    %c0_113 = arith.constant 0 : index
    %c0_114 = arith.constant 0 : index
    %108 = vector.load %arg8[%c0_113, %c0_114] : memref<16x512xbf16, #tpu.memory_space<vmem>>, vector<16x512xbf16>
    tpu.vector_store %arg8[%c0_113, %c0_114], %107 {strides = array<i32>} : memref<16x512xbf16, #tpu.memory_space<vmem>>, vector<16x512xbf16>,
    return
  }
  func.func @transform_0(%arg0: i32) -> (i32, i32, i32) {
    %c0_i32 = arith.constant 0 : i32
    %c0_i32_0 = arith.constant 0 : i32
    %c0_i32_1 = arith.constant 0 : i32
    return %arg0, %c0_i32, %c0_i32_0 : i32, i32, i32
  }
  func.func @transform_1(%arg0: i32) -> (i32, i32, i32) {
    %c0_i32 = arith.constant 0 : i32
    %c0_i32_0 = arith.constant 0 : i32
    %c0_i32_1 = arith.constant 0 : i32
    %c0_i32_2 = arith.constant 0 : i32
    return %c0_i32, %c0_i32_0, %c0_i32_1 : i32, i32, i32
  }
  func.func @transform_2(%arg0: i32) -> (i32, i32) {
    %c0_i32 = arith.constant 0 : i32
    %c0_i32_0 = arith.constant 0 : i32
    %c0_i32_1 = arith.constant 0 : i32
    return %c0_i32, %c0_i32_0 : i32, i32
  }
  func.func @transform_3(%arg0: i32) -> (i32, i32, i32) {
    %c0_i32 = arith.constant 0 : i32
    %c0_i32_0 = arith.constant 0 : i32
    %c0_i32_1 = arith.constant 0 : i32
    %c0_i32_2 = arith.constant 0 : i32
    return %c0_i32, %c0_i32_0, %c0_i32_1 : i32, i32, i32
  }
  func.func @transform_4(%arg0: i32) -> (i32, i32) {
    %c0_i32 = arith.constant 0 : i32
    %c0_i32_0 = arith.constant 0 : i32
    %c0_i32_1 = arith.constant 0 : i32
    return %c0_i32, %c0_i32_0 : i32, i32
  }
  func.func @transform_5(%arg0: i32) -> (i32, i32, i32) {
    %c0_i32 = arith.constant 0 : i32
    %c0_i32_0 = arith.constant 0 : i32
    %c0_i32_1 = arith.constant 0 : i32
    %c0_i32_2 = arith.constant 0 : i32
    return %c0_i32, %c0_i32_0, %c0_i32_1 : i32, i32, i32
  }
  func.func @transform_6(%arg0: i32) -> (i32, i32) {
    %c0_i32 = arith.constant 0 : i32
    %c0_i32_0 = arith.constant 0 : i32
    %c0_i32_1 = arith.constant 0 : i32
    return %c0_i32, %c0_i32_0 : i32, i32
  }
  func.func @transform_7(%arg0: i32) -> (i32, i32) {
    %c0_i32 = arith.constant 0 : i32
    %c0_i32_0 = arith.constant 0 : i32
    return %c0_i32, %arg0 : i32, i32
  }
}

module attributes {stable_mosaic.version = 11 : i64} {
  func.func @bilstm_kernel(%arg0: i32, %arg1: memref<32x512xbf16, #tpu.memory_space<vmem>>, %arg2: memref<512x64xbf16, #tpu.memory_space<vmem>>, %arg3: memref<16x64xbf16, #tpu.memory_space<vmem>>, %arg4: memref<1x64xf32, #tpu.memory_space<vmem>>, %arg5: memref<32x16xf32, #tpu.memory_space<vmem>>, %arg6: memref<32x64xf32, #tpu.memory_space<vmem>>) attributes {dimension_semantics = [#tpu.dimension_semantics<arbitrary>], iteration_bounds = array<i64: 1>, scalar_prefetch = 0 : i64, scratch_operands = 1 : i64, tpu.core_type = #tpu.core_type<tc>, window_params = [{pipeline_mode = #tpu.pipeline_mode<synchronous>, transform_indices = @transform_0, window_bounds = array<i64: 32, 512>}, {pipeline_mode = #tpu.pipeline_mode<synchronous>, transform_indices = @transform_1, window_bounds = array<i64: 512, 64>}, {pipeline_mode = #tpu.pipeline_mode<synchronous>, transform_indices = @transform_2, window_bounds = array<i64: 16, 64>}, {pipeline_mode = #tpu.pipeline_mode<synchronous>, transform_indices = @transform_3, window_bounds = array<i64: 1, 64>}, {pipeline_mode = #tpu.pipeline_mode<synchronous>, transform_indices = @transform_4, window_bounds = array<i64: 32, 16>}]} {
    %c0 = arith.constant 0 : index
    %c0_0 = arith.constant 0 : index
    %0 = vector.load %arg1[%c0, %c0_0] : memref<32x512xbf16, #tpu.memory_space<vmem>>, vector<32x512xbf16>
    %c0_1 = arith.constant 0 : index
    %c0_2 = arith.constant 0 : index
    %1 = vector.load %arg2[%c0_1, %c0_2] : memref<512x64xbf16, #tpu.memory_space<vmem>>, vector<512x64xbf16>
    %cst = arith.constant dense<0.000000e+00> : vector<32x64xf32>
    %2 = tpu.matmul %0, %1, %cst {dimension_numbers = #tpu.dot_dimension_numbers<[1], [0], [0], [1], [0, 0, 1, 1], [], []>} : vector<32x512xbf16>, vector<512x64xbf16>, vector<32x64xf32> -> vector<32x64xf32>
    %c0_3 = arith.constant 0 : index
    %c0_4 = arith.constant 0 : index
    %3 = vector.load %arg4[%c0_3, %c0_4] : memref<1x64xf32, #tpu.memory_space<vmem>>, vector<1x64xf32>
    %4 = vector.broadcast %3 : vector<1x64xf32> to vector<32x64xf32>
    %5 = arith.addf %2, %4 : vector<32x64xf32>
    %c0_5 = arith.constant 0 : index
    %c0_6 = arith.constant 0 : index
    %6 = vector.load %arg6[%c0_5, %c0_6] : memref<32x64xf32, #tpu.memory_space<vmem>>, vector<32x64xf32>
    tpu.vector_store %arg6[%c0_5, %c0_6], %5 {strides = array<i32>} : memref<32x64xf32, #tpu.memory_space<vmem>>, vector<32x64xf32>,
    %c0_7 = arith.constant 0 : index
    %c0_8 = arith.constant 0 : index
    %7 = vector.load %arg3[%c0_7, %c0_8] : memref<16x64xbf16, #tpu.memory_space<vmem>>, vector<16x64xbf16>
    %cst_9 = arith.constant 0.000000e+00 : f32
    %8 = vector.broadcast %cst_9 : f32 to vector<2x8xf32>
    %c0_i32 = arith.constant 0 : i32
    %c2_i32 = arith.constant 2 : i32
    %9 = arith.addi %c0_i32, %c2_i32 : i32
    %c1_i32 = arith.constant 1 : i32
    %10:4 = scf.for %arg7 = %c0_i32 to %9 step %c1_i32 iter_args(%arg8 = %8, %arg9 = %8, %arg10 = %8, %arg11 = %8) -> (vector<2x8xf32>, vector<2x8xf32>, vector<2x8xf32>, vector<2x8xf32>)  : i32 {
      %c8_i32 = arith.constant 8 : i32
      %11 = arith.muli %arg7, %c8_i32 : i32
      %c0_i32_11 = arith.constant 0 : i32
      %12 = arith.addi %11, %c0_i32_11 : i32
      %c15_i32 = arith.constant 15 : i32
      %13 = arith.subi %c15_i32, %12 : i32
      %c2_i32_12 = arith.constant 2 : i32
      %14 = arith.muli %12, %c2_i32_12 : i32
      %15 = tpu.assume_multiple %14, 2 : i32
      %c2_i32_13 = arith.constant 2 : i32
      %16 = arith.muli %13, %c2_i32_13 : i32
      %17 = tpu.assume_multiple %16, 2 : i32
      %18 = arith.index_cast %15 : i32 to index
      %c0_14 = arith.constant 0 : index
      %19 = vector.load %arg6[%18, %c0_14] : memref<32x64xf32, #tpu.memory_space<vmem>>, vector<2x32xf32>
      %20 = arith.index_cast %17 : i32 to index
      %c32 = arith.constant 32 : index
      %21 = vector.load %arg6[%20, %c32] : memref<32x64xf32, #tpu.memory_space<vmem>>, vector<2x32xf32>
      %22 = tpu.concatenate %arg8, %arg10 in 1 : vector<2x8xf32>, vector<2x8xf32> -> vector<2x16xf32>
      %23 = arith.truncf %22 : vector<2x16xf32> to vector<2x16xbf16>
      %cst_15 = arith.constant dense<0.000000e+00> : vector<2x64xf32>
      %24 = tpu.matmul %23, %7, %cst_15 {dimension_numbers = #tpu.dot_dimension_numbers<[1], [0], [0], [1], [0, 0, 1, 1], [], []>} : vector<2x16xbf16>, vector<16x64xbf16>, vector<2x64xf32> -> vector<2x64xf32>
      %25 = tpu.concatenate %19, %21 in 1 : vector<2x32xf32>, vector<2x32xf32> -> vector<2x64xf32>
      %26 = arith.addf %25, %24 : vector<2x64xf32>
      %27 = arith.negf %26 : vector<2x64xf32>
      %28 = math.exp %27 : vector<2x64xf32>
      %cst_16 = arith.constant 1.000000e+00 : f32
      %29 = vector.broadcast %cst_16 : f32 to vector<2x64xf32>
      %30 = arith.addf %29, %28 : vector<2x64xf32>
      %31 = arith.divf %29, %30 : vector<2x64xf32>
      %32 = math.tanh %26 : vector<2x64xf32>
      %33 = vector.extract_strided_slice %31 {offsets = [0, 8], sizes = [2, 8], strides = [1, 1]} : vector<2x64xf32> to vector<2x8xf32>
      %34 = arith.mulf %33, %arg9 : vector<2x8xf32>
      %35 = vector.extract_strided_slice %31 {offsets = [0, 0], sizes = [2, 8], strides = [1, 1]} : vector<2x64xf32> to vector<2x8xf32>
      %36 = vector.extract_strided_slice %32 {offsets = [0, 24], sizes = [2, 8], strides = [1, 1]} : vector<2x64xf32> to vector<2x8xf32>
      %37 = arith.mulf %35, %36 : vector<2x8xf32>
      %38 = arith.addf %34, %37 : vector<2x8xf32>
      %39 = vector.extract_strided_slice %31 {offsets = [0, 40], sizes = [2, 8], strides = [1, 1]} : vector<2x64xf32> to vector<2x8xf32>
      %40 = arith.mulf %39, %arg11 : vector<2x8xf32>
      %41 = vector.extract_strided_slice %31 {offsets = [0, 32], sizes = [2, 8], strides = [1, 1]} : vector<2x64xf32> to vector<2x8xf32>
      %42 = vector.extract_strided_slice %32 {offsets = [0, 56], sizes = [2, 8], strides = [1, 1]} : vector<2x64xf32> to vector<2x8xf32>
      %43 = arith.mulf %41, %42 : vector<2x8xf32>
      %44 = arith.addf %40, %43 : vector<2x8xf32>
      %45 = vector.extract_strided_slice %31 {offsets = [0, 16], sizes = [2, 8], strides = [1, 1]} : vector<2x64xf32> to vector<2x8xf32>
      %46 = math.tanh %38 : vector<2x8xf32>
      %47 = arith.mulf %45, %46 : vector<2x8xf32>
      %48 = vector.extract_strided_slice %31 {offsets = [0, 48], sizes = [2, 8], strides = [1, 1]} : vector<2x64xf32> to vector<2x8xf32>
      %49 = math.tanh %44 : vector<2x8xf32>
      %50 = arith.mulf %48, %49 : vector<2x8xf32>
      %c8_i32_17 = arith.constant 8 : i32
      %51 = arith.muli %arg7, %c8_i32_17 : i32
      %c1_i32_18 = arith.constant 1 : i32
      %52 = arith.addi %51, %c1_i32_18 : i32
      %c15_i32_19 = arith.constant 15 : i32
      %53 = arith.subi %c15_i32_19, %52 : i32
      %c2_i32_20 = arith.constant 2 : i32
      %54 = arith.muli %52, %c2_i32_20 : i32
      %55 = tpu.assume_multiple %54, 2 : i32
      %c2_i32_21 = arith.constant 2 : i32
      %56 = arith.muli %53, %c2_i32_21 : i32
      %57 = tpu.assume_multiple %56, 2 : i32
      %58 = arith.index_cast %55 : i32 to index
      %c0_22 = arith.constant 0 : index
      %59 = vector.load %arg6[%58, %c0_22] : memref<32x64xf32, #tpu.memory_space<vmem>>, vector<2x32xf32>
      %60 = arith.index_cast %57 : i32 to index
      %c32_23 = arith.constant 32 : index
      %61 = vector.load %arg6[%60, %c32_23] : memref<32x64xf32, #tpu.memory_space<vmem>>, vector<2x32xf32>
      %62 = tpu.concatenate %47, %50 in 1 : vector<2x8xf32>, vector<2x8xf32> -> vector<2x16xf32>
      %63 = arith.truncf %62 : vector<2x16xf32> to vector<2x16xbf16>
      %cst_24 = arith.constant dense<0.000000e+00> : vector<2x64xf32>
      %64 = tpu.matmul %63, %7, %cst_24 {dimension_numbers = #tpu.dot_dimension_numbers<[1], [0], [0], [1], [0, 0, 1, 1], [], []>} : vector<2x16xbf16>, vector<16x64xbf16>, vector<2x64xf32> -> vector<2x64xf32>
      %65 = tpu.concatenate %59, %61 in 1 : vector<2x32xf32>, vector<2x32xf32> -> vector<2x64xf32>
      %66 = arith.addf %65, %64 : vector<2x64xf32>
      %67 = arith.negf %66 : vector<2x64xf32>
      %68 = math.exp %67 : vector<2x64xf32>
      %cst_25 = arith.constant 1.000000e+00 : f32
      %69 = vector.broadcast %cst_25 : f32 to vector<2x64xf32>
      %70 = arith.addf %69, %68 : vector<2x64xf32>
      %71 = arith.divf %69, %70 : vector<2x64xf32>
      %72 = math.tanh %66 : vector<2x64xf32>
      %73 = vector.extract_strided_slice %71 {offsets = [0, 8], sizes = [2, 8], strides = [1, 1]} : vector<2x64xf32> to vector<2x8xf32>
      %74 = arith.mulf %73, %38 : vector<2x8xf32>
      %75 = vector.extract_strided_slice %71 {offsets = [0, 0], sizes = [2, 8], strides = [1, 1]} : vector<2x64xf32> to vector<2x8xf32>
      %76 = vector.extract_strided_slice %72 {offsets = [0, 24], sizes = [2, 8], strides = [1, 1]} : vector<2x64xf32> to vector<2x8xf32>
      %77 = arith.mulf %75, %76 : vector<2x8xf32>
      %78 = arith.addf %74, %77 : vector<2x8xf32>
      %79 = vector.extract_strided_slice %71 {offsets = [0, 40], sizes = [2, 8], strides = [1, 1]} : vector<2x64xf32> to vector<2x8xf32>
      %80 = arith.mulf %79, %44 : vector<2x8xf32>
      %81 = vector.extract_strided_slice %71 {offsets = [0, 32], sizes = [2, 8], strides = [1, 1]} : vector<2x64xf32> to vector<2x8xf32>
      %82 = vector.extract_strided_slice %72 {offsets = [0, 56], sizes = [2, 8], strides = [1, 1]} : vector<2x64xf32> to vector<2x8xf32>
      %83 = arith.mulf %81, %82 : vector<2x8xf32>
      %84 = arith.addf %80, %83 : vector<2x8xf32>
      %85 = vector.extract_strided_slice %71 {offsets = [0, 16], sizes = [2, 8], strides = [1, 1]} : vector<2x64xf32> to vector<2x8xf32>
      %86 = math.tanh %78 : vector<2x8xf32>
      %87 = arith.mulf %85, %86 : vector<2x8xf32>
      %88 = vector.extract_strided_slice %71 {offsets = [0, 48], sizes = [2, 8], strides = [1, 1]} : vector<2x64xf32> to vector<2x8xf32>
      %89 = math.tanh %84 : vector<2x8xf32>
      %90 = arith.mulf %88, %89 : vector<2x8xf32>
      %c8_i32_26 = arith.constant 8 : i32
      %91 = arith.muli %arg7, %c8_i32_26 : i32
      %c2_i32_27 = arith.constant 2 : i32
      %92 = arith.addi %91, %c2_i32_27 : i32
      %c15_i32_28 = arith.constant 15 : i32
      %93 = arith.subi %c15_i32_28, %92 : i32
      %c2_i32_29 = arith.constant 2 : i32
      %94 = arith.muli %92, %c2_i32_29 : i32
      %95 = tpu.assume_multiple %94, 2 : i32
      %c2_i32_30 = arith.constant 2 : i32
      %96 = arith.muli %93, %c2_i32_30 : i32
      %97 = tpu.assume_multiple %96, 2 : i32
      %98 = arith.index_cast %95 : i32 to index
      %c0_31 = arith.constant 0 : index
      %99 = vector.load %arg6[%98, %c0_31] : memref<32x64xf32, #tpu.memory_space<vmem>>, vector<2x32xf32>
      %100 = arith.index_cast %97 : i32 to index
      %c32_32 = arith.constant 32 : index
      %101 = vector.load %arg6[%100, %c32_32] : memref<32x64xf32, #tpu.memory_space<vmem>>, vector<2x32xf32>
      %102 = tpu.concatenate %87, %90 in 1 : vector<2x8xf32>, vector<2x8xf32> -> vector<2x16xf32>
      %103 = arith.truncf %102 : vector<2x16xf32> to vector<2x16xbf16>
      %cst_33 = arith.constant dense<0.000000e+00> : vector<2x64xf32>
      %104 = tpu.matmul %103, %7, %cst_33 {dimension_numbers = #tpu.dot_dimension_numbers<[1], [0], [0], [1], [0, 0, 1, 1], [], []>} : vector<2x16xbf16>, vector<16x64xbf16>, vector<2x64xf32> -> vector<2x64xf32>
      %105 = tpu.concatenate %99, %101 in 1 : vector<2x32xf32>, vector<2x32xf32> -> vector<2x64xf32>
      %106 = arith.addf %105, %104 : vector<2x64xf32>
      %107 = arith.negf %106 : vector<2x64xf32>
      %108 = math.exp %107 : vector<2x64xf32>
      %cst_34 = arith.constant 1.000000e+00 : f32
      %109 = vector.broadcast %cst_34 : f32 to vector<2x64xf32>
      %110 = arith.addf %109, %108 : vector<2x64xf32>
      %111 = arith.divf %109, %110 : vector<2x64xf32>
      %112 = math.tanh %106 : vector<2x64xf32>
      %113 = vector.extract_strided_slice %111 {offsets = [0, 8], sizes = [2, 8], strides = [1, 1]} : vector<2x64xf32> to vector<2x8xf32>
      %114 = arith.mulf %113, %78 : vector<2x8xf32>
      %115 = vector.extract_strided_slice %111 {offsets = [0, 0], sizes = [2, 8], strides = [1, 1]} : vector<2x64xf32> to vector<2x8xf32>
      %116 = vector.extract_strided_slice %112 {offsets = [0, 24], sizes = [2, 8], strides = [1, 1]} : vector<2x64xf32> to vector<2x8xf32>
      %117 = arith.mulf %115, %116 : vector<2x8xf32>
      %118 = arith.addf %114, %117 : vector<2x8xf32>
      %119 = vector.extract_strided_slice %111 {offsets = [0, 40], sizes = [2, 8], strides = [1, 1]} : vector<2x64xf32> to vector<2x8xf32>
      %120 = arith.mulf %119, %84 : vector<2x8xf32>
      %121 = vector.extract_strided_slice %111 {offsets = [0, 32], sizes = [2, 8], strides = [1, 1]} : vector<2x64xf32> to vector<2x8xf32>
      %122 = vector.extract_strided_slice %112 {offsets = [0, 56], sizes = [2, 8], strides = [1, 1]} : vector<2x64xf32> to vector<2x8xf32>
      %123 = arith.mulf %121, %122 : vector<2x8xf32>
      %124 = arith.addf %120, %123 : vector<2x8xf32>
      %125 = vector.extract_strided_slice %111 {offsets = [0, 16], sizes = [2, 8], strides = [1, 1]} : vector<2x64xf32> to vector<2x8xf32>
      %126 = math.tanh %118 : vector<2x8xf32>
      %127 = arith.mulf %125, %126 : vector<2x8xf32>
      %128 = vector.extract_strided_slice %111 {offsets = [0, 48], sizes = [2, 8], strides = [1, 1]} : vector<2x64xf32> to vector<2x8xf32>
      %129 = math.tanh %124 : vector<2x8xf32>
      %130 = arith.mulf %128, %129 : vector<2x8xf32>
      %c8_i32_35 = arith.constant 8 : i32
      %131 = arith.muli %arg7, %c8_i32_35 : i32
      %c3_i32 = arith.constant 3 : i32
      %132 = arith.addi %131, %c3_i32 : i32
      %c15_i32_36 = arith.constant 15 : i32
      %133 = arith.subi %c15_i32_36, %132 : i32
      %c2_i32_37 = arith.constant 2 : i32
      %134 = arith.muli %132, %c2_i32_37 : i32
      %135 = tpu.assume_multiple %134, 2 : i32
      %c2_i32_38 = arith.constant 2 : i32
      %136 = arith.muli %133, %c2_i32_38 : i32
      %137 = tpu.assume_multiple %136, 2 : i32
      %138 = arith.index_cast %135 : i32 to index
      %c0_39 = arith.constant 0 : index
      %139 = vector.load %arg6[%138, %c0_39] : memref<32x64xf32, #tpu.memory_space<vmem>>, vector<2x32xf32>
      %140 = arith.index_cast %137 : i32 to index
      %c32_40 = arith.constant 32 : index
      %141 = vector.load %arg6[%140, %c32_40] : memref<32x64xf32, #tpu.memory_space<vmem>>, vector<2x32xf32>
      %142 = tpu.concatenate %127, %130 in 1 : vector<2x8xf32>, vector<2x8xf32> -> vector<2x16xf32>
      %143 = arith.truncf %142 : vector<2x16xf32> to vector<2x16xbf16>
      %cst_41 = arith.constant dense<0.000000e+00> : vector<2x64xf32>
      %144 = tpu.matmul %143, %7, %cst_41 {dimension_numbers = #tpu.dot_dimension_numbers<[1], [0], [0], [1], [0, 0, 1, 1], [], []>} : vector<2x16xbf16>, vector<16x64xbf16>, vector<2x64xf32> -> vector<2x64xf32>
      %145 = tpu.concatenate %139, %141 in 1 : vector<2x32xf32>, vector<2x32xf32> -> vector<2x64xf32>
      %146 = arith.addf %145, %144 : vector<2x64xf32>
      %147 = arith.negf %146 : vector<2x64xf32>
      %148 = math.exp %147 : vector<2x64xf32>
      %cst_42 = arith.constant 1.000000e+00 : f32
      %149 = vector.broadcast %cst_42 : f32 to vector<2x64xf32>
      %150 = arith.addf %149, %148 : vector<2x64xf32>
      %151 = arith.divf %149, %150 : vector<2x64xf32>
      %152 = math.tanh %146 : vector<2x64xf32>
      %153 = vector.extract_strided_slice %151 {offsets = [0, 8], sizes = [2, 8], strides = [1, 1]} : vector<2x64xf32> to vector<2x8xf32>
      %154 = arith.mulf %153, %118 : vector<2x8xf32>
      %155 = vector.extract_strided_slice %151 {offsets = [0, 0], sizes = [2, 8], strides = [1, 1]} : vector<2x64xf32> to vector<2x8xf32>
      %156 = vector.extract_strided_slice %152 {offsets = [0, 24], sizes = [2, 8], strides = [1, 1]} : vector<2x64xf32> to vector<2x8xf32>
      %157 = arith.mulf %155, %156 : vector<2x8xf32>
      %158 = arith.addf %154, %157 : vector<2x8xf32>
      %159 = vector.extract_strided_slice %151 {offsets = [0, 40], sizes = [2, 8], strides = [1, 1]} : vector<2x64xf32> to vector<2x8xf32>
      %160 = arith.mulf %159, %124 : vector<2x8xf32>
      %161 = vector.extract_strided_slice %151 {offsets = [0, 32], sizes = [2, 8], strides = [1, 1]} : vector<2x64xf32> to vector<2x8xf32>
      %162 = vector.extract_strided_slice %152 {offsets = [0, 56], sizes = [2, 8], strides = [1, 1]} : vector<2x64xf32> to vector<2x8xf32>
      %163 = arith.mulf %161, %162 : vector<2x8xf32>
      %164 = arith.addf %160, %163 : vector<2x8xf32>
      %165 = vector.extract_strided_slice %151 {offsets = [0, 16], sizes = [2, 8], strides = [1, 1]} : vector<2x64xf32> to vector<2x8xf32>
      %166 = math.tanh %158 : vector<2x8xf32>
      %167 = arith.mulf %165, %166 : vector<2x8xf32>
      %168 = vector.extract_strided_slice %151 {offsets = [0, 48], sizes = [2, 8], strides = [1, 1]} : vector<2x64xf32> to vector<2x8xf32>
      %169 = math.tanh %164 : vector<2x8xf32>
      %170 = arith.mulf %168, %169 : vector<2x8xf32>
      %c8_i32_43 = arith.constant 8 : i32
      %171 = arith.muli %arg7, %c8_i32_43 : i32
      %c4_i32 = arith.constant 4 : i32
      %172 = arith.addi %171, %c4_i32 : i32
      %c15_i32_44 = arith.constant 15 : i32
      %173 = arith.subi %c15_i32_44, %172 : i32
      %c2_i32_45 = arith.constant 2 : i32
      %174 = arith.muli %172, %c2_i32_45 : i32
      %175 = tpu.assume_multiple %174, 2 : i32
      %c2_i32_46 = arith.constant 2 : i32
      %176 = arith.muli %173, %c2_i32_46 : i32
      %177 = tpu.assume_multiple %176, 2 : i32
      %178 = arith.index_cast %175 : i32 to index
      %c0_47 = arith.constant 0 : index
      %179 = vector.load %arg6[%178, %c0_47] : memref<32x64xf32, #tpu.memory_space<vmem>>, vector<2x32xf32>
      %180 = arith.index_cast %177 : i32 to index
      %c32_48 = arith.constant 32 : index
      %181 = vector.load %arg6[%180, %c32_48] : memref<32x64xf32, #tpu.memory_space<vmem>>, vector<2x32xf32>
      %182 = tpu.concatenate %167, %170 in 1 : vector<2x8xf32>, vector<2x8xf32> -> vector<2x16xf32>
      %183 = arith.truncf %182 : vector<2x16xf32> to vector<2x16xbf16>
      %cst_49 = arith.constant dense<0.000000e+00> : vector<2x64xf32>
      %184 = tpu.matmul %183, %7, %cst_49 {dimension_numbers = #tpu.dot_dimension_numbers<[1], [0], [0], [1], [0, 0, 1, 1], [], []>} : vector<2x16xbf16>, vector<16x64xbf16>, vector<2x64xf32> -> vector<2x64xf32>
      %185 = tpu.concatenate %179, %181 in 1 : vector<2x32xf32>, vector<2x32xf32> -> vector<2x64xf32>
      %186 = arith.addf %185, %184 : vector<2x64xf32>
      %187 = arith.negf %186 : vector<2x64xf32>
      %188 = math.exp %187 : vector<2x64xf32>
      %cst_50 = arith.constant 1.000000e+00 : f32
      %189 = vector.broadcast %cst_50 : f32 to vector<2x64xf32>
      %190 = arith.addf %189, %188 : vector<2x64xf32>
      %191 = arith.divf %189, %190 : vector<2x64xf32>
      %192 = math.tanh %186 : vector<2x64xf32>
      %193 = vector.extract_strided_slice %191 {offsets = [0, 8], sizes = [2, 8], strides = [1, 1]} : vector<2x64xf32> to vector<2x8xf32>
      %194 = arith.mulf %193, %158 : vector<2x8xf32>
      %195 = vector.extract_strided_slice %191 {offsets = [0, 0], sizes = [2, 8], strides = [1, 1]} : vector<2x64xf32> to vector<2x8xf32>
      %196 = vector.extract_strided_slice %192 {offsets = [0, 24], sizes = [2, 8], strides = [1, 1]} : vector<2x64xf32> to vector<2x8xf32>
      %197 = arith.mulf %195, %196 : vector<2x8xf32>
      %198 = arith.addf %194, %197 : vector<2x8xf32>
      %199 = vector.extract_strided_slice %191 {offsets = [0, 40], sizes = [2, 8], strides = [1, 1]} : vector<2x64xf32> to vector<2x8xf32>
      %200 = arith.mulf %199, %164 : vector<2x8xf32>
      %201 = vector.extract_strided_slice %191 {offsets = [0, 32], sizes = [2, 8], strides = [1, 1]} : vector<2x64xf32> to vector<2x8xf32>
      %202 = vector.extract_strided_slice %192 {offsets = [0, 56], sizes = [2, 8], strides = [1, 1]} : vector<2x64xf32> to vector<2x8xf32>
      %203 = arith.mulf %201, %202 : vector<2x8xf32>
      %204 = arith.addf %200, %203 : vector<2x8xf32>
      %205 = vector.extract_strided_slice %191 {offsets = [0, 16], sizes = [2, 8], strides = [1, 1]} : vector<2x64xf32> to vector<2x8xf32>
      %206 = math.tanh %198 : vector<2x8xf32>
      %207 = arith.mulf %205, %206 : vector<2x8xf32>
      %208 = vector.extract_strided_slice %191 {offsets = [0, 48], sizes = [2, 8], strides = [1, 1]} : vector<2x64xf32> to vector<2x8xf32>
      %209 = math.tanh %204 : vector<2x8xf32>
      %210 = arith.mulf %208, %209 : vector<2x8xf32>
      %c8_i32_51 = arith.constant 8 : i32
      %211 = arith.muli %arg7, %c8_i32_51 : i32
      %c5_i32 = arith.constant 5 : i32
      %212 = arith.addi %211, %c5_i32 : i32
      %c15_i32_52 = arith.constant 15 : i32
      %213 = arith.subi %c15_i32_52, %212 : i32
      %c2_i32_53 = arith.constant 2 : i32
      %214 = arith.muli %212, %c2_i32_53 : i32
      %215 = tpu.assume_multiple %214, 2 : i32
      %c2_i32_54 = arith.constant 2 : i32
      %216 = arith.muli %213, %c2_i32_54 : i32
      %217 = tpu.assume_multiple %216, 2 : i32
      %218 = arith.index_cast %215 : i32 to index
      %c0_55 = arith.constant 0 : index
      %219 = vector.load %arg6[%218, %c0_55] : memref<32x64xf32, #tpu.memory_space<vmem>>, vector<2x32xf32>
      %220 = arith.index_cast %217 : i32 to index
      %c32_56 = arith.constant 32 : index
      %221 = vector.load %arg6[%220, %c32_56] : memref<32x64xf32, #tpu.memory_space<vmem>>, vector<2x32xf32>
      %222 = tpu.concatenate %207, %210 in 1 : vector<2x8xf32>, vector<2x8xf32> -> vector<2x16xf32>
      %223 = arith.truncf %222 : vector<2x16xf32> to vector<2x16xbf16>
      %cst_57 = arith.constant dense<0.000000e+00> : vector<2x64xf32>
      %224 = tpu.matmul %223, %7, %cst_57 {dimension_numbers = #tpu.dot_dimension_numbers<[1], [0], [0], [1], [0, 0, 1, 1], [], []>} : vector<2x16xbf16>, vector<16x64xbf16>, vector<2x64xf32> -> vector<2x64xf32>
      %225 = tpu.concatenate %219, %221 in 1 : vector<2x32xf32>, vector<2x32xf32> -> vector<2x64xf32>
      %226 = arith.addf %225, %224 : vector<2x64xf32>
      %227 = arith.negf %226 : vector<2x64xf32>
      %228 = math.exp %227 : vector<2x64xf32>
      %cst_58 = arith.constant 1.000000e+00 : f32
      %229 = vector.broadcast %cst_58 : f32 to vector<2x64xf32>
      %230 = arith.addf %229, %228 : vector<2x64xf32>
      %231 = arith.divf %229, %230 : vector<2x64xf32>
      %232 = math.tanh %226 : vector<2x64xf32>
      %233 = vector.extract_strided_slice %231 {offsets = [0, 8], sizes = [2, 8], strides = [1, 1]} : vector<2x64xf32> to vector<2x8xf32>
      %234 = arith.mulf %233, %198 : vector<2x8xf32>
      %235 = vector.extract_strided_slice %231 {offsets = [0, 0], sizes = [2, 8], strides = [1, 1]} : vector<2x64xf32> to vector<2x8xf32>
      %236 = vector.extract_strided_slice %232 {offsets = [0, 24], sizes = [2, 8], strides = [1, 1]} : vector<2x64xf32> to vector<2x8xf32>
      %237 = arith.mulf %235, %236 : vector<2x8xf32>
      %238 = arith.addf %234, %237 : vector<2x8xf32>
      %239 = vector.extract_strided_slice %231 {offsets = [0, 40], sizes = [2, 8], strides = [1, 1]} : vector<2x64xf32> to vector<2x8xf32>
      %240 = arith.mulf %239, %204 : vector<2x8xf32>
      %241 = vector.extract_strided_slice %231 {offsets = [0, 32], sizes = [2, 8], strides = [1, 1]} : vector<2x64xf32> to vector<2x8xf32>
      %242 = vector.extract_strided_slice %232 {offsets = [0, 56], sizes = [2, 8], strides = [1, 1]} : vector<2x64xf32> to vector<2x8xf32>
      %243 = arith.mulf %241, %242 : vector<2x8xf32>
      %244 = arith.addf %240, %243 : vector<2x8xf32>
      %245 = vector.extract_strided_slice %231 {offsets = [0, 16], sizes = [2, 8], strides = [1, 1]} : vector<2x64xf32> to vector<2x8xf32>
      %246 = math.tanh %238 : vector<2x8xf32>
      %247 = arith.mulf %245, %246 : vector<2x8xf32>
      %248 = vector.extract_strided_slice %231 {offsets = [0, 48], sizes = [2, 8], strides = [1, 1]} : vector<2x64xf32> to vector<2x8xf32>
      %249 = math.tanh %244 : vector<2x8xf32>
      %250 = arith.mulf %248, %249 : vector<2x8xf32>
      %c8_i32_59 = arith.constant 8 : i32
      %251 = arith.muli %arg7, %c8_i32_59 : i32
      %c6_i32 = arith.constant 6 : i32
      %252 = arith.addi %251, %c6_i32 : i32
      %c15_i32_60 = arith.constant 15 : i32
      %253 = arith.subi %c15_i32_60, %252 : i32
      %c2_i32_61 = arith.constant 2 : i32
      %254 = arith.muli %252, %c2_i32_61 : i32
      %255 = tpu.assume_multiple %254, 2 : i32
      %c2_i32_62 = arith.constant 2 : i32
      %256 = arith.muli %253, %c2_i32_62 : i32
      %257 = tpu.assume_multiple %256, 2 : i32
      %258 = arith.index_cast %255 : i32 to index
      %c0_63 = arith.constant 0 : index
      %259 = vector.load %arg6[%258, %c0_63] : memref<32x64xf32, #tpu.memory_space<vmem>>, vector<2x32xf32>
      %260 = arith.index_cast %257 : i32 to index
      %c32_64 = arith.constant 32 : index
      %261 = vector.load %arg6[%260, %c32_64] : memref<32x64xf32, #tpu.memory_space<vmem>>, vector<2x32xf32>
      %262 = tpu.concatenate %247, %250 in 1 : vector<2x8xf32>, vector<2x8xf32> -> vector<2x16xf32>
      %263 = arith.truncf %262 : vector<2x16xf32> to vector<2x16xbf16>
      %cst_65 = arith.constant dense<0.000000e+00> : vector<2x64xf32>
      %264 = tpu.matmul %263, %7, %cst_65 {dimension_numbers = #tpu.dot_dimension_numbers<[1], [0], [0], [1], [0, 0, 1, 1], [], []>} : vector<2x16xbf16>, vector<16x64xbf16>, vector<2x64xf32> -> vector<2x64xf32>
      %265 = tpu.concatenate %259, %261 in 1 : vector<2x32xf32>, vector<2x32xf32> -> vector<2x64xf32>
      %266 = arith.addf %265, %264 : vector<2x64xf32>
      %267 = arith.negf %266 : vector<2x64xf32>
      %268 = math.exp %267 : vector<2x64xf32>
      %cst_66 = arith.constant 1.000000e+00 : f32
      %269 = vector.broadcast %cst_66 : f32 to vector<2x64xf32>
      %270 = arith.addf %269, %268 : vector<2x64xf32>
      %271 = arith.divf %269, %270 : vector<2x64xf32>
      %272 = math.tanh %266 : vector<2x64xf32>
      %273 = vector.extract_strided_slice %271 {offsets = [0, 8], sizes = [2, 8], strides = [1, 1]} : vector<2x64xf32> to vector<2x8xf32>
      %274 = arith.mulf %273, %238 : vector<2x8xf32>
      %275 = vector.extract_strided_slice %271 {offsets = [0, 0], sizes = [2, 8], strides = [1, 1]} : vector<2x64xf32> to vector<2x8xf32>
      %276 = vector.extract_strided_slice %272 {offsets = [0, 24], sizes = [2, 8], strides = [1, 1]} : vector<2x64xf32> to vector<2x8xf32>
      %277 = arith.mulf %275, %276 : vector<2x8xf32>
      %278 = arith.addf %274, %277 : vector<2x8xf32>
      %279 = vector.extract_strided_slice %271 {offsets = [0, 40], sizes = [2, 8], strides = [1, 1]} : vector<2x64xf32> to vector<2x8xf32>
      %280 = arith.mulf %279, %244 : vector<2x8xf32>
      %281 = vector.extract_strided_slice %271 {offsets = [0, 32], sizes = [2, 8], strides = [1, 1]} : vector<2x64xf32> to vector<2x8xf32>
      %282 = vector.extract_strided_slice %272 {offsets = [0, 56], sizes = [2, 8], strides = [1, 1]} : vector<2x64xf32> to vector<2x8xf32>
      %283 = arith.mulf %281, %282 : vector<2x8xf32>
      %284 = arith.addf %280, %283 : vector<2x8xf32>
      %285 = vector.extract_strided_slice %271 {offsets = [0, 16], sizes = [2, 8], strides = [1, 1]} : vector<2x64xf32> to vector<2x8xf32>
      %286 = math.tanh %278 : vector<2x8xf32>
      %287 = arith.mulf %285, %286 : vector<2x8xf32>
      %288 = vector.extract_strided_slice %271 {offsets = [0, 48], sizes = [2, 8], strides = [1, 1]} : vector<2x64xf32> to vector<2x8xf32>
      %289 = math.tanh %284 : vector<2x8xf32>
      %290 = arith.mulf %288, %289 : vector<2x8xf32>
      %c8_i32_67 = arith.constant 8 : i32
      %291 = arith.muli %arg7, %c8_i32_67 : i32
      %c7_i32 = arith.constant 7 : i32
      %292 = arith.addi %291, %c7_i32 : i32
      %c15_i32_68 = arith.constant 15 : i32
      %293 = arith.subi %c15_i32_68, %292 : i32
      %c2_i32_69 = arith.constant 2 : i32
      %294 = arith.muli %292, %c2_i32_69 : i32
      %295 = tpu.assume_multiple %294, 2 : i32
      %c2_i32_70 = arith.constant 2 : i32
      %296 = arith.muli %293, %c2_i32_70 : i32
      %297 = tpu.assume_multiple %296, 2 : i32
      %298 = arith.index_cast %295 : i32 to index
      %c0_71 = arith.constant 0 : index
      %299 = vector.load %arg6[%298, %c0_71] : memref<32x64xf32, #tpu.memory_space<vmem>>, vector<2x32xf32>
      %300 = arith.index_cast %297 : i32 to index
      %c32_72 = arith.constant 32 : index
      %301 = vector.load %arg6[%300, %c32_72] : memref<32x64xf32, #tpu.memory_space<vmem>>, vector<2x32xf32>
      %302 = tpu.concatenate %287, %290 in 1 : vector<2x8xf32>, vector<2x8xf32> -> vector<2x16xf32>
      %303 = arith.truncf %302 : vector<2x16xf32> to vector<2x16xbf16>
      %cst_73 = arith.constant dense<0.000000e+00> : vector<2x64xf32>
      %304 = tpu.matmul %303, %7, %cst_73 {dimension_numbers = #tpu.dot_dimension_numbers<[1], [0], [0], [1], [0, 0, 1, 1], [], []>} : vector<2x16xbf16>, vector<16x64xbf16>, vector<2x64xf32> -> vector<2x64xf32>
      %305 = tpu.concatenate %299, %301 in 1 : vector<2x32xf32>, vector<2x32xf32> -> vector<2x64xf32>
      %306 = arith.addf %305, %304 : vector<2x64xf32>
      %307 = arith.negf %306 : vector<2x64xf32>
      %308 = math.exp %307 : vector<2x64xf32>
      %cst_74 = arith.constant 1.000000e+00 : f32
      %309 = vector.broadcast %cst_74 : f32 to vector<2x64xf32>
      %310 = arith.addf %309, %308 : vector<2x64xf32>
      %311 = arith.divf %309, %310 : vector<2x64xf32>
      %312 = math.tanh %306 : vector<2x64xf32>
      %313 = vector.extract_strided_slice %311 {offsets = [0, 8], sizes = [2, 8], strides = [1, 1]} : vector<2x64xf32> to vector<2x8xf32>
      %314 = arith.mulf %313, %278 : vector<2x8xf32>
      %315 = vector.extract_strided_slice %311 {offsets = [0, 0], sizes = [2, 8], strides = [1, 1]} : vector<2x64xf32> to vector<2x8xf32>
      %316 = vector.extract_strided_slice %312 {offsets = [0, 24], sizes = [2, 8], strides = [1, 1]} : vector<2x64xf32> to vector<2x8xf32>
      %317 = arith.mulf %315, %316 : vector<2x8xf32>
      %318 = arith.addf %314, %317 : vector<2x8xf32>
      %319 = vector.extract_strided_slice %311 {offsets = [0, 40], sizes = [2, 8], strides = [1, 1]} : vector<2x64xf32> to vector<2x8xf32>
      %320 = arith.mulf %319, %284 : vector<2x8xf32>
      %321 = vector.extract_strided_slice %311 {offsets = [0, 32], sizes = [2, 8], strides = [1, 1]} : vector<2x64xf32> to vector<2x8xf32>
      %322 = vector.extract_strided_slice %312 {offsets = [0, 56], sizes = [2, 8], strides = [1, 1]} : vector<2x64xf32> to vector<2x8xf32>
      %323 = arith.mulf %321, %322 : vector<2x8xf32>
      %324 = arith.addf %320, %323 : vector<2x8xf32>
      %325 = vector.extract_strided_slice %311 {offsets = [0, 16], sizes = [2, 8], strides = [1, 1]} : vector<2x64xf32> to vector<2x8xf32>
      %326 = math.tanh %318 : vector<2x8xf32>
      %327 = arith.mulf %325, %326 : vector<2x8xf32>
      %328 = vector.extract_strided_slice %311 {offsets = [0, 48], sizes = [2, 8], strides = [1, 1]} : vector<2x64xf32> to vector<2x8xf32>
      %329 = math.tanh %324 : vector<2x8xf32>
      %330 = arith.mulf %328, %329 : vector<2x8xf32>
      %c16_i32 = arith.constant 16 : i32
      %331 = arith.muli %arg7, %c16_i32 : i32
      %332 = tpu.assume_multiple %331, 16 : i32
      %333 = tpu.concatenate %47, %87, %127, %167, %207, %247, %287, %327 in 0 : vector<2x8xf32>, vector<2x8xf32>, vector<2x8xf32>, vector<2x8xf32>, vector<2x8xf32>, vector<2x8xf32>, vector<2x8xf32>, vector<2x8xf32> -> vector<16x8xf32>
      %334 = arith.index_cast %332 : i32 to index
      %c0_75 = arith.constant 0 : index
      %335 = vector.load %arg5[%334, %c0_75] : memref<32x16xf32, #tpu.memory_space<vmem>>, vector<16x8xf32>
      tpu.vector_store %arg5[%334, %c0_75], %333 {strides = array<i32>} : memref<32x16xf32, #tpu.memory_space<vmem>>, vector<16x8xf32>,
      %c1_i32_76 = arith.constant 1 : i32
      %336 = arith.addi %arg7, %c1_i32_76 : i32
      %c16_i32_77 = arith.constant 16 : i32
      %337 = arith.muli %336, %c16_i32_77 : i32
      %c32_i32 = arith.constant 32 : i32
      %338 = arith.subi %c32_i32, %337 : i32
      %339 = tpu.assume_multiple %338, 16 : i32
      %340 = tpu.concatenate %330, %290, %250, %210, %170, %130, %90, %50 in 0 : vector<2x8xf32>, vector<2x8xf32>, vector<2x8xf32>, vector<2x8xf32>, vector<2x8xf32>, vector<2x8xf32>, vector<2x8xf32>, vector<2x8xf32> -> vector<16x8xf32>
      %341 = arith.index_cast %339 : i32 to index
      %c8 = arith.constant 8 : index
      %342 = vector.load %arg5[%341, %c8] : memref<32x16xf32, #tpu.memory_space<vmem>>, vector<16x8xf32>
      tpu.vector_store %arg5[%341, %c8], %340 {strides = array<i32>} : memref<32x16xf32, #tpu.memory_space<vmem>>, vector<16x8xf32>,
      scf.yield %327, %318, %330, %324 : vector<2x8xf32>, vector<2x8xf32>, vector<2x8xf32>, vector<2x8xf32>
    }
    %c2_i32_10 = arith.constant 2 : i32
    return
  }
  func.func @transform_0(%arg0: i32) -> (i32, i32) {
    %c0_i32 = arith.constant 0 : i32
    %c0_i32_0 = arith.constant 0 : i32
    %c0_i32_1 = arith.constant 0 : i32
    return %c0_i32, %c0_i32_0 : i32, i32
  }
  func.func @transform_1(%arg0: i32) -> (i32, i32) {
    %c0_i32 = arith.constant 0 : i32
    %c0_i32_0 = arith.constant 0 : i32
    %c0_i32_1 = arith.constant 0 : i32
    return %c0_i32, %c0_i32_0 : i32, i32
  }
  func.func @transform_2(%arg0: i32) -> (i32, i32) {
    %c0_i32 = arith.constant 0 : i32
    %c0_i32_0 = arith.constant 0 : i32
    %c0_i32_1 = arith.constant 0 : i32
    return %c0_i32, %c0_i32_0 : i32, i32
  }
  func.func @transform_3(%arg0: i32) -> (i32, i32) {
    %c0_i32 = arith.constant 0 : i32
    %c0_i32_0 = arith.constant 0 : i32
    %c0_i32_1 = arith.constant 0 : i32
    return %c0_i32, %c0_i32_0 : i32, i32
  }
  func.func @transform_4(%arg0: i32) -> (i32, i32) {
    %c0_i32 = arith.constant 0 : i32
    %c0_i32_0 = arith.constant 0 : i32
    %c0_i32_1 = arith.constant 0 : i32
    return %c0_i32, %c0_i32_0 : i32, i32
  }
}

module attributes {stable_mosaic.version = 11 : i64} {
  func.func @bilstm_kernel(%arg0: i32, %arg1: memref<32x16xf32, #tpu.memory_space<vmem>>, %arg2: memref<16x64xbf16, #tpu.memory_space<vmem>>, %arg3: memref<16x64xbf16, #tpu.memory_space<vmem>>, %arg4: memref<1x64xf32, #tpu.memory_space<vmem>>, %arg5: memref<32x16xf32, #tpu.memory_space<vmem>>, %arg6: memref<32x64xf32, #tpu.memory_space<vmem>>) attributes {dimension_semantics = [#tpu.dimension_semantics<arbitrary>], iteration_bounds = array<i64: 1>, scalar_prefetch = 0 : i64, scratch_operands = 1 : i64, tpu.core_type = #tpu.core_type<tc>, window_params = [{pipeline_mode = #tpu.pipeline_mode<synchronous>, transform_indices = @transform_0, window_bounds = array<i64: 32, 16>}, {pipeline_mode = #tpu.pipeline_mode<synchronous>, transform_indices = @transform_1, window_bounds = array<i64: 16, 64>}, {pipeline_mode = #tpu.pipeline_mode<synchronous>, transform_indices = @transform_2, window_bounds = array<i64: 16, 64>}, {pipeline_mode = #tpu.pipeline_mode<synchronous>, transform_indices = @transform_3, window_bounds = array<i64: 1, 64>}, {pipeline_mode = #tpu.pipeline_mode<synchronous>, transform_indices = @transform_4, window_bounds = array<i64: 32, 16>}]} {
    %c0 = arith.constant 0 : index
    %c0_0 = arith.constant 0 : index
    %0 = vector.load %arg1[%c0, %c0_0] : memref<32x16xf32, #tpu.memory_space<vmem>>, vector<32x16xf32>
    %1 = arith.truncf %0 : vector<32x16xf32> to vector<32x16xbf16>
    %c0_1 = arith.constant 0 : index
    %c0_2 = arith.constant 0 : index
    %2 = vector.load %arg2[%c0_1, %c0_2] : memref<16x64xbf16, #tpu.memory_space<vmem>>, vector<16x64xbf16>
    %cst = arith.constant dense<0.000000e+00> : vector<32x64xf32>
    %3 = tpu.matmul %1, %2, %cst {dimension_numbers = #tpu.dot_dimension_numbers<[1], [0], [0], [1], [0, 0, 1, 1], [], []>} : vector<32x16xbf16>, vector<16x64xbf16>, vector<32x64xf32> -> vector<32x64xf32>
    %c0_3 = arith.constant 0 : index
    %c0_4 = arith.constant 0 : index
    %4 = vector.load %arg4[%c0_3, %c0_4] : memref<1x64xf32, #tpu.memory_space<vmem>>, vector<1x64xf32>
    %5 = vector.broadcast %4 : vector<1x64xf32> to vector<32x64xf32>
    %6 = arith.addf %3, %5 : vector<32x64xf32>
    %c0_5 = arith.constant 0 : index
    %c0_6 = arith.constant 0 : index
    %7 = vector.load %arg6[%c0_5, %c0_6] : memref<32x64xf32, #tpu.memory_space<vmem>>, vector<32x64xf32>
    tpu.vector_store %arg6[%c0_5, %c0_6], %6 {strides = array<i32>} : memref<32x64xf32, #tpu.memory_space<vmem>>, vector<32x64xf32>,
    %c0_7 = arith.constant 0 : index
    %c0_8 = arith.constant 0 : index
    %8 = vector.load %arg3[%c0_7, %c0_8] : memref<16x64xbf16, #tpu.memory_space<vmem>>, vector<16x64xbf16>
    %cst_9 = arith.constant 0.000000e+00 : f32
    %9 = vector.broadcast %cst_9 : f32 to vector<2x8xf32>
    %c0_i32 = arith.constant 0 : i32
    %c2_i32 = arith.constant 2 : i32
    %10 = arith.addi %c0_i32, %c2_i32 : i32
    %c1_i32 = arith.constant 1 : i32
    %11:4 = scf.for %arg7 = %c0_i32 to %10 step %c1_i32 iter_args(%arg8 = %9, %arg9 = %9, %arg10 = %9, %arg11 = %9) -> (vector<2x8xf32>, vector<2x8xf32>, vector<2x8xf32>, vector<2x8xf32>)  : i32 {
      %c8_i32 = arith.constant 8 : i32
      %12 = arith.muli %arg7, %c8_i32 : i32
      %c0_i32_11 = arith.constant 0 : i32
      %13 = arith.addi %12, %c0_i32_11 : i32
      %c15_i32 = arith.constant 15 : i32
      %14 = arith.subi %c15_i32, %13 : i32
      %c2_i32_12 = arith.constant 2 : i32
      %15 = arith.muli %13, %c2_i32_12 : i32
      %16 = tpu.assume_multiple %15, 2 : i32
      %c2_i32_13 = arith.constant 2 : i32
      %17 = arith.muli %14, %c2_i32_13 : i32
      %18 = tpu.assume_multiple %17, 2 : i32
      %19 = arith.index_cast %16 : i32 to index
      %c0_14 = arith.constant 0 : index
      %20 = vector.load %arg6[%19, %c0_14] : memref<32x64xf32, #tpu.memory_space<vmem>>, vector<2x32xf32>
      %21 = arith.index_cast %18 : i32 to index
      %c32 = arith.constant 32 : index
      %22 = vector.load %arg6[%21, %c32] : memref<32x64xf32, #tpu.memory_space<vmem>>, vector<2x32xf32>
      %23 = tpu.concatenate %arg8, %arg10 in 1 : vector<2x8xf32>, vector<2x8xf32> -> vector<2x16xf32>
      %24 = arith.truncf %23 : vector<2x16xf32> to vector<2x16xbf16>
      %cst_15 = arith.constant dense<0.000000e+00> : vector<2x64xf32>
      %25 = tpu.matmul %24, %8, %cst_15 {dimension_numbers = #tpu.dot_dimension_numbers<[1], [0], [0], [1], [0, 0, 1, 1], [], []>} : vector<2x16xbf16>, vector<16x64xbf16>, vector<2x64xf32> -> vector<2x64xf32>
      %26 = tpu.concatenate %20, %22 in 1 : vector<2x32xf32>, vector<2x32xf32> -> vector<2x64xf32>
      %27 = arith.addf %26, %25 : vector<2x64xf32>
      %28 = arith.negf %27 : vector<2x64xf32>
      %29 = math.exp %28 : vector<2x64xf32>
      %cst_16 = arith.constant 1.000000e+00 : f32
      %30 = vector.broadcast %cst_16 : f32 to vector<2x64xf32>
      %31 = arith.addf %30, %29 : vector<2x64xf32>
      %32 = arith.divf %30, %31 : vector<2x64xf32>
      %33 = math.tanh %27 : vector<2x64xf32>
      %34 = vector.extract_strided_slice %32 {offsets = [0, 8], sizes = [2, 8], strides = [1, 1]} : vector<2x64xf32> to vector<2x8xf32>
      %35 = arith.mulf %34, %arg9 : vector<2x8xf32>
      %36 = vector.extract_strided_slice %32 {offsets = [0, 0], sizes = [2, 8], strides = [1, 1]} : vector<2x64xf32> to vector<2x8xf32>
      %37 = vector.extract_strided_slice %33 {offsets = [0, 24], sizes = [2, 8], strides = [1, 1]} : vector<2x64xf32> to vector<2x8xf32>
      %38 = arith.mulf %36, %37 : vector<2x8xf32>
      %39 = arith.addf %35, %38 : vector<2x8xf32>
      %40 = vector.extract_strided_slice %32 {offsets = [0, 40], sizes = [2, 8], strides = [1, 1]} : vector<2x64xf32> to vector<2x8xf32>
      %41 = arith.mulf %40, %arg11 : vector<2x8xf32>
      %42 = vector.extract_strided_slice %32 {offsets = [0, 32], sizes = [2, 8], strides = [1, 1]} : vector<2x64xf32> to vector<2x8xf32>
      %43 = vector.extract_strided_slice %33 {offsets = [0, 56], sizes = [2, 8], strides = [1, 1]} : vector<2x64xf32> to vector<2x8xf32>
      %44 = arith.mulf %42, %43 : vector<2x8xf32>
      %45 = arith.addf %41, %44 : vector<2x8xf32>
      %46 = vector.extract_strided_slice %32 {offsets = [0, 16], sizes = [2, 8], strides = [1, 1]} : vector<2x64xf32> to vector<2x8xf32>
      %47 = math.tanh %39 : vector<2x8xf32>
      %48 = arith.mulf %46, %47 : vector<2x8xf32>
      %49 = vector.extract_strided_slice %32 {offsets = [0, 48], sizes = [2, 8], strides = [1, 1]} : vector<2x64xf32> to vector<2x8xf32>
      %50 = math.tanh %45 : vector<2x8xf32>
      %51 = arith.mulf %49, %50 : vector<2x8xf32>
      %c8_i32_17 = arith.constant 8 : i32
      %52 = arith.muli %arg7, %c8_i32_17 : i32
      %c1_i32_18 = arith.constant 1 : i32
      %53 = arith.addi %52, %c1_i32_18 : i32
      %c15_i32_19 = arith.constant 15 : i32
      %54 = arith.subi %c15_i32_19, %53 : i32
      %c2_i32_20 = arith.constant 2 : i32
      %55 = arith.muli %53, %c2_i32_20 : i32
      %56 = tpu.assume_multiple %55, 2 : i32
      %c2_i32_21 = arith.constant 2 : i32
      %57 = arith.muli %54, %c2_i32_21 : i32
      %58 = tpu.assume_multiple %57, 2 : i32
      %59 = arith.index_cast %56 : i32 to index
      %c0_22 = arith.constant 0 : index
      %60 = vector.load %arg6[%59, %c0_22] : memref<32x64xf32, #tpu.memory_space<vmem>>, vector<2x32xf32>
      %61 = arith.index_cast %58 : i32 to index
      %c32_23 = arith.constant 32 : index
      %62 = vector.load %arg6[%61, %c32_23] : memref<32x64xf32, #tpu.memory_space<vmem>>, vector<2x32xf32>
      %63 = tpu.concatenate %48, %51 in 1 : vector<2x8xf32>, vector<2x8xf32> -> vector<2x16xf32>
      %64 = arith.truncf %63 : vector<2x16xf32> to vector<2x16xbf16>
      %cst_24 = arith.constant dense<0.000000e+00> : vector<2x64xf32>
      %65 = tpu.matmul %64, %8, %cst_24 {dimension_numbers = #tpu.dot_dimension_numbers<[1], [0], [0], [1], [0, 0, 1, 1], [], []>} : vector<2x16xbf16>, vector<16x64xbf16>, vector<2x64xf32> -> vector<2x64xf32>
      %66 = tpu.concatenate %60, %62 in 1 : vector<2x32xf32>, vector<2x32xf32> -> vector<2x64xf32>
      %67 = arith.addf %66, %65 : vector<2x64xf32>
      %68 = arith.negf %67 : vector<2x64xf32>
      %69 = math.exp %68 : vector<2x64xf32>
      %cst_25 = arith.constant 1.000000e+00 : f32
      %70 = vector.broadcast %cst_25 : f32 to vector<2x64xf32>
      %71 = arith.addf %70, %69 : vector<2x64xf32>
      %72 = arith.divf %70, %71 : vector<2x64xf32>
      %73 = math.tanh %67 : vector<2x64xf32>
      %74 = vector.extract_strided_slice %72 {offsets = [0, 8], sizes = [2, 8], strides = [1, 1]} : vector<2x64xf32> to vector<2x8xf32>
      %75 = arith.mulf %74, %39 : vector<2x8xf32>
      %76 = vector.extract_strided_slice %72 {offsets = [0, 0], sizes = [2, 8], strides = [1, 1]} : vector<2x64xf32> to vector<2x8xf32>
      %77 = vector.extract_strided_slice %73 {offsets = [0, 24], sizes = [2, 8], strides = [1, 1]} : vector<2x64xf32> to vector<2x8xf32>
      %78 = arith.mulf %76, %77 : vector<2x8xf32>
      %79 = arith.addf %75, %78 : vector<2x8xf32>
      %80 = vector.extract_strided_slice %72 {offsets = [0, 40], sizes = [2, 8], strides = [1, 1]} : vector<2x64xf32> to vector<2x8xf32>
      %81 = arith.mulf %80, %45 : vector<2x8xf32>
      %82 = vector.extract_strided_slice %72 {offsets = [0, 32], sizes = [2, 8], strides = [1, 1]} : vector<2x64xf32> to vector<2x8xf32>
      %83 = vector.extract_strided_slice %73 {offsets = [0, 56], sizes = [2, 8], strides = [1, 1]} : vector<2x64xf32> to vector<2x8xf32>
      %84 = arith.mulf %82, %83 : vector<2x8xf32>
      %85 = arith.addf %81, %84 : vector<2x8xf32>
      %86 = vector.extract_strided_slice %72 {offsets = [0, 16], sizes = [2, 8], strides = [1, 1]} : vector<2x64xf32> to vector<2x8xf32>
      %87 = math.tanh %79 : vector<2x8xf32>
      %88 = arith.mulf %86, %87 : vector<2x8xf32>
      %89 = vector.extract_strided_slice %72 {offsets = [0, 48], sizes = [2, 8], strides = [1, 1]} : vector<2x64xf32> to vector<2x8xf32>
      %90 = math.tanh %85 : vector<2x8xf32>
      %91 = arith.mulf %89, %90 : vector<2x8xf32>
      %c8_i32_26 = arith.constant 8 : i32
      %92 = arith.muli %arg7, %c8_i32_26 : i32
      %c2_i32_27 = arith.constant 2 : i32
      %93 = arith.addi %92, %c2_i32_27 : i32
      %c15_i32_28 = arith.constant 15 : i32
      %94 = arith.subi %c15_i32_28, %93 : i32
      %c2_i32_29 = arith.constant 2 : i32
      %95 = arith.muli %93, %c2_i32_29 : i32
      %96 = tpu.assume_multiple %95, 2 : i32
      %c2_i32_30 = arith.constant 2 : i32
      %97 = arith.muli %94, %c2_i32_30 : i32
      %98 = tpu.assume_multiple %97, 2 : i32
      %99 = arith.index_cast %96 : i32 to index
      %c0_31 = arith.constant 0 : index
      %100 = vector.load %arg6[%99, %c0_31] : memref<32x64xf32, #tpu.memory_space<vmem>>, vector<2x32xf32>
      %101 = arith.index_cast %98 : i32 to index
      %c32_32 = arith.constant 32 : index
      %102 = vector.load %arg6[%101, %c32_32] : memref<32x64xf32, #tpu.memory_space<vmem>>, vector<2x32xf32>
      %103 = tpu.concatenate %88, %91 in 1 : vector<2x8xf32>, vector<2x8xf32> -> vector<2x16xf32>
      %104 = arith.truncf %103 : vector<2x16xf32> to vector<2x16xbf16>
      %cst_33 = arith.constant dense<0.000000e+00> : vector<2x64xf32>
      %105 = tpu.matmul %104, %8, %cst_33 {dimension_numbers = #tpu.dot_dimension_numbers<[1], [0], [0], [1], [0, 0, 1, 1], [], []>} : vector<2x16xbf16>, vector<16x64xbf16>, vector<2x64xf32> -> vector<2x64xf32>
      %106 = tpu.concatenate %100, %102 in 1 : vector<2x32xf32>, vector<2x32xf32> -> vector<2x64xf32>
      %107 = arith.addf %106, %105 : vector<2x64xf32>
      %108 = arith.negf %107 : vector<2x64xf32>
      %109 = math.exp %108 : vector<2x64xf32>
      %cst_34 = arith.constant 1.000000e+00 : f32
      %110 = vector.broadcast %cst_34 : f32 to vector<2x64xf32>
      %111 = arith.addf %110, %109 : vector<2x64xf32>
      %112 = arith.divf %110, %111 : vector<2x64xf32>
      %113 = math.tanh %107 : vector<2x64xf32>
      %114 = vector.extract_strided_slice %112 {offsets = [0, 8], sizes = [2, 8], strides = [1, 1]} : vector<2x64xf32> to vector<2x8xf32>
      %115 = arith.mulf %114, %79 : vector<2x8xf32>
      %116 = vector.extract_strided_slice %112 {offsets = [0, 0], sizes = [2, 8], strides = [1, 1]} : vector<2x64xf32> to vector<2x8xf32>
      %117 = vector.extract_strided_slice %113 {offsets = [0, 24], sizes = [2, 8], strides = [1, 1]} : vector<2x64xf32> to vector<2x8xf32>
      %118 = arith.mulf %116, %117 : vector<2x8xf32>
      %119 = arith.addf %115, %118 : vector<2x8xf32>
      %120 = vector.extract_strided_slice %112 {offsets = [0, 40], sizes = [2, 8], strides = [1, 1]} : vector<2x64xf32> to vector<2x8xf32>
      %121 = arith.mulf %120, %85 : vector<2x8xf32>
      %122 = vector.extract_strided_slice %112 {offsets = [0, 32], sizes = [2, 8], strides = [1, 1]} : vector<2x64xf32> to vector<2x8xf32>
      %123 = vector.extract_strided_slice %113 {offsets = [0, 56], sizes = [2, 8], strides = [1, 1]} : vector<2x64xf32> to vector<2x8xf32>
      %124 = arith.mulf %122, %123 : vector<2x8xf32>
      %125 = arith.addf %121, %124 : vector<2x8xf32>
      %126 = vector.extract_strided_slice %112 {offsets = [0, 16], sizes = [2, 8], strides = [1, 1]} : vector<2x64xf32> to vector<2x8xf32>
      %127 = math.tanh %119 : vector<2x8xf32>
      %128 = arith.mulf %126, %127 : vector<2x8xf32>
      %129 = vector.extract_strided_slice %112 {offsets = [0, 48], sizes = [2, 8], strides = [1, 1]} : vector<2x64xf32> to vector<2x8xf32>
      %130 = math.tanh %125 : vector<2x8xf32>
      %131 = arith.mulf %129, %130 : vector<2x8xf32>
      %c8_i32_35 = arith.constant 8 : i32
      %132 = arith.muli %arg7, %c8_i32_35 : i32
      %c3_i32 = arith.constant 3 : i32
      %133 = arith.addi %132, %c3_i32 : i32
      %c15_i32_36 = arith.constant 15 : i32
      %134 = arith.subi %c15_i32_36, %133 : i32
      %c2_i32_37 = arith.constant 2 : i32
      %135 = arith.muli %133, %c2_i32_37 : i32
      %136 = tpu.assume_multiple %135, 2 : i32
      %c2_i32_38 = arith.constant 2 : i32
      %137 = arith.muli %134, %c2_i32_38 : i32
      %138 = tpu.assume_multiple %137, 2 : i32
      %139 = arith.index_cast %136 : i32 to index
      %c0_39 = arith.constant 0 : index
      %140 = vector.load %arg6[%139, %c0_39] : memref<32x64xf32, #tpu.memory_space<vmem>>, vector<2x32xf32>
      %141 = arith.index_cast %138 : i32 to index
      %c32_40 = arith.constant 32 : index
      %142 = vector.load %arg6[%141, %c32_40] : memref<32x64xf32, #tpu.memory_space<vmem>>, vector<2x32xf32>
      %143 = tpu.concatenate %128, %131 in 1 : vector<2x8xf32>, vector<2x8xf32> -> vector<2x16xf32>
      %144 = arith.truncf %143 : vector<2x16xf32> to vector<2x16xbf16>
      %cst_41 = arith.constant dense<0.000000e+00> : vector<2x64xf32>
      %145 = tpu.matmul %144, %8, %cst_41 {dimension_numbers = #tpu.dot_dimension_numbers<[1], [0], [0], [1], [0, 0, 1, 1], [], []>} : vector<2x16xbf16>, vector<16x64xbf16>, vector<2x64xf32> -> vector<2x64xf32>
      %146 = tpu.concatenate %140, %142 in 1 : vector<2x32xf32>, vector<2x32xf32> -> vector<2x64xf32>
      %147 = arith.addf %146, %145 : vector<2x64xf32>
      %148 = arith.negf %147 : vector<2x64xf32>
      %149 = math.exp %148 : vector<2x64xf32>
      %cst_42 = arith.constant 1.000000e+00 : f32
      %150 = vector.broadcast %cst_42 : f32 to vector<2x64xf32>
      %151 = arith.addf %150, %149 : vector<2x64xf32>
      %152 = arith.divf %150, %151 : vector<2x64xf32>
      %153 = math.tanh %147 : vector<2x64xf32>
      %154 = vector.extract_strided_slice %152 {offsets = [0, 8], sizes = [2, 8], strides = [1, 1]} : vector<2x64xf32> to vector<2x8xf32>
      %155 = arith.mulf %154, %119 : vector<2x8xf32>
      %156 = vector.extract_strided_slice %152 {offsets = [0, 0], sizes = [2, 8], strides = [1, 1]} : vector<2x64xf32> to vector<2x8xf32>
      %157 = vector.extract_strided_slice %153 {offsets = [0, 24], sizes = [2, 8], strides = [1, 1]} : vector<2x64xf32> to vector<2x8xf32>
      %158 = arith.mulf %156, %157 : vector<2x8xf32>
      %159 = arith.addf %155, %158 : vector<2x8xf32>
      %160 = vector.extract_strided_slice %152 {offsets = [0, 40], sizes = [2, 8], strides = [1, 1]} : vector<2x64xf32> to vector<2x8xf32>
      %161 = arith.mulf %160, %125 : vector<2x8xf32>
      %162 = vector.extract_strided_slice %152 {offsets = [0, 32], sizes = [2, 8], strides = [1, 1]} : vector<2x64xf32> to vector<2x8xf32>
      %163 = vector.extract_strided_slice %153 {offsets = [0, 56], sizes = [2, 8], strides = [1, 1]} : vector<2x64xf32> to vector<2x8xf32>
      %164 = arith.mulf %162, %163 : vector<2x8xf32>
      %165 = arith.addf %161, %164 : vector<2x8xf32>
      %166 = vector.extract_strided_slice %152 {offsets = [0, 16], sizes = [2, 8], strides = [1, 1]} : vector<2x64xf32> to vector<2x8xf32>
      %167 = math.tanh %159 : vector<2x8xf32>
      %168 = arith.mulf %166, %167 : vector<2x8xf32>
      %169 = vector.extract_strided_slice %152 {offsets = [0, 48], sizes = [2, 8], strides = [1, 1]} : vector<2x64xf32> to vector<2x8xf32>
      %170 = math.tanh %165 : vector<2x8xf32>
      %171 = arith.mulf %169, %170 : vector<2x8xf32>
      %c8_i32_43 = arith.constant 8 : i32
      %172 = arith.muli %arg7, %c8_i32_43 : i32
      %c4_i32 = arith.constant 4 : i32
      %173 = arith.addi %172, %c4_i32 : i32
      %c15_i32_44 = arith.constant 15 : i32
      %174 = arith.subi %c15_i32_44, %173 : i32
      %c2_i32_45 = arith.constant 2 : i32
      %175 = arith.muli %173, %c2_i32_45 : i32
      %176 = tpu.assume_multiple %175, 2 : i32
      %c2_i32_46 = arith.constant 2 : i32
      %177 = arith.muli %174, %c2_i32_46 : i32
      %178 = tpu.assume_multiple %177, 2 : i32
      %179 = arith.index_cast %176 : i32 to index
      %c0_47 = arith.constant 0 : index
      %180 = vector.load %arg6[%179, %c0_47] : memref<32x64xf32, #tpu.memory_space<vmem>>, vector<2x32xf32>
      %181 = arith.index_cast %178 : i32 to index
      %c32_48 = arith.constant 32 : index
      %182 = vector.load %arg6[%181, %c32_48] : memref<32x64xf32, #tpu.memory_space<vmem>>, vector<2x32xf32>
      %183 = tpu.concatenate %168, %171 in 1 : vector<2x8xf32>, vector<2x8xf32> -> vector<2x16xf32>
      %184 = arith.truncf %183 : vector<2x16xf32> to vector<2x16xbf16>
      %cst_49 = arith.constant dense<0.000000e+00> : vector<2x64xf32>
      %185 = tpu.matmul %184, %8, %cst_49 {dimension_numbers = #tpu.dot_dimension_numbers<[1], [0], [0], [1], [0, 0, 1, 1], [], []>} : vector<2x16xbf16>, vector<16x64xbf16>, vector<2x64xf32> -> vector<2x64xf32>
      %186 = tpu.concatenate %180, %182 in 1 : vector<2x32xf32>, vector<2x32xf32> -> vector<2x64xf32>
      %187 = arith.addf %186, %185 : vector<2x64xf32>
      %188 = arith.negf %187 : vector<2x64xf32>
      %189 = math.exp %188 : vector<2x64xf32>
      %cst_50 = arith.constant 1.000000e+00 : f32
      %190 = vector.broadcast %cst_50 : f32 to vector<2x64xf32>
      %191 = arith.addf %190, %189 : vector<2x64xf32>
      %192 = arith.divf %190, %191 : vector<2x64xf32>
      %193 = math.tanh %187 : vector<2x64xf32>
      %194 = vector.extract_strided_slice %192 {offsets = [0, 8], sizes = [2, 8], strides = [1, 1]} : vector<2x64xf32> to vector<2x8xf32>
      %195 = arith.mulf %194, %159 : vector<2x8xf32>
      %196 = vector.extract_strided_slice %192 {offsets = [0, 0], sizes = [2, 8], strides = [1, 1]} : vector<2x64xf32> to vector<2x8xf32>
      %197 = vector.extract_strided_slice %193 {offsets = [0, 24], sizes = [2, 8], strides = [1, 1]} : vector<2x64xf32> to vector<2x8xf32>
      %198 = arith.mulf %196, %197 : vector<2x8xf32>
      %199 = arith.addf %195, %198 : vector<2x8xf32>
      %200 = vector.extract_strided_slice %192 {offsets = [0, 40], sizes = [2, 8], strides = [1, 1]} : vector<2x64xf32> to vector<2x8xf32>
      %201 = arith.mulf %200, %165 : vector<2x8xf32>
      %202 = vector.extract_strided_slice %192 {offsets = [0, 32], sizes = [2, 8], strides = [1, 1]} : vector<2x64xf32> to vector<2x8xf32>
      %203 = vector.extract_strided_slice %193 {offsets = [0, 56], sizes = [2, 8], strides = [1, 1]} : vector<2x64xf32> to vector<2x8xf32>
      %204 = arith.mulf %202, %203 : vector<2x8xf32>
      %205 = arith.addf %201, %204 : vector<2x8xf32>
      %206 = vector.extract_strided_slice %192 {offsets = [0, 16], sizes = [2, 8], strides = [1, 1]} : vector<2x64xf32> to vector<2x8xf32>
      %207 = math.tanh %199 : vector<2x8xf32>
      %208 = arith.mulf %206, %207 : vector<2x8xf32>
      %209 = vector.extract_strided_slice %192 {offsets = [0, 48], sizes = [2, 8], strides = [1, 1]} : vector<2x64xf32> to vector<2x8xf32>
      %210 = math.tanh %205 : vector<2x8xf32>
      %211 = arith.mulf %209, %210 : vector<2x8xf32>
      %c8_i32_51 = arith.constant 8 : i32
      %212 = arith.muli %arg7, %c8_i32_51 : i32
      %c5_i32 = arith.constant 5 : i32
      %213 = arith.addi %212, %c5_i32 : i32
      %c15_i32_52 = arith.constant 15 : i32
      %214 = arith.subi %c15_i32_52, %213 : i32
      %c2_i32_53 = arith.constant 2 : i32
      %215 = arith.muli %213, %c2_i32_53 : i32
      %216 = tpu.assume_multiple %215, 2 : i32
      %c2_i32_54 = arith.constant 2 : i32
      %217 = arith.muli %214, %c2_i32_54 : i32
      %218 = tpu.assume_multiple %217, 2 : i32
      %219 = arith.index_cast %216 : i32 to index
      %c0_55 = arith.constant 0 : index
      %220 = vector.load %arg6[%219, %c0_55] : memref<32x64xf32, #tpu.memory_space<vmem>>, vector<2x32xf32>
      %221 = arith.index_cast %218 : i32 to index
      %c32_56 = arith.constant 32 : index
      %222 = vector.load %arg6[%221, %c32_56] : memref<32x64xf32, #tpu.memory_space<vmem>>, vector<2x32xf32>
      %223 = tpu.concatenate %208, %211 in 1 : vector<2x8xf32>, vector<2x8xf32> -> vector<2x16xf32>
      %224 = arith.truncf %223 : vector<2x16xf32> to vector<2x16xbf16>
      %cst_57 = arith.constant dense<0.000000e+00> : vector<2x64xf32>
      %225 = tpu.matmul %224, %8, %cst_57 {dimension_numbers = #tpu.dot_dimension_numbers<[1], [0], [0], [1], [0, 0, 1, 1], [], []>} : vector<2x16xbf16>, vector<16x64xbf16>, vector<2x64xf32> -> vector<2x64xf32>
      %226 = tpu.concatenate %220, %222 in 1 : vector<2x32xf32>, vector<2x32xf32> -> vector<2x64xf32>
      %227 = arith.addf %226, %225 : vector<2x64xf32>
      %228 = arith.negf %227 : vector<2x64xf32>
      %229 = math.exp %228 : vector<2x64xf32>
      %cst_58 = arith.constant 1.000000e+00 : f32
      %230 = vector.broadcast %cst_58 : f32 to vector<2x64xf32>
      %231 = arith.addf %230, %229 : vector<2x64xf32>
      %232 = arith.divf %230, %231 : vector<2x64xf32>
      %233 = math.tanh %227 : vector<2x64xf32>
      %234 = vector.extract_strided_slice %232 {offsets = [0, 8], sizes = [2, 8], strides = [1, 1]} : vector<2x64xf32> to vector<2x8xf32>
      %235 = arith.mulf %234, %199 : vector<2x8xf32>
      %236 = vector.extract_strided_slice %232 {offsets = [0, 0], sizes = [2, 8], strides = [1, 1]} : vector<2x64xf32> to vector<2x8xf32>
      %237 = vector.extract_strided_slice %233 {offsets = [0, 24], sizes = [2, 8], strides = [1, 1]} : vector<2x64xf32> to vector<2x8xf32>
      %238 = arith.mulf %236, %237 : vector<2x8xf32>
      %239 = arith.addf %235, %238 : vector<2x8xf32>
      %240 = vector.extract_strided_slice %232 {offsets = [0, 40], sizes = [2, 8], strides = [1, 1]} : vector<2x64xf32> to vector<2x8xf32>
      %241 = arith.mulf %240, %205 : vector<2x8xf32>
      %242 = vector.extract_strided_slice %232 {offsets = [0, 32], sizes = [2, 8], strides = [1, 1]} : vector<2x64xf32> to vector<2x8xf32>
      %243 = vector.extract_strided_slice %233 {offsets = [0, 56], sizes = [2, 8], strides = [1, 1]} : vector<2x64xf32> to vector<2x8xf32>
      %244 = arith.mulf %242, %243 : vector<2x8xf32>
      %245 = arith.addf %241, %244 : vector<2x8xf32>
      %246 = vector.extract_strided_slice %232 {offsets = [0, 16], sizes = [2, 8], strides = [1, 1]} : vector<2x64xf32> to vector<2x8xf32>
      %247 = math.tanh %239 : vector<2x8xf32>
      %248 = arith.mulf %246, %247 : vector<2x8xf32>
      %249 = vector.extract_strided_slice %232 {offsets = [0, 48], sizes = [2, 8], strides = [1, 1]} : vector<2x64xf32> to vector<2x8xf32>
      %250 = math.tanh %245 : vector<2x8xf32>
      %251 = arith.mulf %249, %250 : vector<2x8xf32>
      %c8_i32_59 = arith.constant 8 : i32
      %252 = arith.muli %arg7, %c8_i32_59 : i32
      %c6_i32 = arith.constant 6 : i32
      %253 = arith.addi %252, %c6_i32 : i32
      %c15_i32_60 = arith.constant 15 : i32
      %254 = arith.subi %c15_i32_60, %253 : i32
      %c2_i32_61 = arith.constant 2 : i32
      %255 = arith.muli %253, %c2_i32_61 : i32
      %256 = tpu.assume_multiple %255, 2 : i32
      %c2_i32_62 = arith.constant 2 : i32
      %257 = arith.muli %254, %c2_i32_62 : i32
      %258 = tpu.assume_multiple %257, 2 : i32
      %259 = arith.index_cast %256 : i32 to index
      %c0_63 = arith.constant 0 : index
      %260 = vector.load %arg6[%259, %c0_63] : memref<32x64xf32, #tpu.memory_space<vmem>>, vector<2x32xf32>
      %261 = arith.index_cast %258 : i32 to index
      %c32_64 = arith.constant 32 : index
      %262 = vector.load %arg6[%261, %c32_64] : memref<32x64xf32, #tpu.memory_space<vmem>>, vector<2x32xf32>
      %263 = tpu.concatenate %248, %251 in 1 : vector<2x8xf32>, vector<2x8xf32> -> vector<2x16xf32>
      %264 = arith.truncf %263 : vector<2x16xf32> to vector<2x16xbf16>
      %cst_65 = arith.constant dense<0.000000e+00> : vector<2x64xf32>
      %265 = tpu.matmul %264, %8, %cst_65 {dimension_numbers = #tpu.dot_dimension_numbers<[1], [0], [0], [1], [0, 0, 1, 1], [], []>} : vector<2x16xbf16>, vector<16x64xbf16>, vector<2x64xf32> -> vector<2x64xf32>
      %266 = tpu.concatenate %260, %262 in 1 : vector<2x32xf32>, vector<2x32xf32> -> vector<2x64xf32>
      %267 = arith.addf %266, %265 : vector<2x64xf32>
      %268 = arith.negf %267 : vector<2x64xf32>
      %269 = math.exp %268 : vector<2x64xf32>
      %cst_66 = arith.constant 1.000000e+00 : f32
      %270 = vector.broadcast %cst_66 : f32 to vector<2x64xf32>
      %271 = arith.addf %270, %269 : vector<2x64xf32>
      %272 = arith.divf %270, %271 : vector<2x64xf32>
      %273 = math.tanh %267 : vector<2x64xf32>
      %274 = vector.extract_strided_slice %272 {offsets = [0, 8], sizes = [2, 8], strides = [1, 1]} : vector<2x64xf32> to vector<2x8xf32>
      %275 = arith.mulf %274, %239 : vector<2x8xf32>
      %276 = vector.extract_strided_slice %272 {offsets = [0, 0], sizes = [2, 8], strides = [1, 1]} : vector<2x64xf32> to vector<2x8xf32>
      %277 = vector.extract_strided_slice %273 {offsets = [0, 24], sizes = [2, 8], strides = [1, 1]} : vector<2x64xf32> to vector<2x8xf32>
      %278 = arith.mulf %276, %277 : vector<2x8xf32>
      %279 = arith.addf %275, %278 : vector<2x8xf32>
      %280 = vector.extract_strided_slice %272 {offsets = [0, 40], sizes = [2, 8], strides = [1, 1]} : vector<2x64xf32> to vector<2x8xf32>
      %281 = arith.mulf %280, %245 : vector<2x8xf32>
      %282 = vector.extract_strided_slice %272 {offsets = [0, 32], sizes = [2, 8], strides = [1, 1]} : vector<2x64xf32> to vector<2x8xf32>
      %283 = vector.extract_strided_slice %273 {offsets = [0, 56], sizes = [2, 8], strides = [1, 1]} : vector<2x64xf32> to vector<2x8xf32>
      %284 = arith.mulf %282, %283 : vector<2x8xf32>
      %285 = arith.addf %281, %284 : vector<2x8xf32>
      %286 = vector.extract_strided_slice %272 {offsets = [0, 16], sizes = [2, 8], strides = [1, 1]} : vector<2x64xf32> to vector<2x8xf32>
      %287 = math.tanh %279 : vector<2x8xf32>
      %288 = arith.mulf %286, %287 : vector<2x8xf32>
      %289 = vector.extract_strided_slice %272 {offsets = [0, 48], sizes = [2, 8], strides = [1, 1]} : vector<2x64xf32> to vector<2x8xf32>
      %290 = math.tanh %285 : vector<2x8xf32>
      %291 = arith.mulf %289, %290 : vector<2x8xf32>
      %c8_i32_67 = arith.constant 8 : i32
      %292 = arith.muli %arg7, %c8_i32_67 : i32
      %c7_i32 = arith.constant 7 : i32
      %293 = arith.addi %292, %c7_i32 : i32
      %c15_i32_68 = arith.constant 15 : i32
      %294 = arith.subi %c15_i32_68, %293 : i32
      %c2_i32_69 = arith.constant 2 : i32
      %295 = arith.muli %293, %c2_i32_69 : i32
      %296 = tpu.assume_multiple %295, 2 : i32
      %c2_i32_70 = arith.constant 2 : i32
      %297 = arith.muli %294, %c2_i32_70 : i32
      %298 = tpu.assume_multiple %297, 2 : i32
      %299 = arith.index_cast %296 : i32 to index
      %c0_71 = arith.constant 0 : index
      %300 = vector.load %arg6[%299, %c0_71] : memref<32x64xf32, #tpu.memory_space<vmem>>, vector<2x32xf32>
      %301 = arith.index_cast %298 : i32 to index
      %c32_72 = arith.constant 32 : index
      %302 = vector.load %arg6[%301, %c32_72] : memref<32x64xf32, #tpu.memory_space<vmem>>, vector<2x32xf32>
      %303 = tpu.concatenate %288, %291 in 1 : vector<2x8xf32>, vector<2x8xf32> -> vector<2x16xf32>
      %304 = arith.truncf %303 : vector<2x16xf32> to vector<2x16xbf16>
      %cst_73 = arith.constant dense<0.000000e+00> : vector<2x64xf32>
      %305 = tpu.matmul %304, %8, %cst_73 {dimension_numbers = #tpu.dot_dimension_numbers<[1], [0], [0], [1], [0, 0, 1, 1], [], []>} : vector<2x16xbf16>, vector<16x64xbf16>, vector<2x64xf32> -> vector<2x64xf32>
      %306 = tpu.concatenate %300, %302 in 1 : vector<2x32xf32>, vector<2x32xf32> -> vector<2x64xf32>
      %307 = arith.addf %306, %305 : vector<2x64xf32>
      %308 = arith.negf %307 : vector<2x64xf32>
      %309 = math.exp %308 : vector<2x64xf32>
      %cst_74 = arith.constant 1.000000e+00 : f32
      %310 = vector.broadcast %cst_74 : f32 to vector<2x64xf32>
      %311 = arith.addf %310, %309 : vector<2x64xf32>
      %312 = arith.divf %310, %311 : vector<2x64xf32>
      %313 = math.tanh %307 : vector<2x64xf32>
      %314 = vector.extract_strided_slice %312 {offsets = [0, 8], sizes = [2, 8], strides = [1, 1]} : vector<2x64xf32> to vector<2x8xf32>
      %315 = arith.mulf %314, %279 : vector<2x8xf32>
      %316 = vector.extract_strided_slice %312 {offsets = [0, 0], sizes = [2, 8], strides = [1, 1]} : vector<2x64xf32> to vector<2x8xf32>
      %317 = vector.extract_strided_slice %313 {offsets = [0, 24], sizes = [2, 8], strides = [1, 1]} : vector<2x64xf32> to vector<2x8xf32>
      %318 = arith.mulf %316, %317 : vector<2x8xf32>
      %319 = arith.addf %315, %318 : vector<2x8xf32>
      %320 = vector.extract_strided_slice %312 {offsets = [0, 40], sizes = [2, 8], strides = [1, 1]} : vector<2x64xf32> to vector<2x8xf32>
      %321 = arith.mulf %320, %285 : vector<2x8xf32>
      %322 = vector.extract_strided_slice %312 {offsets = [0, 32], sizes = [2, 8], strides = [1, 1]} : vector<2x64xf32> to vector<2x8xf32>
      %323 = vector.extract_strided_slice %313 {offsets = [0, 56], sizes = [2, 8], strides = [1, 1]} : vector<2x64xf32> to vector<2x8xf32>
      %324 = arith.mulf %322, %323 : vector<2x8xf32>
      %325 = arith.addf %321, %324 : vector<2x8xf32>
      %326 = vector.extract_strided_slice %312 {offsets = [0, 16], sizes = [2, 8], strides = [1, 1]} : vector<2x64xf32> to vector<2x8xf32>
      %327 = math.tanh %319 : vector<2x8xf32>
      %328 = arith.mulf %326, %327 : vector<2x8xf32>
      %329 = vector.extract_strided_slice %312 {offsets = [0, 48], sizes = [2, 8], strides = [1, 1]} : vector<2x64xf32> to vector<2x8xf32>
      %330 = math.tanh %325 : vector<2x8xf32>
      %331 = arith.mulf %329, %330 : vector<2x8xf32>
      %c16_i32 = arith.constant 16 : i32
      %332 = arith.muli %arg7, %c16_i32 : i32
      %333 = tpu.assume_multiple %332, 16 : i32
      %334 = tpu.concatenate %48, %88, %128, %168, %208, %248, %288, %328 in 0 : vector<2x8xf32>, vector<2x8xf32>, vector<2x8xf32>, vector<2x8xf32>, vector<2x8xf32>, vector<2x8xf32>, vector<2x8xf32>, vector<2x8xf32> -> vector<16x8xf32>
      %335 = arith.index_cast %333 : i32 to index
      %c0_75 = arith.constant 0 : index
      %336 = vector.load %arg5[%335, %c0_75] : memref<32x16xf32, #tpu.memory_space<vmem>>, vector<16x8xf32>
      tpu.vector_store %arg5[%335, %c0_75], %334 {strides = array<i32>} : memref<32x16xf32, #tpu.memory_space<vmem>>, vector<16x8xf32>,
      %c1_i32_76 = arith.constant 1 : i32
      %337 = arith.addi %arg7, %c1_i32_76 : i32
      %c16_i32_77 = arith.constant 16 : i32
      %338 = arith.muli %337, %c16_i32_77 : i32
      %c32_i32 = arith.constant 32 : i32
      %339 = arith.subi %c32_i32, %338 : i32
      %340 = tpu.assume_multiple %339, 16 : i32
      %341 = tpu.concatenate %331, %291, %251, %211, %171, %131, %91, %51 in 0 : vector<2x8xf32>, vector<2x8xf32>, vector<2x8xf32>, vector<2x8xf32>, vector<2x8xf32>, vector<2x8xf32>, vector<2x8xf32>, vector<2x8xf32> -> vector<16x8xf32>
      %342 = arith.index_cast %340 : i32 to index
      %c8 = arith.constant 8 : index
      %343 = vector.load %arg5[%342, %c8] : memref<32x16xf32, #tpu.memory_space<vmem>>, vector<16x8xf32>
      tpu.vector_store %arg5[%342, %c8], %341 {strides = array<i32>} : memref<32x16xf32, #tpu.memory_space<vmem>>, vector<16x8xf32>,
      scf.yield %328, %319, %331, %325 : vector<2x8xf32>, vector<2x8xf32>, vector<2x8xf32>, vector<2x8xf32>
    }
    %c2_i32_10 = arith.constant 2 : i32
    return
  }
  func.func @transform_0(%arg0: i32) -> (i32, i32) {
    %c0_i32 = arith.constant 0 : i32
    %c0_i32_0 = arith.constant 0 : i32
    %c0_i32_1 = arith.constant 0 : i32
    return %c0_i32, %c0_i32_0 : i32, i32
  }
  func.func @transform_1(%arg0: i32) -> (i32, i32) {
    %c0_i32 = arith.constant 0 : i32
    %c0_i32_0 = arith.constant 0 : i32
    %c0_i32_1 = arith.constant 0 : i32
    return %c0_i32, %c0_i32_0 : i32, i32
  }
  func.func @transform_2(%arg0: i32) -> (i32, i32) {
    %c0_i32 = arith.constant 0 : i32
    %c0_i32_0 = arith.constant 0 : i32
    %c0_i32_1 = arith.constant 0 : i32
    return %c0_i32, %c0_i32_0 : i32, i32
  }
  func.func @transform_3(%arg0: i32) -> (i32, i32) {
    %c0_i32 = arith.constant 0 : i32
    %c0_i32_0 = arith.constant 0 : i32
    %c0_i32_1 = arith.constant 0 : i32
    return %c0_i32, %c0_i32_0 : i32, i32
  }
  func.func @transform_4(%arg0: i32) -> (i32, i32) {
    %c0_i32 = arith.constant 0 : i32
    %c0_i32_0 = arith.constant 0 : i32
    %c0_i32_1 = arith.constant 0 : i32
    return %c0_i32, %c0_i32_0 : i32, i32
  }
}

</mosaic_0001>

<bundles_post_ra>
// kernel: encoder_forward.5
= control target key start
LH: loop header
LB: loop body
LE: loop exit
PB: predicated region body
PF: predicated region fallthrough
CT: control target
= control target key end

     0   :  { %vm39_vm0 = vcmask 130048   ;;  %vm95_vm1 = vcmask 523264   ;;  %v1347_v18 = vmov 0.0   ;;  %v1349_v19 = vmov 0.0   ;;  %s1559_s1 = inlined_call_operand.vmem [shape: bf16[16,64], index: 1, kind: input, shape index: {}]   ;;  %s1560_s4 = inlined_call_operand.vmem [shape: f32[32,16], index: 4, kind: output, shape index: {}]   ;;  %s1561_s0 = inlined_call_operand.vmem [shape: f32[32,16], index: 0, kind: input, shape index: {}]   ;;  %s1562_s2 = inlined_call_operand.vmem [shape: bf16[16,64], index: 2, kind: input, shape index: {}]   ;;  %s1563_s3 = inlined_call_operand.vmem [shape: f32[1,64], index: 3, kind: input, shape index: {}]  }
   0x1   :  { %v1189_v0 = vld [vmem:[%s1559_s1] sm:$0xff]   ;;  %v19_v2 = vld [vmem:[%s1561_s0 + $0x8] sm:$0xff]  ;;  %v20_v3 = vld [vmem:[%s1561_s0 + $0x10] sm:$0xff]  ;;  %v1351_v20 = vmov 0.0  }
   0x2   :  { %v18_v1 = vld [vmem:[%s1561_s0] sm:$0xff]  ;;  %1097 = vmatprep.subr.bf16.mxu0 %v1189_v0  ;;  %v21_v5 = vld [vmem:[%s1561_s0 + $0x18] sm:$0xff]  ;;  %s1353_s0 = smov 0  }
   0x3   :  { %v22_v4 = vpack.c.bf16 %v19_v2, %v18_v1  ;;  %1098 = vmatpush3.bf16.msra.mxu0 %v1189_v0  ;;  %v23_v6 = vpack.c.bf16 %v21_v5, %v20_v3  ;;  %v1337_v7 = vld [vmem:[%s1562_s2] sm:$0xf]  ;;  %v1342_v8 = vld [vmem:[%s1562_s2 + $0x4] sm:$0xf] }
   0x4   :  { %v1016_v9 = vld [vmem:[%s1563_s3] ss:$0 sm:$0xff] }
   0x5   :  { %1099 = vmatprep.mubr.msk.bf16.mxu0 %vm39_vm0, %v22_v4 }
   0x6   :  { %1100 = vmatmul.mubr.msk.bf16.vlgmr.msra.gmra.mrb[0].mxu0 %vm39_vm0, %v23_v6 }
  0xd9   :  { %v1101_v10 = vpop.f32.mrb[0].mxu0 }
  0xda   :  { %v89_v11 = vadd.f32 %v1101_v10, %v1016_v9  ;;  %v80_v12 = vpop.f32.mrb[1].mxu0 }
  0xdb   :  { %v81_v13 = vadd.f32 %v1016_v9, %v80_v12  ;;  %v1102_v14 = vpop.f32.mrb[2].mxu0 }
  0xdc   :  { %98 = vst.msk [vmem:[#allocation2 + $0x10] sm:$0xff] %vm95_vm1, %v89_v11  ;;  %v92_v15 = vadd.f32 %v1102_v14, %v1016_v9  ;;  %v83_v16 = vpop.f32.mrb[3].mxu0 }
  0xdd   :  { %96 = vst.msk [vmem:[#allocation2] sm:$0xff] %vm95_vm1, %v81_v13  ;;  %v84_v17 = vadd.f32 %v1016_v9, %v83_v16 }
  0xde   :  { %99 = vst.msk [vmem:[#allocation2 + $0x18] sm:$0xff] %vm95_vm1, %v92_v15 }
  0xdf   :  { %97 = vst.msk [vmem:[#allocation2 + $0x8] sm:$0xff] %vm95_vm1, %v84_v17 }
  0xe0 LB: > { %v1286_v21 = vmov 0.0   ;;  %v1364_v22 = vcombine.low %v1337_v7, %v1342_v8  ;;  %s1287_s2 = smov 112   ;;  %vm1288_vm2 = vmmov 0   ;;  %s1289_s3 = smov 88   ;;  %vm128_vm3 = vcmask 64512   ;;  %s1284_s0 = sphi %s1353_s0, %s107_s0   ;;  %v1280_v20 = vphi %v1351_v20, %v873_v20   ;;  %v1276_v19 = vphi %v1349_v19, %v865_v19   ;;  %v1272_v18 = vphi %v1347_v18, %v879_v18  }
  0xe1   : > { %1103 = vmatprep.subr.bf16.mxu0 %v1286_v21  ;;  %1109 = vmatprep.subr.bf16.mxu1 %v1286_v21  ;;  %s1384_s30 = sshll.u32 %s1284_s0, 3  ;;  %s1388_s6 = sshll.u32 %s1284_s0, 4  ;;  %vm180_vm4 = vcmask 261120   ;;  %vm893_vm5 = vcmask 1041408   ;;  %vm895_vm6 = vcmask 1043456   ;;  %vm897_vm7 = vcmask 1045504  }
  0xe2   : > { %121 = vrot.lane.b32.xlu0 %v1280_v20, %s1287_s2  ;;  %1105 = vmatprep.mubr.msk.bf16.mxu0 %vm1288_vm2, %v1286_v21  ;;  %s113_s5 = ssub.s32 15, %s1384_s30  ;;  %s1391_s8 = scalar_lea.vmem [#allocation2], %s1388_s6  ;;  %vm943_vm8 = vcmask 130112  }
  0xe3   : > { %1104 = vmatpush3.bf16.msra.mxu0 %v1364_v22  ;;  %1110 = vmatpush3.bf16.msra.mxu1 %v1364_v22  ;;  %s1022_s7 = sshll.u32 %s113_s5, 1  ;;  %s1290_s10 = smov 104  }
  0xe4   : > { %1111 = vmatprep.mubr.msk.bf16.mxu1 %vm1288_vm2, %v1286_v21  ;;  %1115 = vmatprep.subr.bf16.mxu0 %v1286_v21  ;;  %s118_s9 = scalar_lea.vmem [#allocation2], %s1022_s7  ;;  %s1291_s11 = smov 8  }
  0xe5   : > { %1121 = vmatprep.subr.bf16.mxu1 %v1286_v21  ;;  %s216_s12 = ssub.s32 14, %s1384_s30  ;;  %s311_s15 = ssub.s32 13, %s1384_s30 }
  0xe6   : > { %125 = vrot.lane.b32.xlu0 %v1272_v18, %s1289_s3  ;;  %v117_v27 = vld [vmem:[%s1391_s8] sm:$0x3]  ;;  %s1026_s13 = sshll.u32 %s216_s12, 1  ;;  %v1029_v54 = vld [vmem:[%s1391_s8 + $0x2] sm:$0x3]  ;;  %s1032_s16 = sshll.u32 %s311_s15, 1 }
  0xe7   : > { %v119_v28 = vld [vmem:[%s118_s9] sm:$0x3]  ;;  %s221_s14 = scalar_lea.vmem [#allocation2], %s1026_s13  ;;  %s316_s17 = scalar_lea.vmem [#allocation2], %s1032_s16 }
  0xe8   : > { %v181_v29 = vsel %vm180_vm4, %v117_v27, %v119_v28  ;;  %v222_v55 = vld [vmem:[%s221_s14] sm:$0x3]  ;;  %s406_s18 = ssub.s32 12, %s1384_s30  ;;  %s501_s21 = ssub.s32 11, %s1384_s30 }
  0xe9   : > { %v276_v56 = vsel %vm180_vm4, %v1029_v54, %v222_v55  ;;  %v317_v20 = vld [vmem:[%s316_s17] sm:$0x3]  ;;  %s1038_s19 = sshll.u32 %s406_s18, 1  ;;  %v1041_v54 = vld [vmem:[%s1391_s8 + $0x6] sm:$0x3]  ;;  %s1044_s22 = sshll.u32 %s501_s21, 1 }
  0xea   : > { %s411_s20 = scalar_lea.vmem [#allocation2], %s1038_s19  ;;  %s506_s23 = scalar_lea.vmem [#allocation2], %s1044_s22 }
  0xeb   : > { %s596_s24 = ssub.s32 10, %s1384_s30  ;;  %s691_s26 = ssub.s32 9, %s1384_s30 }
  0xec   : > { %s1050_s1 = sshll.u32 %s596_s24, 1  ;;  %s1056_s27 = sshll.u32 %s691_s26, 1 }
  0xed   : > { %s601_s25 = scalar_lea.vmem [#allocation2], %s1050_s1  ;;  %s696_s28 = scalar_lea.vmem [#allocation2], %s1056_s27 }
  0xee   : > { %s786_s29 = ssub.s32 8, %s1384_s30  ;;  %s910_s9 = scalar_lea.vmem %s1560_s4, %s1388_s6 }
  0xef   : > { %s1062_s5 = sshll.u32 %s786_s29, 1  ;;  %s107_s0 = sadd.s32 1, %s1284_s0  }
  0xf0   : > { %s791_s7 = scalar_lea.vmem [#allocation2], %s1062_s5  ;;  %p104_p0 = scmp.ge.s32.totalorder %s107_s0, 2  }
 0x154   : > { %v122_v23 = vpop.permute.xlu0 %121 }
 0x158   : > { %v126_v24 = vpop.permute.xlu0 %125 }
 0x159   : > { %v129_v25 = vsel %vm128_vm3, %v122_v23, %v126_v24 }
 0x15a   : > { %v130_v26 = vpack.c.bf16 %v129_v25, %v129_v25 }
 0x15c   : > { %1106 = vmatmul.mubr.msk.bf16.vlgmr.msra.gmra.mrb[0].mxu0 %vm39_vm0, %v130_v26 }
 0x15d   : > { %1116 = vmatpush3.bf16.msra.mxu0 %v1364_v22  ;;  %1117 = vmatprep.mubr.msk.bf16.mxu0 %vm1288_vm2, %v1286_v21 }
 0x15e   : > { %1127 = vmatprep.subr.bf16.mxu0 %v1286_v21 }
 0x22f   : > { %v174_v30 = vpop.f32.mrb[0].mxu0 }
 0x230   : > { %v182_v31 = vadd.f32 %v181_v29, %v174_v30  ;;  %v1107_v32 = vpop.f32.mrb[1].mxu0 }
 0x231   : > { %v177_v33 = vpop.f32.mrb[2].mxu0 }
 0x232   : > { %1190 = vtanh.f32 %v182_v31  ;;  %v1108_v34 = vpop.f32.mrb[3].mxu0  ;;  %v1025_v36 = vmul.f32 -1.442695, %v182_v31 }
 0x234   : > { %1192 = vpow2.f32 %v1025_v36 }
 0x23c   : > { %v1191_v35 = vpop.eup %1190 }
 0x23d   : > { %192 = vrot.lane.b32.xlu1 %v1191_v35, %s1290_s10 }
 0x23e   : > { %v1193_v37 = vpop.eup %1192 }
 0x23f   : > { %v186_v38 = vadd.f32 1.0, %v1193_v37 }
 0x241   : > { %1194 = vrcp.f32 %v186_v38 }
 0x24b   : > { %v1195_v39 = vpop.eup %1194 }
 0x24c   : > { %v190_v42 = vmul.f32 %v1276_v19, %v1195_v39  ;;  %v1035_v19 = vld [vmem:[%s1391_s8 + $0x4] sm:$0x3] }
 0x24d   : > { %v371_v23 = vsel %vm180_vm4, %v1035_v19, %v317_v20 }
 0x2af   : > { %v193_v40 = vpop.permute.xlu1 %192 }
 0x2b0   : > { %v195_v41 = vmul.f32 %v1195_v39, %v193_v40 }
 0x2b2   : > { %197 = vrot.lane.b32.xlu1 %v195_v41, %s1291_s11 }
 0x324   : > { %v198_v43 = vpop.permute.xlu1 %197 }
 0x325   : > { %v200_v44 = vadd.f32 %v198_v43, %v190_v42 }
 0x327   : > { %1196 = vtanh.f32 %v200_v44 }
 0x331   : > { %v1197_v45 = vpop.eup %1196 }
 0x332   : > { %211 = vrot.lane.b32.xlu1 %v1197_v45, %s1291_s11  ;;  %205 = vrot.lane.b32.xlu0 %v1197_v45, %s1291_s11 }
 0x3a4   : > { %v212_v46 = vpop.permute.xlu1 %211  ;;  %v206_v47 = vpop.permute.xlu0 %205 }
 0x3a5   : > { %v1399_v48 = vmul.f32 %v1195_v39, %v212_v46  ;;  %v1401_v49 = vmul.f32 %v1195_v39, %v206_v47 }
 0x3a7   : > { %228 = vrot.lane.b32.xlu1 %v1399_v48, %s1289_s3  ;;  %224 = vrot.lane.b32.xlu0 %v1401_v49, %s1287_s2 }
 0x419   : > { %v229_v50 = vpop.permute.xlu1 %228  ;;  %v225_v51 = vpop.permute.xlu0 %224 }
 0x41a   : > { %v231_v52 = vsel %vm128_vm3, %v225_v51, %v229_v50 }
 0x41b   : > { %v232_v53 = vpack.c.bf16 %v231_v52, %v231_v52 }
 0x41d   : > { %1112 = vmatmul.mubr.msk.bf16.vlgmr.msra.gmra.mrb[0].mxu1 %vm39_vm0, %v232_v53 }
 0x41e   : > { %1122 = vmatpush3.bf16.msra.mxu1 %v1364_v22  ;;  %1123 = vmatprep.mubr.msk.bf16.mxu1 %vm1288_vm2, %v1286_v21 }
 0x41f   : > { %1133 = vmatprep.subr.bf16.mxu1 %v1286_v21 }
 0x4f0   : > { %v270_v57 = vpop.f32.mrb[0].mxu1 }
 0x4f1   : > { %v277_v58 = vadd.f32 %v276_v56, %v270_v57  ;;  %v1113_v59 = vpop.f32.mrb[1].mxu1 }
 0x4f2   : > { %v273_v60 = vpop.f32.mrb[2].mxu1 }
 0x4f3   : > { %1198 = vtanh.f32 %v277_v58  ;;  %v1114_v61 = vpop.f32.mrb[3].mxu1  ;;  %v1031_v63 = vmul.f32 -1.442695, %v277_v58 }
 0x4f5   : > { %1200 = vpow2.f32 %v1031_v63 }
 0x4fd   : > { %v1199_v62 = vpop.eup %1198 }
 0x4fe   : > { %287 = vrot.lane.b32.xlu0 %v1199_v62, %s1290_s10 }
 0x4ff   : > { %v1201_v0 = vpop.eup %1200 }
 0x500   : > { %v281_v1 = vadd.f32 1.0, %v1201_v0 }
 0x502   : > { %1202 = vrcp.f32 %v281_v1 }
 0x50c   : > { %v1203_v2 = vpop.eup %1202 }
 0x50d   : > { %v285_v5 = vmul.f32 %v1203_v2, %v200_v44 }
 0x570   : > { %v288_v3 = vpop.permute.xlu0 %287 }
 0x571   : > { %v290_v4 = vmul.f32 %v1203_v2, %v288_v3 }
 0x573   : > { %292 = vrot.lane.b32.xlu1 %v290_v4, %s1291_s11 }
 0x5e5   : > { %v293_v6 = vpop.permute.xlu1 %292 }
 0x5e6   : > { %v295_v9 = vadd.f32 %v293_v6, %v285_v5 }
 0x5e8   : > { %1204 = vtanh.f32 %v295_v9 }
 0x5f2   : > { %v1205_v10 = vpop.eup %1204 }
 0x5f3   : > { %306 = vrot.lane.b32.xlu1 %v1205_v10, %s1291_s11  ;;  %300 = vrot.lane.b32.xlu0 %v1205_v10, %s1291_s11 }
 0x665   : > { %v307_v11 = vpop.permute.xlu1 %306  ;;  %v301_v12 = vpop.permute.xlu0 %300 }
 0x666   : > { %v1420_v13 = vmul.f32 %v1203_v2, %v307_v11  ;;  %v303_v14 = vmul.f32 %v1203_v2, %v301_v12 }
 0x668   : > { %323 = vrot.lane.b32.xlu1 %v1420_v13, %s1289_s3  ;;  %319 = vrot.lane.b32.xlu0 %v303_v14, %s1287_s2  ;;  %v880_v40 = vrot.slane %v303_v14, 6 }
 0x66a   : > { %v894_v46 = vsel %vm893_vm5, %v1401_v49, %v880_v40  ;;  %v412_v49 = vld [vmem:[%s411_s20] sm:$0x3] }
 0x66b   : > { %v466_v55 = vsel %vm180_vm4, %v1041_v54, %v412_v49 }
 0x6da   : > { %v324_v15 = vpop.permute.xlu1 %323  ;;  %v320_v16 = vpop.permute.xlu0 %319 }
 0x6db   : > { %v326_v17 = vsel %vm128_vm3, %v320_v16, %v324_v15  ;;  %v924_v16 = vrot.slane %v1420_v13, 4 }
 0x6dc   : > { %v327_v18 = vpack.c.bf16 %v326_v17, %v326_v17  ;;  %v926_v17 = vrot.slane %v1399_v48, 2 }
 0x6de   : > { %1118 = vmatmul.mubr.msk.bf16.vlgmr.msra.gmra.mrb[4].mxu0 %vm39_vm0, %v327_v18 }
 0x6df   : > { %1128 = vmatpush3.bf16.msra.mxu0 %v1364_v22  ;;  %1129 = vmatprep.mubr.msk.bf16.mxu0 %vm1288_vm2, %v1286_v21 }
 0x6e0   : > { %1139 = vmatprep.subr.bf16.mxu0 %v1286_v21 }
 0x7b1   : > { %v365_v24 = vpop.f32.mrb[4].mxu0 }
 0x7b2   : > { %v372_v25 = vadd.f32 %v371_v23, %v365_v24  ;;  %v1119_v26 = vpop.f32.mrb[5].mxu0 }
 0x7b3   : > { %v368_v27 = vpop.f32.mrb[6].mxu0 }
 0x7b4   : > { %1206 = vtanh.f32 %v372_v25  ;;  %v1120_v28 = vpop.f32.mrb[7].mxu0  ;;  %v1037_v30 = vmul.f32 -1.442695, %v372_v25  ;;  %v1047_v27 = vld [vmem:[%s1391_s8 + $0x8] sm:$0x3] }
 0x7b5   : > { %v507_v28 = vld [vmem:[%s506_s23] sm:$0x3] }
 0x7b6   : > { %1208 = vpow2.f32 %v1037_v30 }
 0x7be   : > { %v1207_v29 = vpop.eup %1206 }
 0x7bf   : > { %382 = vrot.lane.b32.xlu0 %v1207_v29, %s1290_s10  ;;  %v561_v29 = vsel %vm180_vm4, %v1047_v27, %v507_v28 }
 0x7c0   : > { %v1209_v31 = vpop.eup %1208 }
 0x7c1   : > { %v376_v32 = vadd.f32 1.0, %v1209_v31 }
 0x7c3   : > { %1210 = vrcp.f32 %v376_v32 }
 0x7cd   : > { %v1211_v33 = vpop.eup %1210 }
 0x7ce   : > { %v380_v36 = vmul.f32 %v1211_v33, %v295_v9 }
 0x831   : > { %v383_v34 = vpop.permute.xlu0 %382 }
 0x832   : > { %v385_v35 = vmul.f32 %v1211_v33, %v383_v34 }
 0x834   : > { %387 = vrot.lane.b32.xlu1 %v385_v35, %s1291_s11 }
 0x8a6   : > { %v388_v37 = vpop.permute.xlu1 %387 }
 0x8a7   : > { %v390_v38 = vadd.f32 %v388_v37, %v380_v36 }
 0x8a9   : > { %1212 = vtanh.f32 %v390_v38 }
 0x8b3   : > { %v1213_v39 = vpop.eup %1212 }
 0x8b4   : > { %401 = vrot.lane.b32.xlu1 %v1213_v39, %s1291_s11  ;;  %395 = vrot.lane.b32.xlu0 %v1213_v39, %s1291_s11 }
 0x926   : > { %v402_v41 = vpop.permute.xlu1 %401  ;;  %v396_v42 = vpop.permute.xlu0 %395 }
 0x927   : > { %v404_v43 = vmul.f32 %v1211_v33, %v402_v41  ;;  %v398_v44 = vmul.f32 %v1211_v33, %v396_v42 }
 0x929   : > { %v882_v45 = vrot.slane %v398_v44, 4  ;;  %418 = vrot.lane.b32.xlu1 %v404_v43, %s1289_s3  ;;  %414 = vrot.lane.b32.xlu0 %v398_v44, %s1287_s2  ;;  %v922_v12 = vrot.slane %v404_v43, 6 }
 0x92b   : > { %v896_v47 = vsel %vm895_vm6, %v894_v46, %v882_v45 }
 0x99b   : > { %v419_v50 = vpop.permute.xlu1 %418  ;;  %v415_v51 = vpop.permute.xlu0 %414 }
 0x99c   : > { %v421_v52 = vsel %vm128_vm3, %v415_v51, %v419_v50 }
 0x99d   : > { %v422_v53 = vpack.c.bf16 %v421_v52, %v421_v52 }
 0x99f   : > { %1124 = vmatmul.mubr.msk.bf16.vlgmr.msra.gmra.mrb[4].mxu1 %vm39_vm0, %v422_v53 }
 0x9a0   : > { %1134 = vmatpush3.bf16.msra.mxu1 %v1364_v22  ;;  %1135 = vmatprep.mubr.msk.bf16.mxu1 %vm1288_vm2, %v1286_v21 }
 0x9a1   : > { %1145 = vmatprep.subr.bf16.mxu1 %v1286_v21 }
 0xa72   : > { %v460_v56 = vpop.f32.mrb[4].mxu1 }
 0xa73   : > { %v467_v57 = vadd.f32 %v466_v55, %v460_v56  ;;  %v1125_v58 = vpop.f32.mrb[5].mxu1  ;;  %v1053_v55 = vld [vmem:[%s1391_s8 + $0xa] sm:$0x3]  ;;  %v602_v56 = vld [vmem:[%s601_s25] sm:$0x3] }
 0xa74   : > { %v463_v59 = vpop.f32.mrb[6].mxu1 }
 0xa75   : > { %1214 = vtanh.f32 %v467_v57  ;;  %v1126_v60 = vpop.f32.mrb[7].mxu1  ;;  %v1043_v62 = vmul.f32 -1.442695, %v467_v57  ;;  %v656_v57 = vsel %vm180_vm4, %v1053_v55, %v602_v56  ;;  %v1065_v55 = vld [vmem:[%s1391_s8 + $0xe] sm:$0x3] }
 0xa76   : > { %v792_v56 = vld [vmem:[%s791_s7] sm:$0x3] }
 0xa77   : > { %1216 = vpow2.f32 %v1043_v62 }
 0xa7f   : > { %v1215_v61 = vpop.eup %1214 }
 0xa80   : > { %477 = vrot.lane.b32.xlu0 %v1215_v61, %s1290_s10 }
 0xa81   : > { %v1217_v63 = vpop.eup %1216 }
 0xa82   : > { %v471_v0 = vadd.f32 1.0, %v1217_v63 }
 0xa84   : > { %1218 = vrcp.f32 %v471_v0 }
 0xa8e   : > { %v1219_v1 = vpop.eup %1218 }
 0xa8f   : > { %v475_v4 = vmul.f32 %v1219_v1, %v390_v38 }
 0xaf2   : > { %v478_v2 = vpop.permute.xlu0 %477 }
 0xaf3   : > { %v480_v3 = vmul.f32 %v1219_v1, %v478_v2 }
 0xaf5   : > { %482 = vrot.lane.b32.xlu1 %v480_v3, %s1291_s11 }
 0xb67   : > { %v483_v5 = vpop.permute.xlu1 %482 }
 0xb68   : > { %v485_v6 = vadd.f32 %v483_v5, %v475_v4 }
 0xb6a   : > { %1220 = vtanh.f32 %v485_v6 }
 0xb74   : > { %v1221_v9 = vpop.eup %1220 }
 0xb75   : > { %496 = vrot.lane.b32.xlu1 %v1221_v9, %s1291_s11  ;;  %490 = vrot.lane.b32.xlu0 %v1221_v9, %s1291_s11 }
 0xbe7   : > { %v497_v10 = vpop.permute.xlu1 %496  ;;  %v491_v11 = vpop.permute.xlu0 %490 }
 0xbe8   : > { %v499_v14 = vmul.f32 %v1219_v1, %v497_v10  ;;  %v493_v15 = vmul.f32 %v1219_v1, %v491_v11 }
 0xbea   : > { %v931_v18 = vsel %vm893_vm5, %v499_v14, %v922_v12  ;;  %v884_v19 = vrot.slane %v493_v15, 2  ;;  %513 = vrot.lane.b32.xlu1 %v499_v14, %s1289_s3  ;;  %509 = vrot.lane.b32.xlu0 %v493_v15, %s1287_s2 }
 0xbeb   : > { %v932_v20 = vsel %vm895_vm6, %v931_v18, %v924_v16 }
 0xbec   : > { %v1463_v23 = vsel %vm897_vm7, %v896_v47, %v884_v19  ;;  %v1466_v24 = vsel %vm897_vm7, %v932_v20, %v926_v17  ;;  %v1059_v19 = vld [vmem:[%s1391_s8 + $0xc] sm:$0x3]  ;;  %v697_v20 = vld [vmem:[%s696_s28] sm:$0x3] }
 0xc5c   : > { %v514_v13 = vpop.permute.xlu1 %513  ;;  %v510_v25 = vpop.permute.xlu0 %509 }
 0xc5d   : > { %v516_v48 = vsel %vm128_vm3, %v510_v25, %v514_v13  ;;  %v751_v13 = vsel %vm180_vm4, %v1059_v19, %v697_v20 }
 0xc5e   : > { %v517_v26 = vpack.c.bf16 %v516_v48, %v516_v48 }
 0xc60   : > { %1130 = vmatmul.mubr.msk.bf16.vlgmr.msra.gmra.mrb[8].mxu0 %vm39_vm0, %v517_v26 }
 0xc61   : > { %1140 = vmatpush3.bf16.msra.mxu0 %v1364_v22  ;;  %1141 = vmatprep.mubr.msk.bf16.mxu0 %vm1288_vm2, %v1286_v21 }
 0xd33   : > { %v555_v30 = vpop.f32.mrb[8].mxu0 }
 0xd34   : > { %v562_v31 = vadd.f32 %v561_v29, %v555_v30  ;;  %v1131_v32 = vpop.f32.mrb[9].mxu0 }
 0xd35   : > { %v558_v33 = vpop.f32.mrb[10].mxu0 }
 0xd36   : > { %1222 = vtanh.f32 %v562_v31  ;;  %v1132_v34 = vpop.f32.mrb[11].mxu0  ;;  %v1049_v36 = vmul.f32 -1.442695, %v562_v31 }
 0xd38   : > { %1224 = vpow2.f32 %v1049_v36 }
 0xd40   : > { %v1223_v35 = vpop.eup %1222 }
 0xd41   : > { %572 = vrot.lane.b32.xlu0 %v1223_v35, %s1290_s10 }
 0xd42   : > { %v1225_v37 = vpop.eup %1224 }
 0xd43   : > { %v566_v38 = vadd.f32 1.0, %v1225_v37 }
 0xd45   : > { %1226 = vrcp.f32 %v566_v38 }
 0xd4f   : > { %v1227_v39 = vpop.eup %1226 }
 0xd50   : > { %v570_v42 = vmul.f32 %v1227_v39, %v485_v6 }
 0xdb3   : > { %v573_v40 = vpop.permute.xlu0 %572 }
 0xdb4   : > { %v575_v41 = vmul.f32 %v1227_v39, %v573_v40 }
 0xdb6   : > { %577 = vrot.lane.b32.xlu1 %v575_v41, %s1291_s11 }
 0xe28   : > { %v578_v43 = vpop.permute.xlu1 %577 }
 0xe29   : > { %v580_v44 = vadd.f32 %v578_v43, %v570_v42 }
 0xe2b   : > { %1228 = vtanh.f32 %v580_v44 }
 0xe35   : > { %v1229_v45 = vpop.eup %1228 }
 0xe36   : > { %591 = vrot.lane.b32.xlu1 %v1229_v45, %s1291_s11  ;;  %585 = vrot.lane.b32.xlu0 %v1229_v45, %s1291_s11 }
 0xea8   : > { %v592_v46 = vpop.permute.xlu1 %591  ;;  %v586_v47 = vpop.permute.xlu0 %585 }
 0xea9   : > { %v1480_v50 = vmul.f32 %v1227_v39, %v592_v46  ;;  %v1482_v51 = vmul.f32 %v1227_v39, %v586_v47 }
 0xeab   : > { %608 = vrot.lane.b32.xlu1 %v1480_v50, %s1289_s3  ;;  %604 = vrot.lane.b32.xlu0 %v1482_v51, %s1287_s2 }
 0xf1d   : > { %v609_v52 = vpop.permute.xlu1 %608  ;;  %v605_v53 = vpop.permute.xlu0 %604 }
 0xf1e   : > { %v611_v54 = vsel %vm128_vm3, %v605_v53, %v609_v52 }
 0xf1f   : > { %v612_v49 = vpack.c.bf16 %v611_v54, %v611_v54 }
 0xf21   : > { %1136 = vmatmul.mubr.msk.bf16.vlgmr.msra.gmra.mrb[8].mxu1 %vm39_vm0, %v612_v49 }
 0xf22   : > { %1146 = vmatpush3.bf16.msra.mxu1 %v1364_v22  ;;  %1147 = vmatprep.mubr.msk.bf16.mxu1 %vm1288_vm2, %v1286_v21 }
 0xff4   : > { %v650_v58 = vpop.f32.mrb[8].mxu1 }
 0xff5   : > { %v657_v59 = vadd.f32 %v656_v57, %v650_v58  ;;  %v1137_v60 = vpop.f32.mrb[9].mxu1  ;;  %v846_v57 = vsel %vm180_vm4, %v1065_v55, %v792_v56 }
 0xff6   : > { %v653_v61 = vpop.f32.mrb[10].mxu1 }
 0xff7   : > { %1230 = vtanh.f32 %v657_v59  ;;  %v1138_v62 = vpop.f32.mrb[11].mxu1  ;;  %v1055_v22 = vmul.f32 -1.442695, %v657_v59 }
 0xff9   : > { %1232 = vpow2.f32 %v1055_v22 }
0x1001   : > { %v1231_v63 = vpop.eup %1230 }
0x1002   : > { %667 = vrot.lane.b32.xlu0 %v1231_v63, %s1290_s10 }
0x1003   : > { %v1233_v0 = vpop.eup %1232 }
0x1004   : > { %v661_v21 = vadd.f32 1.0, %v1233_v0 }
0x1006   : > { %1234 = vrcp.f32 %v661_v21 }
0x1010   : > { %v1235_v1 = vpop.eup %1234 }
0x1011   : > { %v665_v4 = vmul.f32 %v1235_v1, %v580_v44 }
0x1074   : > { %v668_v2 = vpop.permute.xlu0 %667 }
0x1075   : > { %v670_v3 = vmul.f32 %v1235_v1, %v668_v2 }
0x1077   : > { %672 = vrot.lane.b32.xlu1 %v670_v3, %s1291_s11 }
0x10e9   : > { %v673_v5 = vpop.permute.xlu1 %672 }
0x10ea   : > { %v675_v6 = vadd.f32 %v673_v5, %v665_v4 }
0x10ec   : > { %1236 = vtanh.f32 %v675_v6 }
0x10f6   : > { %v1237_v9 = vpop.eup %1236 }
0x10f7   : > { %686 = vrot.lane.b32.xlu1 %v1237_v9, %s1291_s11  ;;  %680 = vrot.lane.b32.xlu0 %v1237_v9, %s1291_s11 }
0x1169   : > { %v687_v10 = vpop.permute.xlu1 %686  ;;  %v681_v11 = vpop.permute.xlu0 %680 }
0x116a   : > { %v1500_v12 = vmul.f32 %v1235_v1, %v687_v10  ;;  %v683_v14 = vmul.f32 %v1235_v1, %v681_v11 }
0x116c   : > { %703 = vrot.lane.b32.xlu1 %v1500_v12, %s1289_s3  ;;  %699 = vrot.lane.b32.xlu0 %v683_v14, %s1287_s2  ;;  %v886_v40 = vrot.slane %v683_v14, 6  ;;  %v918_v11 = vrot.slane %v1500_v12, 4  ;;  %v920_v14 = vrot.slane %v1480_v50, 2 }
0x116e   : > { %v899_v46 = vsel %vm893_vm5, %v1482_v51, %v886_v40 }
0x11de   : > { %v704_v15 = vpop.permute.xlu1 %703  ;;  %v700_v16 = vpop.permute.xlu0 %699 }
0x11df   : > { %v706_v17 = vsel %vm128_vm3, %v700_v16, %v704_v15 }
0x11e0   : > { %v707_v18 = vpack.c.bf16 %v706_v17, %v706_v17 }
0x11e2   : > { %1142 = vmatmul.mubr.msk.bf16.vlgmr.msra.gmra.mrb[12].mxu0 %vm39_vm0, %v707_v18 }
0x12b5   : > { %v745_v25 = vpop.f32.mrb[12].mxu0 }
0x12b6   : > { %v752_v48 = vadd.f32 %v751_v13, %v745_v25  ;;  %v1143_v26 = vpop.f32.mrb[13].mxu0 }
0x12b7   : > { %v748_v27 = vpop.f32.mrb[14].mxu0 }
0x12b8   : > { %1238 = vtanh.f32 %v752_v48  ;;  %v1144_v28 = vpop.f32.mrb[15].mxu0  ;;  %v1061_v30 = vmul.f32 -1.442695, %v752_v48 }
0x12ba   : > { %1240 = vpow2.f32 %v1061_v30 }
0x12c2   : > { %v1239_v29 = vpop.eup %1238 }
0x12c3   : > { %762 = vrot.lane.b32.xlu0 %v1239_v29, %s1290_s10 }
0x12c4   : > { %v1241_v31 = vpop.eup %1240 }
0x12c5   : > { %v756_v32 = vadd.f32 1.0, %v1241_v31 }
0x12c7   : > { %1242 = vrcp.f32 %v756_v32 }
0x12d1   : > { %v1243_v33 = vpop.eup %1242 }
0x12d2   : > { %v760_v36 = vmul.f32 %v1243_v33, %v675_v6 }
0x1335   : > { %v763_v34 = vpop.permute.xlu0 %762 }
0x1336   : > { %v765_v35 = vmul.f32 %v1243_v33, %v763_v34 }
0x1338   : > { %767 = vrot.lane.b32.xlu1 %v765_v35, %s1291_s11 }
0x13aa   : > { %v768_v37 = vpop.permute.xlu1 %767 }
0x13ab   : > { %v770_v38 = vadd.f32 %v768_v37, %v760_v36 }
0x13ad   : > { %1244 = vtanh.f32 %v770_v38 }
0x13b7   : > { %v1245_v39 = vpop.eup %1244 }
0x13b8   : > { %781 = vrot.lane.b32.xlu1 %v1245_v39, %s1291_s11  ;;  %775 = vrot.lane.b32.xlu0 %v1245_v39, %s1291_s11 }
0x142a   : > { %v782_v41 = vpop.permute.xlu1 %781  ;;  %v776_v42 = vpop.permute.xlu0 %775 }
0x142b   : > { %v784_v43 = vmul.f32 %v1243_v33, %v782_v41  ;;  %v778_v44 = vmul.f32 %v1243_v33, %v776_v42 }
0x142d   : > { %v888_v45 = vrot.slane %v778_v44, 4  ;;  %798 = vrot.lane.b32.xlu1 %v784_v43, %s1289_s3  ;;  %794 = vrot.lane.b32.xlu0 %v778_v44, %s1287_s2  ;;  %v916_v10 = vrot.slane %v784_v43, 6 }
0x142f   : > { %v900_v47 = vsel %vm895_vm6, %v899_v46, %v888_v45 }
0x149f   : > { %v799_v52 = vpop.permute.xlu1 %798  ;;  %v795_v53 = vpop.permute.xlu0 %794 }
0x14a0   : > { %v801_v54 = vsel %vm128_vm3, %v795_v53, %v799_v52 }
0x14a1   : > { %v802_v49 = vpack.c.bf16 %v801_v54, %v801_v54 }
0x14a3   : > { %1148 = vmatmul.mubr.msk.bf16.vlgmr.msra.gmra.mrb[12].mxu1 %vm39_vm0, %v802_v49 }
0x1576   : > { %v840_v58 = vpop.f32.mrb[12].mxu1 }
0x1577   : > { %v847_v59 = vadd.f32 %v846_v57, %v840_v58  ;;  %v1149_v60 = vpop.f32.mrb[13].mxu1 }
0x1578   : > { %v843_v51 = vpop.f32.mrb[14].mxu1 }
0x1579   : > { %1246 = vtanh.f32 %v847_v59  ;;  %v1150_v61 = vpop.f32.mrb[15].mxu1  ;;  %v1067_v63 = vmul.f32 -1.442695, %v847_v59 }
0x157b   : > { %1248 = vpow2.f32 %v1067_v63 }
0x1583   : > { %v1247_v62 = vpop.eup %1246 }
0x1584   : > { %857 = vrot.lane.b32.xlu0 %v1247_v62, %s1290_s10  ;;  %s1077_s10 = sadd.s32 16, %s1388_s6 }
0x1585   : > { %v1249_v22 = vpop.eup %1248 }
0x1586   : > { %v851_v0 = vadd.f32 1.0, %v1249_v22 }
0x1588   : > { %1250 = vrcp.f32 %v851_v0 }
0x1592   : > { %v1251_v21 = vpop.eup %1250 }
0x1593   : > { %v855_v3 = vmul.f32 %v1251_v21, %v770_v38 }
0x15f6   : > { %v858_v1 = vpop.permute.xlu0 %857 }
0x15f7   : > { %v860_v2 = vmul.f32 %v1251_v21, %v858_v1 }
0x15f9   : > { %862 = vrot.lane.b32.xlu1 %v860_v2, %s1291_s11 }
0x166b   : > { %v863_v4 = vpop.permute.xlu1 %862 }
0x166c   : > { %v865_v19 = vadd.f32 %v863_v4, %v855_v3  }
0x166e   : > { %1252 = vtanh.f32 %v865_v19 }
0x1678   : > { %v1253_v5 = vpop.eup %1252 }
0x1679   : > { %876 = vrot.lane.b32.xlu1 %v1253_v5, %s1291_s11  ;;  %870 = vrot.lane.b32.xlu0 %v1253_v5, %s1291_s11  ;;  %s915_s11 = ssub.s32 32, %s1077_s10 }
0x167a   : > { %s942_s14 = scalar_lea.vmem %s1560_s4, %s915_s11 }
0x167d   : > { %904 = vrot.lane.b32.xlu0 %v1463_v23, %s1287_s2 }
0x16eb   : > { %v877_v6 = vpop.permute.xlu1 %876  ;;  %v871_v9 = vpop.permute.xlu0 %870 }
0x16ec   : > { %v879_v18 = vmul.f32 %v1251_v21, %v877_v6   ;;  %v873_v20 = vmul.f32 %v1251_v21, %v871_v9  }
0x16ee   : > { %v928_v15 = vsel %vm893_vm5, %v879_v18, %v916_v10  ;;  %v891_v16 = vrot.slane %v873_v20, 2 }
0x16ef   : > { %v905_v17 = vpop.permute.xlu0 %904  ;;  %v929_v23 = vsel %vm895_vm6, %v928_v15, %v918_v11 }
0x16f0   : > { %911 = vst.msk [vmem:[%s910_s9] sm:$0xff] %vm128_vm3, %v905_v17  ;;  %v930_v13 = vsel %vm897_vm7, %v929_v23, %v920_v14  ;;  %v901_v25 = vsel %vm897_vm7, %v900_v47, %v891_v16 }
0x16f1   : > { %936 = vrot.lane.b32.xlu0 %v930_v13, %s1289_s3  ;;  %906 = vrot.lane.b32.xlu1 %v901_v25, %s1287_s2 }
0x16f5   : > { %938 = vrot.lane.b32.xlu1 %v1466_v24, %s1289_s3 }
0x1762   :  { %106 = sbr.rel (!%p104_p0) target bundleno = 224 (0xe0), region = 61 }
0x1763   : > { %v937_v50 = vpop.permute.xlu0 %936  ;;  %v907_v12 = vpop.permute.xlu1 %906 }
0x1764   : > { %912 = vst.msk [vmem:[%s910_s9 + $0x8] sm:$0xff] %vm128_vm3, %v907_v12 }
0x1765   : > { %944 = vst.msk [vmem:[%s942_s14] sm:$0xff] %vm943_vm8, %v937_v50 }
0x1767   : > { %v939_v48 = vpop.permute.xlu1 %938 }
0x1768   : > { %945 = vst.msk [vmem:[%s942_s14 + $0x8] sm:$0xff] %vm943_vm8, %v939_v48 }

// kernel: encoder_forward.4
= control target key start
LH: loop header
LB: loop body
LE: loop exit
PB: predicated region body
PF: predicated region fallthrough
CT: control target
= control target key end

     0   :  { %vm427_vm0 = vcmask 523264   ;;  %s2126_s1 = inlined_call_operand.vmem [shape: bf16[512,64], index: 1, kind: input, shape index: {}]   ;;  %s2127_s4 = inlined_call_operand.vmem [shape: f32[32,16], index: 4, kind: output, shape index: {}]   ;;  %s2128_s0 = inlined_call_operand.vmem [shape: bf16[32,512], index: 0, kind: input, shape index: {}]   ;;  %s2129_s2 = inlined_call_operand.vmem [shape: bf16[16,64], index: 2, kind: input, shape index: {}]   ;;  %s2130_s3 = inlined_call_operand.vmem [shape: f32[1,64], index: 3, kind: input, shape index: {}]  }
   0x1   :  { %v1606_v0 = vld [vmem:[%s2126_s1 + $0x40] sm:$0xff]   ;;  %v1610_v4 = vld [vmem:[%s2126_s1 + $0x48] sm:$0xff]   ;;  %v1614_v8 = vld [vmem:[%s2126_s1 + $0x50] sm:$0xff]  }
   0x2   :  { %v1607_v1 = vld [vmem:[%s2126_s1 + $0xc0] sm:$0xff]   ;;  %1448 = vmatprep.subr.bf16.mxu0 %v1606_v0  ;;  %v1611_v5 = vld [vmem:[%s2126_s1 + $0xc8] sm:$0xff]   ;;  %v1615_v9 = vld [vmem:[%s2126_s1 + $0xd0] sm:$0xff]  }
   0x3   :  { %v1608_v2 = vld [vmem:[%s2126_s1] sm:$0xff]   ;;  %1476 = vmatprep.subr.bf16.mxu1 %v1607_v1  ;;  %v1612_v6 = vld [vmem:[%s2126_s1 + $0x8] sm:$0xff]   ;;  %v1616_v10 = vld [vmem:[%s2126_s1 + $0x10] sm:$0xff]  }
   0x4   :  { %v1609_v3 = vld [vmem:[%s2126_s1 + $0x80] sm:$0xff]   ;;  %1449 = vmatpush3.bf16.msra.mxu0 %v1608_v2  ;;  %v1613_v7 = vld [vmem:[%s2126_s1 + $0x88] sm:$0xff]   ;;  %v1617_v11 = vld [vmem:[%s2126_s1 + $0x90] sm:$0xff]  }
   0x5   :  { %1477 = vmatpush3.bf16.msra.mxu1 %v1609_v3  ;;  %1450 = vmatprep.subr.bf16.mxu0 %v1610_v4  ;;  %v1618_v12 = vld [vmem:[%s2126_s1 + $0x58] sm:$0xff]   ;;  %v1622_v16 = vld [vmem:[%s2126_s1 + $0x60] sm:$0xff]   ;;  %v1626_v20 = vld [vmem:[%s2126_s1 + $0x68] sm:$0xff]  }
   0x6   :  { %1478 = vmatprep.subr.bf16.mxu1 %v1611_v5  ;;  %v1619_v13 = vld [vmem:[%s2126_s1 + $0xd8] sm:$0xff]   ;;  %v1623_v17 = vld [vmem:[%s2126_s1 + $0xe0] sm:$0xff]   ;;  %v1627_v21 = vld [vmem:[%s2126_s1 + $0xe8] sm:$0xff]  }
   0x7   :  { %v1620_v14 = vld [vmem:[%s2126_s1 + $0x18] sm:$0xff]   ;;  %v1624_v18 = vld [vmem:[%s2126_s1 + $0x20] sm:$0xff]   ;;  %v1628_v22 = vld [vmem:[%s2126_s1 + $0x28] sm:$0xff]  }
   0x8   :  { %1451 = vmatpush3.bf16.msra.mxu0 %v1612_v6  ;;  %v1621_v15 = vld [vmem:[%s2126_s1 + $0x98] sm:$0xff]   ;;  %v1625_v19 = vld [vmem:[%s2126_s1 + $0xa0] sm:$0xff]   ;;  %v1629_v23 = vld [vmem:[%s2126_s1 + $0xa8] sm:$0xff]  }
   0x9   :  { %1479 = vmatpush3.bf16.msra.mxu1 %v1613_v7  ;;  %1452 = vmatprep.subr.bf16.mxu0 %v1614_v8  ;;  %v1630_v24 = vld [vmem:[%s2126_s1 + $0x70] sm:$0xff]   ;;  %v1634_v28 = vld [vmem:[%s2126_s1 + $0x78] sm:$0xff]   ;;  %v1900_v40 = vld [vmem:[%s2129_s2] sm:$0xf] }
   0xa   :  { %1480 = vmatprep.subr.bf16.mxu1 %v1615_v9  ;;  %v1631_v25 = vld [vmem:[%s2126_s1 + $0xf0] sm:$0xff]   ;;  %v1635_v29 = vld [vmem:[%s2126_s1 + $0xf8] sm:$0xff]   ;;  %v1905_v41 = vld [vmem:[%s2129_s2 + $0x4] sm:$0xf] }
   0xb   :  { %v1632_v26 = vld [vmem:[%s2126_s1 + $0x30] sm:$0xff]   ;;  %v1636_v30 = vld [vmem:[%s2126_s1 + $0x38] sm:$0xff]   ;;  %v1349_v44 = vld [vmem:[%s2130_s3] ss:$0 sm:$0xff] }
   0xc   :  { %1453 = vmatpush3.bf16.msra.mxu0 %v1616_v10  ;;  %v1633_v27 = vld [vmem:[%s2126_s1 + $0xb0] sm:$0xff]   ;;  %v1637_v31 = vld [vmem:[%s2126_s1 + $0xb8] sm:$0xff]  }
   0xd   :  { %1481 = vmatpush3.bf16.msra.mxu1 %v1617_v11  ;;  %1454 = vmatprep.subr.bf16.mxu0 %v1618_v12  ;;  %v1638_v32 = vld [vmem:[%s2128_s0] ss:$16 sps:$4 sm:$0xff]   ;;  %v1640_v33 = vld [vmem:[%s2128_s0 + $0x4] ss:$16 sps:$4 sm:$0xff]   ;;  %v1641_v34 = vld [vmem:[%s2128_s0 + $0x8] ss:$16 sps:$4 sm:$0xff]  }
   0xe   :  { %1482 = vmatprep.subr.bf16.mxu1 %v1619_v13  ;;  %v1643_v35 = vld [vmem:[%s2128_s0 + $0xc] ss:$16 sps:$4 sm:$0xff]   ;;  %361 = vmatprep.mubr.bf16.mxu0 %v1640_v33  ;;  %v1644_v36 = vld [vmem:[%s2128_s0 + $0x24] ss:$16 sps:$4 sm:$0xff]   ;;  %v1648_v38 = vld [vmem:[%s2128_s0 + $0x20] ss:$16 sps:$4 sm:$0xff]  }
   0xf   :  { %410 = vmatprep.mubr.bf16.mxu1 %v1643_v35  ;;  %v1646_v37 = vld [vmem:[%s2128_s0 + $0x2c] ss:$16 sps:$4 sm:$0xff]   ;;  %v1649_v39 = vld [vmem:[%s2128_s0 + $0x28] ss:$16 sps:$4 sm:$0xff]   ;;  %v1914_v11 = vmov 0.0   ;;  %v1916_v12 = vmov 0.0  }
  0x10   :  { %1455 = vmatpush3.bf16.msra.mxu0 %v1620_v14  ;;  %v1918_v13 = vmov 0.0   ;;  %s1920_s0 = smov 0  }
  0x11   :  { %1483 = vmatpush3.bf16.msra.mxu1 %v1621_v15  ;;  %1456 = vmatprep.subr.bf16.mxu0 %v1622_v16 }
  0x12   :  { %1484 = vmatprep.subr.bf16.mxu1 %v1623_v17 }
  0x14   :  { %1457 = vmatpush3.bf16.msra.mxu0 %v1624_v18 }
  0x15   :  { %1485 = vmatpush3.bf16.msra.mxu1 %v1625_v19  ;;  %1458 = vmatprep.subr.bf16.mxu0 %v1626_v20 }
  0x16   :  { %1486 = vmatprep.subr.bf16.mxu1 %v1627_v21 }
  0x18   :  { %1459 = vmatpush3.bf16.msra.mxu0 %v1628_v22 }
  0x19   :  { %1487 = vmatpush3.bf16.msra.mxu1 %v1629_v23  ;;  %1460 = vmatprep.subr.bf16.mxu0 %v1630_v24 }
  0x1a   :  { %1488 = vmatprep.subr.bf16.mxu1 %v1631_v25 }
  0x1c   :  { %1461 = vmatpush3.bf16.msra.mxu0 %v1632_v26 }
  0x1d   :  { %1489 = vmatpush3.bf16.msra.mxu1 %v1633_v27  ;;  %1462 = vmatprep.subr.bf16.mxu0 %v1634_v28 }
  0x1e   :  { %1490 = vmatprep.subr.bf16.mxu1 %v1635_v29 }
  0x20   :  { %1463 = vmatpush3.bf16.msra.mxu0 %v1636_v30 }
  0x21   :  { %1491 = vmatpush3.bf16.msra.mxu1 %v1637_v31 }
  0x23   :  { %362 = vmatmul.mubr.bf16.vlgmr.msra.gmra.mrb[0].mxu0 %v1638_v32 }
  0x24   :  { %411 = vmatmul.mubr.bf16.vlgmr.msra.gmra.mrb[0].mxu1 %v1641_v34  ;;  %369 = vmatprep.mubr.bf16.mxu0 %v1644_v36 }
  0x25   :  { %418 = vmatprep.mubr.bf16.mxu1 %v1646_v37 }
  0x2b   :  { %370 = vmatmul.mubr.bf16.gmra.mrb[4].mxu0 %v1648_v38 }
  0x2c   :  { %419 = vmatmul.mubr.bf16.gmra.mrb[4].mxu1 %v1649_v39 }
  0xf6   :  { %v1464_v42 = vpop.f32.mrb[0].mxu0 }
  0xf7   :  { %v1492_v43 = vpop.f32.mrb[0].mxu1  ;;  %v1465_v45 = vpop.f32.mrb[1].mxu0 }
  0xf8   :  { %v1466_v46 = vadd.f32 %v1465_v45, %v1464_v42  ;;  %v1493_v47 = vpop.f32.mrb[1].mxu1  ;;  %v1467_v48 = vpop.f32.mrb[2].mxu0 }
  0xf9   :  { %v1494_v49 = vadd.f32 %v1493_v47, %v1492_v43  ;;  %v1495_v50 = vpop.f32.mrb[2].mxu1  ;;  %v1468_v51 = vpop.f32.mrb[3].mxu0 }
  0xfa   :  { %v364_v52 = vadd.f32 %v1466_v46, %v1349_v44  ;;  %v1469_v53 = vadd.f32 %v1468_v51, %v1467_v48  ;;  %v1496_v54 = vpop.f32.mrb[3].mxu1 }
  0xfb   :  { %v1497_v55 = vadd.f32 %v1496_v54, %v1495_v50 }
  0xfc   :  { %v413_v56 = vadd.f32 %v1494_v49, %v364_v52  ;;  %v367_v57 = vadd.f32 %v1469_v53, %v1349_v44 }
  0xfe   :  { %428 = vst.msk [vmem:[#allocation2] sm:$0xff] %vm427_vm0, %v413_v56  ;;  %v416_v58 = vadd.f32 %v1497_v55, %v367_v57  ;;  %v1470_v59 = vpop.f32.mrb[4].mxu0 }
  0xff   :  { %v1498_v60 = vpop.f32.mrb[4].mxu1  ;;  %v1471_v61 = vpop.f32.mrb[5].mxu0 }
 0x100   :  { %429 = vst.msk [vmem:[#allocation2 + $0x8] sm:$0xff] %vm427_vm0, %v416_v58  ;;  %v1472_v62 = vadd.f32 %v1471_v61, %v1470_v59  ;;  %v1499_v63 = vpop.f32.mrb[5].mxu1  ;;  %v1473_v0 = vpop.f32.mrb[6].mxu0 }
 0x101   :  { %v1500_v1 = vadd.f32 %v1499_v63, %v1498_v60  ;;  %v1501_v2 = vpop.f32.mrb[6].mxu1  ;;  %v1474_v3 = vpop.f32.mrb[7].mxu0 }
 0x102   :  { %v372_v4 = vadd.f32 %v1472_v62, %v1349_v44  ;;  %v1475_v5 = vadd.f32 %v1474_v3, %v1473_v0  ;;  %v1502_v6 = vpop.f32.mrb[7].mxu1 }
 0x103   :  { %v1503_v7 = vadd.f32 %v1502_v6, %v1501_v2 }
 0x104   :  { %v421_v8 = vadd.f32 %v1500_v1, %v372_v4  ;;  %v375_v9 = vadd.f32 %v1475_v5, %v1349_v44 }
 0x106   :  { %430 = vst.msk [vmem:[#allocation2 + $0x10] sm:$0xff] %vm427_vm0, %v421_v8  ;;  %v424_v10 = vadd.f32 %v1503_v7, %v375_v9 }
 0x108   :  { %431 = vst.msk [vmem:[#allocation2 + $0x18] sm:$0xff] %vm427_vm0, %v424_v10 }
 0x109 LB: > { %v1746_v14 = vmov 0.0   ;;  %v1931_v15 = vcombine.low %v1900_v40, %v1905_v41  ;;  %s1747_s2 = smov 112   ;;  %vm1748_vm1 = vmmov 0   ;;  %s1749_s3 = smov 88   ;;  %vm460_vm2 = vcmask 64512   ;;  %s1744_s0 = sphi %s1920_s0, %s439_s0   ;;  %v1740_v13 = vphi %v1918_v13, %v1206_v13   ;;  %v1736_v12 = vphi %v1916_v12, %v1198_v12   ;;  %v1732_v11 = vphi %v1914_v11, %v1212_v11  }
 0x10a   : > { %1520 = vmatprep.subr.bf16.mxu0 %v1746_v14  ;;  %1526 = vmatprep.subr.bf16.mxu1 %v1746_v14  ;;  %vm469_vm3 = vcmask 130048   ;;  %s1951_s22 = sshll.u32 %s1744_s0, 3  ;;  %s1955_s24 = sshll.u32 %s1744_s0, 4  ;;  %vm513_vm4 = vcmask 261120   ;;  %vm1226_vm5 = vcmask 1041408   ;;  %vm1228_vm6 = vcmask 1043456  }
 0x10b   : > { %453 = vrot.lane.b32.xlu0 %v1740_v13, %s1747_s2  ;;  %1522 = vmatprep.mubr.msk.bf16.mxu0 %vm1748_vm1, %v1746_v14  ;;  %s445_s23 = ssub.s32 15, %s1951_s22  ;;  %s1958_s26 = scalar_lea.vmem [#allocation2], %s1955_s24  ;;  %vm1230_vm7 = vcmask 1045504   ;;  %vm1276_vm8 = vcmask 130112  }
 0x10c   : > { %1521 = vmatpush3.bf16.msra.mxu0 %v1931_v15  ;;  %1527 = vmatpush3.bf16.msra.mxu1 %v1931_v15  ;;  %s1392_s25 = sshll.u32 %s445_s23, 1  ;;  %s1750_s28 = smov 104  }
 0x10d   : > { %1528 = vmatprep.mubr.msk.bf16.mxu1 %vm1748_vm1, %v1746_v14  ;;  %1532 = vmatprep.subr.bf16.mxu0 %v1746_v14  ;;  %s450_s27 = scalar_lea.vmem [#allocation2], %s1392_s25  ;;  %s1751_s29 = smov 8  }
 0x10e   : > { %1538 = vmatprep.subr.bf16.mxu1 %v1746_v14  ;;  %s549_s30 = ssub.s32 14, %s1951_s22  ;;  %s644_s7 = ssub.s32 13, %s1951_s22 }
 0x10f   : > { %457 = vrot.lane.b32.xlu0 %v1732_v11, %s1749_s3  ;;  %v449_v20 = vld [vmem:[%s1958_s26] sm:$0x3]  ;;  %s1396_s5 = sshll.u32 %s549_s30, 1  ;;  %v1399_v49 = vld [vmem:[%s1958_s26 + $0x2] sm:$0x3]  ;;  %s1402_s8 = sshll.u32 %s644_s7, 1 }
 0x110   : > { %v451_v21 = vld [vmem:[%s450_s27] sm:$0x3]  ;;  %s554_s6 = scalar_lea.vmem [#allocation2], %s1396_s5  ;;  %s649_s1 = scalar_lea.vmem [#allocation2], %s1402_s8 }
 0x111   : > { %v514_v22 = vsel %vm513_vm4, %v449_v20, %v451_v21  ;;  %v555_v50 = vld [vmem:[%s554_s6] sm:$0x3]  ;;  %s739_s9 = ssub.s32 12, %s1951_s22  ;;  %s834_s12 = ssub.s32 11, %s1951_s22 }
 0x112   : > { %v609_v51 = vsel %vm513_vm4, %v1399_v49, %v555_v50  ;;  %v650_v13 = vld [vmem:[%s649_s1] sm:$0x3]  ;;  %s1408_s10 = sshll.u32 %s739_s9, 1  ;;  %v1411_v49 = vld [vmem:[%s1958_s26 + $0x6] sm:$0x3]  ;;  %s1414_s13 = sshll.u32 %s834_s12, 1 }
 0x113   : > { %s744_s11 = scalar_lea.vmem [#allocation2], %s1408_s10  ;;  %s839_s14 = scalar_lea.vmem [#allocation2], %s1414_s13 }
 0x114   : > { %s929_s15 = ssub.s32 10, %s1951_s22  ;;  %s1024_s18 = ssub.s32 9, %s1951_s22 }
 0x115   : > { %s1420_s16 = sshll.u32 %s929_s15, 1  ;;  %s1426_s19 = sshll.u32 %s1024_s18, 1 }
 0x116   : > { %s934_s17 = scalar_lea.vmem [#allocation2], %s1420_s16  ;;  %s1029_s20 = scalar_lea.vmem [#allocation2], %s1426_s19 }
 0x117   : > { %s1119_s21 = ssub.s32 8, %s1951_s22  ;;  %s1243_s27 = scalar_lea.vmem %s2127_s4, %s1955_s24 }
 0x118   : > { %s1432_s23 = sshll.u32 %s1119_s21, 1  ;;  %s439_s0 = sadd.s32 1, %s1744_s0  }
 0x119   : > { %s1124_s25 = scalar_lea.vmem [#allocation2], %s1432_s23  ;;  %p436_p0 = scmp.ge.s32.totalorder %s439_s0, 2  }
 0x17d   : > { %v454_v16 = vpop.permute.xlu0 %453 }
 0x181   : > { %v458_v17 = vpop.permute.xlu0 %457 }
 0x182   : > { %v461_v18 = vsel %vm460_vm2, %v454_v16, %v458_v17 }
 0x183   : > { %v462_v19 = vpack.c.bf16 %v461_v18, %v461_v18 }
 0x185   : > { %1523 = vmatmul.mubr.msk.bf16.vlgmr.msra.gmra.mrb[0].mxu0 %vm469_vm3, %v462_v19 }
 0x186   : > { %1533 = vmatpush3.bf16.msra.mxu0 %v1931_v15  ;;  %1534 = vmatprep.mubr.msk.bf16.mxu0 %vm1748_vm1, %v1746_v14 }
 0x187   : > { %1544 = vmatprep.subr.bf16.mxu0 %v1746_v14 }
 0x258   : > { %v507_v23 = vpop.f32.mrb[0].mxu0 }
 0x259   : > { %v515_v24 = vadd.f32 %v514_v22, %v507_v23  ;;  %v1524_v25 = vpop.f32.mrb[1].mxu0 }
 0x25a   : > { %v510_v26 = vpop.f32.mrb[2].mxu0 }
 0x25b   : > { %1650 = vtanh.f32 %v515_v24  ;;  %v1525_v27 = vpop.f32.mrb[3].mxu0  ;;  %v1395_v29 = vmul.f32 -1.442695, %v515_v24 }
 0x25d   : > { %1652 = vpow2.f32 %v1395_v29 }
 0x265   : > { %v1651_v28 = vpop.eup %1650 }
 0x266   : > { %525 = vrot.lane.b32.xlu1 %v1651_v28, %s1750_s28 }
 0x267   : > { %v1653_v30 = vpop.eup %1652 }
 0x268   : > { %v519_v31 = vadd.f32 1.0, %v1653_v30 }
 0x26a   : > { %1654 = vrcp.f32 %v519_v31 }
 0x274   : > { %v1655_v32 = vpop.eup %1654 }
 0x275   : > { %v523_v35 = vmul.f32 %v1736_v12, %v1655_v32  ;;  %v1405_v12 = vld [vmem:[%s1958_s26 + $0x4] sm:$0x3] }
 0x276   : > { %v704_v16 = vsel %vm513_vm4, %v1405_v12, %v650_v13 }
 0x2d8   : > { %v526_v33 = vpop.permute.xlu1 %525 }
 0x2d9   : > { %v528_v34 = vmul.f32 %v1655_v32, %v526_v33 }
 0x2db   : > { %530 = vrot.lane.b32.xlu1 %v528_v34, %s1751_s29 }
 0x34d   : > { %v531_v36 = vpop.permute.xlu1 %530 }
 0x34e   : > { %v533_v37 = vadd.f32 %v531_v36, %v523_v35 }
 0x350   : > { %1656 = vtanh.f32 %v533_v37 }
 0x35a   : > { %v1657_v38 = vpop.eup %1656 }
 0x35b   : > { %544 = vrot.lane.b32.xlu1 %v1657_v38, %s1751_s29  ;;  %538 = vrot.lane.b32.xlu0 %v1657_v38, %s1751_s29 }
 0x3cd   : > { %v545_v39 = vpop.permute.xlu1 %544  ;;  %v539_v42 = vpop.permute.xlu0 %538 }
 0x3ce   : > { %v1966_v43 = vmul.f32 %v1655_v32, %v545_v39  ;;  %v1968_v44 = vmul.f32 %v1655_v32, %v539_v42 }
 0x3d0   : > { %561 = vrot.lane.b32.xlu1 %v1966_v43, %s1749_s3  ;;  %557 = vrot.lane.b32.xlu0 %v1968_v44, %s1747_s2 }
 0x442   : > { %v562_v45 = vpop.permute.xlu1 %561  ;;  %v558_v46 = vpop.permute.xlu0 %557 }
 0x443   : > { %v564_v47 = vsel %vm460_vm2, %v558_v46, %v562_v45 }
 0x444   : > { %v565_v48 = vpack.c.bf16 %v564_v47, %v564_v47 }
 0x446   : > { %1529 = vmatmul.mubr.msk.bf16.vlgmr.msra.gmra.mrb[0].mxu1 %vm469_vm3, %v565_v48 }
 0x447   : > { %1539 = vmatpush3.bf16.msra.mxu1 %v1931_v15  ;;  %1540 = vmatprep.mubr.msk.bf16.mxu1 %vm1748_vm1, %v1746_v14 }
 0x448   : > { %1550 = vmatprep.subr.bf16.mxu1 %v1746_v14 }
 0x519   : > { %v603_v52 = vpop.f32.mrb[0].mxu1 }
 0x51a   : > { %v610_v53 = vadd.f32 %v609_v51, %v603_v52  ;;  %v1530_v54 = vpop.f32.mrb[1].mxu1 }
 0x51b   : > { %v606_v55 = vpop.f32.mrb[2].mxu1 }
 0x51c   : > { %1658 = vtanh.f32 %v610_v53  ;;  %v1531_v56 = vpop.f32.mrb[3].mxu1  ;;  %v1401_v58 = vmul.f32 -1.442695, %v610_v53 }
 0x51e   : > { %1660 = vpow2.f32 %v1401_v58 }
 0x526   : > { %v1659_v57 = vpop.eup %1658 }
 0x527   : > { %620 = vrot.lane.b32.xlu0 %v1659_v57, %s1750_s28 }
 0x528   : > { %v1661_v59 = vpop.eup %1660 }
 0x529   : > { %v614_v60 = vadd.f32 1.0, %v1661_v59 }
 0x52b   : > { %1662 = vrcp.f32 %v614_v60 }
 0x535   : > { %v1663_v61 = vpop.eup %1662 }
 0x536   : > { %v618_v0 = vmul.f32 %v1663_v61, %v533_v37 }
 0x599   : > { %v621_v62 = vpop.permute.xlu0 %620 }
 0x59a   : > { %v623_v63 = vmul.f32 %v1663_v61, %v621_v62 }
 0x59c   : > { %625 = vrot.lane.b32.xlu1 %v623_v63, %s1751_s29 }
 0x60e   : > { %v626_v1 = vpop.permute.xlu1 %625 }
 0x60f   : > { %v628_v2 = vadd.f32 %v626_v1, %v618_v0 }
 0x611   : > { %1664 = vtanh.f32 %v628_v2 }
 0x61b   : > { %v1665_v3 = vpop.eup %1664 }
 0x61c   : > { %639 = vrot.lane.b32.xlu1 %v1665_v3, %s1751_s29  ;;  %633 = vrot.lane.b32.xlu0 %v1665_v3, %s1751_s29 }
 0x68e   : > { %v640_v4 = vpop.permute.xlu1 %639  ;;  %v634_v5 = vpop.permute.xlu0 %633 }
 0x68f   : > { %v1987_v6 = vmul.f32 %v1663_v61, %v640_v4  ;;  %v636_v7 = vmul.f32 %v1663_v61, %v634_v5 }
 0x691   : > { %656 = vrot.lane.b32.xlu1 %v1987_v6, %s1749_s3  ;;  %652 = vrot.lane.b32.xlu0 %v636_v7, %s1747_s2  ;;  %v1213_v33 = vrot.slane %v636_v7, 6 }
 0x693   : > { %v1227_v39 = vsel %vm1226_vm5, %v1968_v44, %v1213_v33  ;;  %v745_v44 = vld [vmem:[%s744_s11] sm:$0x3] }
 0x694   : > { %v799_v50 = vsel %vm513_vm4, %v1411_v49, %v745_v44 }
 0x703   : > { %v657_v8 = vpop.permute.xlu1 %656  ;;  %v653_v9 = vpop.permute.xlu0 %652 }
 0x704   : > { %v659_v10 = vsel %vm460_vm2, %v653_v9, %v657_v8  ;;  %v1257_v9 = vrot.slane %v1987_v6, 4 }
 0x705   : > { %v660_v11 = vpack.c.bf16 %v659_v10, %v659_v10  ;;  %v1259_v10 = vrot.slane %v1966_v43, 2 }
 0x707   : > { %1535 = vmatmul.mubr.msk.bf16.vlgmr.msra.gmra.mrb[4].mxu0 %vm469_vm3, %v660_v11 }
 0x708   : > { %1545 = vmatpush3.bf16.msra.mxu0 %v1931_v15  ;;  %1546 = vmatprep.mubr.msk.bf16.mxu0 %vm1748_vm1, %v1746_v14 }
 0x709   : > { %1556 = vmatprep.subr.bf16.mxu0 %v1746_v14 }
 0x7da   : > { %v698_v17 = vpop.f32.mrb[4].mxu0 }
 0x7db   : > { %v705_v18 = vadd.f32 %v704_v16, %v698_v17  ;;  %v1536_v19 = vpop.f32.mrb[5].mxu0 }
 0x7dc   : > { %v701_v20 = vpop.f32.mrb[6].mxu0 }
 0x7dd   : > { %1666 = vtanh.f32 %v705_v18  ;;  %v1537_v21 = vpop.f32.mrb[7].mxu0  ;;  %v1407_v23 = vmul.f32 -1.442695, %v705_v18  ;;  %v1417_v20 = vld [vmem:[%s1958_s26 + $0x8] sm:$0x3] }
 0x7de   : > { %v840_v21 = vld [vmem:[%s839_s14] sm:$0x3] }
 0x7df   : > { %1668 = vpow2.f32 %v1407_v23 }
 0x7e7   : > { %v1667_v22 = vpop.eup %1666 }
 0x7e8   : > { %715 = vrot.lane.b32.xlu0 %v1667_v22, %s1750_s28  ;;  %v894_v22 = vsel %vm513_vm4, %v1417_v20, %v840_v21 }
 0x7e9   : > { %v1669_v24 = vpop.eup %1668 }
 0x7ea   : > { %v709_v25 = vadd.f32 1.0, %v1669_v24 }
 0x7ec   : > { %1670 = vrcp.f32 %v709_v25 }
 0x7f6   : > { %v1671_v26 = vpop.eup %1670 }
 0x7f7   : > { %v713_v29 = vmul.f32 %v1671_v26, %v628_v2 }
 0x85a   : > { %v716_v27 = vpop.permute.xlu0 %715 }
 0x85b   : > { %v718_v28 = vmul.f32 %v1671_v26, %v716_v27 }
 0x85d   : > { %720 = vrot.lane.b32.xlu1 %v718_v28, %s1751_s29 }
 0x8cf   : > { %v721_v30 = vpop.permute.xlu1 %720 }
 0x8d0   : > { %v723_v31 = vadd.f32 %v721_v30, %v713_v29 }
 0x8d2   : > { %1672 = vtanh.f32 %v723_v31 }
 0x8dc   : > { %v1673_v32 = vpop.eup %1672 }
 0x8dd   : > { %734 = vrot.lane.b32.xlu1 %v1673_v32, %s1751_s29  ;;  %728 = vrot.lane.b32.xlu0 %v1673_v32, %s1751_s29 }
 0x94f   : > { %v735_v34 = vpop.permute.xlu1 %734  ;;  %v729_v35 = vpop.permute.xlu0 %728 }
 0x950   : > { %v737_v36 = vmul.f32 %v1671_v26, %v735_v34  ;;  %v731_v37 = vmul.f32 %v1671_v26, %v729_v35 }
 0x952   : > { %v1215_v38 = vrot.slane %v731_v37, 4  ;;  %751 = vrot.lane.b32.xlu1 %v737_v36, %s1749_s3  ;;  %747 = vrot.lane.b32.xlu0 %v731_v37, %s1747_s2  ;;  %v1255_v5 = vrot.slane %v737_v36, 6 }
 0x954   : > { %v1229_v42 = vsel %vm1228_vm6, %v1227_v39, %v1215_v38 }
 0x9c4   : > { %v752_v45 = vpop.permute.xlu1 %751  ;;  %v748_v46 = vpop.permute.xlu0 %747 }
 0x9c5   : > { %v754_v47 = vsel %vm460_vm2, %v748_v46, %v752_v45 }
 0x9c6   : > { %v755_v48 = vpack.c.bf16 %v754_v47, %v754_v47 }
 0x9c8   : > { %1541 = vmatmul.mubr.msk.bf16.vlgmr.msra.gmra.mrb[4].mxu1 %vm469_vm3, %v755_v48 }
 0x9c9   : > { %1551 = vmatpush3.bf16.msra.mxu1 %v1931_v15  ;;  %1552 = vmatprep.mubr.msk.bf16.mxu1 %vm1748_vm1, %v1746_v14 }
 0x9ca   : > { %1562 = vmatprep.subr.bf16.mxu1 %v1746_v14 }
 0xa9b   : > { %v793_v51 = vpop.f32.mrb[4].mxu1 }
 0xa9c   : > { %v800_v52 = vadd.f32 %v799_v50, %v793_v51  ;;  %v1542_v53 = vpop.f32.mrb[5].mxu1  ;;  %v1423_v50 = vld [vmem:[%s1958_s26 + $0xa] sm:$0x3]  ;;  %v935_v51 = vld [vmem:[%s934_s17] sm:$0x3] }
 0xa9d   : > { %v796_v54 = vpop.f32.mrb[6].mxu1 }
 0xa9e   : > { %1674 = vtanh.f32 %v800_v52  ;;  %v1543_v55 = vpop.f32.mrb[7].mxu1  ;;  %v1413_v57 = vmul.f32 -1.442695, %v800_v52  ;;  %v989_v52 = vsel %vm513_vm4, %v1423_v50, %v935_v51  ;;  %v1435_v50 = vld [vmem:[%s1958_s26 + $0xe] sm:$0x3] }
 0xa9f   : > { %v1125_v51 = vld [vmem:[%s1124_s25] sm:$0x3] }
 0xaa0   : > { %1676 = vpow2.f32 %v1413_v57 }
 0xaa8   : > { %v1675_v56 = vpop.eup %1674 }
 0xaa9   : > { %810 = vrot.lane.b32.xlu0 %v1675_v56, %s1750_s28 }
 0xaaa   : > { %v1677_v58 = vpop.eup %1676 }
 0xaab   : > { %v804_v59 = vadd.f32 1.0, %v1677_v58 }
 0xaad   : > { %1678 = vrcp.f32 %v804_v59 }
 0xab7   : > { %v1679_v60 = vpop.eup %1678 }
 0xab8   : > { %v808_v63 = vmul.f32 %v1679_v60, %v723_v31 }
 0xb1b   : > { %v811_v61 = vpop.permute.xlu0 %810 }
 0xb1c   : > { %v813_v62 = vmul.f32 %v1679_v60, %v811_v61 }
 0xb1e   : > { %815 = vrot.lane.b32.xlu1 %v813_v62, %s1751_s29 }
 0xb90   : > { %v816_v0 = vpop.permute.xlu1 %815 }
 0xb91   : > { %v818_v1 = vadd.f32 %v816_v0, %v808_v63 }
 0xb93   : > { %1680 = vtanh.f32 %v818_v1 }
 0xb9d   : > { %v1681_v2 = vpop.eup %1680 }
 0xb9e   : > { %829 = vrot.lane.b32.xlu1 %v1681_v2, %s1751_s29  ;;  %823 = vrot.lane.b32.xlu0 %v1681_v2, %s1751_s29 }
 0xc10   : > { %v830_v3 = vpop.permute.xlu1 %829  ;;  %v824_v4 = vpop.permute.xlu0 %823 }
 0xc11   : > { %v832_v7 = vmul.f32 %v1679_v60, %v830_v3  ;;  %v826_v8 = vmul.f32 %v1679_v60, %v824_v4 }
 0xc13   : > { %v1264_v11 = vsel %vm1226_vm5, %v832_v7, %v1255_v5  ;;  %v1217_v12 = vrot.slane %v826_v8, 2  ;;  %846 = vrot.lane.b32.xlu1 %v832_v7, %s1749_s3  ;;  %842 = vrot.lane.b32.xlu0 %v826_v8, %s1747_s2 }
 0xc14   : > { %v1265_v13 = vsel %vm1228_vm6, %v1264_v11, %v1257_v9 }
 0xc15   : > { %v2030_v16 = vsel %vm1230_vm7, %v1229_v42, %v1217_v12  ;;  %v2033_v17 = vsel %vm1230_vm7, %v1265_v13, %v1259_v10  ;;  %v1429_v12 = vld [vmem:[%s1958_s26 + $0xc] sm:$0x3]  ;;  %v1030_v13 = vld [vmem:[%s1029_s20] sm:$0x3] }
 0xc85   : > { %v847_v6 = vpop.permute.xlu1 %846  ;;  %v843_v18 = vpop.permute.xlu0 %842 }
 0xc86   : > { %v849_v43 = vsel %vm460_vm2, %v843_v18, %v847_v6  ;;  %v1084_v6 = vsel %vm513_vm4, %v1429_v12, %v1030_v13 }
 0xc87   : > { %v850_v19 = vpack.c.bf16 %v849_v43, %v849_v43 }
 0xc89   : > { %1547 = vmatmul.mubr.msk.bf16.vlgmr.msra.gmra.mrb[8].mxu0 %vm469_vm3, %v850_v19 }
 0xc8a   : > { %1557 = vmatpush3.bf16.msra.mxu0 %v1931_v15  ;;  %1558 = vmatprep.mubr.msk.bf16.mxu0 %vm1748_vm1, %v1746_v14 }
 0xd5c   : > { %v888_v23 = vpop.f32.mrb[8].mxu0 }
 0xd5d   : > { %v895_v24 = vadd.f32 %v894_v22, %v888_v23  ;;  %v1548_v25 = vpop.f32.mrb[9].mxu0 }
 0xd5e   : > { %v891_v26 = vpop.f32.mrb[10].mxu0 }
 0xd5f   : > { %1682 = vtanh.f32 %v895_v24  ;;  %v1549_v27 = vpop.f32.mrb[11].mxu0  ;;  %v1419_v29 = vmul.f32 -1.442695, %v895_v24 }
 0xd61   : > { %1684 = vpow2.f32 %v1419_v29 }
 0xd69   : > { %v1683_v28 = vpop.eup %1682 }
 0xd6a   : > { %905 = vrot.lane.b32.xlu0 %v1683_v28, %s1750_s28 }
 0xd6b   : > { %v1685_v30 = vpop.eup %1684 }
 0xd6c   : > { %v899_v31 = vadd.f32 1.0, %v1685_v30 }
 0xd6e   : > { %1686 = vrcp.f32 %v899_v31 }
 0xd78   : > { %v1687_v32 = vpop.eup %1686 }
 0xd79   : > { %v903_v35 = vmul.f32 %v1687_v32, %v818_v1 }
 0xddc   : > { %v906_v33 = vpop.permute.xlu0 %905 }
 0xddd   : > { %v908_v34 = vmul.f32 %v1687_v32, %v906_v33 }
 0xddf   : > { %910 = vrot.lane.b32.xlu1 %v908_v34, %s1751_s29 }
 0xe51   : > { %v911_v36 = vpop.permute.xlu1 %910 }
 0xe52   : > { %v913_v37 = vadd.f32 %v911_v36, %v903_v35 }
 0xe54   : > { %1688 = vtanh.f32 %v913_v37 }
 0xe5e   : > { %v1689_v38 = vpop.eup %1688 }
 0xe5f   : > { %924 = vrot.lane.b32.xlu1 %v1689_v38, %s1751_s29  ;;  %918 = vrot.lane.b32.xlu0 %v1689_v38, %s1751_s29 }
 0xed1   : > { %v925_v39 = vpop.permute.xlu1 %924  ;;  %v919_v42 = vpop.permute.xlu0 %918 }
 0xed2   : > { %v2047_v45 = vmul.f32 %v1687_v32, %v925_v39  ;;  %v2049_v46 = vmul.f32 %v1687_v32, %v919_v42 }
 0xed4   : > { %941 = vrot.lane.b32.xlu1 %v2047_v45, %s1749_s3  ;;  %937 = vrot.lane.b32.xlu0 %v2049_v46, %s1747_s2 }
 0xf46   : > { %v942_v47 = vpop.permute.xlu1 %941  ;;  %v938_v48 = vpop.permute.xlu0 %937 }
 0xf47   : > { %v944_v49 = vsel %vm460_vm2, %v938_v48, %v942_v47 }
 0xf48   : > { %v945_v44 = vpack.c.bf16 %v944_v49, %v944_v49 }
 0xf4a   : > { %1553 = vmatmul.mubr.msk.bf16.vlgmr.msra.gmra.mrb[8].mxu1 %vm469_vm3, %v945_v44 }
 0xf4b   : > { %1563 = vmatpush3.bf16.msra.mxu1 %v1931_v15  ;;  %1564 = vmatprep.mubr.msk.bf16.mxu1 %vm1748_vm1, %v1746_v14 }
0x101d   : > { %v983_v53 = vpop.f32.mrb[8].mxu1 }
0x101e   : > { %v990_v54 = vadd.f32 %v989_v52, %v983_v53  ;;  %v1554_v55 = vpop.f32.mrb[9].mxu1  ;;  %v1179_v52 = vsel %vm513_vm4, %v1435_v50, %v1125_v51 }
0x101f   : > { %v986_v56 = vpop.f32.mrb[10].mxu1 }
0x1020   : > { %1690 = vtanh.f32 %v990_v54  ;;  %v1555_v57 = vpop.f32.mrb[11].mxu1  ;;  %v1425_v15 = vmul.f32 -1.442695, %v990_v54 }
0x1022   : > { %1692 = vpow2.f32 %v1425_v15 }
0x102a   : > { %v1691_v58 = vpop.eup %1690 }
0x102b   : > { %1000 = vrot.lane.b32.xlu0 %v1691_v58, %s1750_s28 }
0x102c   : > { %v1693_v59 = vpop.eup %1692 }
0x102d   : > { %v994_v14 = vadd.f32 1.0, %v1693_v59 }
0x102f   : > { %1694 = vrcp.f32 %v994_v14 }
0x1039   : > { %v1695_v60 = vpop.eup %1694 }
0x103a   : > { %v998_v63 = vmul.f32 %v1695_v60, %v913_v37 }
0x109d   : > { %v1001_v61 = vpop.permute.xlu0 %1000 }
0x109e   : > { %v1003_v62 = vmul.f32 %v1695_v60, %v1001_v61 }
0x10a0   : > { %1005 = vrot.lane.b32.xlu1 %v1003_v62, %s1751_s29 }
0x1112   : > { %v1006_v0 = vpop.permute.xlu1 %1005 }
0x1113   : > { %v1008_v1 = vadd.f32 %v1006_v0, %v998_v63 }
0x1115   : > { %1696 = vtanh.f32 %v1008_v1 }
0x111f   : > { %v1697_v2 = vpop.eup %1696 }
0x1120   : > { %1019 = vrot.lane.b32.xlu1 %v1697_v2, %s1751_s29  ;;  %1013 = vrot.lane.b32.xlu0 %v1697_v2, %s1751_s29 }
0x1192   : > { %v1020_v3 = vpop.permute.xlu1 %1019  ;;  %v1014_v4 = vpop.permute.xlu0 %1013 }
0x1193   : > { %v2067_v5 = vmul.f32 %v1695_v60, %v1020_v3  ;;  %v1016_v7 = vmul.f32 %v1695_v60, %v1014_v4 }
0x1195   : > { %1036 = vrot.lane.b32.xlu1 %v2067_v5, %s1749_s3  ;;  %1032 = vrot.lane.b32.xlu0 %v1016_v7, %s1747_s2  ;;  %v1219_v33 = vrot.slane %v1016_v7, 6  ;;  %v1251_v4 = vrot.slane %v2067_v5, 4  ;;  %v1253_v7 = vrot.slane %v2047_v45, 2 }
0x1197   : > { %v1232_v39 = vsel %vm1226_vm5, %v2049_v46, %v1219_v33 }
0x1207   : > { %v1037_v8 = vpop.permute.xlu1 %1036  ;;  %v1033_v9 = vpop.permute.xlu0 %1032 }
0x1208   : > { %v1039_v10 = vsel %vm460_vm2, %v1033_v9, %v1037_v8 }
0x1209   : > { %v1040_v11 = vpack.c.bf16 %v1039_v10, %v1039_v10 }
0x120b   : > { %1559 = vmatmul.mubr.msk.bf16.vlgmr.msra.gmra.mrb[12].mxu0 %vm469_vm3, %v1040_v11 }
0x12de   : > { %v1078_v18 = vpop.f32.mrb[12].mxu0 }
0x12df   : > { %v1085_v43 = vadd.f32 %v1084_v6, %v1078_v18  ;;  %v1560_v19 = vpop.f32.mrb[13].mxu0 }
0x12e0   : > { %v1081_v20 = vpop.f32.mrb[14].mxu0 }
0x12e1   : > { %1698 = vtanh.f32 %v1085_v43  ;;  %v1561_v21 = vpop.f32.mrb[15].mxu0  ;;  %v1431_v23 = vmul.f32 -1.442695, %v1085_v43 }
0x12e3   : > { %1700 = vpow2.f32 %v1431_v23 }
0x12eb   : > { %v1699_v22 = vpop.eup %1698 }
0x12ec   : > { %1095 = vrot.lane.b32.xlu0 %v1699_v22, %s1750_s28 }
0x12ed   : > { %v1701_v24 = vpop.eup %1700 }
0x12ee   : > { %v1089_v25 = vadd.f32 1.0, %v1701_v24 }
0x12f0   : > { %1702 = vrcp.f32 %v1089_v25 }
0x12fa   : > { %v1703_v26 = vpop.eup %1702 }
0x12fb   : > { %v1093_v29 = vmul.f32 %v1703_v26, %v1008_v1 }
0x135e   : > { %v1096_v27 = vpop.permute.xlu0 %1095 }
0x135f   : > { %v1098_v28 = vmul.f32 %v1703_v26, %v1096_v27 }
0x1361   : > { %1100 = vrot.lane.b32.xlu1 %v1098_v28, %s1751_s29 }
0x13d3   : > { %v1101_v30 = vpop.permute.xlu1 %1100 }
0x13d4   : > { %v1103_v31 = vadd.f32 %v1101_v30, %v1093_v29 }
0x13d6   : > { %1704 = vtanh.f32 %v1103_v31 }
0x13e0   : > { %v1705_v32 = vpop.eup %1704 }
0x13e1   : > { %1114 = vrot.lane.b32.xlu1 %v1705_v32, %s1751_s29  ;;  %1108 = vrot.lane.b32.xlu0 %v1705_v32, %s1751_s29 }
0x1453   : > { %v1115_v34 = vpop.permute.xlu1 %1114  ;;  %v1109_v35 = vpop.permute.xlu0 %1108 }
0x1454   : > { %v1117_v36 = vmul.f32 %v1703_v26, %v1115_v34  ;;  %v1111_v37 = vmul.f32 %v1703_v26, %v1109_v35 }
0x1456   : > { %v1221_v38 = vrot.slane %v1111_v37, 4  ;;  %1131 = vrot.lane.b32.xlu1 %v1117_v36, %s1749_s3  ;;  %1127 = vrot.lane.b32.xlu0 %v1111_v37, %s1747_s2  ;;  %v1249_v3 = vrot.slane %v1117_v36, 6 }
0x1458   : > { %v1233_v42 = vsel %vm1228_vm6, %v1232_v39, %v1221_v38 }
0x14c8   : > { %v1132_v47 = vpop.permute.xlu1 %1131  ;;  %v1128_v48 = vpop.permute.xlu0 %1127 }
0x14c9   : > { %v1134_v49 = vsel %vm460_vm2, %v1128_v48, %v1132_v47 }
0x14ca   : > { %v1135_v44 = vpack.c.bf16 %v1134_v49, %v1134_v49 }
0x14cc   : > { %1565 = vmatmul.mubr.msk.bf16.vlgmr.msra.gmra.mrb[12].mxu1 %vm469_vm3, %v1135_v44 }
0x159f   : > { %v1173_v53 = vpop.f32.mrb[12].mxu1 }
0x15a0   : > { %v1180_v54 = vadd.f32 %v1179_v52, %v1173_v53  ;;  %v1566_v55 = vpop.f32.mrb[13].mxu1 }
0x15a1   : > { %v1176_v46 = vpop.f32.mrb[14].mxu1 }
0x15a2   : > { %1706 = vtanh.f32 %v1180_v54  ;;  %v1567_v56 = vpop.f32.mrb[15].mxu1  ;;  %v1437_v58 = vmul.f32 -1.442695, %v1180_v54 }
0x15a4   : > { %1708 = vpow2.f32 %v1437_v58 }
0x15ac   : > { %v1707_v57 = vpop.eup %1706 }
0x15ad   : > { %1190 = vrot.lane.b32.xlu0 %v1707_v57, %s1750_s28  ;;  %s1447_s28 = sadd.s32 16, %s1955_s24 }
0x15ae   : > { %v1709_v15 = vpop.eup %1708 }
0x15af   : > { %v1184_v59 = vadd.f32 1.0, %v1709_v15 }
0x15b1   : > { %1710 = vrcp.f32 %v1184_v59 }
0x15bb   : > { %v1711_v14 = vpop.eup %1710 }
0x15bc   : > { %v1188_v62 = vmul.f32 %v1711_v14, %v1103_v31 }
0x161f   : > { %v1191_v60 = vpop.permute.xlu0 %1190 }
0x1620   : > { %v1193_v61 = vmul.f32 %v1711_v14, %v1191_v60 }
0x1622   : > { %1195 = vrot.lane.b32.xlu1 %v1193_v61, %s1751_s29 }
0x1694   : > { %v1196_v63 = vpop.permute.xlu1 %1195 }
0x1695   : > { %v1198_v12 = vadd.f32 %v1196_v63, %v1188_v62  }
0x1697   : > { %1712 = vtanh.f32 %v1198_v12 }
0x16a1   : > { %v1713_v0 = vpop.eup %1712 }
0x16a2   : > { %1209 = vrot.lane.b32.xlu1 %v1713_v0, %s1751_s29  ;;  %1203 = vrot.lane.b32.xlu0 %v1713_v0, %s1751_s29  ;;  %s1248_s29 = ssub.s32 32, %s1447_s28 }
0x16a3   : > { %s1275_s6 = scalar_lea.vmem %s2127_s4, %s1248_s29 }
0x16a6   : > { %1237 = vrot.lane.b32.xlu0 %v2030_v16, %s1747_s2 }
0x1714   : > { %v1210_v1 = vpop.permute.xlu1 %1209  ;;  %v1204_v2 = vpop.permute.xlu0 %1203 }
0x1715   : > { %v1212_v11 = vmul.f32 %v1711_v14, %v1210_v1   ;;  %v1206_v13 = vmul.f32 %v1711_v14, %v1204_v2  }
0x1717   : > { %v1261_v8 = vsel %vm1226_vm5, %v1212_v11, %v1249_v3  ;;  %v1224_v9 = vrot.slane %v1206_v13, 2 }
0x1718   : > { %v1238_v10 = vpop.permute.xlu0 %1237  ;;  %v1262_v16 = vsel %vm1228_vm6, %v1261_v8, %v1251_v4 }
0x1719   : > { %1244 = vst.msk [vmem:[%s1243_s27] sm:$0xff] %vm460_vm2, %v1238_v10  ;;  %v1263_v6 = vsel %vm1230_vm7, %v1262_v16, %v1253_v7  ;;  %v1234_v18 = vsel %vm1230_vm7, %v1233_v42, %v1224_v9 }
0x171a   : > { %1269 = vrot.lane.b32.xlu0 %v1263_v6, %s1749_s3  ;;  %1239 = vrot.lane.b32.xlu1 %v1234_v18, %s1747_s2 }
0x171e   : > { %1271 = vrot.lane.b32.xlu1 %v2033_v17, %s1749_s3 }
0x178b   :  { %438 = sbr.rel (!%p436_p0) target bundleno = 265 (0x109), region = 61 }
0x178c   : > { %v1270_v45 = vpop.permute.xlu0 %1269  ;;  %v1240_v5 = vpop.permute.xlu1 %1239 }
0x178d   : > { %1245 = vst.msk [vmem:[%s1243_s27 + $0x8] sm:$0xff] %vm460_vm2, %v1240_v5 }
0x178e   : > { %1277 = vst.msk [vmem:[%s1275_s6] sm:$0xff] %vm1276_vm8, %v1270_v45 }
0x1790   : > { %v1272_v43 = vpop.permute.xlu1 %1271 }
0x1791   : > { %1278 = vst.msk [vmem:[%s1275_s6 + $0x8] sm:$0xff] %vm1276_vm8, %v1272_v43 }

// kernel: encoder_forward.3
= control target key start
LH: loop header
LB: loop body
LE: loop exit
PB: predicated region body
PF: predicated region fallthrough
CT: control target
= control target key end

     0   :  { %s16950_s0 = inlined_call_operand.vmem [shape: bf16[2,20,128], index: 0, kind: input, shape index: {}]   ;;  %s16951_s1 = inlined_call_operand.hbm [shape: bf16[5,128,512], index: 1, kind: input, shape index: {}]   ;;  %s16952_s2 = inlined_call_operand.hbm [shape: f32[1,512], index: 2, kind: input, shape index: {}]   ;;  %s16953_s3 = inlined_call_operand.hbm [shape: bf16[5,512,512], index: 3, kind: input, shape index: {}]   ;;  %s16954_s4 = inlined_call_operand.hbm [shape: f32[1,512], index: 4, kind: input, shape index: {}]   ;;  %s16955_s5 = inlined_call_operand.hbm [shape: bf16[5,512,512], index: 5, kind: input, shape index: {}]   ;;  %s16956_s6 = inlined_call_operand.hbm [shape: f32[1,512], index: 6, kind: input, shape index: {}]   ;;  %s16957_s7 = inlined_call_operand.vmem [shape: bf16[16,1024], index: 7, kind: output, shape index: {}]  }
   0x1   :  { %16960 = sst [smem:[#allocation19_spill]] %s16952_s2 }
   0x2   :  { %16961 = sst [smem:[#allocation20_spill]] %s16954_s4 }
   0x3   :  { %12 = vsyncpa [#allocation5], 0 }
   0x4   :  { %13 = vsyncpa [#allocation7], 0 }
   0x5   :  { %14 = vsyncpa [#allocation10], 0 }
   0x6   :  { %15 = vsyncpa [#allocation13], 0  ;;  %s16372_s24 = smov 0   ;;  %s16374_s25 = smov 0  }
   0x7   :  { %s16376_s26 = smov 0  }
   0x8 LB: > { %s16385_s27 = sadd.s32 4294967295, %s16321_s26   ;;  %s16387_s28 = sadd.s32 1, %s16321_s26   ;;  %s16321_s26 = sphi %s16376_s26, %s16982_s26   ;;  %s16317_s25 = sphi %s16374_s25, %s16981_s25   ;;  %s16313_s24 = sphi %s16372_s24, %s16980_s24  }
   0x9   : > { %s177_s29 = ssub.s32 %s16321_s26, %s16387_s28  ;;  %s180_s30 = sadd.s32 1, %s16317_s25 }
   0xa   : > { %p178_p0 = scmp.eq.s32.totalorder %s177_s29, 0  ;;  %p190_p1 = scmp.ne.s32.totalorder %s16317_s25, %s16313_s24 }
   0xb   : > { %p191_p2 = scmp.eq.s32.totalorder %s16385_s27, 1  ;;  %p12136_p3 = scmp.ge.s32.totalorder %s16321_s26, 1 }
   0xc   : > { %s16395_s8 = scalar_select %p178_p0, %s16317_s25, %s180_s30  }
   0xd   : > { %p16397_p4 = por %p191_p2, %p190_p1  ;;  %p204_p5 = scmp.lt.s32.totalorder %s16321_s26, 3 }
   0xe   : > { %p16958_p6 = scmp.eq.s32.totalorder %s16385_s27, 0  ;;  %s16323_s11 = smov [#allocation6]  }
   0xf   : > { %s16962_s9 = scalar_select %p16397_p4, 1, 0 }
  0x10   : > { %p16402_p7 = pnand %p12136_p3, %p204_p5  ;;  %s230_s12 = sshll.u32 %s16323_s11, 4  ;;  %s231_s12 = int_to_ptr.vmem [resolvable:$true] %s230_s12 }
  0x11   : > { %s16324_s13 = smov [#allocation9]   ;;  %s16325_s16 = smov [#allocation4]  }
  0x12   : > { %s16963_s10 = scalar_select %p16402_p7, 1, 0 }
  0x13   : > { %p13869_p8 = pneg %p16402_p7  ;;  %s254_s14 = sshll.u32 %s16324_s13, 4  ;;  %s16414_s14 = int_to_ptr.vmem [resolvable:$true] %s254_s14 }
  0x14   : > { %s216_s17 = sshll.u32 %s16325_s16, 4  ;;  %s16965_s2 = sld [smem:[#allocation19_spill]]  ;;  %s16416_s17 = int_to_ptr.vmem [resolvable:$true] %s216_s17 }
  0x15   : > { %p16410_p9 = pnand %p16958_p6, %p13869_p8 }
  0x17   : > { %p16426_p11 = pneg %p16410_p9 }
  0x1a   : > { %s16115_s20 = scalar_lea.hbm %s16965_s2, 64 }
  0x1b   : > { %p16116_p10 = scmp.ne.s32.totalorder %s16965_s2, %s16115_s20  ;;  %p16122_p0 = scmp.lt.u32.totalorder %s16115_s20, %s16965_s2 }
  0x1d   : > { %p16118_p12 = pnand %p16426_p11, %p16116_p10 }
  0x1f   : > { %p16119_p13 = pneg %p16118_p12 }
  0x21   : > { %p16124_p1 = pnand %p16122_p0, %p16119_p13 }
  0x23   : > { %16127 = shalt.err (!%p16124_p1)
}
  0x24   : > { %s16128_s30 = scalar_lea.vmem %s231_s12, 64  ;;  %p16136_p8 = scmp.lt.s32.totalorder %s231_s12, %s231_s12 }
  0x25   : > { %p16129_p2 = scmp.ne.s32.totalorder %s231_s12, %s16128_s30  ;;  %p16137_p6 = scmp.lt.s32.totalorder %s16128_s30, %s16128_s30 }
  0x27   : > { %p16131_p3 = pnand %p16129_p2, %p16426_p11  ;;  %p16138_p4 = por %p16137_p6, %p16136_p8 }
  0x29   : > { %p16132_p5 = pneg %p16131_p3 }
  0x2b   : > { %p16139_p7 = pnand %p16138_p4, %p16132_p5 }
  0x2d   : > { %16142 = shalt.err (!%p16139_p7)
}
  0x2e   : > { %13875 = dma.hbm_to_vmem [thread:$0]  (!%p16410_p9), %s16965_s2, 64, %s231_s12, [#allocation7]  }
  0x2f   : > { %s16967_s4 = sld [smem:[#allocation20_spill]] }
  0x35   : > { %s16143_s19 = scalar_lea.hbm %s16967_s4, 64 }
  0x36   : > { %p16144_p10 = scmp.ne.s32.totalorder %s16967_s4, %s16143_s19  ;;  %p16150_p4 = scmp.lt.u32.totalorder %s16143_s19, %s16967_s4 }
  0x38   : > { %p16146_p12 = pnand %p16144_p10, %p16426_p11 }
  0x3a   : > { %p16147_p6 = pneg %p16146_p12 }
  0x3c   : > { %p16152_p7 = pnand %p16150_p4, %p16147_p6 }
  0x3e   : > { %16155 = shalt.err (!%p16152_p7)
}
  0x3f   : > { %s16156_s12 = scalar_lea.vmem %s16414_s14, 64  ;;  %p16164_p2 = scmp.lt.s32.totalorder %s16414_s14, %s16414_s14 }
  0x40   : > { %p16157_p13 = scmp.ne.s32.totalorder %s16414_s14, %s16156_s12  ;;  %p16165_p3 = scmp.lt.s32.totalorder %s16156_s12, %s16156_s12 }
  0x42   : > { %p16159_p0 = pnand %p16157_p13, %p16426_p11  ;;  %p16166_p5 = por %p16165_p3, %p16164_p2 }
  0x44   : > { %p16160_p1 = pneg %p16159_p0 }
  0x46   : > { %p16167_p8 = pnand %p16166_p5, %p16160_p1 }
  0x48   : > { %16170 = shalt.err (!%p16167_p8)
}
  0x49   : > { %13881 = dma.hbm_to_vmem [thread:$0]  (!%p16410_p9), %s16967_s4, 64, %s16414_s14, [#allocation10]  }
  0x4a   : > { %s16171_s16 = scalar_lea.hbm %s16951_s1, 20480 }
  0x4b   : > { %p16172_p10 = scmp.ne.s32.totalorder %s16951_s1, %s16171_s16  ;;  %p16178_p4 = scmp.lt.u32.totalorder %s16171_s16, %s16951_s1 }
  0x4d   : > { %p16174_p12 = pnand %p16172_p10, %p16426_p11 }
  0x4f   : > { %p16175_p6 = pneg %p16174_p12 }
  0x51   : > { %p16180_p7 = pnand %p16178_p4, %p16175_p6 }
  0x53   : > { %16183 = shalt.err (!%p16180_p7)
}
  0x54   : > { %s16184_s14 = scalar_lea.vmem %s16416_s17, 20480  ;;  %p16192_p2 = scmp.lt.s32.totalorder %s16416_s17, %s16416_s17 }
  0x55   : > { %p16185_p13 = scmp.ne.s32.totalorder %s16416_s17, %s16184_s14  ;;  %p16193_p3 = scmp.lt.s32.totalorder %s16184_s14, %s16184_s14 }
  0x57   : > { %p16187_p0 = pnand %p16185_p13, %p16426_p11  ;;  %p16194_p5 = por %p16193_p3, %p16192_p2 }
  0x59   : > { %p16188_p1 = pneg %p16187_p0 }
  0x5b   : > { %p16195_p8 = pnand %p16194_p5, %p16188_p1 }
  0x5d   : > { %16198 = shalt.err (!%p16195_p8)
}
  0x5e   : > { %s16326_s22 = smov 256   ;;  %s16327_s26 = smov 16  }
  0x5f   : > { %13872 = dma.hbm_to_vmem [thread:$0]  (!%p16410_p9), %s16951_s1, 20480, %s16416_s17, [#allocation5], %s16326_s22, %s16326_s22, %s16327_s26  }
  0x60   : > { %s16328_s30 = smov [#allocation8]   ;;  %s16329_s13 = smov [#allocation11]  }
  0x61   : > { %s240_s11 = sshll.u32 %s16328_s30, 4  ;;  %s264_s16 = sshll.u32 %s16329_s13, 4  ;;  %s241_s11 = int_to_ptr.vmem [resolvable:$true] %s240_s11  ;;  %s265_s16 = int_to_ptr.vmem [resolvable:$true] %s264_s16 }
  0x62   : > { %s16199_s20 = scalar_lea.hbm %s16953_s3, 81920 }
  0x63   : > { %p16200_p10 = scmp.ne.s32.totalorder %s16953_s3, %s16199_s20  ;;  %p16206_p4 = scmp.lt.u32.totalorder %s16199_s20, %s16953_s3 }
  0x65   : > { %p16202_p12 = pnand %p16200_p10, %p16426_p11 }
  0x67   : > { %p16203_p6 = pneg %p16202_p12 }
  0x69   : > { %p16208_p7 = pnand %p16206_p4, %p16203_p6 }
  0x6b   : > { %16211 = shalt.err (!%p16208_p7)
}
  0x6c   : > { %s16212_s17 = scalar_lea.vmem %s241_s11, 81920  ;;  %p16220_p2 = scmp.lt.s32.totalorder %s241_s11, %s241_s11 }
  0x6d   : > { %p16213_p13 = scmp.ne.s32.totalorder %s241_s11, %s16212_s17  ;;  %p16221_p3 = scmp.lt.s32.totalorder %s16212_s17, %s16212_s17 }
  0x6f   : > { %p16215_p0 = pnand %p16213_p13, %p16426_p11  ;;  %p16222_p5 = por %p16221_p3, %p16220_p2 }
  0x71   : > { %p16216_p1 = pneg %p16215_p0 }
  0x73   : > { %p16223_p8 = pnand %p16222_p5, %p16216_p1 }
  0x75   : > { %16226 = shalt.err (!%p16223_p8)
}
  0x76   : > { %13878 = dma.hbm_to_vmem [thread:$0]  (!%p16410_p9), %s16953_s3, 81920, %s241_s11, [#allocation7], %s16326_s22, %s16326_s22, %s16327_s26  }
  0x77   : > { %s16227_s30 = scalar_lea.hbm %s16955_s5, 81920 }
  0x78   : > { %p16228_p10 = scmp.ne.s32.totalorder %s16955_s5, %s16227_s30  ;;  %p16234_p4 = scmp.lt.u32.totalorder %s16227_s30, %s16955_s5 }
  0x7a   : > { %p16230_p12 = pnand %p16228_p10, %p16426_p11 }
  0x7c   : > { %p16231_p6 = pneg %p16230_p12 }
  0x7e   : > { %p16236_p7 = pnand %p16234_p4, %p16231_p6 }
  0x80   : > { %16239 = shalt.err (!%p16236_p7)
}
  0x81   : > { %s16240_s21 = scalar_lea.vmem %s265_s16, 81920  ;;  %p16248_p2 = scmp.lt.s32.totalorder %s265_s16, %s265_s16 }
  0x82   : > { %p16241_p13 = scmp.ne.s32.totalorder %s265_s16, %s16240_s21  ;;  %p16249_p3 = scmp.lt.s32.totalorder %s16240_s21, %s16240_s21 }
  0x84   : > { %p16243_p0 = pnand %p16241_p13, %p16426_p11  ;;  %p16250_p5 = por %p16249_p3, %p16248_p2 }
  0x86   : > { %p16244_p1 = pneg %p16243_p0 }
  0x88   : > { %p16251_p8 = pnand %p16250_p5, %p16244_p1 }
  0x8a   : > { %16254 = shalt.err (!%p16251_p8)
}
  0x8b   : > { %13884 = dma.hbm_to_vmem [thread:$0]  (!%p16410_p9), %s16955_s5, 81920, %s265_s16, [#allocation10], %s16326_s22, %s16326_s22, %s16327_s26  }
  0x8c   : > { %s16330_s17 = smov [#allocation12]   ;;  %s16255_s29 = scalar_lea.hbm %s16956_s6, 64 }
  0x8d   : > { %s278_s2 = sshll.u32 %s16330_s17, 4  ;;  %p16256_p10 = scmp.ne.s32.totalorder %s16956_s6, %s16255_s29  ;;  %s279_s2 = int_to_ptr.vmem [resolvable:$true] %s278_s2 }
  0x8e   : > { %p16262_p4 = scmp.lt.u32.totalorder %s16255_s29, %s16956_s6 }
  0x8f   : > { %p16258_p12 = pnand %p16256_p10, %p16426_p11 }
  0x91   : > { %p16259_p6 = pneg %p16258_p12 }
  0x93   : > { %p16264_p7 = pnand %p16262_p4, %p16259_p6 }
  0x95   : > { %16267 = shalt.err (!%p16264_p7)
}
  0x96   : > { %s16268_s22 = scalar_lea.vmem %s279_s2, 64  ;;  %p16276_p2 = scmp.lt.s32.totalorder %s279_s2, %s279_s2 }
  0x97   : > { %p16269_p13 = scmp.ne.s32.totalorder %s279_s2, %s16268_s22  ;;  %p16277_p3 = scmp.lt.s32.totalorder %s16268_s22, %s16268_s22 }
  0x99   : > { %p16271_p0 = pnand %p16269_p13, %p16426_p11  ;;  %p16278_p5 = por %p16277_p3, %p16276_p2 }
  0x9b   : > { %p16272_p1 = pneg %p16271_p0 }
  0x9d   : > { %p16279_p8 = pnand %p16278_p5, %p16272_p1 }
  0x9f   : > { %16282 = shalt.err (!%p16279_p8)
}
  0xa0   : > { %13887 = dma.hbm_to_vmem [thread:$0]  (!%p16410_p9), %s16956_s6, 64, %s279_s2, [#allocation13]  }
  0xa1   : > { %p16968_p10 = scmp.ne.s32.totalorder %s16963_s10, 0 }
  0xa2   : > { %p16969_p12 = scmp.eq.s32.totalorder (!%p16968_p10), %s16385_s27, 0 }
  0xa3   : > { %299 = sbr.rel (%p16968_p10) target bundleno = 2209 (0x8a1), region = 48 }
  0xaa   : > { %16296 = dma.done.wait (%p16969_p12), [#allocation5], 20480   ;;  %p16970_p11 = pmov %p16969_p12 }
  0xac   : > { %16298 = vsyncadd (%p16970_p11), [#allocation5], 4294946816  ;;  %p16971_p6 = pmov %p16970_p11 }
  0xae   : > { %16300 = dma.done.wait (%p16971_p6), [#allocation7], 81984   ;;  %p16972_p4 = pmov %p16971_p6 }
  0xb0   : > { %16302 = vsyncadd (%p16972_p4), [#allocation7], 4294885312  ;;  %p16973_p7 = pmov %p16972_p4 }
  0xb1   : > { %p16974_p9 = pmov %p16972_p4 }
  0xb2   : > { %16304 = dma.done.wait (%p16973_p7), [#allocation10], 81984  }
  0xb3   : > { %16306 = vsyncadd (%p16974_p9), [#allocation10], 4294885312  ;;  %p16975_p13 = pmov %p16972_p4 }
  0xb4   : > { %p16976_p0 = pmov %p16972_p4 }
  0xb5   : > { %16308 = dma.done.wait (%p16975_p13), [#allocation13], 64  }
  0xb6   : > { %16310 = vsyncadd (%p16976_p0), [#allocation13], 4294967232  ;;  %v16331_v0 = vmov 0   ;;  %v13933_v1 = vld [vmem:[#allocation4 + $0x104] ss:$16 sps:$4 sm:$0xff]   ;;  %p350_p1 = scmp.lt.s32.totalorder %s16385_s27, 1 }
  0xb7   : > { %639 = vmatprep.mubr.bf16.mxu0 %v16331_v0  ;;  %1880 = vst [vmem:[#allocation2] sm:$0x11] %v16331_v0  ;;  %1881 = vst [vmem:[#allocation2 + $0x8] sm:$0x11] %v16331_v0  ;;  %682 = vmatprep.mubr.bf16.mxu1 %v16331_v0  ;;  %v13935_v2 = vld [vmem:[#allocation4 + $0x10c] ss:$16 sps:$4 sm:$0xff]  }
  0xb8   : > { %1882 = vst [vmem:[#allocation2 + $0x20] sm:$0x22] %v16331_v0  ;;  %1883 = vst [vmem:[#allocation2 + $0x28] sm:$0x22] %v16331_v0  ;;  %607 = vmatprep.subr.bf16.mxu0 %v13933_v1  ;;  %v13937_v3 = vld [vmem:[#allocation4 + $0x100] ss:$16 sps:$4 sm:$0xff]   ;;  %650 = vmatprep.subr.bf16.mxu1 %v13935_v2 }
  0xb9   : > { %6923 = vst [vmem:[#allocation3] sm:$0x11] %v16331_v0  ;;  %6924 = vst [vmem:[#allocation3 + $0x8] sm:$0x11] %v16331_v0  ;;  %v13938_v4 = vld [vmem:[#allocation4 + $0x108] ss:$16 sps:$4 sm:$0xff]   ;;  %608 = vmatpush1.bf16.msra.mxu0 %v13937_v3 }
  0xba   : > { %6925 = vst [vmem:[#allocation3 + $0x20] sm:$0x22] %v16331_v0  ;;  %6926 = vst [vmem:[#allocation3 + $0x28] sm:$0x22] %v16331_v0  ;;  %v13939_v5 = vld [vmem:[#allocation4 + $0x124] ss:$16 sps:$4 sm:$0xff]   ;;  %651 = vmatpush1.bf16.msra.mxu1 %v13938_v4 }
  0xbb   : > { %v13941_v6 = vld [vmem:[#allocation4 + $0x12c] ss:$16 sps:$4 sm:$0xff]   ;;  %v13943_v7 = vld [vmem:[#allocation4 + $0x120] ss:$16 sps:$4 sm:$0xff]   ;;  %609 = vmatprep.subr.bf16.mxu0 %v13939_v5  ;;  %v13944_v8 = vld [vmem:[#allocation4 + $0x128] ss:$16 sps:$4 sm:$0xff]  }
  0xbc   : > { %652 = vmatprep.subr.bf16.mxu1 %v13941_v6  ;;  %v13945_v9 = vld [vmem:[#allocation4 + $0x144] ss:$16 sps:$4 sm:$0xff]   ;;  %v13947_v10 = vld [vmem:[#allocation4 + $0x14c] ss:$16 sps:$4 sm:$0xff]   ;;  %v13949_v11 = vld [vmem:[#allocation4 + $0x140] ss:$16 sps:$4 sm:$0xff]  }
  0xbd   : > { %v13950_v12 = vld [vmem:[#allocation4 + $0x148] ss:$16 sps:$4 sm:$0xff]   ;;  %610 = vmatpush1.bf16.msra.mxu0 %v13943_v7  ;;  %v13951_v13 = vld [vmem:[#allocation4 + $0x164] ss:$16 sps:$4 sm:$0xff]   ;;  %v13953_v14 = vld [vmem:[#allocation4 + $0x16c] ss:$16 sps:$4 sm:$0xff]  }
  0xbe   : > { %653 = vmatpush1.bf16.msra.mxu1 %v13944_v8  ;;  %611 = vmatprep.subr.bf16.mxu0 %v13945_v9  ;;  %v13955_v15 = vld [vmem:[#allocation4 + $0x160] ss:$16 sps:$4 sm:$0xff]   ;;  %v13956_v16 = vld [vmem:[#allocation4 + $0x168] ss:$16 sps:$4 sm:$0xff]   ;;  %v13957_v17 = vld [vmem:[#allocation4 + $0x184] ss:$16 sps:$4 sm:$0xff]  }
  0xbf   : > { %654 = vmatprep.subr.bf16.mxu1 %v13947_v10  ;;  %v13959_v18 = vld [vmem:[#allocation4 + $0x18c] ss:$16 sps:$4 sm:$0xff]   ;;  %s351_s10 = scalar_select %p350_p1, %s16385_s27, 1  ;;  %v13961_v19 = vld [vmem:[#allocation4 + $0x180] ss:$16 sps:$4 sm:$0xff]   ;;  %vm977_vm1 = vcmask 1046528  }
  0xc0   : > { %v13962_v20 = vld [vmem:[#allocation4 + $0x188] ss:$16 sps:$4 sm:$0xff]   ;;  %v13963_v21 = vld [vmem:[#allocation4 + $0x1a4] ss:$16 sps:$4 sm:$0xff]   ;;  %v13965_v22 = vld [vmem:[#allocation4 + $0x1ac] ss:$16 sps:$4 sm:$0xff]  }
  0xc1   : > { %612 = vmatpush1.bf16.msra.mxu0 %v13949_v11  ;;  %s13844_s15 = smul.u32 12, %s351_s10  ;;  %v13967_v23 = vld [vmem:[#allocation4 + $0x1a0] ss:$16 sps:$4 sm:$0xff]   ;;  %v13968_v24 = vld [vmem:[#allocation4 + $0x1a8] ss:$16 sps:$4 sm:$0xff]   ;;  %vm1583_vm3 = vcmask 1045504  }
  0xc2   : > { %655 = vmatpush1.bf16.msra.mxu1 %v13950_v12  ;;  %613 = vmatprep.subr.bf16.mxu0 %v13951_v13  ;;  %v13969_v25 = vld [vmem:[#allocation4 + $0x1c4] ss:$16 sps:$4 sm:$0xff]   ;;  %v13971_v26 = vld [vmem:[#allocation4 + $0x1cc] ss:$16 sps:$4 sm:$0xff]   ;;  %v13973_v27 = vld [vmem:[#allocation4 + $0x1c0] ss:$16 sps:$4 sm:$0xff]  }
  0xc3   : > { %656 = vmatprep.subr.bf16.mxu1 %v13953_v14  ;;  %s16584_s21 = scalar_lea.vmem %s16950_s0, %s13844_s15  ;;  %v13974_v28 = vld [vmem:[#allocation4 + $0x1c8] ss:$16 sps:$4 sm:$0xff]   ;;  %v13975_v29 = vld [vmem:[#allocation4 + $0x1e4] ss:$16 sps:$4 sm:$0xff]   ;;  %v13977_v30 = vld [vmem:[#allocation4 + $0x1ec] ss:$16 sps:$4 sm:$0xff]  }
  0xc4   : > { %v357_v31 = vld [vmem:[%s16584_s21] sm:$0xf]  ;;  %v16588_v32 = vld [vmem:[%s16584_s21 + $0x4] sm:$0xf]  ;;  %v13980_v39 = vld [vmem:[#allocation4 + $0x1e8] ss:$16 sps:$4 sm:$0xff]  }
  0xc5   : > { %614 = vmatpush1.bf16.msra.mxu0 %v13955_v15  ;;  %v16591_v33 = vcombine.low %v357_v31, %v16588_v32  ;;  %v16594_v34 = vld [vmem:[%s16584_s21 + $0x8] ss:$0 sps:$4 sm:$0x11]   ;;  %v13979_v35 = vld [vmem:[#allocation4 + $0x1e0] ss:$16 sps:$4 sm:$0xff]   ;;  %vm1904_vm4 = vcmask 1040384  }
  0xc6   : > { %657 = vmatpush1.bf16.msra.mxu1 %v13956_v16  ;;  %615 = vmatprep.subr.bf16.mxu0 %v13957_v17  ;;  %v442_v38 = vshll.u32 %v16594_v34, 16  ;;  %v13983_v40 = vld [vmem:[#allocation4 + $0x4] ss:$16 sps:$4 sm:$0xff]   ;;  %v13986_v41 = vld [vmem:[#allocation4 + $0xc] ss:$16 sps:$4 sm:$0xff]   ;;  %vm1905_vm5 = vcmask 1044484  }
  0xc7   : > { %658 = vmatprep.subr.bf16.mxu1 %v13959_v18  ;;  %v435_v36 = vshrl.u32 %v16591_v33, 16  ;;  %v437_v37 = vshll.u32 %v16591_v33, 16  ;;  %vm433_vm0 = vsmask.f32 7424  ;;  %v13981_v45 = vld [vmem:[#allocation4] ss:$16 sps:$4 sm:$0xff]   ;;  %vm16641_vm6 = vmor %vm1904_vm4, %vm1905_vm5 }
  0xc8   : > { %v444_v43 = vrot.slane %v442_v38, 1  ;;  %v13984_v46 = vld [vmem:[#allocation4 + $0x8] ss:$16 sps:$4 sm:$0xff]   ;;  %v13991_v48 = vld [vmem:[#allocation4 + $0x24] ss:$16 sps:$4 sm:$0xff]   ;;  %s347_s11 = sand.u32 1, %s16313_s24  }
  0xc9   : > { %616 = vmatpush1.bf16.msra.mxu0 %v13961_v19  ;;  %v439_v42 = vrot.slane %v437_v37, 1  ;;  %v13994_v49 = vld [vmem:[#allocation4 + $0x2c] ss:$16 sps:$4 sm:$0xff]   ;;  %v13989_v50 = vld [vmem:[#allocation4 + $0x20] ss:$16 sps:$4 sm:$0xff]   ;;  %s12151_s14 = sshll.u32 %s347_s11, 5 }
  0xca   : > { %659 = vmatpush1.bf16.msra.mxu1 %v13962_v20  ;;  %617 = vmatprep.subr.bf16.mxu0 %v13963_v21  ;;  %v13992_v51 = vld [vmem:[#allocation4 + $0x28] ss:$16 sps:$4 sm:$0xff]   ;;  %v13997_v52 = vld [vmem:[#allocation4 + $0x44] ss:$16 sps:$4 sm:$0xff]   ;;  %v14000_v53 = vld [vmem:[#allocation4 + $0x4c] ss:$16 sps:$4 sm:$0xff]  }
  0xcb   : > { %660 = vmatprep.subr.bf16.mxu1 %v13965_v22  ;;  %v440_v44 = vor.u32 %v439_v42, %v435_v36  ;;  %v13995_v54 = vld [vmem:[#allocation4 + $0x40] ss:$16 sps:$4 sm:$0xff]   ;;  %v13998_v55 = vld [vmem:[#allocation4 + $0x48] ss:$16 sps:$4 sm:$0xff]   ;;  %v14003_v56 = vld [vmem:[#allocation4 + $0x64] ss:$16 sps:$4 sm:$0xff]  }
  0xcc   : > { %v14006_v57 = vld [vmem:[#allocation4 + $0x6c] ss:$16 sps:$4 sm:$0xff]   ;;  %v14001_v58 = vld [vmem:[#allocation4 + $0x60] ss:$16 sps:$4 sm:$0xff]   ;;  %v14004_v59 = vld [vmem:[#allocation4 + $0x68] ss:$16 sps:$4 sm:$0xff]  }
  0xcd   : > { %618 = vmatpush1.bf16.msra.mxu0 %v13967_v23  ;;  %v445_v47 = vsel %vm433_vm0, %v440_v44, %v444_v43  ;;  %v14009_v60 = vld [vmem:[#allocation4 + $0x84] ss:$16 sps:$4 sm:$0xff]   ;;  %v14012_v61 = vld [vmem:[#allocation4 + $0x8c] ss:$16 sps:$4 sm:$0xff]   ;;  %v14007_v62 = vld [vmem:[#allocation4 + $0x80] ss:$16 sps:$4 sm:$0xff]  }
  0xce   : > { %661 = vmatpush1.bf16.msra.mxu1 %v13968_v24  ;;  %619 = vmatprep.subr.bf16.mxu0 %v13969_v25  ;;  %v14010_v63 = vld [vmem:[#allocation4 + $0x88] ss:$16 sps:$4 sm:$0xff]   ;;  %v14015_v1 = vld [vmem:[#allocation4 + $0xa4] ss:$16 sps:$4 sm:$0xff]   ;;  %v14018_v2 = vld [vmem:[#allocation4 + $0xac] ss:$16 sps:$4 sm:$0xff]  }
  0xcf   : > { %662 = vmatprep.subr.bf16.mxu1 %v13971_v26  ;;  %v14013_v3 = vld [vmem:[#allocation4 + $0xa0] ss:$16 sps:$4 sm:$0xff]   ;;  %v14016_v4 = vld [vmem:[#allocation4 + $0xa8] ss:$16 sps:$4 sm:$0xff]   ;;  %v14021_v5 = vld [vmem:[#allocation4 + $0xc4] ss:$16 sps:$4 sm:$0xff]  }
  0xd0   : > { %v14024_v6 = vld [vmem:[#allocation4 + $0xcc] ss:$16 sps:$4 sm:$0xff]   ;;  %v14019_v7 = vld [vmem:[#allocation4 + $0xc0] ss:$16 sps:$4 sm:$0xff]   ;;  %v14022_v8 = vld [vmem:[#allocation4 + $0xc8] ss:$16 sps:$4 sm:$0xff]  }
  0xd1   : > { %620 = vmatpush1.bf16.msra.mxu0 %v13973_v27  ;;  %v14027_v9 = vld [vmem:[#allocation4 + $0xe4] ss:$16 sps:$4 sm:$0xff]   ;;  %v14030_v10 = vld [vmem:[#allocation4 + $0xec] ss:$16 sps:$4 sm:$0xff]   ;;  %v14025_v11 = vld [vmem:[#allocation4 + $0xe0] ss:$16 sps:$4 sm:$0xff]  }
  0xd2   : > { %663 = vmatpush1.bf16.msra.mxu1 %v13974_v28  ;;  %621 = vmatprep.subr.bf16.mxu0 %v13975_v29  ;;  %v14028_v12 = vld [vmem:[#allocation4 + $0xe8] ss:$16 sps:$4 sm:$0xff]   ;;  %v14033_v13 = vld [vmem:[#allocation4 + $0x204] ss:$16 sps:$4 sm:$0xff]   ;;  %v14036_v14 = vld [vmem:[#allocation4 + $0x20c] ss:$16 sps:$4 sm:$0xff]  }
  0xd3   : > { %664 = vmatprep.subr.bf16.mxu1 %v13977_v30  ;;  %v14031_v15 = vld [vmem:[#allocation4 + $0x200] ss:$16 sps:$4 sm:$0xff]   ;;  %v14034_v16 = vld [vmem:[#allocation4 + $0x208] ss:$16 sps:$4 sm:$0xff]   ;;  %v14039_v17 = vld [vmem:[#allocation4 + $0x224] ss:$16 sps:$4 sm:$0xff]  }
  0xd4   : > { %v14042_v18 = vld [vmem:[#allocation4 + $0x22c] ss:$16 sps:$4 sm:$0xff]   ;;  %v14037_v19 = vld [vmem:[#allocation4 + $0x220] ss:$16 sps:$4 sm:$0xff]   ;;  %v14040_v20 = vld [vmem:[#allocation4 + $0x228] ss:$16 sps:$4 sm:$0xff]  }
  0xd5   : > { %622 = vmatpush1.bf16.msra.mxu0 %v13979_v35  ;;  %v14045_v21 = vld [vmem:[#allocation4 + $0x244] ss:$16 sps:$4 sm:$0xff]   ;;  %v14048_v22 = vld [vmem:[#allocation4 + $0x24c] ss:$16 sps:$4 sm:$0xff]   ;;  %v14043_v23 = vld [vmem:[#allocation4 + $0x240] ss:$16 sps:$4 sm:$0xff]  }
  0xd6   : > { %665 = vmatpush1.bf16.msra.mxu1 %v13980_v39  ;;  %854 = vmatprep.subr.bf16.mxu0 %v13983_v40  ;;  %v14046_v24 = vld [vmem:[#allocation4 + $0x248] ss:$16 sps:$4 sm:$0xff]   ;;  %v14051_v25 = vld [vmem:[#allocation4 + $0x264] ss:$16 sps:$4 sm:$0xff]   ;;  %v14054_v26 = vld [vmem:[#allocation4 + $0x26c] ss:$16 sps:$4 sm:$0xff]  }
  0xd7   : > { %897 = vmatprep.subr.bf16.mxu1 %v13986_v41  ;;  %v14049_v27 = vld [vmem:[#allocation4 + $0x260] ss:$16 sps:$4 sm:$0xff]   ;;  %v14052_v28 = vld [vmem:[#allocation4 + $0x268] ss:$16 sps:$4 sm:$0xff]   ;;  %v14057_v29 = vld [vmem:[#allocation4 + $0x284] ss:$16 sps:$4 sm:$0xff]  }
  0xd8   : > { %640 = vmatmul.mubr.bf16.vlgmr.msra.gmra.mrb[0].mxu0 %v445_v47  ;;  %v14060_v30 = vld [vmem:[#allocation4 + $0x28c] ss:$16 sps:$4 sm:$0xff]   ;;  %v14055_v31 = vld [vmem:[#allocation4 + $0x280] ss:$16 sps:$4 sm:$0xff]   ;;  %v14063_v35 = vld [vmem:[#allocation4 + $0x2a4] ss:$16 sps:$4 sm:$0xff]  }
  0xd9   : > { %683 = vmatmul.mubr.bf16.vlgmr.msra.gmra.mrb[0].mxu1 %v445_v47  ;;  %855 = vmatpush1.bf16.msra.mxu0 %v13981_v45  ;;  %v14066_v36 = vld [vmem:[#allocation4 + $0x2ac] ss:$16 sps:$4 sm:$0xff]   ;;  %v14061_v37 = vld [vmem:[#allocation4 + $0x2a0] ss:$16 sps:$4 sm:$0xff]   ;;  %v14064_v38 = vld [vmem:[#allocation4 + $0x2a8] ss:$16 sps:$4 sm:$0xff]  }
  0xda   : > { %898 = vmatpush1.bf16.msra.mxu1 %v13984_v46  ;;  %856 = vmatprep.subr.bf16.mxu0 %v13991_v48  ;;  %v14069_v39 = vld [vmem:[#allocation4 + $0x2c4] ss:$16 sps:$4 sm:$0xff]   ;;  %v14072_v40 = vld [vmem:[#allocation4 + $0x2cc] ss:$16 sps:$4 sm:$0xff]   ;;  %v940_v41 = vld [vmem:[%s16584_s21] sm:$0xe] }
  0xdb   : > { %899 = vmatprep.subr.bf16.mxu1 %v13994_v49  ;;  %886 = vmatprep.mubr.bf16.mxu0 %v16331_v0  ;;  %v14067_v42 = vld [vmem:[#allocation4 + $0x2c0] ss:$16 sps:$4 sm:$0xff]   ;;  %v14070_v43 = vld [vmem:[#allocation4 + $0x2c8] ss:$16 sps:$4 sm:$0xff]   ;;  %v14075_v44 = vld [vmem:[#allocation4 + $0x2e4] ss:$16 sps:$4 sm:$0xff]   ;;  %v16608_v45 = vcombine.low %v940_v41, %v16588_v32 }
  0xdc   : > { %929 = vmatprep.mubr.bf16.mxu1 %v16331_v0  ;;  %v14078_v46 = vld [vmem:[#allocation4 + $0x2ec] ss:$16 sps:$4 sm:$0xff]   ;;  %v14073_v47 = vld [vmem:[#allocation4 + $0x2e0] ss:$16 sps:$4 sm:$0xff]   ;;  %v14076_v48 = vld [vmem:[#allocation4 + $0x2e8] ss:$16 sps:$4 sm:$0xff]  }
  0xdd   : > { %857 = vmatpush1.bf16.msra.mxu0 %v13989_v50  ;;  %v978_v49 = vrot.slane %v16608_v45, 1  ;;  %v979_v50 = vrot.slane %v16594_v34, 1  ;;  %v14079_v32 = vld [vmem:[#allocation4 + $0x300] ss:$16 sps:$4 sm:$0xff]   ;;  %vm1273_vm2 = vsmask.f32 6400 }
  0xde   : > { %900 = vmatpush1.bf16.msra.mxu1 %v13992_v51  ;;  %858 = vmatprep.subr.bf16.mxu0 %v13997_v52  ;;  %v14081_v51 = vld [vmem:[#allocation4 + $0x304] ss:$16 sps:$4 sm:$0xff]   ;;  %v14084_v52 = vld [vmem:[#allocation4 + $0x30c] ss:$16 sps:$4 sm:$0xff]   ;;  %v14086_v34 = vld [vmem:[#allocation4 + $0x320] ss:$16 sps:$4 sm:$0xff]  }
  0xdf   : > { %901 = vmatprep.subr.bf16.mxu1 %v14000_v53  ;;  %v14082_v53 = vld [vmem:[#allocation4 + $0x308] ss:$16 sps:$4 sm:$0xff]   ;;  %v14143_v41 = vld [vmem:[#allocation4 + $0x444] ss:$16 sps:$4 sm:$0xff]   ;;  %s349_s24 = scalar_lea.vmem [#allocation14], %s12151_s14  ;;  %p16979_p2 = scmp.ne.s32.totalorder %s16962_s9, 0 }
  0xe0   : > { %s13667_s17 = sshll.u32 (%p16979_p2), %s16385_s27, 4 }
  0xe1   : > { %859 = vmatpush1.bf16.msra.mxu0 %v13995_v54  ;;  %v980_v54 = vsel %vm977_vm1, %v978_v49, %v979_v50  ;;  %v14155_v49 = vld [vmem:[#allocation4 + $0x484] ss:$16 sps:$4 sm:$0xff]   ;;  %v14158_v50 = vld [vmem:[#allocation4 + $0x48c] ss:$16 sps:$4 sm:$0xff]   ;;  %s12000_s12 = scalar_lea.vmem (%p16979_p2), %s16957_s7, %s13667_s17 }
  0xe2   : > { %902 = vmatpush1.bf16.msra.mxu1 %v13998_v55  ;;  %860 = vmatprep.subr.bf16.mxu0 %v14003_v56  ;;  %v14088_v55 = vld [vmem:[#allocation4 + $0x324] ss:$16 sps:$4 sm:$0xff]   ;;  %v14091_v56 = vld [vmem:[#allocation4 + $0x32c] ss:$16 sps:$4 sm:$0xff]  }
  0xe3   : > { %903 = vmatprep.subr.bf16.mxu1 %v14006_v57  ;;  %v14089_v57 = vld [vmem:[#allocation4 + $0x328] ss:$16 sps:$4 sm:$0xff]  }
  0xe5   : > { %861 = vmatpush1.bf16.msra.mxu0 %v14001_v58  ;;  %v14094_v58 = vld [vmem:[#allocation4 + $0x344] ss:$16 sps:$4 sm:$0xff]  }
  0xe6   : > { %904 = vmatpush1.bf16.msra.mxu1 %v14004_v59  ;;  %862 = vmatprep.subr.bf16.mxu0 %v14009_v60  ;;  %v14097_v59 = vld [vmem:[#allocation4 + $0x34c] ss:$16 sps:$4 sm:$0xff]   ;;  %v14092_v60 = vld [vmem:[#allocation4 + $0x340] ss:$16 sps:$4 sm:$0xff]  }
  0xe7   : > { %905 = vmatprep.subr.bf16.mxu1 %v14012_v61  ;;  %v14095_v61 = vld [vmem:[#allocation4 + $0x348] ss:$16 sps:$4 sm:$0xff]  }
  0xe9   : > { %863 = vmatpush1.bf16.msra.mxu0 %v14007_v62  ;;  %v14100_v62 = vld [vmem:[#allocation4 + $0x364] ss:$16 sps:$4 sm:$0xff]  }
  0xea   : > { %906 = vmatpush1.bf16.msra.mxu1 %v14010_v63  ;;  %864 = vmatprep.subr.bf16.mxu0 %v14015_v1  ;;  %v14103_v63 = vld [vmem:[#allocation4 + $0x36c] ss:$16 sps:$4 sm:$0xff]   ;;  %v14098_v1 = vld [vmem:[#allocation4 + $0x360] ss:$16 sps:$4 sm:$0xff]  }
  0xeb   : > { %907 = vmatprep.subr.bf16.mxu1 %v14018_v2  ;;  %v14101_v2 = vld [vmem:[#allocation4 + $0x368] ss:$16 sps:$4 sm:$0xff]  }
  0xed   : > { %865 = vmatpush1.bf16.msra.mxu0 %v14013_v3  ;;  %v14106_v3 = vld [vmem:[#allocation4 + $0x384] ss:$16 sps:$4 sm:$0xff]  }
  0xee   : > { %908 = vmatpush1.bf16.msra.mxu1 %v14016_v4  ;;  %866 = vmatprep.subr.bf16.mxu0 %v14021_v5  ;;  %v14109_v4 = vld [vmem:[#allocation4 + $0x38c] ss:$16 sps:$4 sm:$0xff]   ;;  %v14104_v5 = vld [vmem:[#allocation4 + $0x380] ss:$16 sps:$4 sm:$0xff]  }
  0xef   : > { %909 = vmatprep.subr.bf16.mxu1 %v14024_v6  ;;  %v14107_v6 = vld [vmem:[#allocation4 + $0x388] ss:$16 sps:$4 sm:$0xff]  }
  0xf1   : > { %867 = vmatpush1.bf16.msra.mxu0 %v14019_v7  ;;  %v14112_v7 = vld [vmem:[#allocation4 + $0x3a4] ss:$16 sps:$4 sm:$0xff]  }
  0xf2   : > { %910 = vmatpush1.bf16.msra.mxu1 %v14022_v8  ;;  %868 = vmatprep.subr.bf16.mxu0 %v14027_v9  ;;  %v16616_v8 = vld [vmem:[%s16584_s21 + $0x8] ss:$0 sps:$4 sm:$0x33]   ;;  %v14115_v9 = vld [vmem:[#allocation4 + $0x3ac] ss:$16 sps:$4 sm:$0xff]  }
  0xf3   : > { %911 = vmatprep.subr.bf16.mxu1 %v14030_v10  ;;  %v14110_v10 = vld [vmem:[#allocation4 + $0x3a0] ss:$16 sps:$4 sm:$0xff]  }
  0xf5   : > { %869 = vmatpush1.bf16.msra.mxu0 %v14025_v11  ;;  %v14113_v11 = vld [vmem:[#allocation4 + $0x3a8] ss:$16 sps:$4 sm:$0xff]  }
  0xf6   : > { %912 = vmatpush1.bf16.msra.mxu1 %v14028_v12  ;;  %1142 = vmatprep.subr.bf16.mxu0 %v14033_v13  ;;  %v1275_v12 = vshrl.u32 %v16608_v45, 16  ;;  %v14118_v13 = vld [vmem:[#allocation4 + $0x3c4] ss:$16 sps:$4 sm:$0xff]  }
  0xf7   : > { %1185 = vmatprep.subr.bf16.mxu1 %v14036_v14  ;;  %v1278_v14 = vshll.u32 %v16608_v45, 16  ;;  %v14149_v45 = vld [vmem:[#allocation4 + $0x464] ss:$16 sps:$4 sm:$0xff]  }
  0xf8   : > { %887 = vmatmul.mubr.bf16.vlgmr.msra.gmra.mrb[0].mxu0 %v16591_v33 }
  0xf9   : > { %930 = vmatmul.mubr.bf16.vlgmr.msra.gmra.mrb[0].mxu1 %v16591_v33  ;;  %1143 = vmatpush1.bf16.msra.mxu0 %v14031_v15  ;;  %v14058_v33 = vld [vmem:[#allocation4 + $0x288] ss:$16 sps:$4 sm:$0xff]   ;;  %v1283_v15 = vshrl.u32 %v16616_v8, 16 }
  0xfa   : > { %1186 = vmatpush1.bf16.msra.mxu1 %v14034_v16  ;;  %1144 = vmatprep.subr.bf16.mxu0 %v14039_v17  ;;  %v1286_v16 = vshll.u32 %v16616_v8, 16  ;;  %v14121_v17 = vld [vmem:[#allocation4 + $0x3cc] ss:$16 sps:$4 sm:$0xff]  }
  0xfb   : > { %1187 = vmatprep.subr.bf16.mxu1 %v14042_v18  ;;  %1174 = vmatprep.mubr.bf16.mxu0 %v16331_v0  ;;  %v14116_v18 = vld [vmem:[#allocation4 + $0x3c0] ss:$16 sps:$4 sm:$0xff]  }
  0xfc   : > { %1217 = vmatprep.mubr.bf16.mxu1 %v16331_v0 }
  0xfd   : > { %1145 = vmatpush1.bf16.msra.mxu0 %v14037_v19  ;;  %v14119_v19 = vld [vmem:[#allocation4 + $0x3c8] ss:$16 sps:$4 sm:$0xff]  }
  0xfe   : > { %1188 = vmatpush1.bf16.msra.mxu1 %v14040_v20  ;;  %1146 = vmatprep.subr.bf16.mxu0 %v14045_v21  ;;  %v1277_v20 = vrot.slane %v1275_v12, 1  ;;  %v14124_v21 = vld [vmem:[#allocation4 + $0x3e4] ss:$16 sps:$4 sm:$0xff]  }
  0xff   : > { %1189 = vmatprep.subr.bf16.mxu1 %v14048_v22  ;;  %v1280_v22 = vrot.slane %v1278_v14, 2  ;;  %v14184_v12 = vld [vmem:[#allocation8 + $0x420] ss:$16 sps:$4 sm:$0xff]   ;;  %v14192_v14 = vld [vmem:[#allocation8 + $0x444] ss:$16 sps:$4 sm:$0xff]  }
 0x101   : > { %1147 = vmatpush1.bf16.msra.mxu0 %v14043_v23  ;;  %v1285_v23 = vrot.slane %v1283_v15, 1  ;;  %v14195_v15 = vld [vmem:[#allocation8 + $0x44c] ss:$16 sps:$4 sm:$0xff]  }
 0x102   : > { %1190 = vmatpush1.bf16.msra.mxu1 %v14046_v24  ;;  %1148 = vmatprep.subr.bf16.mxu0 %v14051_v25  ;;  %v1288_v24 = vrot.slane %v1286_v16, 2  ;;  %v14127_v25 = vld [vmem:[#allocation4 + $0x3ec] ss:$16 sps:$4 sm:$0xff]  }
 0x103   : > { %1191 = vmatprep.subr.bf16.mxu1 %v14054_v26  ;;  %v14122_v26 = vld [vmem:[#allocation4 + $0x3e0] ss:$16 sps:$4 sm:$0xff]   ;;  %v14193_v16 = vld [vmem:[#allocation8 + $0x448] ss:$16 sps:$4 sm:$0xff]  }
 0x105   : > { %1149 = vmatpush1.bf16.msra.mxu0 %v14049_v27  ;;  %v14125_v27 = vld [vmem:[#allocation4 + $0x3e8] ss:$16 sps:$4 sm:$0xff]  }
 0x106   : > { %1192 = vmatpush1.bf16.msra.mxu1 %v14052_v28  ;;  %1150 = vmatprep.subr.bf16.mxu0 %v14057_v29  ;;  %v14130_v28 = vld [vmem:[#allocation4 + $0x404] ss:$16 sps:$4 sm:$0xff]   ;;  %v1281_v29 = vor.u32 %v1280_v22, %v1277_v20  ;;  %v14199_v20 = vld [vmem:[#allocation8 + $0x468] ss:$16 sps:$4 sm:$0xff]   ;;  %v14207_v22 = vld [vmem:[#allocation8 + $0x48c] ss:$16 sps:$4 sm:$0xff]  }
 0x107   : > { %1193 = vmatprep.subr.bf16.mxu1 %v14060_v30  ;;  %v1289_v30 = vor.u32 %v1288_v24, %v1285_v23  ;;  %v14202_v23 = vld [vmem:[#allocation8 + $0x480] ss:$16 sps:$4 sm:$0xff]   ;;  %v14205_v24 = vld [vmem:[#allocation8 + $0x488] ss:$16 sps:$4 sm:$0xff]  }
 0x109   : > { %1151 = vmatpush1.bf16.msra.mxu0 %v14055_v31  ;;  %v14133_v31 = vld [vmem:[#allocation4 + $0x40c] ss:$16 sps:$4 sm:$0xff]  }
 0x10a   : > { %1194 = vmatpush1.bf16.msra.mxu1 %v14058_v33  ;;  %1152 = vmatprep.subr.bf16.mxu0 %v14063_v35  ;;  %v14128_v33 = vld [vmem:[#allocation4 + $0x400] ss:$16 sps:$4 sm:$0xff]   ;;  %v14131_v35 = vld [vmem:[#allocation4 + $0x408] ss:$16 sps:$4 sm:$0xff]  }
 0x10b   : > { %1195 = vmatprep.subr.bf16.mxu1 %v14066_v36  ;;  %v1290_v36 = vsel %vm1273_vm2, %v1281_v29, %v1289_v30  ;;  %v14216_v29 = vld [vmem:[#allocation8 + $0x4c4] ss:$16 sps:$4 sm:$0xff]   ;;  %v14219_v30 = vld [vmem:[#allocation8 + $0x4cc] ss:$16 sps:$4 sm:$0xff]  }
 0x10d   : > { %1153 = vmatpush1.bf16.msra.mxu0 %v14061_v37  ;;  %v14137_v37 = vld [vmem:[#allocation4 + $0x424] ss:$16 sps:$4 sm:$0xff]  }
 0x10e   : > { %1196 = vmatpush1.bf16.msra.mxu1 %v14064_v38  ;;  %1154 = vmatprep.subr.bf16.mxu0 %v14069_v39  ;;  %v14140_v38 = vld [vmem:[#allocation4 + $0x42c] ss:$16 sps:$4 sm:$0xff]   ;;  %v14135_v39 = vld [vmem:[#allocation4 + $0x420] ss:$16 sps:$4 sm:$0xff]  }
 0x10f   : > { %1197 = vmatprep.subr.bf16.mxu1 %v14072_v40  ;;  %v14138_v40 = vld [vmem:[#allocation4 + $0x428] ss:$16 sps:$4 sm:$0xff]  }
 0x111   : > { %1155 = vmatpush1.bf16.msra.mxu0 %v14067_v42  ;;  %v14146_v42 = vld [vmem:[#allocation4 + $0x44c] ss:$16 sps:$4 sm:$0xff]  }
 0x112   : > { %1198 = vmatpush1.bf16.msra.mxu1 %v14070_v43  ;;  %1156 = vmatprep.subr.bf16.mxu0 %v14075_v44  ;;  %v14141_v43 = vld [vmem:[#allocation4 + $0x440] ss:$16 sps:$4 sm:$0xff]   ;;  %v14144_v44 = vld [vmem:[#allocation4 + $0x448] ss:$16 sps:$4 sm:$0xff]  }
 0x113   : > { %1199 = vmatprep.subr.bf16.mxu1 %v14078_v46  ;;  %v14152_v46 = vld [vmem:[#allocation4 + $0x46c] ss:$16 sps:$4 sm:$0xff]  }
 0x115   : > { %1157 = vmatpush1.bf16.msra.mxu0 %v14073_v47  ;;  %v14147_v47 = vld [vmem:[#allocation4 + $0x460] ss:$16 sps:$4 sm:$0xff]  }
 0x116   : > { %1200 = vmatpush1.bf16.msra.mxu1 %v14076_v48  ;;  %1452 = vmatprep.subr.bf16.mxu0 %v14081_v51  ;;  %v14150_v48 = vld [vmem:[#allocation4 + $0x468] ss:$16 sps:$4 sm:$0xff]   ;;  %v14153_v51 = vld [vmem:[#allocation4 + $0x480] ss:$16 sps:$4 sm:$0xff]  }
 0x117   : > { %1495 = vmatprep.subr.bf16.mxu1 %v14084_v52  ;;  %v14156_v52 = vld [vmem:[#allocation4 + $0x488] ss:$16 sps:$4 sm:$0xff]  }
 0x118   : > { %1175 = vmatmul.mubr.bf16.vlgmr.msra.gmra.mrb[0].mxu0 %v980_v54 }
 0x119   : > { %1218 = vmatmul.mubr.bf16.vlgmr.msra.gmra.mrb[0].mxu1 %v980_v54  ;;  %1453 = vmatpush1.bf16.msra.mxu0 %v14079_v32  ;;  %v14161_v32 = vld [vmem:[#allocation4 + $0x4a4] ss:$16 sps:$4 sm:$0xff]   ;;  %v14162_v54 = vld [vmem:[#allocation4 + $0x4a8] ss:$16 sps:$4 sm:$0xff]  }
 0x11a   : > { %1496 = vmatpush1.bf16.msra.mxu1 %v14082_v53  ;;  %1454 = vmatprep.subr.bf16.mxu0 %v14088_v55  ;;  %v14164_v53 = vld [vmem:[#allocation4 + $0x4ac] ss:$16 sps:$4 sm:$0xff]   ;;  %v14167_v55 = vld [vmem:[#allocation4 + $0x4c4] ss:$16 sps:$4 sm:$0xff]  }
 0x11b   : > { %1497 = vmatprep.subr.bf16.mxu1 %v14091_v56  ;;  %1484 = vmatprep.mubr.bf16.mxu0 %v16331_v0  ;;  %v14170_v56 = vld [vmem:[#allocation4 + $0x4cc] ss:$16 sps:$4 sm:$0xff]  }
 0x11c   : > { %1527 = vmatprep.mubr.bf16.mxu1 %v16331_v0 }
 0x11d   : > { %1455 = vmatpush1.bf16.msra.mxu0 %v14086_v34  ;;  %v1546_v34 = vld [vmem:[%s16584_s21] sm:$0xc] }
 0x11e   : > { %1498 = vmatpush1.bf16.msra.mxu1 %v14089_v57  ;;  %1456 = vmatprep.subr.bf16.mxu0 %v14094_v58  ;;  %v14165_v57 = vld [vmem:[#allocation4 + $0x4c0] ss:$16 sps:$4 sm:$0xff]   ;;  %v14168_v58 = vld [vmem:[#allocation4 + $0x4c8] ss:$16 sps:$4 sm:$0xff]  }
 0x11f   : > { %1499 = vmatprep.subr.bf16.mxu1 %v14097_v59  ;;  %v14173_v59 = vld [vmem:[#allocation4 + $0x4e4] ss:$16 sps:$4 sm:$0xff]  }
 0x121   : > { %1457 = vmatpush1.bf16.msra.mxu0 %v14092_v60  ;;  %v14176_v60 = vld [vmem:[#allocation4 + $0x4ec] ss:$16 sps:$4 sm:$0xff]  }
 0x122   : > { %1500 = vmatpush1.bf16.msra.mxu1 %v14095_v61  ;;  %1458 = vmatprep.subr.bf16.mxu0 %v14100_v62  ;;  %v16114_v61 = vld [vmem:[%s16584_s21 + $0x4] sm:$0xf] }
 0x123   : > { %1501 = vmatprep.subr.bf16.mxu1 %v14103_v63  ;;  %v12285_v62 = vcombine.low %v1546_v34, %v16114_v61  ;;  %v14171_v63 = vld [vmem:[#allocation4 + $0x4e0] ss:$16 sps:$4 sm:$0xff]   ;;  %v14256_v34 = vld [vmem:[#allocation8 + $0x5a0] ss:$16 sps:$4 sm:$0xff]  }
 0x124   : > { %v14262_v61 = vld [vmem:[#allocation8 + $0x5c0] ss:$16 sps:$4 sm:$0xff]  }
 0x125   : > { %1459 = vmatpush1.bf16.msra.mxu0 %v14098_v1  ;;  %v14174_v1 = vld [vmem:[#allocation4 + $0x4e8] ss:$16 sps:$4 sm:$0xff]  }
 0x126   : > { %1502 = vmatpush1.bf16.msra.mxu1 %v14101_v2  ;;  %1460 = vmatprep.subr.bf16.mxu0 %v14106_v3  ;;  %v14180_v2 = vld [vmem:[#allocation8 + $0x404] ss:$16 sps:$4 sm:$0xff]   ;;  %v14183_v3 = vld [vmem:[#allocation8 + $0x40c] ss:$16 sps:$4 sm:$0xff]  }
 0x127   : > { %1503 = vmatprep.subr.bf16.mxu1 %v14109_v4  ;;  %v1584_v4 = vrot.slane %v12285_v62, 2  ;;  %v14267_v62 = vld [vmem:[#allocation8 + $0x5cc] ss:$16 sps:$4 sm:$0xff]  }
 0x129   : > { %1461 = vmatpush1.bf16.msra.mxu0 %v14104_v5  ;;  %v1585_v5 = vrot.slane %v16616_v8, 2  ;;  %v14190_v8 = vld [vmem:[#allocation8 + $0x440] ss:$16 sps:$4 sm:$0xff]  }
 0x12a   : > { %1504 = vmatpush1.bf16.msra.mxu1 %v14107_v6  ;;  %1462 = vmatprep.subr.bf16.mxu0 %v14112_v7  ;;  %v14178_v6 = vld [vmem:[#allocation8 + $0x400] ss:$16 sps:$4 sm:$0xff]   ;;  %v14181_v7 = vld [vmem:[#allocation8 + $0x408] ss:$16 sps:$4 sm:$0xff]  }
 0x12b   : > { %1505 = vmatprep.subr.bf16.mxu1 %v14115_v9  ;;  %v14186_v9 = vld [vmem:[#allocation8 + $0x424] ss:$16 sps:$4 sm:$0xff]  }
 0x12d   : > { %1463 = vmatpush1.bf16.msra.mxu0 %v14110_v10  ;;  %v14189_v10 = vld [vmem:[#allocation8 + $0x42c] ss:$16 sps:$4 sm:$0xff]  }
 0x12e   : > { %1506 = vmatpush1.bf16.msra.mxu1 %v14113_v11  ;;  %1464 = vmatprep.subr.bf16.mxu0 %v14118_v13  ;;  %v1586_v11 = vsel %vm1583_vm3, %v1584_v4, %v1585_v5  ;;  %v14187_v13 = vld [vmem:[#allocation8 + $0x428] ss:$16 sps:$4 sm:$0xff]   ;;  %v14277_v5 = vld [vmem:[#allocation8 + $0x604] ss:$16 sps:$4 sm:$0xff]  }
 0x12f   : > { %1507 = vmatprep.subr.bf16.mxu1 %v14121_v17  ;;  %v14198_v17 = vld [vmem:[#allocation8 + $0x464] ss:$16 sps:$4 sm:$0xff]   ;;  %v14271_v4 = vld [vmem:[#allocation8 + $0x5e8] ss:$16 sps:$4 sm:$0xff]  }
 0x131   : > { %1465 = vmatpush1.bf16.msra.mxu0 %v14116_v18  ;;  %v14201_v18 = vld [vmem:[#allocation8 + $0x46c] ss:$16 sps:$4 sm:$0xff]  }
 0x132   : > { %1508 = vmatpush1.bf16.msra.mxu1 %v14119_v19  ;;  %1466 = vmatprep.subr.bf16.mxu0 %v14124_v21  ;;  %v14196_v19 = vld [vmem:[#allocation8 + $0x460] ss:$16 sps:$4 sm:$0xff]   ;;  %v14204_v21 = vld [vmem:[#allocation8 + $0x484] ss:$16 sps:$4 sm:$0xff]  }
 0x133   : > { %1509 = vmatprep.subr.bf16.mxu1 %v14127_v25  ;;  %v14210_v25 = vld [vmem:[#allocation8 + $0x4a4] ss:$16 sps:$4 sm:$0xff]  }
 0x135   : > { %1467 = vmatpush1.bf16.msra.mxu0 %v14122_v26  ;;  %v14213_v26 = vld [vmem:[#allocation8 + $0x4ac] ss:$16 sps:$4 sm:$0xff]  }
 0x136   : > { %1510 = vmatpush1.bf16.msra.mxu1 %v14125_v27  ;;  %1748 = vmatprep.subr.bf16.mxu0 %v14130_v28  ;;  %v14208_v27 = vld [vmem:[#allocation8 + $0x4a0] ss:$16 sps:$4 sm:$0xff]   ;;  %v14211_v28 = vld [vmem:[#allocation8 + $0x4a8] ss:$16 sps:$4 sm:$0xff]  }
 0x137   : > { %1791 = vmatprep.subr.bf16.mxu1 %v14133_v31  ;;  %v14214_v31 = vld [vmem:[#allocation8 + $0x4c0] ss:$16 sps:$4 sm:$0xff]  }
 0x138   : > { %1485 = vmatmul.mubr.bf16.vlgmr.msra.gmra.mrb[0].mxu0 %v1290_v36 }
 0x139   : > { %1528 = vmatmul.mubr.bf16.vlgmr.msra.gmra.mrb[0].mxu1 %v1290_v36  ;;  %1749 = vmatpush1.bf16.msra.mxu0 %v14128_v33  ;;  %v14217_v33 = vld [vmem:[#allocation8 + $0x4c8] ss:$16 sps:$4 sm:$0xff]   ;;  %v14225_v36 = vld [vmem:[#allocation8 + $0x4ec] ss:$16 sps:$4 sm:$0xff]  }
 0x13a   : > { %1792 = vmatpush1.bf16.msra.mxu1 %v14131_v35  ;;  %1750 = vmatprep.subr.bf16.mxu0 %v14137_v37  ;;  %v14222_v35 = vld [vmem:[#allocation8 + $0x4e4] ss:$16 sps:$4 sm:$0xff]   ;;  %v14220_v37 = vld [vmem:[#allocation8 + $0x4e0] ss:$16 sps:$4 sm:$0xff]  }
 0x13b   : > { %1793 = vmatprep.subr.bf16.mxu1 %v14140_v38  ;;  %1780 = vmatprep.mubr.bf16.mxu0 %v16331_v0  ;;  %v14223_v38 = vld [vmem:[#allocation8 + $0x4e8] ss:$16 sps:$4 sm:$0xff]  }
 0x13c   : > { %1823 = vmatprep.mubr.bf16.mxu1 %v16331_v0  ;;  %v14159_v0 = vld [vmem:[#allocation4 + $0x4a0] ss:$16 sps:$4 sm:$0xff]  }
 0x13d   : > { %1751 = vmatpush1.bf16.msra.mxu0 %v14135_v39  ;;  %v14228_v39 = vld [vmem:[#allocation8 + $0x504] ss:$16 sps:$4 sm:$0xff]  }
 0x13e   : > { %1794 = vmatpush1.bf16.msra.mxu1 %v14138_v40  ;;  %1752 = vmatprep.subr.bf16.mxu0 %v14143_v41  ;;  %v14231_v40 = vld [vmem:[#allocation8 + $0x50c] ss:$16 sps:$4 sm:$0xff]   ;;  %v14226_v41 = vld [vmem:[#allocation8 + $0x500] ss:$16 sps:$4 sm:$0xff]  }
 0x13f   : > { %1795 = vmatprep.subr.bf16.mxu1 %v14146_v42  ;;  %v14229_v42 = vld [vmem:[#allocation8 + $0x508] ss:$16 sps:$4 sm:$0xff]  }
 0x141   : > { %1753 = vmatpush1.bf16.msra.mxu0 %v14141_v43  ;;  %v14234_v43 = vld [vmem:[#allocation8 + $0x524] ss:$16 sps:$4 sm:$0xff]  }
 0x142   : > { %1796 = vmatpush1.bf16.msra.mxu1 %v14144_v44  ;;  %1754 = vmatprep.subr.bf16.mxu0 %v14149_v45  ;;  %v14237_v44 = vld [vmem:[#allocation8 + $0x52c] ss:$16 sps:$4 sm:$0xff]   ;;  %v14232_v45 = vld [vmem:[#allocation8 + $0x520] ss:$16 sps:$4 sm:$0xff]  }
 0x143   : > { %1797 = vmatprep.subr.bf16.mxu1 %v14152_v46  ;;  %v14235_v46 = vld [vmem:[#allocation8 + $0x528] ss:$16 sps:$4 sm:$0xff]  }
 0x145   : > { %1755 = vmatpush1.bf16.msra.mxu0 %v14147_v47  ;;  %v14240_v47 = vld [vmem:[#allocation8 + $0x544] ss:$16 sps:$4 sm:$0xff]  }
 0x146   : > { %1798 = vmatpush1.bf16.msra.mxu1 %v14150_v48  ;;  %1756 = vmatprep.subr.bf16.mxu0 %v14155_v49  ;;  %v14243_v48 = vld [vmem:[#allocation8 + $0x54c] ss:$16 sps:$4 sm:$0xff]   ;;  %v14238_v49 = vld [vmem:[#allocation8 + $0x540] ss:$16 sps:$4 sm:$0xff]  }
 0x147   : > { %1799 = vmatprep.subr.bf16.mxu1 %v14158_v50  ;;  %v14241_v50 = vld [vmem:[#allocation8 + $0x548] ss:$16 sps:$4 sm:$0xff]  }
 0x149   : > { %1757 = vmatpush1.bf16.msra.mxu0 %v14153_v51  ;;  %v14246_v51 = vld [vmem:[#allocation8 + $0x564] ss:$16 sps:$4 sm:$0xff]  }
 0x14a   : > { %1800 = vmatpush1.bf16.msra.mxu1 %v14156_v52  ;;  %1758 = vmatprep.subr.bf16.mxu0 %v14161_v32  ;;  %v14249_v52 = vld [vmem:[#allocation8 + $0x56c] ss:$16 sps:$4 sm:$0xff]   ;;  %v14244_v32 = vld [vmem:[#allocation8 + $0x560] ss:$16 sps:$4 sm:$0xff]  }
 0x14b   : > { %1801 = vmatprep.subr.bf16.mxu1 %v14164_v53  ;;  %v14247_v53 = vld [vmem:[#allocation8 + $0x568] ss:$16 sps:$4 sm:$0xff]  }
 0x14d   : > { %1759 = vmatpush1.bf16.msra.mxu0 %v14159_v0  ;;  %v14252_v0 = vld [vmem:[#allocation8 + $0x584] ss:$16 sps:$4 sm:$0xff]  }
 0x14e   : > { %1802 = vmatpush1.bf16.msra.mxu1 %v14162_v54  ;;  %1760 = vmatprep.subr.bf16.mxu0 %v14167_v55  ;;  %v14255_v54 = vld [vmem:[#allocation8 + $0x58c] ss:$16 sps:$4 sm:$0xff]   ;;  %v14250_v55 = vld [vmem:[#allocation8 + $0x580] ss:$16 sps:$4 sm:$0xff]  }
 0x14f   : > { %1803 = vmatprep.subr.bf16.mxu1 %v14170_v56  ;;  %v14253_v56 = vld [vmem:[#allocation8 + $0x588] ss:$16 sps:$4 sm:$0xff]  }
 0x151   : > { %1761 = vmatpush1.bf16.msra.mxu0 %v14165_v57  ;;  %v14258_v57 = vld [vmem:[#allocation8 + $0x5a4] ss:$16 sps:$4 sm:$0xff]  }
 0x152   : > { %1804 = vmatpush1.bf16.msra.mxu1 %v14168_v58  ;;  %1762 = vmatprep.subr.bf16.mxu0 %v14173_v59  ;;  %v14259_v58 = vld [vmem:[#allocation8 + $0x5a8] ss:$16 sps:$4 sm:$0xff]   ;;  %v14261_v59 = vld [vmem:[#allocation8 + $0x5ac] ss:$16 sps:$4 sm:$0xff]  }
 0x153   : > { %1805 = vmatprep.subr.bf16.mxu1 %v14176_v60  ;;  %v14264_v60 = vld [vmem:[#allocation8 + $0x5c4] ss:$16 sps:$4 sm:$0xff]  }
 0x155   : > { %1763 = vmatpush1.bf16.msra.mxu0 %v14171_v63  ;;  %v14265_v63 = vld [vmem:[#allocation8 + $0x5c8] ss:$16 sps:$4 sm:$0xff]  }
 0x156   : > { %1806 = vmatpush1.bf16.msra.mxu1 %v14174_v1  ;;  %2910 = vmatprep.subr.bf16.mxu0 %v14180_v2  ;;  %v14270_v1 = vld [vmem:[#allocation8 + $0x5e4] ss:$16 sps:$4 sm:$0xff]   ;;  %v14273_v2 = vld [vmem:[#allocation8 + $0x5ec] ss:$16 sps:$4 sm:$0xff]  }
 0x157   : > { %2996 = vmatprep.subr.bf16.mxu1 %v14183_v3  ;;  %v14268_v3 = vld [vmem:[#allocation8 + $0x5e0] ss:$16 sps:$4 sm:$0xff]  }
 0x158   : > { %1781 = vmatmul.mubr.bf16.vlgmr.msra.gmra.mrb[0].mxu0 %v1586_v11 }
 0x159   : > { %1824 = vmatmul.mubr.bf16.vlgmr.msra.gmra.mrb[0].mxu1 %v1586_v11  ;;  %2911 = vmatpush1.bf16.msra.mxu0 %v14178_v6  ;;  %v14280_v6 = vld [vmem:[#allocation8 + $0x60c] ss:$16 sps:$4 sm:$0xff]  }
 0x15a   : > { %2997 = vmatpush1.bf16.msra.mxu1 %v14181_v7  ;;  %2912 = vmatprep.subr.bf16.mxu0 %v14186_v9  ;;  %v1844_v7 = vlaneseq }
 0x15b   : > { %2998 = vmatprep.subr.bf16.mxu1 %v14189_v10  ;;  %v1842_v10 = vld [vmem:[#allocation6] sm:$0xf] }
 0x15c   : > { %v1845_v9 = vshrl.u32 %v1844_v7, 7 }
 0x15d   : > { %2913 = vmatpush1.bf16.msra.mxu0 %v14184_v12 }
 0x15e   : > { %2999 = vmatpush1.bf16.msra.mxu1 %v14187_v13  ;;  %2914 = vmatprep.subr.bf16.mxu0 %v14192_v14  ;;  %v16629_v11 = vsub.s32 0, %v1845_v9  ;;  %v16631_v12 = vsub.s32 2, %v1845_v9  ;;  %v16633_v13 = vsub.s32 1, %v1845_v9  ;;  %v16635_v14 = vsub.s32 3, %v1845_v9 }
 0x15f   : > { %3000 = vmatprep.subr.bf16.mxu1 %v14195_v15 }
 0x160   : > { %v1847_v15 = vrot.slane %v1842_v10, %v16629_v11 }
 0x161   : > { %2915 = vmatpush1.bf16.msra.mxu0 %v14190_v8  ;;  %v1855_v8 = vrot.slane %v1842_v10, %v16631_v12 }
 0x162   : > { %3001 = vmatpush1.bf16.msra.mxu1 %v14193_v16  ;;  %2916 = vmatprep.subr.bf16.mxu0 %v14198_v17  ;;  %v1851_v16 = vrot.slane %v1842_v10, %v16633_v13  ;;  %v1859_v17 = vrot.slane %v1842_v10, %v16635_v14 }
 0x163   : > { %3002 = vmatprep.subr.bf16.mxu1 %v14201_v18 }
 0x165   : > { %2917 = vmatpush1.bf16.msra.mxu0 %v14196_v19 }
 0x166   : > { %3003 = vmatpush1.bf16.msra.mxu1 %v14199_v20  ;;  %2918 = vmatprep.subr.bf16.mxu0 %v14204_v21 }
 0x167   : > { %3004 = vmatprep.subr.bf16.mxu1 %v14207_v22 }
 0x169   : > { %2919 = vmatpush1.bf16.msra.mxu0 %v14202_v23 }
 0x16a   : > { %3005 = vmatpush1.bf16.msra.mxu1 %v14205_v24  ;;  %2920 = vmatprep.subr.bf16.mxu0 %v14210_v25 }
 0x16b   : > { %3006 = vmatprep.subr.bf16.mxu1 %v14213_v26 }
 0x16d   : > { %2921 = vmatpush1.bf16.msra.mxu0 %v14208_v27 }
 0x16e   : > { %3007 = vmatpush1.bf16.msra.mxu1 %v14211_v28  ;;  %2922 = vmatprep.subr.bf16.mxu0 %v14216_v29 }
 0x16f   : > { %3008 = vmatprep.subr.bf16.mxu1 %v14219_v30 }
 0x171   : > { %2923 = vmatpush1.bf16.msra.mxu0 %v14214_v31 }
 0x172   : > { %3009 = vmatpush1.bf16.msra.mxu1 %v14217_v33  ;;  %2924 = vmatprep.subr.bf16.mxu0 %v14222_v35 }
 0x173   : > { %3010 = vmatprep.subr.bf16.mxu1 %v14225_v36 }
 0x175   : > { %2925 = vmatpush1.bf16.msra.mxu0 %v14220_v37 }
 0x176   : > { %3011 = vmatpush1.bf16.msra.mxu1 %v14223_v38  ;;  %2926 = vmatprep.subr.bf16.mxu0 %v14228_v39 }
 0x177   : > { %3012 = vmatprep.subr.bf16.mxu1 %v14231_v40 }
 0x179   : > { %2927 = vmatpush1.bf16.msra.mxu0 %v14226_v41 }
 0x17a   : > { %3013 = vmatpush1.bf16.msra.mxu1 %v14229_v42  ;;  %2928 = vmatprep.subr.bf16.mxu0 %v14234_v43 }
 0x17b   : > { %3014 = vmatprep.subr.bf16.mxu1 %v14237_v44 }
 0x17d   : > { %2929 = vmatpush1.bf16.msra.mxu0 %v14232_v45 }
 0x17e   : > { %3015 = vmatpush1.bf16.msra.mxu1 %v14235_v46  ;;  %2930 = vmatprep.subr.bf16.mxu0 %v14240_v47 }
 0x17f   : > { %3016 = vmatprep.subr.bf16.mxu1 %v14243_v48 }
 0x181   : > { %2931 = vmatpush1.bf16.msra.mxu0 %v14238_v49 }
 0x182   : > { %3017 = vmatpush1.bf16.msra.mxu1 %v14241_v50  ;;  %2932 = vmatprep.subr.bf16.mxu0 %v14246_v51 }
 0x183   : > { %3018 = vmatprep.subr.bf16.mxu1 %v14249_v52 }
 0x185   : > { %2933 = vmatpush1.bf16.msra.mxu0 %v14244_v32 }
 0x186   : > { %3019 = vmatpush1.bf16.msra.mxu1 %v14247_v53  ;;  %2934 = vmatprep.subr.bf16.mxu0 %v14252_v0 }
 0x187   : > { %3020 = vmatprep.subr.bf16.mxu1 %v14255_v54 }
 0x189   : > { %2935 = vmatpush1.bf16.msra.mxu0 %v14250_v55 }
 0x18a   : > { %3021 = vmatpush1.bf16.msra.mxu1 %v14253_v56  ;;  %2936 = vmatprep.subr.bf16.mxu0 %v14258_v57 }
 0x18b   : > { %3022 = vmatprep.subr.bf16.mxu1 %v14261_v59 }
 0x18d   : > { %2937 = vmatpush1.bf16.msra.mxu0 %v14256_v34 }
 0x18e   : > { %3023 = vmatpush1.bf16.msra.mxu1 %v14259_v58  ;;  %2938 = vmatprep.subr.bf16.mxu0 %v14264_v60 }
 0x18f   : > { %3024 = vmatprep.subr.bf16.mxu1 %v14267_v62 }
 0x191   : > { %2939 = vmatpush1.bf16.msra.mxu0 %v14262_v61 }
 0x192   : > { %3025 = vmatpush1.bf16.msra.mxu1 %v14265_v63  ;;  %2940 = vmatprep.subr.bf16.mxu0 %v14270_v1 }
 0x193   : > { %3026 = vmatprep.subr.bf16.mxu1 %v14273_v2 }
 0x195   : > { %2941 = vmatpush1.bf16.msra.mxu0 %v14268_v3 }
 0x196   : > { %3027 = vmatpush1.bf16.msra.mxu1 %v14271_v4  ;;  %2953 = vmatprep.subr.bf16.mxu0 %v14277_v5 }
 0x197   : > { %3039 = vmatprep.subr.bf16.mxu1 %v14280_v6 }
 0x22b   : > { %v1782_v18 = vpop.f32.mrb[0].mxu0 }
 0x22c   : > { %v1825_v19 = vpop.f32.mrb[0].mxu1  ;;  %v1864_v20 = vadd.f32 %v1847_v15, %v1782_v18  ;;  %v1784_v22 = vpop.f32.mrb[1].mxu0 }
 0x22d   : > { %v1866_v21 = vadd.f32 %v1855_v8, %v1825_v19  ;;  %v1827_v23 = vpop.f32.mrb[1].mxu1  ;;  %v1865_v24 = vadd.f32 %v1851_v16, %v1784_v22  ;;  %v1786_v26 = vpop.f32.mrb[2].mxu0 }
 0x22e   : > { %v1867_v25 = vadd.f32 %v1859_v17, %v1827_v23  ;;  %v1829_v27 = vpop.f32.mrb[2].mxu1  ;;  %v1872_v28 = vmax.f32 %v1864_v20, 0.0  ;;  %v1868_v30 = vadd.f32 %v1847_v15, %v1786_v26  ;;  %v1788_v33 = vpop.f32.mrb[3].mxu0 }
 0x22f   : > { %v1874_v29 = vmax.f32 %v1866_v21, 0.0  ;;  %v1870_v31 = vadd.f32 %v1855_v8, %v1829_v27  ;;  %v1831_v35 = vpop.f32.mrb[3].mxu1  ;;  %v1873_v36 = vmax.f32 %v1865_v24, 0.0  ;;  %v1869_v38 = vadd.f32 %v1851_v16, %v1788_v33  ;;  %v14275_v24 = vld [vmem:[#allocation8 + $0x600] ss:$16 sps:$4 sm:$0xff]  }
 0x230   : > { %v1875_v37 = vmax.f32 %v1867_v25, 0.0  ;;  %v1871_v39 = vadd.f32 %v1859_v17, %v1831_v35  ;;  %v1876_v40 = vmax.f32 %v1868_v30, 0.0 }
 0x231   : > { %v1878_v41 = vmax.f32 %v1870_v31, 0.0  ;;  %v13655_v42 = vpack.c.bf16 %v1873_v36, %v1872_v28  ;;  %v1877_v44 = vmax.f32 %v1869_v38, 0.0  ;;  %v14288_v38 = vld [vmem:[#allocation8 + $0x62c] ss:$16 sps:$4 sm:$0xff]  }
 0x232   : > { %v13656_v43 = vpack.c.bf16 %v1875_v37, %v1874_v29  ;;  %v1879_v45 = vmax.f32 %v1871_v39, 0.0  ;;  %v14278_v29 = vld [vmem:[#allocation8 + $0x608] ss:$16 sps:$4 sm:$0xff]   ;;  %v14285_v37 = vld [vmem:[#allocation8 + $0x624] ss:$16 sps:$4 sm:$0xff]  }
 0x233   : > { %v1907_v46 = vrot.slane %v13655_v42, 7  ;;  %v13657_v48 = vpack.c.bf16 %v1877_v44, %v1876_v40 }
 0x234   : > { %v1908_v47 = vrot.slane %v13656_v43, 7  ;;  %v13658_v49 = vpack.c.bf16 %v1879_v45, %v1878_v41 }
 0x235   : > { %v1909_v51 = vrot.slane %v1907_v46, 4  ;;  %1923 = vst [vmem:[#allocation2] sm:$0xee] %v1907_v46  ;;  %v1910_v32 = vrot.slane %v13657_v48, 7 }
 0x236   : > { %v1912_v52 = vrot.slane %v1908_v47, 4  ;;  %1924 = vst [vmem:[#allocation2 + $0x8] sm:$0xee] %v1908_v47  ;;  %v1913_v53 = vrot.slane %v13658_v49, 7  ;;  %v14283_v47 = vld [vmem:[#allocation8 + $0x620] ss:$16 sps:$4 sm:$0xff]  }
 0x237   : > { %v16647_v0 = vsel %vm16641_vm6, %v1909_v51, %v1910_v32  ;;  %v1915_v54 = vrot.slane %v1910_v32, 4  ;;  %v14286_v32 = vld [vmem:[#allocation8 + $0x628] ss:$16 sps:$4 sm:$0xff]  }
 0x238   : > { %v16651_v55 = vsel %vm16641_vm6, %v1912_v52, %v1913_v53  ;;  %v1916_v56 = vrot.slane %v1913_v53, 4  ;;  %v14291_v53 = vld [vmem:[#allocation8 + $0x644] ss:$16 sps:$4 sm:$0xff]  }
 0x239   : > { %1927 = vst [vmem:[#allocation2 + $0x20] sm:$0x11] %v1915_v54  ;;  %v14294_v54 = vld [vmem:[#allocation8 + $0x64c] ss:$16 sps:$4 sm:$0xff]  }
 0x23a   : > { %1928 = vst [vmem:[#allocation2 + $0x28] sm:$0x11] %v1916_v56 }
 0x23c   : > { %v1929_v34 = vld [vmem:[#allocation2] sm:$0xff] }
 0x23d   : > { %v16653_v57 = vld [vmem:[#allocation2 + $0x8] sm:$0xff]  ;;  %v16656_v58 = vcombine.high %v1929_v34, %v16647_v0  ;;  %v16659_v59 = vcombine.low %v1929_v34, %v16647_v0  ;;  %v3898_v61 = vld [vmem:[#allocation2] sm:$0xee] }
 0x23e   : > { %v16663_v60 = vcombine.high %v16653_v57, %v16651_v55  ;;  %v3899_v1 = vld [vmem:[#allocation2 + $0x8] sm:$0xee]  ;;  %v16669_v5 = vcombine.high %v3898_v61, %v16647_v0  ;;  %v16672_v6 = vcombine.low %v3898_v61, %v16647_v0  ;;  %v14289_v61 = vld [vmem:[#allocation8 + $0x640] ss:$16 sps:$4 sm:$0xff]  }
 0x23f   : > { %v2233_v62 = vshll.u32 %v16656_v58, 16  ;;  %v2221_v63 = vshll.u32 %v16659_v59, 16  ;;  %v2231_v8 = vshrl.u32 %v16656_v58, 16  ;;  %v2219_v16 = vshrl.u32 %v16659_v59, 16 }
 0x240   : > { %v2061_v2 = vld [vmem:[#allocation2 + $0x20] sm:$0x11]  ;;  %v2257_v4 = vshll.u32 %v16663_v60, 16  ;;  %v16677_v18 = vcombine.high %v3899_v1, %v16651_v55  ;;  %v16680_v22 = vcombine.low %v3899_v1, %v16651_v55  ;;  %v4042_v31 = vrot.slane %v16669_v5, 1 }
 0x241   : > { %v2062_v3 = vld [vmem:[#allocation2 + $0x28] sm:$0x11]  ;;  %v12327_v7 = vcombine.high %v2061_v2, %v2061_v2  ;;  %v2235_v9 = vrot.slane %v2233_v62, 1  ;;  %v12326_v10 = vcombine.low %v2061_v2, %v2061_v2  ;;  %v2223_v15 = vrot.slane %v2221_v63, 1  ;;  %v14300_v1 = vld [vmem:[#allocation8 + $0x66c] ss:$16 sps:$4 sm:$0xff]  }
 0x242   : > { %v12329_v17 = vcombine.high %v2062_v3, %v2062_v3  ;;  %v2259_v21 = vrot.slane %v2257_v4, 1  ;;  %v16682_v27 = vcombine.low %v2062_v3, %v2062_v3  ;;  %v2255_v35 = vshrl.u32 %v16663_v60, 16  ;;  %v14292_v62 = vld [vmem:[#allocation8 + $0x648] ss:$16 sps:$4 sm:$0xff]   ;;  %v14297_v63 = vld [vmem:[#allocation8 + $0x664] ss:$16 sps:$4 sm:$0xff]  }
 0x243   : > { %v2238_v19 = vshll.u32 %v12327_v7, 16  ;;  %v2226_v20 = vshll.u32 %v12326_v10, 16  ;;  %v2236_v23 = vor.u32 %v2235_v9, %v2231_v8  ;;  %v2224_v25 = vor.u32 %v2223_v15, %v2219_v16  ;;  %v4875_v2 = vld [vmem:[#allocation2 + $0x20] sm:$0x33]  ;;  %v5908_v3 = vld [vmem:[#allocation2] sm:$0xcc] }
 0x244   : > { %v2262_v26 = vshll.u32 %v12329_v17, 16  ;;  %v4043_v33 = vrot.slane %v12327_v7, 1  ;;  %v4039_v39 = vrot.slane %v16672_v6, 1  ;;  %v4040_v43 = vrot.slane %v12326_v10, 1  ;;  %v14295_v4 = vld [vmem:[#allocation8 + $0x660] ss:$16 sps:$4 sm:$0xff]  }
 0x245   : > { %v2240_v28 = vrot.slane %v2238_v19, 1  ;;  %v2228_v30 = vrot.slane %v2226_v20, 1  ;;  %v2260_v44 = vor.u32 %v2259_v21, %v2255_v35  ;;  %v4048_v45 = vrot.slane %v16677_v18, 1  ;;  %v14298_v7 = vld [vmem:[#allocation8 + $0x668] ss:$16 sps:$4 sm:$0xff]  }
 0x246   : > { %v2264_v36 = vrot.slane %v2262_v26, 1  ;;  %v16690_v42 = vsel %vm977_vm1, %v4042_v31, %v4043_v33  ;;  %v4049_v46 = vrot.slane %v12329_v17, 1  ;;  %v16694_v48 = vsel %vm977_vm1, %v4039_v39, %v4040_v43  ;;  %v14303_v9 = vld [vmem:[#allocation8 + $0x684] ss:$16 sps:$4 sm:$0xff]   ;;  %v14306_v8 = vld [vmem:[#allocation8 + $0x68c] ss:$16 sps:$4 sm:$0xff]  }
 0x247   : > { %v2241_v40 = vsel %vm433_vm0, %v2236_v23, %v2240_v28  ;;  %v2229_v41 = vsel %vm433_vm0, %v2224_v25, %v2228_v30  ;;  %v4045_v49 = vrot.slane %v16680_v22, 1  ;;  %v4046_v51 = vrot.slane %v16682_v27, 1  ;;  %v4876_v16 = vld [vmem:[#allocation2 + $0x28] sm:$0x33]  ;;  %v5909_v17 = vld [vmem:[#allocation2 + $0x8] sm:$0xcc] }
 0x248   : > { %2942 = vmatprep.mubr.bf16.mxu0 %v2241_v40  ;;  %3028 = vmatprep.mubr.bf16.mxu1 %v2241_v40  ;;  %v2265_v52 = vsel %vm433_vm0, %v2260_v44, %v2264_v36  ;;  %v16700_v56 = vsel %vm977_vm1, %v4048_v45, %v4049_v46  ;;  %v16705_v10 = vcombine.high %v4875_v2, %v4875_v2  ;;  %v14301_v19 = vld [vmem:[#allocation8 + $0x680] ss:$16 sps:$4 sm:$0xff]   ;;  %v14304_v20 = vld [vmem:[#allocation8 + $0x688] ss:$16 sps:$4 sm:$0xff]   ;;  %v14312_v30 = vld [vmem:[#allocation8 + $0x6ac] ss:$16 sps:$4 sm:$0xff]  }
 0x249   : > { %2943 = vmatmul.mubr.bf16.vlgmr.msra.gmra.mrb[4].mxu0 %v2229_v41  ;;  %3029 = vmatmul.mubr.bf16.vlgmr.msra.gmra.mrb[4].mxu1 %v2229_v41  ;;  %v16703_v34 = vsel %vm977_vm1, %v4045_v49, %v4046_v51  ;;  %v12851_v15 = vcombine.high %v5908_v3, %v16647_v0  ;;  %v16708_v21 = vcombine.low %v4875_v2, %v4875_v2  ;;  %v14307_v31 = vld [vmem:[#allocation8 + $0x6a0] ss:$16 sps:$4 sm:$0xff]   ;;  %v14310_v33 = vld [vmem:[#allocation8 + $0x6a8] ss:$16 sps:$4 sm:$0xff]   ;;  %v14315_v41 = vld [vmem:[#allocation8 + $0x6c4] ss:$16 sps:$4 sm:$0xff]  }
 0x24a   : > { %2954 = vmatpush1.bf16.msra.mxu0 %v14275_v24  ;;  %3040 = vmatpush1.bf16.msra.mxu1 %v14278_v29  ;;  %v12850_v23 = vcombine.low %v5908_v3, %v16647_v0  ;;  %v16711_v24 = vcombine.high %v4876_v16, %v4876_v16  ;;  %v6053_v26 = vrot.slane %v16705_v10, 2  ;;  %v12853_v28 = vcombine.high %v5909_v17, %v16651_v55  ;;  %v14309_v29 = vld [vmem:[#allocation8 + $0x6a4] ss:$16 sps:$4 sm:$0xff]   ;;  %v14318_v43 = vld [vmem:[#allocation8 + $0x6cc] ss:$16 sps:$4 sm:$0xff]  }
 0x24b   : > { %2985 = vmatprep.mubr.bf16.mxu0 %v2265_v52  ;;  %3071 = vmatprep.mubr.bf16.mxu1 %v2265_v52  ;;  %v6052_v25 = vrot.slane %v12851_v15, 2  ;;  %v16715_v35 = vcombine.low %v4876_v16, %v4876_v16  ;;  %v12852_v0 = vcombine.low %v5909_v17, %v16651_v55  ;;  %v14313_v45 = vld [vmem:[#allocation8 + $0x6c0] ss:$16 sps:$4 sm:$0xff]   ;;  %v14316_v46 = vld [vmem:[#allocation8 + $0x6c8] ss:$16 sps:$4 sm:$0xff]  }
 0x24c   : > { %2955 = vmatprep.subr.bf16.mxu0 %v14285_v37  ;;  %3041 = vmatprep.subr.bf16.mxu1 %v14288_v38  ;;  %v6049_v37 = vrot.slane %v12850_v23, 2  ;;  %v6050_v38 = vrot.slane %v16708_v21, 2  ;;  %v6058_v39 = vrot.slane %v12853_v28, 2  ;;  %v6059_v40 = vrot.slane %v16711_v24, 2  ;;  %v14328_v2 = vld [vmem:[#allocation8 + $0x708] ss:$16 sps:$4 sm:$0xff]  }
 0x24d   : > { %v16718_v36 = vsel %vm1583_vm3, %v6052_v25, %v6053_v26  ;;  %v6055_v49 = vrot.slane %v12852_v0, 2  ;;  %v6056_v51 = vrot.slane %v16715_v35, 2  ;;  %v14333_v3 = vld [vmem:[#allocation8 + $0x724] ss:$16 sps:$4 sm:$0xff]   ;;  %v14337_v16 = vld [vmem:[#allocation8 + $0x740] ss:$16 sps:$4 sm:$0xff]  }
 0x24e   : > { %2956 = vmatpush1.bf16.msra.mxu0 %v14283_v47  ;;  %3042 = vmatpush1.bf16.msra.mxu1 %v14286_v32  ;;  %v16724_v44 = vsel %vm1583_vm3, %v6049_v37, %v6050_v38  ;;  %v16727_v47 = vsel %vm1583_vm3, %v6058_v39, %v6059_v40  ;;  %v14321_v32 = vld [vmem:[#allocation8 + $0x6e4] ss:$16 sps:$4 sm:$0xff]   ;;  %v14340_v17 = vld [vmem:[#allocation8 + $0x748] ss:$16 sps:$4 sm:$0xff]   ;;  %v14343_v23 = vld [vmem:[#allocation8 + $0x760] ss:$16 sps:$4 sm:$0xff]   ;;  %v16735_v38 = vcombine.low %v16653_v57, %v16651_v55 }
 0x24f   : > { %2957 = vmatprep.subr.bf16.mxu0 %v14291_v53  ;;  %3043 = vmatprep.subr.bf16.mxu1 %v14294_v54  ;;  %v16731_v52 = vsel %vm1583_vm3, %v6055_v49, %v6056_v51  ;;  %v14324_v53 = vld [vmem:[#allocation8 + $0x6ec] ss:$16 sps:$4 sm:$0xff]   ;;  %v14319_v54 = vld [vmem:[#allocation8 + $0x6e0] ss:$16 sps:$4 sm:$0xff]   ;;  %v14339_v15 = vld [vmem:[#allocation8 + $0x744] ss:$16 sps:$4 sm:$0xff]  }
 0x250   : > { %v14346_v25 = vld [vmem:[#allocation8 + $0x768] ss:$16 sps:$4 sm:$0xff]   ;;  %v14351_v26 = vld [vmem:[#allocation8 + $0x784] ss:$16 sps:$4 sm:$0xff]   ;;  %v14354_v28 = vld [vmem:[#allocation8 + $0x78c] ss:$16 sps:$4 sm:$0xff]  }
 0x251   : > { %v14355_v0 = vld [vmem:[#allocation8 + $0x7a0] ss:$16 sps:$4 sm:$0xff]   ;;  %v14358_v37 = vld [vmem:[#allocation8 + $0x7a8] ss:$16 sps:$4 sm:$0xff]   ;;  %v14363_v39 = vld [vmem:[#allocation8 + $0x7c4] ss:$16 sps:$4 sm:$0xff]  }
 0x252   : > { %2958 = vmatpush1.bf16.msra.mxu0 %v14289_v61  ;;  %3044 = vmatpush1.bf16.msra.mxu1 %v14292_v62  ;;  %v14322_v61 = vld [vmem:[#allocation8 + $0x6e8] ss:$16 sps:$4 sm:$0xff]   ;;  %v14327_v62 = vld [vmem:[#allocation8 + $0x704] ss:$16 sps:$4 sm:$0xff]   ;;  %v14366_v40 = vld [vmem:[#allocation8 + $0x7cc] ss:$16 sps:$4 sm:$0xff]  }
 0x253   : > { %2959 = vmatprep.subr.bf16.mxu0 %v14297_v63  ;;  %3045 = vmatprep.subr.bf16.mxu1 %v14300_v1  ;;  %v14330_v63 = vld [vmem:[#allocation8 + $0x70c] ss:$16 sps:$4 sm:$0xff]   ;;  %v14325_v1 = vld [vmem:[#allocation8 + $0x700] ss:$16 sps:$4 sm:$0xff]   ;;  %v14376_v57 = vld [vmem:[#allocation8 + $0x4] ss:$16 sps:$4 sm:$0xff]  }
 0x254   : > { %v14372_v49 = vld [vmem:[#allocation8 + $0x7ec] ss:$16 sps:$4 sm:$0xff]   ;;  %v14367_v51 = vld [vmem:[#allocation8 + $0x7e0] ss:$16 sps:$4 sm:$0xff]  }
 0x256   : > { %2960 = vmatpush1.bf16.msra.mxu0 %v14295_v4  ;;  %3046 = vmatpush1.bf16.msra.mxu1 %v14298_v7  ;;  %v14336_v4 = vld [vmem:[#allocation8 + $0x72c] ss:$16 sps:$4 sm:$0xff]   ;;  %v14331_v7 = vld [vmem:[#allocation8 + $0x720] ss:$16 sps:$4 sm:$0xff]  }
 0x257   : > { %2961 = vmatprep.subr.bf16.mxu0 %v14303_v9  ;;  %3047 = vmatprep.subr.bf16.mxu1 %v14306_v8  ;;  %v14334_v9 = vld [vmem:[#allocation8 + $0x728] ss:$16 sps:$4 sm:$0xff]   ;;  %v14342_v8 = vld [vmem:[#allocation8 + $0x74c] ss:$16 sps:$4 sm:$0xff]  }
 0x25a   : > { %2962 = vmatpush1.bf16.msra.mxu0 %v14301_v19  ;;  %3048 = vmatpush1.bf16.msra.mxu1 %v14304_v20  ;;  %v14345_v19 = vld [vmem:[#allocation8 + $0x764] ss:$16 sps:$4 sm:$0xff]   ;;  %v14348_v20 = vld [vmem:[#allocation8 + $0x76c] ss:$16 sps:$4 sm:$0xff]  }
 0x25b   : > { %2963 = vmatprep.subr.bf16.mxu0 %v14309_v29  ;;  %3049 = vmatprep.subr.bf16.mxu1 %v14312_v30  ;;  %v14349_v29 = vld [vmem:[#allocation8 + $0x780] ss:$16 sps:$4 sm:$0xff]   ;;  %v14352_v30 = vld [vmem:[#allocation8 + $0x788] ss:$16 sps:$4 sm:$0xff]  }
 0x25e   : > { %2964 = vmatpush1.bf16.msra.mxu0 %v14307_v31  ;;  %3050 = vmatpush1.bf16.msra.mxu1 %v14310_v33  ;;  %v14357_v31 = vld [vmem:[#allocation8 + $0x7a4] ss:$16 sps:$4 sm:$0xff]   ;;  %v14360_v33 = vld [vmem:[#allocation8 + $0x7ac] ss:$16 sps:$4 sm:$0xff]  }
 0x25f   : > { %2965 = vmatprep.subr.bf16.mxu0 %v14315_v41  ;;  %3051 = vmatprep.subr.bf16.mxu1 %v14318_v43  ;;  %v14361_v41 = vld [vmem:[#allocation8 + $0x7c0] ss:$16 sps:$4 sm:$0xff]   ;;  %v14364_v43 = vld [vmem:[#allocation8 + $0x7c8] ss:$16 sps:$4 sm:$0xff]  }
 0x262   : > { %2966 = vmatpush1.bf16.msra.mxu0 %v14313_v45  ;;  %3052 = vmatpush1.bf16.msra.mxu1 %v14316_v46  ;;  %v2245_v45 = vshll.u32 %v16735_v38, 16  ;;  %v14369_v46 = vld [vmem:[#allocation8 + $0x7e4] ss:$16 sps:$4 sm:$0xff]  }
 0x263   : > { %2967 = vmatprep.subr.bf16.mxu0 %v14321_v32  ;;  %3053 = vmatprep.subr.bf16.mxu1 %v14324_v53  ;;  %v14370_v32 = vld [vmem:[#allocation8 + $0x7e8] ss:$16 sps:$4 sm:$0xff]   ;;  %v2250_v53 = vshll.u32 %v16682_v27, 16 }
 0x264   : > { %v2247_v55 = vrot.slane %v2245_v45, 1  ;;  %v14416_v45 = vld [vmem:[#allocation8 + $0xe0] ss:$16 sps:$4 sm:$0xff]  }
 0x266   : > { %2968 = vmatpush1.bf16.msra.mxu0 %v14319_v54  ;;  %3054 = vmatpush1.bf16.msra.mxu1 %v14322_v61  ;;  %v14379_v54 = vld [vmem:[#allocation8 + $0xc] ss:$16 sps:$4 sm:$0xff]   ;;  %v2243_v61 = vshrl.u32 %v16735_v38, 16 }
 0x267   : > { %2969 = vmatprep.subr.bf16.mxu0 %v14327_v62  ;;  %3055 = vmatprep.subr.bf16.mxu1 %v14330_v63  ;;  %v2252_v62 = vrot.slane %v2250_v53, 1  ;;  %v14374_v63 = vld [vmem:[#allocation8] ss:$16 sps:$4 sm:$0xff]   ;;  %v14427_v53 = vld [vmem:[#allocation8 + $0x10c] ss:$16 sps:$4 sm:$0xff]  }
 0x26a   : > { %2970 = vmatpush1.bf16.msra.mxu0 %v14325_v1  ;;  %3056 = vmatpush1.bf16.msra.mxu1 %v14328_v2  ;;  %v14377_v1 = vld [vmem:[#allocation8 + $0x8] ss:$16 sps:$4 sm:$0xff]   ;;  %v2248_v2 = vor.u32 %v2247_v55, %v2243_v61  ;;  %v14433_v61 = vld [vmem:[#allocation8 + $0x12c] ss:$16 sps:$4 sm:$0xff]  }
 0x26b   : > { %2971 = vmatprep.subr.bf16.mxu0 %v14333_v3  ;;  %3057 = vmatprep.subr.bf16.mxu1 %v14336_v4  ;;  %v14382_v3 = vld [vmem:[#allocation8 + $0x24] ss:$16 sps:$4 sm:$0xff]   ;;  %v14385_v4 = vld [vmem:[#allocation8 + $0x2c] ss:$16 sps:$4 sm:$0xff]   ;;  %v14425_v55 = vld [vmem:[#allocation8 + $0x108] ss:$16 sps:$4 sm:$0xff]  }
 0x26c   : > { %v2253_v27 = vsel %vm433_vm0, %v2248_v2, %v2252_v62  ;;  %v14431_v62 = vld [vmem:[#allocation8 + $0x128] ss:$16 sps:$4 sm:$0xff]   ;;  %v14439_v2 = vld [vmem:[#allocation8 + $0x14c] ss:$16 sps:$4 sm:$0xff]  }
 0x26e   : > { %2972 = vmatpush1.bf16.msra.mxu0 %v14331_v7  ;;  %3058 = vmatpush1.bf16.msra.mxu1 %v14334_v9  ;;  %v14380_v7 = vld [vmem:[#allocation8 + $0x20] ss:$16 sps:$4 sm:$0xff]   ;;  %v14383_v9 = vld [vmem:[#allocation8 + $0x28] ss:$16 sps:$4 sm:$0xff]  }
 0x26f   : > { %2973 = vmatprep.subr.bf16.mxu0 %v14339_v15  ;;  %3059 = vmatprep.subr.bf16.mxu1 %v14342_v8  ;;  %v14388_v15 = vld [vmem:[#allocation8 + $0x44] ss:$16 sps:$4 sm:$0xff]   ;;  %v14391_v8 = vld [vmem:[#allocation8 + $0x4c] ss:$16 sps:$4 sm:$0xff]  }
 0x272   : > { %2974 = vmatpush1.bf16.msra.mxu0 %v14337_v16  ;;  %3060 = vmatpush1.bf16.msra.mxu1 %v14340_v17  ;;  %v14386_v16 = vld [vmem:[#allocation8 + $0x40] ss:$16 sps:$4 sm:$0xff]   ;;  %v14389_v17 = vld [vmem:[#allocation8 + $0x48] ss:$16 sps:$4 sm:$0xff]  }
 0x273   : > { %2975 = vmatprep.subr.bf16.mxu0 %v14345_v19  ;;  %3061 = vmatprep.subr.bf16.mxu1 %v14348_v20  ;;  %v14394_v19 = vld [vmem:[#allocation8 + $0x64] ss:$16 sps:$4 sm:$0xff]   ;;  %v14392_v20 = vld [vmem:[#allocation8 + $0x60] ss:$16 sps:$4 sm:$0xff]  }
 0x276   : > { %2976 = vmatpush1.bf16.msra.mxu0 %v14343_v23  ;;  %3062 = vmatpush1.bf16.msra.mxu1 %v14346_v25  ;;  %v14397_v23 = vld [vmem:[#allocation8 + $0x6c] ss:$16 sps:$4 sm:$0xff]   ;;  %v14395_v25 = vld [vmem:[#allocation8 + $0x68] ss:$16 sps:$4 sm:$0xff]  }
 0x277   : > { %2977 = vmatprep.subr.bf16.mxu0 %v14351_v26  ;;  %3063 = vmatprep.subr.bf16.mxu1 %v14354_v28  ;;  %v14400_v26 = vld [vmem:[#allocation8 + $0x84] ss:$16 sps:$4 sm:$0xff]   ;;  %v14403_v28 = vld [vmem:[#allocation8 + $0x8c] ss:$16 sps:$4 sm:$0xff]  }
 0x27a   : > { %2978 = vmatpush1.bf16.msra.mxu0 %v14349_v29  ;;  %3064 = vmatpush1.bf16.msra.mxu1 %v14352_v30  ;;  %v14401_v29 = vld [vmem:[#allocation8 + $0x88] ss:$16 sps:$4 sm:$0xff]   ;;  %v14406_v30 = vld [vmem:[#allocation8 + $0xa4] ss:$16 sps:$4 sm:$0xff]  }
 0x27b   : > { %2979 = vmatprep.subr.bf16.mxu0 %v14357_v31  ;;  %3065 = vmatprep.subr.bf16.mxu1 %v14360_v33  ;;  %v14404_v31 = vld [vmem:[#allocation8 + $0xa0] ss:$16 sps:$4 sm:$0xff]   ;;  %v14409_v33 = vld [vmem:[#allocation8 + $0xac] ss:$16 sps:$4 sm:$0xff]  }
 0x27e   : > { %2980 = vmatpush1.bf16.msra.mxu0 %v14355_v0  ;;  %3066 = vmatpush1.bf16.msra.mxu1 %v14358_v37  ;;  %v14407_v0 = vld [vmem:[#allocation8 + $0xa8] ss:$16 sps:$4 sm:$0xff]   ;;  %v14412_v37 = vld [vmem:[#allocation8 + $0xc4] ss:$16 sps:$4 sm:$0xff]  }
 0x27f   : > { %2981 = vmatprep.subr.bf16.mxu0 %v14363_v39  ;;  %3067 = vmatprep.subr.bf16.mxu1 %v14366_v40  ;;  %v14410_v39 = vld [vmem:[#allocation8 + $0xc0] ss:$16 sps:$4 sm:$0xff]   ;;  %v14415_v40 = vld [vmem:[#allocation8 + $0xcc] ss:$16 sps:$4 sm:$0xff]  }
 0x282   : > { %2982 = vmatpush1.bf16.msra.mxu0 %v14361_v41  ;;  %3068 = vmatpush1.bf16.msra.mxu1 %v14364_v43  ;;  %v14413_v41 = vld [vmem:[#allocation8 + $0xc8] ss:$16 sps:$4 sm:$0xff]   ;;  %v14418_v43 = vld [vmem:[#allocation8 + $0xe4] ss:$16 sps:$4 sm:$0xff]  }
 0x283   : > { %2983 = vmatprep.subr.bf16.mxu0 %v14369_v46  ;;  %3069 = vmatprep.subr.bf16.mxu1 %v14372_v49  ;;  %v14421_v46 = vld [vmem:[#allocation8 + $0xec] ss:$16 sps:$4 sm:$0xff]   ;;  %v14419_v49 = vld [vmem:[#allocation8 + $0xe8] ss:$16 sps:$4 sm:$0xff]  }
 0x286   : > { %2984 = vmatpush1.bf16.msra.mxu0 %v14367_v51  ;;  %3070 = vmatpush1.bf16.msra.mxu1 %v14370_v32  ;;  %v14424_v51 = vld [vmem:[#allocation8 + $0x104] ss:$16 sps:$4 sm:$0xff]   ;;  %v14422_v32 = vld [vmem:[#allocation8 + $0x100] ss:$16 sps:$4 sm:$0xff]  }
 0x287   : > { %3726 = vmatprep.subr.bf16.mxu0 %v14376_v57  ;;  %3812 = vmatprep.subr.bf16.mxu1 %v14379_v54  ;;  %v14430_v57 = vld [vmem:[#allocation8 + $0x124] ss:$16 sps:$4 sm:$0xff]   ;;  %v14428_v54 = vld [vmem:[#allocation8 + $0x120] ss:$16 sps:$4 sm:$0xff]  }
 0x289   : > { %2986 = vmatmul.mubr.bf16.vlgmr.msra.gmra.mrb[4].mxu0 %v2253_v27  ;;  %3072 = vmatmul.mubr.bf16.vlgmr.msra.gmra.mrb[4].mxu1 %v2253_v27  ;;  %v14440_v27 = vld [vmem:[#allocation8 + $0x160] ss:$16 sps:$4 sm:$0xff]  }
 0x28a   : > { %3727 = vmatpush1.bf16.msra.mxu0 %v14374_v63  ;;  %3758 = vmatprep.mubr.bf16.mxu0 %v16656_v58  ;;  %v14436_v63 = vld [vmem:[#allocation8 + $0x144] ss:$16 sps:$4 sm:$0xff]  }
 0x28b   : > { %3813 = vmatpush1.bf16.msra.mxu1 %v14377_v1  ;;  %3844 = vmatprep.mubr.bf16.mxu1 %v16656_v58  ;;  %v14398_v58 = vld [vmem:[#allocation8 + $0x80] ss:$16 sps:$4 sm:$0xff]  }
 0x28c   : > { %3728 = vmatprep.subr.bf16.mxu0 %v14382_v3  ;;  %3814 = vmatprep.subr.bf16.mxu1 %v14385_v4  ;;  %v14434_v1 = vld [vmem:[#allocation8 + $0x140] ss:$16 sps:$4 sm:$0xff]   ;;  %v14437_v3 = vld [vmem:[#allocation8 + $0x148] ss:$16 sps:$4 sm:$0xff]   ;;  %v14442_v4 = vld [vmem:[#allocation8 + $0x164] ss:$16 sps:$4 sm:$0xff]  }
 0x28e   : > { %3729 = vmatpush1.bf16.msra.mxu0 %v14380_v7  ;;  %v14445_v7 = vld [vmem:[#allocation8 + $0x16c] ss:$16 sps:$4 sm:$0xff]  }
 0x28f   : > { %3815 = vmatpush1.bf16.msra.mxu1 %v14383_v9  ;;  %3730 = vmatprep.subr.bf16.mxu0 %v14388_v15  ;;  %v14443_v9 = vld [vmem:[#allocation8 + $0x168] ss:$16 sps:$4 sm:$0xff]   ;;  %v14448_v15 = vld [vmem:[#allocation8 + $0x184] ss:$16 sps:$4 sm:$0xff]  }
 0x290   : > { %3816 = vmatprep.subr.bf16.mxu1 %v14391_v8  ;;  %v14446_v8 = vld [vmem:[#allocation8 + $0x180] ss:$16 sps:$4 sm:$0xff]  }
 0x292   : > { %3731 = vmatpush1.bf16.msra.mxu0 %v14386_v16  ;;  %v14451_v16 = vld [vmem:[#allocation8 + $0x18c] ss:$16 sps:$4 sm:$0xff]  }
 0x293   : > { %3817 = vmatpush1.bf16.msra.mxu1 %v14389_v17  ;;  %3732 = vmatprep.subr.bf16.mxu0 %v14394_v19  ;;  %v14449_v17 = vld [vmem:[#allocation8 + $0x188] ss:$16 sps:$4 sm:$0xff]   ;;  %v14454_v19 = vld [vmem:[#allocation8 + $0x1a4] ss:$16 sps:$4 sm:$0xff]  }
 0x294   : > { %3818 = vmatprep.subr.bf16.mxu1 %v14397_v23  ;;  %v14457_v23 = vld [vmem:[#allocation8 + $0x1ac] ss:$16 sps:$4 sm:$0xff]  }
 0x296   : > { %3733 = vmatpush1.bf16.msra.mxu0 %v14392_v20  ;;  %v14452_v20 = vld [vmem:[#allocation8 + $0x1a0] ss:$16 sps:$4 sm:$0xff]  }
 0x297   : > { %3819 = vmatpush1.bf16.msra.mxu1 %v14395_v25  ;;  %3734 = vmatprep.subr.bf16.mxu0 %v14400_v26  ;;  %v14455_v25 = vld [vmem:[#allocation8 + $0x1a8] ss:$16 sps:$4 sm:$0xff]   ;;  %v14460_v26 = vld [vmem:[#allocation8 + $0x1c4] ss:$16 sps:$4 sm:$0xff]  }
 0x298   : > { %3820 = vmatprep.subr.bf16.mxu1 %v14403_v28  ;;  %v14463_v28 = vld [vmem:[#allocation8 + $0x1cc] ss:$16 sps:$4 sm:$0xff]  }
 0x29a   : > { %3735 = vmatpush1.bf16.msra.mxu0 %v14398_v58  ;;  %v14458_v58 = vld [vmem:[#allocation8 + $0x1c0] ss:$16 sps:$4 sm:$0xff]  }
 0x29b   : > { %3821 = vmatpush1.bf16.msra.mxu1 %v14401_v29  ;;  %3736 = vmatprep.subr.bf16.mxu0 %v14406_v30  ;;  %v14461_v29 = vld [vmem:[#allocation8 + $0x1c8] ss:$16 sps:$4 sm:$0xff]   ;;  %v14466_v30 = vld [vmem:[#allocation8 + $0x1e4] ss:$16 sps:$4 sm:$0xff]  }
 0x29c   : > { %3822 = vmatprep.subr.bf16.mxu1 %v14409_v33  ;;  %v14469_v33 = vld [vmem:[#allocation8 + $0x1ec] ss:$16 sps:$4 sm:$0xff]  }
 0x29e   : > { %3737 = vmatpush1.bf16.msra.mxu0 %v14404_v31  ;;  %v14464_v31 = vld [vmem:[#allocation8 + $0x1e0] ss:$16 sps:$4 sm:$0xff]  }
 0x29f   : > { %3823 = vmatpush1.bf16.msra.mxu1 %v14407_v0  ;;  %3738 = vmatprep.subr.bf16.mxu0 %v14412_v37  ;;  %v14467_v0 = vld [vmem:[#allocation8 + $0x1e8] ss:$16 sps:$4 sm:$0xff]   ;;  %v14472_v37 = vld [vmem:[#allocation8 + $0x204] ss:$16 sps:$4 sm:$0xff]  }
 0x2a0   : > { %3824 = vmatprep.subr.bf16.mxu1 %v14415_v40  ;;  %v14475_v40 = vld [vmem:[#allocation8 + $0x20c] ss:$16 sps:$4 sm:$0xff]  }
 0x2a2   : > { %3739 = vmatpush1.bf16.msra.mxu0 %v14410_v39  ;;  %v14470_v39 = vld [vmem:[#allocation8 + $0x200] ss:$16 sps:$4 sm:$0xff]  }
 0x2a3   : > { %3825 = vmatpush1.bf16.msra.mxu1 %v14413_v41  ;;  %3740 = vmatprep.subr.bf16.mxu0 %v14418_v43  ;;  %v14473_v41 = vld [vmem:[#allocation8 + $0x208] ss:$16 sps:$4 sm:$0xff]   ;;  %v14478_v43 = vld [vmem:[#allocation8 + $0x224] ss:$16 sps:$4 sm:$0xff]  }
 0x2a4   : > { %3826 = vmatprep.subr.bf16.mxu1 %v14421_v46  ;;  %v14481_v46 = vld [vmem:[#allocation8 + $0x22c] ss:$16 sps:$4 sm:$0xff]  }
 0x2a6   : > { %3741 = vmatpush1.bf16.msra.mxu0 %v14416_v45  ;;  %v14476_v45 = vld [vmem:[#allocation8 + $0x220] ss:$16 sps:$4 sm:$0xff]  }
 0x2a7   : > { %3827 = vmatpush1.bf16.msra.mxu1 %v14419_v49  ;;  %3742 = vmatprep.subr.bf16.mxu0 %v14424_v51  ;;  %v14479_v49 = vld [vmem:[#allocation8 + $0x228] ss:$16 sps:$4 sm:$0xff]   ;;  %v14484_v51 = vld [vmem:[#allocation8 + $0x244] ss:$16 sps:$4 sm:$0xff]  }
 0x2a8   : > { %3828 = vmatprep.subr.bf16.mxu1 %v14427_v53  ;;  %v14482_v53 = vld [vmem:[#allocation8 + $0x240] ss:$16 sps:$4 sm:$0xff]  }
 0x2aa   : > { %3743 = vmatpush1.bf16.msra.mxu0 %v14422_v32  ;;  %v14487_v32 = vld [vmem:[#allocation8 + $0x24c] ss:$16 sps:$4 sm:$0xff]  }
 0x2ab   : > { %3829 = vmatpush1.bf16.msra.mxu1 %v14425_v55  ;;  %3744 = vmatprep.subr.bf16.mxu0 %v14430_v57  ;;  %v14485_v55 = vld [vmem:[#allocation8 + $0x248] ss:$16 sps:$4 sm:$0xff]   ;;  %v14490_v57 = vld [vmem:[#allocation8 + $0x264] ss:$16 sps:$4 sm:$0xff]  }
 0x2ac   : > { %3830 = vmatprep.subr.bf16.mxu1 %v14433_v61  ;;  %v14491_v61 = vld [vmem:[#allocation8 + $0x268] ss:$16 sps:$4 sm:$0xff]  }
 0x2ae   : > { %3745 = vmatpush1.bf16.msra.mxu0 %v14428_v54  ;;  %v14488_v54 = vld [vmem:[#allocation8 + $0x260] ss:$16 sps:$4 sm:$0xff]  }
 0x2af   : > { %3831 = vmatpush1.bf16.msra.mxu1 %v14431_v62  ;;  %3746 = vmatprep.subr.bf16.mxu0 %v14436_v63  ;;  %v14496_v62 = vld [vmem:[#allocation8 + $0x284] ss:$16 sps:$4 sm:$0xff]   ;;  %v14494_v63 = vld [vmem:[#allocation8 + $0x280] ss:$16 sps:$4 sm:$0xff]  }
 0x2b0   : > { %3832 = vmatprep.subr.bf16.mxu1 %v14439_v2  ;;  %v14502_v2 = vld [vmem:[#allocation8 + $0x2a4] ss:$16 sps:$4 sm:$0xff]  }
 0x2b2   : > { %3747 = vmatpush1.bf16.msra.mxu0 %v14434_v1  ;;  %v14497_v1 = vld [vmem:[#allocation8 + $0x288] ss:$16 sps:$4 sm:$0xff]  }
 0x2b3   : > { %3833 = vmatpush1.bf16.msra.mxu1 %v14437_v3  ;;  %3748 = vmatprep.subr.bf16.mxu0 %v14442_v4  ;;  %v14500_v3 = vld [vmem:[#allocation8 + $0x2a0] ss:$16 sps:$4 sm:$0xff]   ;;  %v14505_v4 = vld [vmem:[#allocation8 + $0x2ac] ss:$16 sps:$4 sm:$0xff]  }
 0x2b4   : > { %3834 = vmatprep.subr.bf16.mxu1 %v14445_v7  ;;  %v14508_v7 = vld [vmem:[#allocation8 + $0x2c4] ss:$16 sps:$4 sm:$0xff]  }
 0x2b6   : > { %3749 = vmatpush1.bf16.msra.mxu0 %v14440_v27  ;;  %v14503_v27 = vld [vmem:[#allocation8 + $0x2a8] ss:$16 sps:$4 sm:$0xff]  }
 0x2b7   : > { %3835 = vmatpush1.bf16.msra.mxu1 %v14443_v9  ;;  %3750 = vmatprep.subr.bf16.mxu0 %v14448_v15  ;;  %v14506_v9 = vld [vmem:[#allocation8 + $0x2c0] ss:$16 sps:$4 sm:$0xff]   ;;  %v14511_v15 = vld [vmem:[#allocation8 + $0x2cc] ss:$16 sps:$4 sm:$0xff]  }
 0x2b8   : > { %3836 = vmatprep.subr.bf16.mxu1 %v14451_v16  ;;  %v14514_v16 = vld [vmem:[#allocation8 + $0x2e4] ss:$16 sps:$4 sm:$0xff]  }
 0x2ba   : > { %3751 = vmatpush1.bf16.msra.mxu0 %v14446_v8  ;;  %v14509_v8 = vld [vmem:[#allocation8 + $0x2c8] ss:$16 sps:$4 sm:$0xff]  }
 0x2bb   : > { %3837 = vmatpush1.bf16.msra.mxu1 %v14449_v17  ;;  %3752 = vmatprep.subr.bf16.mxu0 %v14454_v19  ;;  %v14512_v17 = vld [vmem:[#allocation8 + $0x2e0] ss:$16 sps:$4 sm:$0xff]   ;;  %v14517_v19 = vld [vmem:[#allocation8 + $0x2ec] ss:$16 sps:$4 sm:$0xff]  }
 0x2bc   : > { %3838 = vmatprep.subr.bf16.mxu1 %v14457_v23  ;;  %v14520_v23 = vld [vmem:[#allocation8 + $0x304] ss:$16 sps:$4 sm:$0xff]  }
 0x2be   : > { %3753 = vmatpush1.bf16.msra.mxu0 %v14452_v20  ;;  %v14515_v20 = vld [vmem:[#allocation8 + $0x2e8] ss:$16 sps:$4 sm:$0xff]  }
 0x2bf   : > { %3839 = vmatpush1.bf16.msra.mxu1 %v14455_v25  ;;  %3754 = vmatprep.subr.bf16.mxu0 %v14460_v26  ;;  %v14518_v25 = vld [vmem:[#allocation8 + $0x300] ss:$16 sps:$4 sm:$0xff]   ;;  %v14523_v26 = vld [vmem:[#allocation8 + $0x30c] ss:$16 sps:$4 sm:$0xff]  }
 0x2c0   : > { %3840 = vmatprep.subr.bf16.mxu1 %v14463_v28  ;;  %v14526_v28 = vld [vmem:[#allocation8 + $0x324] ss:$16 sps:$4 sm:$0xff]  }
 0x2c2   : > { %3755 = vmatpush1.bf16.msra.mxu0 %v14458_v58  ;;  %v14521_v58 = vld [vmem:[#allocation8 + $0x308] ss:$16 sps:$4 sm:$0xff]  }
 0x2c3   : > { %3841 = vmatpush1.bf16.msra.mxu1 %v14461_v29  ;;  %3756 = vmatprep.subr.bf16.mxu0 %v14466_v30  ;;  %v14524_v29 = vld [vmem:[#allocation8 + $0x320] ss:$16 sps:$4 sm:$0xff]   ;;  %v14529_v30 = vld [vmem:[#allocation8 + $0x32c] ss:$16 sps:$4 sm:$0xff]  }
 0x2c4   : > { %3842 = vmatprep.subr.bf16.mxu1 %v14469_v33  ;;  %v14532_v33 = vld [vmem:[#allocation8 + $0x344] ss:$16 sps:$4 sm:$0xff]  }
 0x2c6   : > { %3757 = vmatpush1.bf16.msra.mxu0 %v14464_v31  ;;  %v14527_v31 = vld [vmem:[#allocation8 + $0x328] ss:$16 sps:$4 sm:$0xff]  }
 0x2c7   : > { %3843 = vmatpush1.bf16.msra.mxu1 %v14467_v0  ;;  %3769 = vmatprep.subr.bf16.mxu0 %v14472_v37  ;;  %v14530_v0 = vld [vmem:[#allocation8 + $0x340] ss:$16 sps:$4 sm:$0xff]   ;;  %v14535_v37 = vld [vmem:[#allocation8 + $0x34c] ss:$16 sps:$4 sm:$0xff]  }
 0x2c8   : > { %3855 = vmatprep.subr.bf16.mxu1 %v14475_v40  ;;  %v14538_v40 = vld [vmem:[#allocation8 + $0x364] ss:$16 sps:$4 sm:$0xff]  }
 0x2c9   : > { %3759 = vmatmul.mubr.bf16.vlgmr.msra.gmra.mrb[4].mxu0 %v16659_v59 }
 0x2ca   : > { %3845 = vmatmul.mubr.bf16.vlgmr.msra.gmra.mrb[4].mxu1 %v16659_v59  ;;  %3770 = vmatpush1.bf16.msra.mxu0 %v14470_v39  ;;  %v14493_v59 = vld [vmem:[#allocation8 + $0x26c] ss:$16 sps:$4 sm:$0xff]   ;;  %v14533_v39 = vld [vmem:[#allocation8 + $0x348] ss:$16 sps:$4 sm:$0xff]  }
 0x2cb   : > { %3801 = vmatprep.mubr.bf16.mxu0 %v16663_v60  ;;  %3856 = vmatpush1.bf16.msra.mxu1 %v14473_v41  ;;  %v14536_v41 = vld [vmem:[#allocation8 + $0x360] ss:$16 sps:$4 sm:$0xff]  }
 0x2cc   : > { %3887 = vmatprep.mubr.bf16.mxu1 %v16663_v60  ;;  %3771 = vmatprep.subr.bf16.mxu0 %v14478_v43  ;;  %v14499_v60 = vld [vmem:[#allocation8 + $0x28c] ss:$16 sps:$4 sm:$0xff]  }
 0x2cd   : > { %3857 = vmatprep.subr.bf16.mxu1 %v14481_v46  ;;  %v14541_v43 = vld [vmem:[#allocation8 + $0x36c] ss:$16 sps:$4 sm:$0xff]   ;;  %v14544_v46 = vld [vmem:[#allocation8 + $0x384] ss:$16 sps:$4 sm:$0xff]  }
 0x2ce   : > { %3772 = vmatpush1.bf16.msra.mxu0 %v14476_v45  ;;  %v14539_v45 = vld [vmem:[#allocation8 + $0x368] ss:$16 sps:$4 sm:$0xff]  }
 0x2cf   : > { %3858 = vmatpush1.bf16.msra.mxu1 %v14479_v49  ;;  %3773 = vmatprep.subr.bf16.mxu0 %v14484_v51  ;;  %v14542_v49 = vld [vmem:[#allocation8 + $0x380] ss:$16 sps:$4 sm:$0xff]   ;;  %v14547_v51 = vld [vmem:[#allocation8 + $0x38c] ss:$16 sps:$4 sm:$0xff]  }
 0x2d0   : > { %3859 = vmatprep.subr.bf16.mxu1 %v14487_v32  ;;  %v14545_v32 = vld [vmem:[#allocation8 + $0x388] ss:$16 sps:$4 sm:$0xff]  }
 0x2d2   : > { %3774 = vmatpush1.bf16.msra.mxu0 %v14482_v53  ;;  %v14550_v53 = vld [vmem:[#allocation8 + $0x3a4] ss:$16 sps:$4 sm:$0xff]  }
 0x2d3   : > { %3860 = vmatpush1.bf16.msra.mxu1 %v14485_v55  ;;  %3775 = vmatprep.subr.bf16.mxu0 %v14490_v57  ;;  %v14548_v55 = vld [vmem:[#allocation8 + $0x3a0] ss:$16 sps:$4 sm:$0xff]   ;;  %v14553_v57 = vld [vmem:[#allocation8 + $0x3ac] ss:$16 sps:$4 sm:$0xff]  }
 0x2d4   : > { %3861 = vmatprep.subr.bf16.mxu1 %v14493_v59  ;;  %v14556_v59 = vld [vmem:[#allocation8 + $0x3c4] ss:$16 sps:$4 sm:$0xff]  }
 0x2d6   : > { %3776 = vmatpush1.bf16.msra.mxu0 %v14488_v54  ;;  %v14551_v54 = vld [vmem:[#allocation8 + $0x3a8] ss:$16 sps:$4 sm:$0xff]  }
 0x2d7   : > { %3862 = vmatpush1.bf16.msra.mxu1 %v14491_v61  ;;  %3777 = vmatprep.subr.bf16.mxu0 %v14496_v62  ;;  %v14554_v61 = vld [vmem:[#allocation8 + $0x3c0] ss:$16 sps:$4 sm:$0xff]   ;;  %v14559_v62 = vld [vmem:[#allocation8 + $0x3cc] ss:$16 sps:$4 sm:$0xff]  }
 0x2d8   : > { %3863 = vmatprep.subr.bf16.mxu1 %v14499_v60  ;;  %v14562_v60 = vld [vmem:[#allocation8 + $0x3e4] ss:$16 sps:$4 sm:$0xff]  }
 0x2da   : > { %3778 = vmatpush1.bf16.msra.mxu0 %v14494_v63  ;;  %v14557_v63 = vld [vmem:[#allocation8 + $0x3c8] ss:$16 sps:$4 sm:$0xff]  }
 0x2db   : > { %3864 = vmatpush1.bf16.msra.mxu1 %v14497_v1  ;;  %3779 = vmatprep.subr.bf16.mxu0 %v14502_v2  ;;  %v14560_v1 = vld [vmem:[#allocation8 + $0x3e0] ss:$16 sps:$4 sm:$0xff]   ;;  %v14565_v2 = vld [vmem:[#allocation8 + $0x3ec] ss:$16 sps:$4 sm:$0xff]  }
 0x2dc   : > { %3865 = vmatprep.subr.bf16.mxu1 %v14505_v4  ;;  %v14568_v4 = vld [vmem:[#allocation8 + $0x804] ss:$16 sps:$4 sm:$0xff]  }
 0x2de   : > { %3780 = vmatpush1.bf16.msra.mxu0 %v14500_v3  ;;  %v14563_v3 = vld [vmem:[#allocation8 + $0x3e8] ss:$16 sps:$4 sm:$0xff]  }
 0x2df   : > { %3866 = vmatpush1.bf16.msra.mxu1 %v14503_v27  ;;  %3781 = vmatprep.subr.bf16.mxu0 %v14508_v7  ;;  %v14566_v27 = vld [vmem:[#allocation8 + $0x800] ss:$16 sps:$4 sm:$0xff]   ;;  %v14571_v7 = vld [vmem:[#allocation8 + $0x80c] ss:$16 sps:$4 sm:$0xff]  }
 0x2e0   : > { %3867 = vmatprep.subr.bf16.mxu1 %v14511_v15  ;;  %v14574_v15 = vld [vmem:[#allocation8 + $0x824] ss:$16 sps:$4 sm:$0xff]  }
 0x2e2   : > { %3782 = vmatpush1.bf16.msra.mxu0 %v14506_v9  ;;  %v14569_v9 = vld [vmem:[#allocation8 + $0x808] ss:$16 sps:$4 sm:$0xff]  }
 0x2e3   : > { %3868 = vmatpush1.bf16.msra.mxu1 %v14509_v8  ;;  %3783 = vmatprep.subr.bf16.mxu0 %v14514_v16  ;;  %v14577_v8 = vld [vmem:[#allocation8 + $0x82c] ss:$16 sps:$4 sm:$0xff]   ;;  %v14572_v16 = vld [vmem:[#allocation8 + $0x820] ss:$16 sps:$4 sm:$0xff]  }
 0x2e4   : > { %3869 = vmatprep.subr.bf16.mxu1 %v14517_v19  ;;  %v14580_v19 = vld [vmem:[#allocation8 + $0x844] ss:$16 sps:$4 sm:$0xff]  }
 0x2e6   : > { %3784 = vmatpush1.bf16.msra.mxu0 %v14512_v17  ;;  %v14575_v17 = vld [vmem:[#allocation8 + $0x828] ss:$16 sps:$4 sm:$0xff]  }
 0x2e7   : > { %3870 = vmatpush1.bf16.msra.mxu1 %v14515_v20  ;;  %3785 = vmatprep.subr.bf16.mxu0 %v14520_v23  ;;  %v14583_v20 = vld [vmem:[#allocation8 + $0x84c] ss:$16 sps:$4 sm:$0xff]   ;;  %v14578_v23 = vld [vmem:[#allocation8 + $0x840] ss:$16 sps:$4 sm:$0xff]  }
 0x2e8   : > { %3871 = vmatprep.subr.bf16.mxu1 %v14523_v26  ;;  %v14586_v26 = vld [vmem:[#allocation8 + $0x864] ss:$16 sps:$4 sm:$0xff]  }
 0x2ea   : > { %3786 = vmatpush1.bf16.msra.mxu0 %v14518_v25  ;;  %v14581_v25 = vld [vmem:[#allocation8 + $0x848] ss:$16 sps:$4 sm:$0xff]  }
 0x2eb   : > { %3872 = vmatpush1.bf16.msra.mxu1 %v14521_v58  ;;  %3787 = vmatprep.subr.bf16.mxu0 %v14526_v28  ;;  %v14589_v58 = vld [vmem:[#allocation8 + $0x86c] ss:$16 sps:$4 sm:$0xff]   ;;  %v14587_v28 = vld [vmem:[#allocation8 + $0x868] ss:$16 sps:$4 sm:$0xff]  }
 0x2ec   : > { %3873 = vmatprep.subr.bf16.mxu1 %v14529_v30  ;;  %v14590_v30 = vld [vmem:[#allocation8 + $0x880] ss:$16 sps:$4 sm:$0xff]  }
 0x2ee   : > { %3788 = vmatpush1.bf16.msra.mxu0 %v14524_v29  ;;  %v14592_v29 = vld [vmem:[#allocation8 + $0x884] ss:$16 sps:$4 sm:$0xff]  }
 0x2ef   : > { %3874 = vmatpush1.bf16.msra.mxu1 %v14527_v31  ;;  %3789 = vmatprep.subr.bf16.mxu0 %v14532_v33  ;;  %v14593_v31 = vld [vmem:[#allocation8 + $0x888] ss:$16 sps:$4 sm:$0xff]   ;;  %v14598_v33 = vld [vmem:[#allocation8 + $0x8a4] ss:$16 sps:$4 sm:$0xff]  }
 0x2f0   : > { %3875 = vmatprep.subr.bf16.mxu1 %v14535_v37  ;;  %v14601_v37 = vld [vmem:[#allocation8 + $0x8ac] ss:$16 sps:$4 sm:$0xff]  }
 0x2f2   : > { %3790 = vmatpush1.bf16.msra.mxu0 %v14530_v0  ;;  %v14596_v0 = vld [vmem:[#allocation8 + $0x8a0] ss:$16 sps:$4 sm:$0xff]  }
 0x2f3   : > { %3876 = vmatpush1.bf16.msra.mxu1 %v14533_v39  ;;  %3791 = vmatprep.subr.bf16.mxu0 %v14538_v40  ;;  %v14599_v39 = vld [vmem:[#allocation8 + $0x8a8] ss:$16 sps:$4 sm:$0xff]   ;;  %v14604_v40 = vld [vmem:[#allocation8 + $0x8c4] ss:$16 sps:$4 sm:$0xff]  }
 0x2f4   : > { %3877 = vmatprep.subr.bf16.mxu1 %v14541_v43  ;;  %v14607_v43 = vld [vmem:[#allocation8 + $0x8cc] ss:$16 sps:$4 sm:$0xff]  }
 0x2f6   : > { %3792 = vmatpush1.bf16.msra.mxu0 %v14536_v41  ;;  %v14602_v41 = vld [vmem:[#allocation8 + $0x8c0] ss:$16 sps:$4 sm:$0xff]  }
 0x2f7   : > { %3878 = vmatpush1.bf16.msra.mxu1 %v14539_v45  ;;  %3793 = vmatprep.subr.bf16.mxu0 %v14544_v46  ;;  %v14605_v45 = vld [vmem:[#allocation8 + $0x8c8] ss:$16 sps:$4 sm:$0xff]   ;;  %v14610_v46 = vld [vmem:[#allocation8 + $0x8e4] ss:$16 sps:$4 sm:$0xff]  }
 0x2f8   : > { %3879 = vmatprep.subr.bf16.mxu1 %v14547_v51  ;;  %v14613_v51 = vld [vmem:[#allocation8 + $0x8ec] ss:$16 sps:$4 sm:$0xff]  }
 0x2fa   : > { %3794 = vmatpush1.bf16.msra.mxu0 %v14542_v49  ;;  %v14608_v49 = vld [vmem:[#allocation8 + $0x8e0] ss:$16 sps:$4 sm:$0xff]  }
 0x2fb   : > { %3880 = vmatpush1.bf16.msra.mxu1 %v14545_v32  ;;  %3795 = vmatprep.subr.bf16.mxu0 %v14550_v53  ;;  %v14611_v32 = vld [vmem:[#allocation8 + $0x8e8] ss:$16 sps:$4 sm:$0xff]   ;;  %v14616_v53 = vld [vmem:[#allocation8 + $0x904] ss:$16 sps:$4 sm:$0xff]  }
 0x2fc   : > { %3881 = vmatprep.subr.bf16.mxu1 %v14553_v57  ;;  %v14619_v57 = vld [vmem:[#allocation8 + $0x90c] ss:$16 sps:$4 sm:$0xff]  }
 0x2fe   : > { %3796 = vmatpush1.bf16.msra.mxu0 %v14548_v55  ;;  %v14614_v55 = vld [vmem:[#allocation8 + $0x900] ss:$16 sps:$4 sm:$0xff]  }
 0x2ff   : > { %3882 = vmatpush1.bf16.msra.mxu1 %v14551_v54  ;;  %3797 = vmatprep.subr.bf16.mxu0 %v14556_v59  ;;  %v14617_v54 = vld [vmem:[#allocation8 + $0x908] ss:$16 sps:$4 sm:$0xff]   ;;  %v14622_v59 = vld [vmem:[#allocation8 + $0x924] ss:$16 sps:$4 sm:$0xff]  }
 0x300   : > { %3883 = vmatprep.subr.bf16.mxu1 %v14559_v62  ;;  %v14625_v62 = vld [vmem:[#allocation8 + $0x92c] ss:$16 sps:$4 sm:$0xff]  }
 0x302   : > { %3798 = vmatpush1.bf16.msra.mxu0 %v14554_v61  ;;  %v14620_v61 = vld [vmem:[#allocation8 + $0x920] ss:$16 sps:$4 sm:$0xff]  }
 0x303   : > { %3884 = vmatpush1.bf16.msra.mxu1 %v14557_v63  ;;  %3799 = vmatprep.subr.bf16.mxu0 %v14562_v60  ;;  %v14623_v63 = vld [vmem:[#allocation8 + $0x928] ss:$16 sps:$4 sm:$0xff]   ;;  %v14628_v60 = vld [vmem:[#allocation8 + $0x944] ss:$16 sps:$4 sm:$0xff]  }
 0x304   : > { %3885 = vmatprep.subr.bf16.mxu1 %v14565_v2  ;;  %v14631_v2 = vld [vmem:[#allocation8 + $0x94c] ss:$16 sps:$4 sm:$0xff]  }
 0x306   : > { %3800 = vmatpush1.bf16.msra.mxu0 %v14560_v1  ;;  %v14626_v1 = vld [vmem:[#allocation8 + $0x940] ss:$16 sps:$4 sm:$0xff]  }
 0x307   : > { %3886 = vmatpush1.bf16.msra.mxu1 %v14563_v3  ;;  %4695 = vmatprep.subr.bf16.mxu0 %v14568_v4  ;;  %v14629_v3 = vld [vmem:[#allocation8 + $0x948] ss:$16 sps:$4 sm:$0xff]   ;;  %v14634_v4 = vld [vmem:[#allocation8 + $0x964] ss:$16 sps:$4 sm:$0xff]  }
 0x308   : > { %4781 = vmatprep.subr.bf16.mxu1 %v14571_v7  ;;  %v14637_v7 = vld [vmem:[#allocation8 + $0x96c] ss:$16 sps:$4 sm:$0xff]  }
 0x309   : > { %3802 = vmatmul.mubr.bf16.vlgmr.msra.gmra.mrb[4].mxu0 %v16735_v38 }
 0x30a   : > { %3888 = vmatmul.mubr.bf16.vlgmr.msra.gmra.mrb[4].mxu1 %v16735_v38  ;;  %4696 = vmatpush1.bf16.msra.mxu0 %v14566_v27  ;;  %v14584_v38 = vld [vmem:[#allocation8 + $0x860] ss:$16 sps:$4 sm:$0xff]  }
 0x30b   : > { %4727 = vmatprep.mubr.bf16.mxu0 %v16690_v42  ;;  %4782 = vmatpush1.bf16.msra.mxu1 %v14569_v9  ;;  %v14632_v27 = vld [vmem:[#allocation8 + $0x960] ss:$16 sps:$4 sm:$0xff]   ;;  %v14635_v9 = vld [vmem:[#allocation8 + $0x968] ss:$16 sps:$4 sm:$0xff]  }
 0x30c   : > { %4813 = vmatprep.mubr.bf16.mxu1 %v16690_v42  ;;  %4697 = vmatprep.subr.bf16.mxu0 %v14574_v15  ;;  %v14595_v42 = vld [vmem:[#allocation8 + $0x88c] ss:$16 sps:$4 sm:$0xff]   ;;  %v14640_v15 = vld [vmem:[#allocation8 + $0x984] ss:$16 sps:$4 sm:$0xff]  }
 0x30d   : > { %4783 = vmatprep.subr.bf16.mxu1 %v14577_v8  ;;  %v14638_v8 = vld [vmem:[#allocation8 + $0x980] ss:$16 sps:$4 sm:$0xff]  }
 0x30e   : > { %4698 = vmatpush1.bf16.msra.mxu0 %v14572_v16  ;;  %v14643_v16 = vld [vmem:[#allocation8 + $0x98c] ss:$16 sps:$4 sm:$0xff]  }
 0x30f   : > { %4784 = vmatpush1.bf16.msra.mxu1 %v14575_v17  ;;  %4699 = vmatprep.subr.bf16.mxu0 %v14580_v19  ;;  %v14641_v17 = vld [vmem:[#allocation8 + $0x988] ss:$16 sps:$4 sm:$0xff]   ;;  %v14646_v19 = vld [vmem:[#allocation8 + $0x9a4] ss:$16 sps:$4 sm:$0xff]  }
 0x310   : > { %4785 = vmatprep.subr.bf16.mxu1 %v14583_v20  ;;  %v14644_v20 = vld [vmem:[#allocation8 + $0x9a0] ss:$16 sps:$4 sm:$0xff]  }
 0x312   : > { %4700 = vmatpush1.bf16.msra.mxu0 %v14578_v23  ;;  %v14649_v23 = vld [vmem:[#allocation8 + $0x9ac] ss:$16 sps:$4 sm:$0xff]  }
 0x313   : > { %4786 = vmatpush1.bf16.msra.mxu1 %v14581_v25  ;;  %4701 = vmatprep.subr.bf16.mxu0 %v14586_v26  ;;  %v14647_v25 = vld [vmem:[#allocation8 + $0x9a8] ss:$16 sps:$4 sm:$0xff]   ;;  %v14652_v26 = vld [vmem:[#allocation8 + $0x9c4] ss:$16 sps:$4 sm:$0xff]  }
 0x314   : > { %4787 = vmatprep.subr.bf16.mxu1 %v14589_v58  ;;  %v14655_v58 = vld [vmem:[#allocation8 + $0x9cc] ss:$16 sps:$4 sm:$0xff]  }
 0x316   : > { %4702 = vmatpush1.bf16.msra.mxu0 %v14584_v38  ;;  %v14650_v38 = vld [vmem:[#allocation8 + $0x9c0] ss:$16 sps:$4 sm:$0xff]  }
 0x317   : > { %4788 = vmatpush1.bf16.msra.mxu1 %v14587_v28  ;;  %4703 = vmatprep.subr.bf16.mxu0 %v14592_v29  ;;  %v14653_v28 = vld [vmem:[#allocation8 + $0x9c8] ss:$16 sps:$4 sm:$0xff]   ;;  %v14658_v29 = vld [vmem:[#allocation8 + $0x9e4] ss:$16 sps:$4 sm:$0xff]  }
 0x318   : > { %4789 = vmatprep.subr.bf16.mxu1 %v14595_v42  ;;  %v14661_v42 = vld [vmem:[#allocation8 + $0x9ec] ss:$16 sps:$4 sm:$0xff]  }
 0x31a   : > { %4704 = vmatpush1.bf16.msra.mxu0 %v14590_v30  ;;  %v14656_v30 = vld [vmem:[#allocation8 + $0x9e0] ss:$16 sps:$4 sm:$0xff]  }
 0x31b   : > { %4790 = vmatpush1.bf16.msra.mxu1 %v14593_v31  ;;  %4705 = vmatprep.subr.bf16.mxu0 %v14598_v33  ;;  %v14659_v31 = vld [vmem:[#allocation8 + $0x9e8] ss:$16 sps:$4 sm:$0xff]   ;;  %v14664_v33 = vld [vmem:[#allocation8 + $0xa04] ss:$16 sps:$4 sm:$0xff]  }
 0x31c   : > { %4791 = vmatprep.subr.bf16.mxu1 %v14601_v37  ;;  %v14667_v37 = vld [vmem:[#allocation8 + $0xa0c] ss:$16 sps:$4 sm:$0xff]  }
 0x31e   : > { %4706 = vmatpush1.bf16.msra.mxu0 %v14596_v0  ;;  %v14662_v0 = vld [vmem:[#allocation8 + $0xa00] ss:$16 sps:$4 sm:$0xff]  }
 0x31f   : > { %4792 = vmatpush1.bf16.msra.mxu1 %v14599_v39  ;;  %4707 = vmatprep.subr.bf16.mxu0 %v14604_v40  ;;  %v14665_v39 = vld [vmem:[#allocation8 + $0xa08] ss:$16 sps:$4 sm:$0xff]   ;;  %v14670_v40 = vld [vmem:[#allocation8 + $0xa24] ss:$16 sps:$4 sm:$0xff]  }
 0x320   : > { %4793 = vmatprep.subr.bf16.mxu1 %v14607_v43  ;;  %v14673_v43 = vld [vmem:[#allocation8 + $0xa2c] ss:$16 sps:$4 sm:$0xff]  }
 0x322   : > { %4708 = vmatpush1.bf16.msra.mxu0 %v14602_v41  ;;  %v14668_v41 = vld [vmem:[#allocation8 + $0xa20] ss:$16 sps:$4 sm:$0xff]  }
 0x323   : > { %4794 = vmatpush1.bf16.msra.mxu1 %v14605_v45  ;;  %4709 = vmatprep.subr.bf16.mxu0 %v14610_v46  ;;  %v14671_v45 = vld [vmem:[#allocation8 + $0xa28] ss:$16 sps:$4 sm:$0xff]   ;;  %v14676_v46 = vld [vmem:[#allocation8 + $0xa44] ss:$16 sps:$4 sm:$0xff]  }
 0x324   : > { %4795 = vmatprep.subr.bf16.mxu1 %v14613_v51  ;;  %v14674_v51 = vld [vmem:[#allocation8 + $0xa40] ss:$16 sps:$4 sm:$0xff]  }
 0x326   : > { %4710 = vmatpush1.bf16.msra.mxu0 %v14608_v49  ;;  %v14679_v49 = vld [vmem:[#allocation8 + $0xa4c] ss:$16 sps:$4 sm:$0xff]  }
 0x327   : > { %4796 = vmatpush1.bf16.msra.mxu1 %v14611_v32  ;;  %4711 = vmatprep.subr.bf16.mxu0 %v14616_v53  ;;  %v14677_v32 = vld [vmem:[#allocation8 + $0xa48] ss:$16 sps:$4 sm:$0xff]   ;;  %v14682_v53 = vld [vmem:[#allocation8 + $0xa64] ss:$16 sps:$4 sm:$0xff]  }
 0x328   : > { %4797 = vmatprep.subr.bf16.mxu1 %v14619_v57  ;;  %v14683_v57 = vld [vmem:[#allocation8 + $0xa68] ss:$16 sps:$4 sm:$0xff]  }
 0x32a   : > { %4712 = vmatpush1.bf16.msra.mxu0 %v14614_v55  ;;  %v14680_v55 = vld [vmem:[#allocation8 + $0xa60] ss:$16 sps:$4 sm:$0xff]  }
 0x32b   : > { %4798 = vmatpush1.bf16.msra.mxu1 %v14617_v54  ;;  %4713 = vmatprep.subr.bf16.mxu0 %v14622_v59  ;;  %v14688_v54 = vld [vmem:[#allocation8 + $0xa84] ss:$16 sps:$4 sm:$0xff]   ;;  %v14686_v59 = vld [vmem:[#allocation8 + $0xa80] ss:$16 sps:$4 sm:$0xff]  }
 0x32c   : > { %4799 = vmatprep.subr.bf16.mxu1 %v14625_v62  ;;  %v14694_v62 = vld [vmem:[#allocation8 + $0xaa4] ss:$16 sps:$4 sm:$0xff]  }
 0x32e   : > { %4714 = vmatpush1.bf16.msra.mxu0 %v14620_v61  ;;  %v14689_v61 = vld [vmem:[#allocation8 + $0xa88] ss:$16 sps:$4 sm:$0xff]  }
 0x32f   : > { %4800 = vmatpush1.bf16.msra.mxu1 %v14623_v63  ;;  %4715 = vmatprep.subr.bf16.mxu0 %v14628_v60  ;;  %v14692_v63 = vld [vmem:[#allocation8 + $0xaa0] ss:$16 sps:$4 sm:$0xff]   ;;  %v14697_v60 = vld [vmem:[#allocation8 + $0xaac] ss:$16 sps:$4 sm:$0xff]  }
 0x330   : > { %4801 = vmatprep.subr.bf16.mxu1 %v14631_v2  ;;  %v14700_v2 = vld [vmem:[#allocation8 + $0xac4] ss:$16 sps:$4 sm:$0xff]  }
 0x332   : > { %4716 = vmatpush1.bf16.msra.mxu0 %v14626_v1  ;;  %v14695_v1 = vld [vmem:[#allocation8 + $0xaa8] ss:$16 sps:$4 sm:$0xff]  }
 0x333   : > { %4802 = vmatpush1.bf16.msra.mxu1 %v14629_v3  ;;  %4717 = vmatprep.subr.bf16.mxu0 %v14634_v4  ;;  %v14698_v3 = vld [vmem:[#allocation8 + $0xac0] ss:$16 sps:$4 sm:$0xff]   ;;  %v14703_v4 = vld [vmem:[#allocation8 + $0xacc] ss:$16 sps:$4 sm:$0xff]  }
 0x334   : > { %4803 = vmatprep.subr.bf16.mxu1 %v14637_v7  ;;  %v14706_v7 = vld [vmem:[#allocation8 + $0xae4] ss:$16 sps:$4 sm:$0xff]  }
 0x336   : > { %4718 = vmatpush1.bf16.msra.mxu0 %v14632_v27  ;;  %v14701_v27 = vld [vmem:[#allocation8 + $0xac8] ss:$16 sps:$4 sm:$0xff]  }
 0x337   : > { %4804 = vmatpush1.bf16.msra.mxu1 %v14635_v9  ;;  %4719 = vmatprep.subr.bf16.mxu0 %v14640_v15  ;;  %v14704_v9 = vld [vmem:[#allocation8 + $0xae0] ss:$16 sps:$4 sm:$0xff]   ;;  %v14709_v15 = vld [vmem:[#allocation8 + $0xaec] ss:$16 sps:$4 sm:$0xff]  }
 0x338   : > { %4805 = vmatprep.subr.bf16.mxu1 %v14643_v16  ;;  %v14712_v16 = vld [vmem:[#allocation8 + $0xb04] ss:$16 sps:$4 sm:$0xff]  }
 0x33a   : > { %4720 = vmatpush1.bf16.msra.mxu0 %v14638_v8  ;;  %v14707_v8 = vld [vmem:[#allocation8 + $0xae8] ss:$16 sps:$4 sm:$0xff]  }
 0x33b   : > { %4806 = vmatpush1.bf16.msra.mxu1 %v14641_v17  ;;  %4721 = vmatprep.subr.bf16.mxu0 %v14646_v19  ;;  %v14710_v17 = vld [vmem:[#allocation8 + $0xb00] ss:$16 sps:$4 sm:$0xff]   ;;  %v14715_v19 = vld [vmem:[#allocation8 + $0xb0c] ss:$16 sps:$4 sm:$0xff]  }
 0x33c   : > { %4807 = vmatprep.subr.bf16.mxu1 %v14649_v23  ;;  %v14718_v23 = vld [vmem:[#allocation8 + $0xb24] ss:$16 sps:$4 sm:$0xff]  }
 0x33e   : > { %4722 = vmatpush1.bf16.msra.mxu0 %v14644_v20  ;;  %v14713_v20 = vld [vmem:[#allocation8 + $0xb08] ss:$16 sps:$4 sm:$0xff]  }
 0x33f   : > { %4808 = vmatpush1.bf16.msra.mxu1 %v14647_v25  ;;  %4723 = vmatprep.subr.bf16.mxu0 %v14652_v26  ;;  %v14716_v25 = vld [vmem:[#allocation8 + $0xb20] ss:$16 sps:$4 sm:$0xff]   ;;  %v14721_v26 = vld [vmem:[#allocation8 + $0xb2c] ss:$16 sps:$4 sm:$0xff]  }
 0x340   : > { %4809 = vmatprep.subr.bf16.mxu1 %v14655_v58  ;;  %v14724_v58 = vld [vmem:[#allocation8 + $0xb44] ss:$16 sps:$4 sm:$0xff]  }
 0x342   : > { %4724 = vmatpush1.bf16.msra.mxu0 %v14650_v38  ;;  %v14719_v38 = vld [vmem:[#allocation8 + $0xb28] ss:$16 sps:$4 sm:$0xff]  }
 0x343   : > { %4810 = vmatpush1.bf16.msra.mxu1 %v14653_v28  ;;  %4725 = vmatprep.subr.bf16.mxu0 %v14658_v29  ;;  %v14722_v28 = vld [vmem:[#allocation8 + $0xb40] ss:$16 sps:$4 sm:$0xff]   ;;  %v14727_v29 = vld [vmem:[#allocation8 + $0xb4c] ss:$16 sps:$4 sm:$0xff]  }
 0x344   : > { %4811 = vmatprep.subr.bf16.mxu1 %v14661_v42  ;;  %v14730_v42 = vld [vmem:[#allocation8 + $0xb64] ss:$16 sps:$4 sm:$0xff]  }
 0x346   : > { %4726 = vmatpush1.bf16.msra.mxu0 %v14656_v30  ;;  %v14725_v30 = vld [vmem:[#allocation8 + $0xb48] ss:$16 sps:$4 sm:$0xff]  }
 0x347   : > { %4812 = vmatpush1.bf16.msra.mxu1 %v14659_v31  ;;  %4738 = vmatprep.subr.bf16.mxu0 %v14664_v33  ;;  %v14728_v31 = vld [vmem:[#allocation8 + $0xb60] ss:$16 sps:$4 sm:$0xff]   ;;  %v14733_v33 = vld [vmem:[#allocation8 + $0xb6c] ss:$16 sps:$4 sm:$0xff]  }
 0x348   : > { %4824 = vmatprep.subr.bf16.mxu1 %v14667_v37  ;;  %v14736_v37 = vld [vmem:[#allocation8 + $0xb84] ss:$16 sps:$4 sm:$0xff]  }
 0x349   : > { %4728 = vmatmul.mubr.bf16.vlgmr.msra.gmra.mrb[4].mxu0 %v16694_v48 }
 0x34a   : > { %4814 = vmatmul.mubr.bf16.vlgmr.msra.gmra.mrb[4].mxu1 %v16694_v48  ;;  %4739 = vmatpush1.bf16.msra.mxu0 %v14662_v0  ;;  %v14685_v48 = vld [vmem:[#allocation8 + $0xa6c] ss:$16 sps:$4 sm:$0xff]   ;;  %v14731_v0 = vld [vmem:[#allocation8 + $0xb68] ss:$16 sps:$4 sm:$0xff]  }
 0x34b   : > { %4770 = vmatprep.mubr.bf16.mxu0 %v16700_v56  ;;  %4825 = vmatpush1.bf16.msra.mxu1 %v14665_v39  ;;  %v14734_v39 = vld [vmem:[#allocation8 + $0xb80] ss:$16 sps:$4 sm:$0xff]  }
 0x34c   : > { %4856 = vmatprep.mubr.bf16.mxu1 %v16700_v56  ;;  %4740 = vmatprep.subr.bf16.mxu0 %v14670_v40  ;;  %v14691_v56 = vld [vmem:[#allocation8 + $0xa8c] ss:$16 sps:$4 sm:$0xff]  }
 0x34d   : > { %4826 = vmatprep.subr.bf16.mxu1 %v14673_v43  ;;  %v14739_v40 = vld [vmem:[#allocation8 + $0xb8c] ss:$16 sps:$4 sm:$0xff]   ;;  %v14742_v43 = vld [vmem:[#allocation8 + $0xba4] ss:$16 sps:$4 sm:$0xff]  }
 0x34e   : > { %4741 = vmatpush1.bf16.msra.mxu0 %v14668_v41  ;;  %v14737_v41 = vld [vmem:[#allocation8 + $0xb88] ss:$16 sps:$4 sm:$0xff]  }
 0x34f   : > { %4827 = vmatpush1.bf16.msra.mxu1 %v14671_v45  ;;  %4742 = vmatprep.subr.bf16.mxu0 %v14676_v46  ;;  %v14740_v45 = vld [vmem:[#allocation8 + $0xba0] ss:$16 sps:$4 sm:$0xff]   ;;  %v14745_v46 = vld [vmem:[#allocation8 + $0xbac] ss:$16 sps:$4 sm:$0xff]  }
 0x350   : > { %4828 = vmatprep.subr.bf16.mxu1 %v14679_v49  ;;  %v14743_v49 = vld [vmem:[#allocation8 + $0xba8] ss:$16 sps:$4 sm:$0xff]  }
 0x352   : > { %4743 = vmatpush1.bf16.msra.mxu0 %v14674_v51  ;;  %v14748_v51 = vld [vmem:[#allocation8 + $0xbc4] ss:$16 sps:$4 sm:$0xff]  }
 0x353   : > { %4829 = vmatpush1.bf16.msra.mxu1 %v14677_v32  ;;  %4744 = vmatprep.subr.bf16.mxu0 %v14682_v53  ;;  %v14746_v32 = vld [vmem:[#allocation8 + $0xbc0] ss:$16 sps:$4 sm:$0xff]   ;;  %v14751_v53 = vld [vmem:[#allocation8 + $0xbcc] ss:$16 sps:$4 sm:$0xff]  }
 0x354   : > { %4830 = vmatprep.subr.bf16.mxu1 %v14685_v48  ;;  %v5045_v48 = vshll.u32 %v16705_v10, 16 }
 0x356   : > { %4745 = vmatpush1.bf16.msra.mxu0 %v14680_v55  ;;  %v5042_v55 = vshrl.u32 %v16705_v10, 16  ;;  %v14763_v10 = vld [vmem:[#allocation8 + $0xc0c] ss:$16 sps:$4 sm:$0xff]  }
 0x357   : > { %4831 = vmatpush1.bf16.msra.mxu1 %v14683_v57  ;;  %4746 = vmatprep.subr.bf16.mxu0 %v14688_v54  ;;  %v14749_v57 = vld [vmem:[#allocation8 + $0xbc8] ss:$16 sps:$4 sm:$0xff]   ;;  %v14754_v54 = vld [vmem:[#allocation8 + $0xbe4] ss:$16 sps:$4 sm:$0xff]  }
 0x358   : > { %4832 = vmatprep.subr.bf16.mxu1 %v14691_v56  ;;  %v14757_v56 = vld [vmem:[#allocation8 + $0xbec] ss:$16 sps:$4 sm:$0xff]  }
 0x35a   : > { %4747 = vmatpush1.bf16.msra.mxu0 %v14686_v59  ;;  %v14752_v59 = vld [vmem:[#allocation8 + $0xbe0] ss:$16 sps:$4 sm:$0xff]  }
 0x35b   : > { %4833 = vmatpush1.bf16.msra.mxu1 %v14689_v61  ;;  %4748 = vmatprep.subr.bf16.mxu0 %v14694_v62  ;;  %v5034_v61 = vshrl.u32 %v16669_v5, 16  ;;  %v5037_v62 = vshll.u32 %v16669_v5, 16  ;;  %v14767_v5 = vld [vmem:[#allocation8 + $0xc24] ss:$16 sps:$4 sm:$0xff]  }
 0x35c   : > { %4834 = vmatprep.subr.bf16.mxu1 %v14697_v60  ;;  %v5047_v60 = vrot.slane %v5045_v48, 2  ;;  %v14807_v48 = vld [vmem:[#allocation8 + $0xd00] ss:$16 sps:$4 sm:$0xff]  }
 0x35e   : > { %4749 = vmatpush1.bf16.msra.mxu0 %v14692_v63  ;;  %v5044_v63 = vrot.slane %v5042_v55, 1  ;;  %v14812_v55 = vld [vmem:[#allocation8 + $0xd0c] ss:$16 sps:$4 sm:$0xff]  }
 0x35f   : > { %4835 = vmatpush1.bf16.msra.mxu1 %v14695_v1  ;;  %4750 = vmatprep.subr.bf16.mxu0 %v14700_v2  ;;  %v14755_v1 = vld [vmem:[#allocation8 + $0xbe8] ss:$16 sps:$4 sm:$0xff]   ;;  %v14760_v2 = vld [vmem:[#allocation8 + $0xc04] ss:$16 sps:$4 sm:$0xff]  }
 0x360   : > { %4836 = vmatprep.subr.bf16.mxu1 %v14703_v4  ;;  %v5039_v4 = vrot.slane %v5037_v62, 2  ;;  %v14821_v62 = vld [vmem:[#allocation8 + $0xd44] ss:$16 sps:$4 sm:$0xff]  }
 0x362   : > { %4751 = vmatpush1.bf16.msra.mxu0 %v14698_v3  ;;  %v5036_v3 = vrot.slane %v5034_v61, 1  ;;  %v14816_v61 = vld [vmem:[#allocation8 + $0xd28] ss:$16 sps:$4 sm:$0xff]  }
 0x363   : > { %4837 = vmatpush1.bf16.msra.mxu1 %v14701_v27  ;;  %4752 = vmatprep.subr.bf16.mxu0 %v14706_v7  ;;  %v14758_v27 = vld [vmem:[#allocation8 + $0xc00] ss:$16 sps:$4 sm:$0xff]   ;;  %v5048_v7 = vor.u32 %v5047_v60, %v5044_v63  ;;  %v14824_v63 = vld [vmem:[#allocation8 + $0xd4c] ss:$16 sps:$4 sm:$0xff]  }
 0x364   : > { %4838 = vmatprep.subr.bf16.mxu1 %v14709_v15  ;;  %v5040_v15 = vor.u32 %v5039_v4, %v5036_v3  ;;  %v14819_v60 = vld [vmem:[#allocation8 + $0xd40] ss:$16 sps:$4 sm:$0xff]   ;;  %v14828_v4 = vld [vmem:[#allocation8 + $0xd68] ss:$16 sps:$4 sm:$0xff]  }
 0x365   : > { %v14825_v3 = vld [vmem:[#allocation8 + $0xd60] ss:$16 sps:$4 sm:$0xff]  }
 0x366   : > { %4753 = vmatpush1.bf16.msra.mxu0 %v14704_v9  ;;  %v14761_v9 = vld [vmem:[#allocation8 + $0xc08] ss:$16 sps:$4 sm:$0xff]  }
 0x367   : > { %4839 = vmatpush1.bf16.msra.mxu1 %v14707_v8  ;;  %4754 = vmatprep.subr.bf16.mxu0 %v14712_v16  ;;  %v14770_v8 = vld [vmem:[#allocation8 + $0xc2c] ss:$16 sps:$4 sm:$0xff]   ;;  %v5049_v16 = vsel %vm1273_vm2, %v5040_v15, %v5048_v7  ;;  %v14834_v15 = vld [vmem:[#allocation8 + $0xd88] ss:$16 sps:$4 sm:$0xff]  }
 0x368   : > { %4840 = vmatprep.subr.bf16.mxu1 %v14715_v19  ;;  %v14768_v19 = vld [vmem:[#allocation8 + $0xc28] ss:$16 sps:$4 sm:$0xff]   ;;  %v14836_v7 = vld [vmem:[#allocation8 + $0xd8c] ss:$16 sps:$4 sm:$0xff]  }
 0x36a   : > { %4755 = vmatpush1.bf16.msra.mxu0 %v14710_v17  ;;  %v14765_v17 = vld [vmem:[#allocation8 + $0xc20] ss:$16 sps:$4 sm:$0xff]  }
 0x36b   : > { %4841 = vmatpush1.bf16.msra.mxu1 %v14713_v20  ;;  %4756 = vmatprep.subr.bf16.mxu0 %v14718_v23  ;;  %v14773_v20 = vld [vmem:[#allocation8 + $0xc44] ss:$16 sps:$4 sm:$0xff]   ;;  %v14776_v23 = vld [vmem:[#allocation8 + $0xc4c] ss:$16 sps:$4 sm:$0xff]  }
 0x36c   : > { %4842 = vmatprep.subr.bf16.mxu1 %v14721_v26  ;;  %v14774_v26 = vld [vmem:[#allocation8 + $0xc48] ss:$16 sps:$4 sm:$0xff]  }
 0x36e   : > { %4757 = vmatpush1.bf16.msra.mxu0 %v14716_v25  ;;  %v14771_v25 = vld [vmem:[#allocation8 + $0xc40] ss:$16 sps:$4 sm:$0xff]  }
 0x36f   : > { %4843 = vmatpush1.bf16.msra.mxu1 %v14719_v38  ;;  %4758 = vmatprep.subr.bf16.mxu0 %v14724_v58  ;;  %v14779_v38 = vld [vmem:[#allocation8 + $0xc64] ss:$16 sps:$4 sm:$0xff]   ;;  %v14777_v58 = vld [vmem:[#allocation8 + $0xc60] ss:$16 sps:$4 sm:$0xff]  }
 0x370   : > { %4844 = vmatprep.subr.bf16.mxu1 %v14727_v29  ;;  %v14785_v29 = vld [vmem:[#allocation8 + $0xc84] ss:$16 sps:$4 sm:$0xff]  }
 0x372   : > { %4759 = vmatpush1.bf16.msra.mxu0 %v14722_v28  ;;  %v14780_v28 = vld [vmem:[#allocation8 + $0xc68] ss:$16 sps:$4 sm:$0xff]  }
 0x373   : > { %4845 = vmatpush1.bf16.msra.mxu1 %v14725_v30  ;;  %4760 = vmatprep.subr.bf16.mxu0 %v14730_v42  ;;  %v14788_v30 = vld [vmem:[#allocation8 + $0xc8c] ss:$16 sps:$4 sm:$0xff]   ;;  %v14783_v42 = vld [vmem:[#allocation8 + $0xc80] ss:$16 sps:$4 sm:$0xff]  }
 0x374   : > { %4846 = vmatprep.subr.bf16.mxu1 %v14733_v33  ;;  %v14791_v33 = vld [vmem:[#allocation8 + $0xca4] ss:$16 sps:$4 sm:$0xff]  }
 0x376   : > { %4761 = vmatpush1.bf16.msra.mxu0 %v14728_v31  ;;  %v14786_v31 = vld [vmem:[#allocation8 + $0xc88] ss:$16 sps:$4 sm:$0xff]  }
 0x377   : > { %4847 = vmatpush1.bf16.msra.mxu1 %v14731_v0  ;;  %4762 = vmatprep.subr.bf16.mxu0 %v14736_v37  ;;  %v14794_v0 = vld [vmem:[#allocation8 + $0xcac] ss:$16 sps:$4 sm:$0xff]   ;;  %v14789_v37 = vld [vmem:[#allocation8 + $0xca0] ss:$16 sps:$4 sm:$0xff]  }
 0x378   : > { %4848 = vmatprep.subr.bf16.mxu1 %v14739_v40  ;;  %v14797_v40 = vld [vmem:[#allocation8 + $0xcc4] ss:$16 sps:$4 sm:$0xff]  }
 0x37a   : > { %4763 = vmatpush1.bf16.msra.mxu0 %v14734_v39  ;;  %v14792_v39 = vld [vmem:[#allocation8 + $0xca8] ss:$16 sps:$4 sm:$0xff]  }
 0x37b   : > { %4849 = vmatpush1.bf16.msra.mxu1 %v14737_v41  ;;  %4764 = vmatprep.subr.bf16.mxu0 %v14742_v43  ;;  %v14800_v41 = vld [vmem:[#allocation8 + $0xccc] ss:$16 sps:$4 sm:$0xff]   ;;  %v14795_v43 = vld [vmem:[#allocation8 + $0xcc0] ss:$16 sps:$4 sm:$0xff]  }
 0x37c   : > { %4850 = vmatprep.subr.bf16.mxu1 %v14745_v46  ;;  %v14803_v46 = vld [vmem:[#allocation8 + $0xce4] ss:$16 sps:$4 sm:$0xff]  }
 0x37e   : > { %4765 = vmatpush1.bf16.msra.mxu0 %v14740_v45  ;;  %v14798_v45 = vld [vmem:[#allocation8 + $0xcc8] ss:$16 sps:$4 sm:$0xff]  }
 0x37f   : > { %4851 = vmatpush1.bf16.msra.mxu1 %v14743_v49  ;;  %4766 = vmatprep.subr.bf16.mxu0 %v14748_v51  ;;  %v14806_v49 = vld [vmem:[#allocation8 + $0xcec] ss:$16 sps:$4 sm:$0xff]   ;;  %v14801_v51 = vld [vmem:[#allocation8 + $0xce0] ss:$16 sps:$4 sm:$0xff]  }
 0x380   : > { %4852 = vmatprep.subr.bf16.mxu1 %v14751_v53  ;;  %v14809_v53 = vld [vmem:[#allocation8 + $0xd04] ss:$16 sps:$4 sm:$0xff]  }
 0x382   : > { %4767 = vmatpush1.bf16.msra.mxu0 %v14746_v32  ;;  %v14804_v32 = vld [vmem:[#allocation8 + $0xce8] ss:$16 sps:$4 sm:$0xff]  }
 0x383   : > { %4853 = vmatpush1.bf16.msra.mxu1 %v14749_v57  ;;  %4768 = vmatprep.subr.bf16.mxu0 %v14754_v54  ;;  %v14810_v57 = vld [vmem:[#allocation8 + $0xd08] ss:$16 sps:$4 sm:$0xff]   ;;  %v14815_v54 = vld [vmem:[#allocation8 + $0xd24] ss:$16 sps:$4 sm:$0xff]  }
 0x384   : > { %4854 = vmatprep.subr.bf16.mxu1 %v14757_v56  ;;  %v14813_v56 = vld [vmem:[#allocation8 + $0xd20] ss:$16 sps:$4 sm:$0xff]  }
 0x386   : > { %4769 = vmatpush1.bf16.msra.mxu0 %v14752_v59  ;;  %v14818_v59 = vld [vmem:[#allocation8 + $0xd2c] ss:$16 sps:$4 sm:$0xff]  }
 0x387   : > { %4855 = vmatpush1.bf16.msra.mxu1 %v14755_v1  ;;  %5728 = vmatprep.subr.bf16.mxu0 %v14760_v2  ;;  %v14822_v1 = vld [vmem:[#allocation8 + $0xd48] ss:$16 sps:$4 sm:$0xff]   ;;  %v14827_v2 = vld [vmem:[#allocation8 + $0xd64] ss:$16 sps:$4 sm:$0xff]  }
 0x388   : > { %5814 = vmatprep.subr.bf16.mxu1 %v14763_v10  ;;  %v14830_v10 = vld [vmem:[#allocation8 + $0xd6c] ss:$16 sps:$4 sm:$0xff]  }
 0x389   : > { %4771 = vmatmul.mubr.bf16.vlgmr.msra.gmra.mrb[4].mxu0 %v16703_v34 }
 0x38a   : > { %4857 = vmatmul.mubr.bf16.vlgmr.msra.gmra.mrb[4].mxu1 %v16703_v34  ;;  %5729 = vmatpush1.bf16.msra.mxu0 %v14758_v27  ;;  %v14782_v34 = vld [vmem:[#allocation8 + $0xc6c] ss:$16 sps:$4 sm:$0xff]   ;;  %v14833_v27 = vld [vmem:[#allocation8 + $0xd84] ss:$16 sps:$4 sm:$0xff]  }
 0x38b   : > { %5760 = vmatprep.mubr.bf16.mxu0 %v5049_v16  ;;  %5815 = vmatpush1.bf16.msra.mxu1 %v14761_v9  ;;  %v14831_v9 = vld [vmem:[#allocation8 + $0xd80] ss:$16 sps:$4 sm:$0xff]  }
 0x38c   : > { %5846 = vmatprep.mubr.bf16.mxu1 %v5049_v16  ;;  %5730 = vmatprep.subr.bf16.mxu0 %v14767_v5  ;;  %v14839_v5 = vld [vmem:[#allocation8 + $0xda4] ss:$16 sps:$4 sm:$0xff]   ;;  %v14837_v16 = vld [vmem:[#allocation8 + $0xda0] ss:$16 sps:$4 sm:$0xff]  }
 0x38d   : > { %5816 = vmatprep.subr.bf16.mxu1 %v14770_v8  ;;  %v14842_v8 = vld [vmem:[#allocation8 + $0xdac] ss:$16 sps:$4 sm:$0xff]  }
 0x38e   : > { %5731 = vmatpush1.bf16.msra.mxu0 %v14765_v17  ;;  %v14840_v17 = vld [vmem:[#allocation8 + $0xda8] ss:$16 sps:$4 sm:$0xff]  }
 0x38f   : > { %5817 = vmatpush1.bf16.msra.mxu1 %v14768_v19  ;;  %5732 = vmatprep.subr.bf16.mxu0 %v14773_v20  ;;  %v14845_v19 = vld [vmem:[#allocation8 + $0xdc4] ss:$16 sps:$4 sm:$0xff]   ;;  %v14848_v20 = vld [vmem:[#allocation8 + $0xdcc] ss:$16 sps:$4 sm:$0xff]  }
 0x390   : > { %5818 = vmatprep.subr.bf16.mxu1 %v14776_v23  ;;  %v5025_v23 = vshrl.u32 %v16708_v21, 16 }
 0x392   : > { %5733 = vmatpush1.bf16.msra.mxu0 %v14771_v25  ;;  %v5028_v25 = vshll.u32 %v16708_v21, 16  ;;  %v5068_v21 = vshrl.u32 %v16677_v18, 16 }
 0x393   : > { %5819 = vmatpush1.bf16.msra.mxu1 %v14774_v26  ;;  %5734 = vmatprep.subr.bf16.mxu0 %v14779_v38  ;;  %v14843_v26 = vld [vmem:[#allocation8 + $0xdc0] ss:$16 sps:$4 sm:$0xff]   ;;  %v5017_v38 = vshrl.u32 %v16672_v6, 16 }
 0x394   : > { %5820 = vmatprep.subr.bf16.mxu1 %v14782_v34  ;;  %v5020_v34 = vshll.u32 %v16672_v6, 16 }
 0x396   : > { %5735 = vmatpush1.bf16.msra.mxu0 %v14777_v58  ;;  %v5076_v58 = vshrl.u32 %v16711_v24, 16  ;;  %v5022_v6 = vrot.slane %v5020_v34, 2  ;;  %v14904_v34 = vld [vmem:[#allocation8 + $0xeec] ss:$16 sps:$4 sm:$0xff]  }
 0x397   : > { %5821 = vmatpush1.bf16.msra.mxu1 %v14780_v28  ;;  %5736 = vmatprep.subr.bf16.mxu0 %v14785_v29  ;;  %v5079_v28 = vshll.u32 %v16711_v24, 16  ;;  %v14846_v29 = vld [vmem:[#allocation8 + $0xdc8] ss:$16 sps:$4 sm:$0xff]  }
 0x398   : > { %5822 = vmatprep.subr.bf16.mxu1 %v14788_v30  ;;  %v14851_v30 = vld [vmem:[#allocation8 + $0xde4] ss:$16 sps:$4 sm:$0xff]   ;;  %v14852_v24 = vld [vmem:[#allocation8 + $0xde8] ss:$16 sps:$4 sm:$0xff]  }
 0x39a   : > { %5737 = vmatpush1.bf16.msra.mxu0 %v14783_v42  ;;  %v14854_v42 = vld [vmem:[#allocation8 + $0xdec] ss:$16 sps:$4 sm:$0xff]  }
 0x39b   : > { %5823 = vmatpush1.bf16.msra.mxu1 %v14786_v31  ;;  %5738 = vmatprep.subr.bf16.mxu0 %v14791_v33  ;;  %v5027_v31 = vrot.slane %v5025_v23, 1  ;;  %v5030_v33 = vrot.slane %v5028_v25, 2  ;;  %v14898_v23 = vld [vmem:[#allocation8 + $0xecc] ss:$16 sps:$4 sm:$0xff]   ;;  %v14893_v25 = vld [vmem:[#allocation8 + $0xec0] ss:$16 sps:$4 sm:$0xff]  }
 0x39c   : > { %5824 = vmatprep.subr.bf16.mxu1 %v14794_v0  ;;  %v5071_v0 = vshll.u32 %v16677_v18, 16  ;;  %v14859_v18 = vld [vmem:[#allocation8 + $0xe08] ss:$16 sps:$4 sm:$0xff]  }
 0x39e   : > { %5739 = vmatpush1.bf16.msra.mxu0 %v14789_v37  ;;  %v14849_v37 = vld [vmem:[#allocation8 + $0xde0] ss:$16 sps:$4 sm:$0xff]  }
 0x39f   : > { %5825 = vmatpush1.bf16.msra.mxu1 %v14792_v39  ;;  %5740 = vmatprep.subr.bf16.mxu0 %v14797_v40  ;;  %v5019_v39 = vrot.slane %v5017_v38, 1  ;;  %v5078_v40 = vrot.slane %v5076_v58, 1  ;;  %v14901_v38 = vld [vmem:[#allocation8 + $0xee4] ss:$16 sps:$4 sm:$0xff]   ;;  %v14899_v58 = vld [vmem:[#allocation8 + $0xee0] ss:$16 sps:$4 sm:$0xff]  }
 0x3a0   : > { %5826 = vmatprep.subr.bf16.mxu1 %v14800_v41  ;;  %v5081_v41 = vrot.slane %v5079_v28, 2  ;;  %v14902_v28 = vld [vmem:[#allocation8 + $0xee8] ss:$16 sps:$4 sm:$0xff]  }
 0x3a2   : > { %5741 = vmatpush1.bf16.msra.mxu0 %v14795_v43  ;;  %v14858_v43 = vld [vmem:[#allocation8 + $0xe04] ss:$16 sps:$4 sm:$0xff]  }
 0x3a3   : > { %5827 = vmatpush1.bf16.msra.mxu1 %v14798_v45  ;;  %5742 = vmatprep.subr.bf16.mxu0 %v14803_v46  ;;  %v5031_v45 = vor.u32 %v5030_v33, %v5027_v31  ;;  %v14861_v46 = vld [vmem:[#allocation8 + $0xe0c] ss:$16 sps:$4 sm:$0xff]   ;;  %v14908_v31 = vld [vmem:[#allocation8 + $0xf08] ss:$16 sps:$4 sm:$0xff]   ;;  %v14913_v33 = vld [vmem:[#allocation8 + $0xf24] ss:$16 sps:$4 sm:$0xff]  }
 0x3a4   : > { %5828 = vmatprep.subr.bf16.mxu1 %v14806_v49  ;;  %v5070_v49 = vrot.slane %v5068_v21, 1  ;;  %v14916_v21 = vld [vmem:[#allocation8 + $0xf2c] ss:$16 sps:$4 sm:$0xff]  }
 0x3a6   : > { %5743 = vmatpush1.bf16.msra.mxu0 %v14801_v51  ;;  %v5073_v51 = vrot.slane %v5071_v0, 2  ;;  %v14911_v0 = vld [vmem:[#allocation8 + $0xf20] ss:$16 sps:$4 sm:$0xff]  }
 0x3a7   : > { %5829 = vmatpush1.bf16.msra.mxu1 %v14804_v32  ;;  %5744 = vmatprep.subr.bf16.mxu0 %v14809_v53  ;;  %v5023_v32 = vor.u32 %v5022_v6, %v5019_v39  ;;  %v14856_v53 = vld [vmem:[#allocation8 + $0xe00] ss:$16 sps:$4 sm:$0xff]   ;;  %v14919_v39 = vld [vmem:[#allocation8 + $0xf44] ss:$16 sps:$4 sm:$0xff]   ;;  %v14922_v6 = vld [vmem:[#allocation8 + $0xf4c] ss:$16 sps:$4 sm:$0xff]  }
 0x3a8   : > { %5830 = vmatprep.subr.bf16.mxu1 %v14812_v55  ;;  %v5082_v55 = vor.u32 %v5081_v41, %v5078_v40  ;;  %v14917_v40 = vld [vmem:[#allocation8 + $0xf40] ss:$16 sps:$4 sm:$0xff]   ;;  %v14920_v41 = vld [vmem:[#allocation8 + $0xf48] ss:$16 sps:$4 sm:$0xff]  }
 0x3aa   : > { %5745 = vmatpush1.bf16.msra.mxu0 %v14807_v48  ;;  %v5032_v48 = vsel %vm1273_vm2, %v5023_v32, %v5031_v45  ;;  %v14923_v45 = vld [vmem:[#allocation8 + $0xf60] ss:$16 sps:$4 sm:$0xff]  }
 0x3ab   : > { %5831 = vmatpush1.bf16.msra.mxu1 %v14810_v57  ;;  %5746 = vmatprep.subr.bf16.mxu0 %v14815_v54  ;;  %v5074_v57 = vor.u32 %v5073_v51, %v5070_v49  ;;  %v14865_v54 = vld [vmem:[#allocation8 + $0xe24] ss:$16 sps:$4 sm:$0xff]   ;;  %v14934_v51 = vld [vmem:[#allocation8 + $0xf8c] ss:$16 sps:$4 sm:$0xff]   ;;  %v14929_v32 = vld [vmem:[#allocation8 + $0xf80] ss:$16 sps:$4 sm:$0xff]  }
 0x3ac   : > { %5832 = vmatprep.subr.bf16.mxu1 %v14818_v59  ;;  %v14868_v59 = vld [vmem:[#allocation8 + $0xe2c] ss:$16 sps:$4 sm:$0xff]   ;;  %v14931_v49 = vld [vmem:[#allocation8 + $0xf84] ss:$16 sps:$4 sm:$0xff]  }
 0x3ae   : > { %5747 = vmatpush1.bf16.msra.mxu0 %v14813_v56  ;;  %v5083_v56 = vsel %vm1273_vm2, %v5074_v57, %v5082_v55  ;;  %v14937_v55 = vld [vmem:[#allocation8 + $0xfa4] ss:$16 sps:$4 sm:$0xff]   ;;  %v14938_v57 = vld [vmem:[#allocation8 + $0xfa8] ss:$16 sps:$4 sm:$0xff]  }
 0x3af   : > { %5833 = vmatpush1.bf16.msra.mxu1 %v14816_v61  ;;  %5748 = vmatprep.subr.bf16.mxu0 %v14821_v62  ;;  %v14863_v61 = vld [vmem:[#allocation8 + $0xe20] ss:$16 sps:$4 sm:$0xff]   ;;  %v14866_v62 = vld [vmem:[#allocation8 + $0xe28] ss:$16 sps:$4 sm:$0xff]  }
 0x3b0   : > { %5834 = vmatprep.subr.bf16.mxu1 %v14824_v63  ;;  %v14871_v63 = vld [vmem:[#allocation8 + $0xe44] ss:$16 sps:$4 sm:$0xff]  }
 0x3b2   : > { %5749 = vmatpush1.bf16.msra.mxu0 %v14819_v60  ;;  %v14874_v60 = vld [vmem:[#allocation8 + $0xe4c] ss:$16 sps:$4 sm:$0xff]  }
 0x3b3   : > { %5835 = vmatpush1.bf16.msra.mxu1 %v14822_v1  ;;  %5750 = vmatprep.subr.bf16.mxu0 %v14827_v2  ;;  %v14869_v1 = vld [vmem:[#allocation8 + $0xe40] ss:$16 sps:$4 sm:$0xff]   ;;  %v14872_v2 = vld [vmem:[#allocation8 + $0xe48] ss:$16 sps:$4 sm:$0xff]  }
 0x3b4   : > { %5836 = vmatprep.subr.bf16.mxu1 %v14830_v10  ;;  %v14877_v10 = vld [vmem:[#allocation8 + $0xe64] ss:$16 sps:$4 sm:$0xff]  }
 0x3b6   : > { %5751 = vmatpush1.bf16.msra.mxu0 %v14825_v3  ;;  %v14880_v3 = vld [vmem:[#allocation8 + $0xe6c] ss:$16 sps:$4 sm:$0xff]  }
 0x3b7   : > { %5837 = vmatpush1.bf16.msra.mxu1 %v14828_v4  ;;  %5752 = vmatprep.subr.bf16.mxu0 %v14833_v27  ;;  %v14875_v4 = vld [vmem:[#allocation8 + $0xe60] ss:$16 sps:$4 sm:$0xff]   ;;  %v14878_v27 = vld [vmem:[#allocation8 + $0xe68] ss:$16 sps:$4 sm:$0xff]  }
 0x3b8   : > { %5838 = vmatprep.subr.bf16.mxu1 %v14836_v7  ;;  %v14883_v7 = vld [vmem:[#allocation8 + $0xe84] ss:$16 sps:$4 sm:$0xff]  }
 0x3ba   : > { %5753 = vmatpush1.bf16.msra.mxu0 %v14831_v9  ;;  %v14886_v9 = vld [vmem:[#allocation8 + $0xe8c] ss:$16 sps:$4 sm:$0xff]  }
 0x3bb   : > { %5839 = vmatpush1.bf16.msra.mxu1 %v14834_v15  ;;  %5754 = vmatprep.subr.bf16.mxu0 %v14839_v5  ;;  %v14881_v15 = vld [vmem:[#allocation8 + $0xe80] ss:$16 sps:$4 sm:$0xff]   ;;  %v14884_v5 = vld [vmem:[#allocation8 + $0xe88] ss:$16 sps:$4 sm:$0xff]  }
 0x3bc   : > { %5840 = vmatprep.subr.bf16.mxu1 %v14842_v8  ;;  %v14889_v8 = vld [vmem:[#allocation8 + $0xea4] ss:$16 sps:$4 sm:$0xff]  }
 0x3be   : > { %5755 = vmatpush1.bf16.msra.mxu0 %v14837_v16  ;;  %v14892_v16 = vld [vmem:[#allocation8 + $0xeac] ss:$16 sps:$4 sm:$0xff]  }
 0x3bf   : > { %5841 = vmatpush1.bf16.msra.mxu1 %v14840_v17  ;;  %5756 = vmatprep.subr.bf16.mxu0 %v14845_v19  ;;  %v14887_v17 = vld [vmem:[#allocation8 + $0xea0] ss:$16 sps:$4 sm:$0xff]   ;;  %v14890_v19 = vld [vmem:[#allocation8 + $0xea8] ss:$16 sps:$4 sm:$0xff]  }
 0x3c0   : > { %5842 = vmatprep.subr.bf16.mxu1 %v14848_v20  ;;  %v14895_v20 = vld [vmem:[#allocation8 + $0xec4] ss:$16 sps:$4 sm:$0xff]  }
 0x3c2   : > { %5757 = vmatpush1.bf16.msra.mxu0 %v14843_v26  ;;  %v14896_v26 = vld [vmem:[#allocation8 + $0xec8] ss:$16 sps:$4 sm:$0xff]  }
 0x3c3   : > { %5843 = vmatpush1.bf16.msra.mxu1 %v14846_v29  ;;  %5758 = vmatprep.subr.bf16.mxu0 %v14851_v30  ;;  %v14907_v29 = vld [vmem:[#allocation8 + $0xf04] ss:$16 sps:$4 sm:$0xff]   ;;  %v14910_v30 = vld [vmem:[#allocation8 + $0xf0c] ss:$16 sps:$4 sm:$0xff]  }
 0x3c4   : > { %5844 = vmatprep.subr.bf16.mxu1 %v14854_v42  ;;  %v14905_v42 = vld [vmem:[#allocation8 + $0xf00] ss:$16 sps:$4 sm:$0xff]  }
 0x3c6   : > { %5759 = vmatpush1.bf16.msra.mxu0 %v14849_v37  ;;  %v14914_v37 = vld [vmem:[#allocation8 + $0xf28] ss:$16 sps:$4 sm:$0xff]  }
 0x3c7   : > { %5845 = vmatpush1.bf16.msra.mxu1 %v14852_v24  ;;  %5771 = vmatprep.subr.bf16.mxu0 %v14858_v43  ;;  %v14925_v24 = vld [vmem:[#allocation8 + $0xf64] ss:$16 sps:$4 sm:$0xff]   ;;  %v14928_v43 = vld [vmem:[#allocation8 + $0xf6c] ss:$16 sps:$4 sm:$0xff]  }
 0x3c8   : > { %5857 = vmatprep.subr.bf16.mxu1 %v14861_v46  ;;  %v14926_v46 = vld [vmem:[#allocation8 + $0xf68] ss:$16 sps:$4 sm:$0xff]  }
 0x3c9   : > { %5761 = vmatmul.mubr.bf16.vlgmr.msra.gmra.mrb[4].mxu0 %v5032_v48 }
 0x3ca   : > { %5847 = vmatmul.mubr.bf16.vlgmr.msra.gmra.mrb[4].mxu1 %v5032_v48  ;;  %5772 = vmatpush1.bf16.msra.mxu0 %v14856_v53  ;;  %v14932_v53 = vld [vmem:[#allocation8 + $0xf88] ss:$16 sps:$4 sm:$0xff]   ;;  %v14935_v48 = vld [vmem:[#allocation8 + $0xfa0] ss:$16 sps:$4 sm:$0xff]  }
 0x3cb   : > { %5803 = vmatprep.mubr.bf16.mxu0 %v5083_v56  ;;  %5858 = vmatpush1.bf16.msra.mxu1 %v14859_v18  ;;  %v14940_v18 = vld [vmem:[#allocation8 + $0xfac] ss:$16 sps:$4 sm:$0xff]  }
 0x3cc   : > { %5889 = vmatprep.mubr.bf16.mxu1 %v5083_v56  ;;  %5773 = vmatprep.subr.bf16.mxu0 %v14865_v54  ;;  %v14943_v54 = vld [vmem:[#allocation8 + $0xfc4] ss:$16 sps:$4 sm:$0xff]   ;;  %v5059_v56 = vshrl.u32 %v16715_v35, 16 }
 0x3cd   : > { %5859 = vmatprep.subr.bf16.mxu1 %v14868_v59  ;;  %v14946_v59 = vld [vmem:[#allocation8 + $0xfcc] ss:$16 sps:$4 sm:$0xff]  }
 0x3ce   : > { %5774 = vmatpush1.bf16.msra.mxu0 %v14863_v61  ;;  %v5062_v61 = vshll.u32 %v16715_v35, 16  ;;  %v14950_v35 = vld [vmem:[#allocation8 + $0xfe8] ss:$16 sps:$4 sm:$0xff]  }
 0x3cf   : > { %5860 = vmatpush1.bf16.msra.mxu1 %v14866_v62  ;;  %5775 = vmatprep.subr.bf16.mxu0 %v14871_v63  ;;  %v14941_v62 = vld [vmem:[#allocation8 + $0xfc0] ss:$16 sps:$4 sm:$0xff]   ;;  %v5051_v63 = vshrl.u32 %v16680_v22, 16 }
 0x3d0   : > { %5861 = vmatprep.subr.bf16.mxu1 %v14874_v60  ;;  %v5054_v60 = vshll.u32 %v16680_v22, 16 }
 0x3d2   : > { %5776 = vmatpush1.bf16.msra.mxu0 %v14869_v1  ;;  %v14944_v1 = vld [vmem:[#allocation8 + $0xfc8] ss:$16 sps:$4 sm:$0xff]  }
 0x3d3   : > { %5862 = vmatpush1.bf16.msra.mxu1 %v14872_v2  ;;  %5777 = vmatprep.subr.bf16.mxu0 %v14877_v10  ;;  %v14949_v2 = vld [vmem:[#allocation8 + $0xfe4] ss:$16 sps:$4 sm:$0xff]   ;;  %v14952_v10 = vld [vmem:[#allocation8 + $0xfec] ss:$16 sps:$4 sm:$0xff]  }
 0x3d4   : > { %5863 = vmatprep.subr.bf16.mxu1 %v14880_v3  ;;  %v5061_v3 = vrot.slane %v5059_v56, 1  ;;  %v15011_v56 = vld [vmem:[#allocation8 + $0x1128] ss:$16 sps:$4 sm:$0xff]  }
 0x3d6   : > { %5778 = vmatpush1.bf16.msra.mxu0 %v14875_v4  ;;  %v5064_v4 = vrot.slane %v5062_v61, 2  ;;  %v15016_v61 = vld [vmem:[#allocation8 + $0x1144] ss:$16 sps:$4 sm:$0xff]  }
 0x3d7   : > { %5864 = vmatpush1.bf16.msra.mxu1 %v14878_v27  ;;  %5779 = vmatprep.subr.bf16.mxu0 %v14883_v7  ;;  %v14947_v27 = vld [vmem:[#allocation8 + $0xfe0] ss:$16 sps:$4 sm:$0xff]   ;;  %v5053_v7 = vrot.slane %v5051_v63, 1 }
 0x3d8   : > { %5865 = vmatprep.subr.bf16.mxu1 %v14886_v9  ;;  %v5056_v9 = vrot.slane %v5054_v60, 2  ;;  %v15014_v63 = vld [vmem:[#allocation8 + $0x1140] ss:$16 sps:$4 sm:$0xff]   ;;  %v15017_v60 = vld [vmem:[#allocation8 + $0x1148] ss:$16 sps:$4 sm:$0xff]  }
 0x3da   : > { %5780 = vmatpush1.bf16.msra.mxu0 %v14881_v15  ;;  %v14956_v15 = vld [vmem:[#allocation8 + $0x1004] ss:$16 sps:$4 sm:$0xff]   ;;  %v5057_v22 = vor.u32 %v5056_v9, %v5053_v7  ;;  %v15026_v7 = vld [vmem:[#allocation8 + $0x1180] ss:$16 sps:$4 sm:$0xff]   ;;  %v15029_v9 = vld [vmem:[#allocation8 + $0x1188] ss:$16 sps:$4 sm:$0xff]  }
 0x3db   : > { %5866 = vmatpush1.bf16.msra.mxu1 %v14884_v5  ;;  %5781 = vmatprep.subr.bf16.mxu0 %v14889_v8  ;;  %v5065_v5 = vor.u32 %v5064_v4, %v5061_v3  ;;  %v14959_v8 = vld [vmem:[#allocation8 + $0x100c] ss:$16 sps:$4 sm:$0xff]   ;;  %v15023_v3 = vld [vmem:[#allocation8 + $0x1168] ss:$16 sps:$4 sm:$0xff]   ;;  %v15028_v4 = vld [vmem:[#allocation8 + $0x1184] ss:$16 sps:$4 sm:$0xff]  }
 0x3dc   : > { %5867 = vmatprep.subr.bf16.mxu1 %v14892_v16  ;;  %v14954_v16 = vld [vmem:[#allocation8 + $0x1000] ss:$16 sps:$4 sm:$0xff]  }
 0x3de   : > { %5782 = vmatpush1.bf16.msra.mxu0 %v14887_v17  ;;  %v14957_v17 = vld [vmem:[#allocation8 + $0x1008] ss:$16 sps:$4 sm:$0xff]  }
 0x3df   : > { %5868 = vmatpush1.bf16.msra.mxu1 %v14890_v19  ;;  %5783 = vmatprep.subr.bf16.mxu0 %v14895_v20  ;;  %v5066_v19 = vsel %vm1273_vm2, %v5057_v22, %v5065_v5  ;;  %v14962_v20 = vld [vmem:[#allocation8 + $0x1024] ss:$16 sps:$4 sm:$0xff]   ;;  %v15032_v5 = vld [vmem:[#allocation8 + $0x11a0] ss:$16 sps:$4 sm:$0xff]  }
 0x3e0   : > { %5869 = vmatprep.subr.bf16.mxu1 %v14898_v23  ;;  %v14965_v23 = vld [vmem:[#allocation8 + $0x102c] ss:$16 sps:$4 sm:$0xff]   ;;  %v15040_v22 = vld [vmem:[#allocation8 + $0x11c4] ss:$16 sps:$4 sm:$0xff]  }
 0x3e2   : > { %5784 = vmatpush1.bf16.msra.mxu0 %v14893_v25  ;;  %v14960_v25 = vld [vmem:[#allocation8 + $0x1020] ss:$16 sps:$4 sm:$0xff]  }
 0x3e3   : > { %5870 = vmatpush1.bf16.msra.mxu1 %v14896_v26  ;;  %5785 = vmatprep.subr.bf16.mxu0 %v14901_v38  ;;  %v14963_v26 = vld [vmem:[#allocation8 + $0x1028] ss:$16 sps:$4 sm:$0xff]   ;;  %v14968_v38 = vld [vmem:[#allocation8 + $0x1044] ss:$16 sps:$4 sm:$0xff]  }
 0x3e4   : > { %5871 = vmatprep.subr.bf16.mxu1 %v14904_v34  ;;  %v14971_v34 = vld [vmem:[#allocation8 + $0x104c] ss:$16 sps:$4 sm:$0xff]  }
 0x3e6   : > { %5786 = vmatpush1.bf16.msra.mxu0 %v14899_v58  ;;  %v14966_v58 = vld [vmem:[#allocation8 + $0x1040] ss:$16 sps:$4 sm:$0xff]  }
 0x3e7   : > { %5872 = vmatpush1.bf16.msra.mxu1 %v14902_v28  ;;  %5787 = vmatprep.subr.bf16.mxu0 %v14907_v29  ;;  %v14969_v28 = vld [vmem:[#allocation8 + $0x1048] ss:$16 sps:$4 sm:$0xff]   ;;  %v14974_v29 = vld [vmem:[#allocation8 + $0x1064] ss:$16 sps:$4 sm:$0xff]  }
 0x3e8   : > { %5873 = vmatprep.subr.bf16.mxu1 %v14910_v30  ;;  %v14977_v30 = vld [vmem:[#allocation8 + $0x106c] ss:$16 sps:$4 sm:$0xff]  }
 0x3ea   : > { %5788 = vmatpush1.bf16.msra.mxu0 %v14905_v42  ;;  %v14972_v42 = vld [vmem:[#allocation8 + $0x1060] ss:$16 sps:$4 sm:$0xff]  }
 0x3eb   : > { %5874 = vmatpush1.bf16.msra.mxu1 %v14908_v31  ;;  %5789 = vmatprep.subr.bf16.mxu0 %v14913_v33  ;;  %v14975_v31 = vld [vmem:[#allocation8 + $0x1068] ss:$16 sps:$4 sm:$0xff]   ;;  %v14980_v33 = vld [vmem:[#allocation8 + $0x1084] ss:$16 sps:$4 sm:$0xff]  }
 0x3ec   : > { %5875 = vmatprep.subr.bf16.mxu1 %v14916_v21  ;;  %v14983_v21 = vld [vmem:[#allocation8 + $0x108c] ss:$16 sps:$4 sm:$0xff]  }
 0x3ee   : > { %5790 = vmatpush1.bf16.msra.mxu0 %v14911_v0  ;;  %v14981_v0 = vld [vmem:[#allocation8 + $0x1088] ss:$16 sps:$4 sm:$0xff]  }
 0x3ef   : > { %5876 = vmatpush1.bf16.msra.mxu1 %v14914_v37  ;;  %5791 = vmatprep.subr.bf16.mxu0 %v14919_v39  ;;  %v14986_v37 = vld [vmem:[#allocation8 + $0x10a4] ss:$16 sps:$4 sm:$0xff]   ;;  %v14989_v39 = vld [vmem:[#allocation8 + $0x10ac] ss:$16 sps:$4 sm:$0xff]  }
 0x3f0   : > { %5877 = vmatprep.subr.bf16.mxu1 %v14922_v6  ;;  %v14984_v6 = vld [vmem:[#allocation8 + $0x10a0] ss:$16 sps:$4 sm:$0xff]  }
 0x3f2   : > { %5792 = vmatpush1.bf16.msra.mxu0 %v14917_v40  ;;  %v14987_v40 = vld [vmem:[#allocation8 + $0x10a8] ss:$16 sps:$4 sm:$0xff]  }
 0x3f3   : > { %5878 = vmatpush1.bf16.msra.mxu1 %v14920_v41  ;;  %5793 = vmatprep.subr.bf16.mxu0 %v14925_v24  ;;  %v14992_v41 = vld [vmem:[#allocation8 + $0x10c4] ss:$16 sps:$4 sm:$0xff]   ;;  %v14995_v24 = vld [vmem:[#allocation8 + $0x10cc] ss:$16 sps:$4 sm:$0xff]  }
 0x3f4   : > { %5879 = vmatprep.subr.bf16.mxu1 %v14928_v43  ;;  %v14990_v43 = vld [vmem:[#allocation8 + $0x10c0] ss:$16 sps:$4 sm:$0xff]  }
 0x3f6   : > { %5794 = vmatpush1.bf16.msra.mxu0 %v14923_v45  ;;  %v14993_v45 = vld [vmem:[#allocation8 + $0x10c8] ss:$16 sps:$4 sm:$0xff]  }
 0x3f7   : > { %5880 = vmatpush1.bf16.msra.mxu1 %v14926_v46  ;;  %5795 = vmatprep.subr.bf16.mxu0 %v14931_v49  ;;  %v14998_v46 = vld [vmem:[#allocation8 + $0x10e4] ss:$16 sps:$4 sm:$0xff]   ;;  %v15001_v49 = vld [vmem:[#allocation8 + $0x10ec] ss:$16 sps:$4 sm:$0xff]  }
 0x3f8   : > { %5881 = vmatprep.subr.bf16.mxu1 %v14934_v51  ;;  %v14996_v51 = vld [vmem:[#allocation8 + $0x10e0] ss:$16 sps:$4 sm:$0xff]  }
 0x3fa   : > { %5796 = vmatpush1.bf16.msra.mxu0 %v14929_v32  ;;  %v14999_v32 = vld [vmem:[#allocation8 + $0x10e8] ss:$16 sps:$4 sm:$0xff]  }
 0x3fb   : > { %5882 = vmatpush1.bf16.msra.mxu1 %v14932_v53  ;;  %5797 = vmatprep.subr.bf16.mxu0 %v14937_v55  ;;  %v15004_v53 = vld [vmem:[#allocation8 + $0x1104] ss:$16 sps:$4 sm:$0xff]   ;;  %v15007_v55 = vld [vmem:[#allocation8 + $0x110c] ss:$16 sps:$4 sm:$0xff]  }
 0x3fc   : > { %5883 = vmatprep.subr.bf16.mxu1 %v14940_v18  ;;  %v15002_v18 = vld [vmem:[#allocation8 + $0x1100] ss:$16 sps:$4 sm:$0xff]  }
 0x3fe   : > { %5798 = vmatpush1.bf16.msra.mxu0 %v14935_v48  ;;  %v15005_v48 = vld [vmem:[#allocation8 + $0x1108] ss:$16 sps:$4 sm:$0xff]  }
 0x3ff   : > { %5884 = vmatpush1.bf16.msra.mxu1 %v14938_v57  ;;  %5799 = vmatprep.subr.bf16.mxu0 %v14943_v54  ;;  %v15010_v57 = vld [vmem:[#allocation8 + $0x1124] ss:$16 sps:$4 sm:$0xff]   ;;  %v15013_v54 = vld [vmem:[#allocation8 + $0x112c] ss:$16 sps:$4 sm:$0xff]  }
 0x400   : > { %5885 = vmatprep.subr.bf16.mxu1 %v14946_v59  ;;  %v15008_v59 = vld [vmem:[#allocation8 + $0x1120] ss:$16 sps:$4 sm:$0xff]  }
 0x402   : > { %5800 = vmatpush1.bf16.msra.mxu0 %v14941_v62  ;;  %v15019_v62 = vld [vmem:[#allocation8 + $0x114c] ss:$16 sps:$4 sm:$0xff]  }
 0x403   : > { %5886 = vmatpush1.bf16.msra.mxu1 %v14944_v1  ;;  %5801 = vmatprep.subr.bf16.mxu0 %v14949_v2  ;;  %v15022_v1 = vld [vmem:[#allocation8 + $0x1164] ss:$16 sps:$4 sm:$0xff]   ;;  %v15025_v2 = vld [vmem:[#allocation8 + $0x116c] ss:$16 sps:$4 sm:$0xff]  }
 0x404   : > { %5887 = vmatprep.subr.bf16.mxu1 %v14952_v10  ;;  %v15020_v10 = vld [vmem:[#allocation8 + $0x1160] ss:$16 sps:$4 sm:$0xff]  }
 0x406   : > { %5802 = vmatpush1.bf16.msra.mxu0 %v14947_v27  ;;  %v15031_v27 = vld [vmem:[#allocation8 + $0x118c] ss:$16 sps:$4 sm:$0xff]  }
 0x407   : > { %5888 = vmatpush1.bf16.msra.mxu1 %v14950_v35  ;;  %6705 = vmatprep.subr.bf16.mxu0 %v14956_v15  ;;  %v15034_v35 = vld [vmem:[#allocation8 + $0x11a4] ss:$16 sps:$4 sm:$0xff]   ;;  %v15037_v15 = vld [vmem:[#allocation8 + $0x11ac] ss:$16 sps:$4 sm:$0xff]  }
 0x408   : > { %6791 = vmatprep.subr.bf16.mxu1 %v14959_v8  ;;  %v15035_v8 = vld [vmem:[#allocation8 + $0x11a8] ss:$16 sps:$4 sm:$0xff]  }
 0x409   : > { %5804 = vmatmul.mubr.bf16.vlgmr.msra.gmra.mrb[4].mxu0 %v5066_v19 }
 0x40a   : > { %5890 = vmatmul.mubr.bf16.vlgmr.msra.gmra.mrb[4].mxu1 %v5066_v19  ;;  %6706 = vmatpush1.bf16.msra.mxu0 %v14954_v16  ;;  %v15043_v16 = vld [vmem:[#allocation8 + $0x11cc] ss:$16 sps:$4 sm:$0xff]   ;;  %v15041_v19 = vld [vmem:[#allocation8 + $0x11c8] ss:$16 sps:$4 sm:$0xff]  }
 0x40b   : > { %6737 = vmatprep.mubr.bf16.mxu0 %v16718_v36  ;;  %6792 = vmatpush1.bf16.msra.mxu1 %v14957_v17  ;;  %v15038_v17 = vld [vmem:[#allocation8 + $0x11c0] ss:$16 sps:$4 sm:$0xff]  }
 0x40c   : > { %6823 = vmatprep.mubr.bf16.mxu1 %v16718_v36  ;;  %6707 = vmatprep.subr.bf16.mxu0 %v14962_v20  ;;  %v14978_v36 = vld [vmem:[#allocation8 + $0x1080] ss:$16 sps:$4 sm:$0xff]   ;;  %v15046_v20 = vld [vmem:[#allocation8 + $0x11e4] ss:$16 sps:$4 sm:$0xff]  }
 0x40d   : > { %6793 = vmatprep.subr.bf16.mxu1 %v14965_v23  ;;  %v15049_v23 = vld [vmem:[#allocation8 + $0x11ec] ss:$16 sps:$4 sm:$0xff]  }
 0x40e   : > { %6708 = vmatpush1.bf16.msra.mxu0 %v14960_v25  ;;  %v15044_v25 = vld [vmem:[#allocation8 + $0x11e0] ss:$16 sps:$4 sm:$0xff]  }
 0x40f   : > { %6794 = vmatpush1.bf16.msra.mxu1 %v14963_v26  ;;  %6709 = vmatprep.subr.bf16.mxu0 %v14968_v38  ;;  %v15047_v26 = vld [vmem:[#allocation8 + $0x11e8] ss:$16 sps:$4 sm:$0xff]   ;;  %v15052_v38 = vld [vmem:[#allocation8 + $0x1204] ss:$16 sps:$4 sm:$0xff]  }
 0x410   : > { %6795 = vmatprep.subr.bf16.mxu1 %v14971_v34  ;;  %v15055_v34 = vld [vmem:[#allocation8 + $0x120c] ss:$16 sps:$4 sm:$0xff]  }
 0x412   : > { %6710 = vmatpush1.bf16.msra.mxu0 %v14966_v58  ;;  %v15050_v58 = vld [vmem:[#allocation8 + $0x1200] ss:$16 sps:$4 sm:$0xff]  }
 0x413   : > { %6796 = vmatpush1.bf16.msra.mxu1 %v14969_v28  ;;  %6711 = vmatprep.subr.bf16.mxu0 %v14974_v29  ;;  %v15053_v28 = vld [vmem:[#allocation8 + $0x1208] ss:$16 sps:$4 sm:$0xff]   ;;  %v15058_v29 = vld [vmem:[#allocation8 + $0x1224] ss:$16 sps:$4 sm:$0xff]  }
 0x414   : > { %6797 = vmatprep.subr.bf16.mxu1 %v14977_v30  ;;  %v15061_v30 = vld [vmem:[#allocation8 + $0x122c] ss:$16 sps:$4 sm:$0xff]  }
 0x416   : > { %6712 = vmatpush1.bf16.msra.mxu0 %v14972_v42  ;;  %v15056_v42 = vld [vmem:[#allocation8 + $0x1220] ss:$16 sps:$4 sm:$0xff]  }
 0x417   : > { %6798 = vmatpush1.bf16.msra.mxu1 %v14975_v31  ;;  %6713 = vmatprep.subr.bf16.mxu0 %v14980_v33  ;;  %v15059_v31 = vld [vmem:[#allocation8 + $0x1228] ss:$16 sps:$4 sm:$0xff]   ;;  %v15064_v33 = vld [vmem:[#allocation8 + $0x1244] ss:$16 sps:$4 sm:$0xff]  }
 0x418   : > { %6799 = vmatprep.subr.bf16.mxu1 %v14983_v21  ;;  %v15067_v21 = vld [vmem:[#allocation8 + $0x124c] ss:$16 sps:$4 sm:$0xff]  }
 0x41a   : > { %6714 = vmatpush1.bf16.msra.mxu0 %v14978_v36  ;;  %v15062_v36 = vld [vmem:[#allocation8 + $0x1240] ss:$16 sps:$4 sm:$0xff]  }
 0x41b   : > { %6800 = vmatpush1.bf16.msra.mxu1 %v14981_v0  ;;  %6715 = vmatprep.subr.bf16.mxu0 %v14986_v37  ;;  %v15065_v0 = vld [vmem:[#allocation8 + $0x1248] ss:$16 sps:$4 sm:$0xff]   ;;  %v15070_v37 = vld [vmem:[#allocation8 + $0x1264] ss:$16 sps:$4 sm:$0xff]  }
 0x41c   : > { %6801 = vmatprep.subr.bf16.mxu1 %v14989_v39  ;;  %v15068_v39 = vld [vmem:[#allocation8 + $0x1260] ss:$16 sps:$4 sm:$0xff]  }
 0x41e   : > { %6716 = vmatpush1.bf16.msra.mxu0 %v14984_v6  ;;  %v15071_v6 = vld [vmem:[#allocation8 + $0x1268] ss:$16 sps:$4 sm:$0xff]  }
 0x41f   : > { %6802 = vmatpush1.bf16.msra.mxu1 %v14987_v40  ;;  %6717 = vmatprep.subr.bf16.mxu0 %v14992_v41  ;;  %v15076_v40 = vld [vmem:[#allocation8 + $0x1284] ss:$16 sps:$4 sm:$0xff]   ;;  %v15079_v41 = vld [vmem:[#allocation8 + $0x128c] ss:$16 sps:$4 sm:$0xff]  }
 0x420   : > { %6803 = vmatprep.subr.bf16.mxu1 %v14995_v24  ;;  %v15077_v24 = vld [vmem:[#allocation8 + $0x1288] ss:$16 sps:$4 sm:$0xff]  }
 0x422   : > { %6718 = vmatpush1.bf16.msra.mxu0 %v14990_v43  ;;  %v15082_v43 = vld [vmem:[#allocation8 + $0x12a4] ss:$16 sps:$4 sm:$0xff]  }
 0x423   : > { %6804 = vmatpush1.bf16.msra.mxu1 %v14993_v45  ;;  %6719 = vmatprep.subr.bf16.mxu0 %v14998_v46  ;;  %v15085_v45 = vld [vmem:[#allocation8 + $0x12ac] ss:$16 sps:$4 sm:$0xff]   ;;  %v15080_v46 = vld [vmem:[#allocation8 + $0x12a0] ss:$16 sps:$4 sm:$0xff]  }
 0x424   : > { %6805 = vmatprep.subr.bf16.mxu1 %v15001_v49  ;;  %v15083_v49 = vld [vmem:[#allocation8 + $0x12a8] ss:$16 sps:$4 sm:$0xff]  }
 0x426   : > { %6720 = vmatpush1.bf16.msra.mxu0 %v14996_v51  ;;  %v15088_v51 = vld [vmem:[#allocation8 + $0x12c4] ss:$16 sps:$4 sm:$0xff]  }
 0x427   : > { %6806 = vmatpush1.bf16.msra.mxu1 %v14999_v32  ;;  %6721 = vmatprep.subr.bf16.mxu0 %v15004_v53  ;;  %v15091_v32 = vld [vmem:[#allocation8 + $0x12cc] ss:$16 sps:$4 sm:$0xff]   ;;  %v15086_v53 = vld [vmem:[#allocation8 + $0x12c0] ss:$16 sps:$4 sm:$0xff]  }
 0x428   : > { %6807 = vmatprep.subr.bf16.mxu1 %v15007_v55  ;;  %v15089_v55 = vld [vmem:[#allocation8 + $0x12c8] ss:$16 sps:$4 sm:$0xff]  }
 0x42a   : > { %6722 = vmatpush1.bf16.msra.mxu0 %v15002_v18  ;;  %v15094_v18 = vld [vmem:[#allocation8 + $0x12e4] ss:$16 sps:$4 sm:$0xff]  }
 0x42b   : > { %6808 = vmatpush1.bf16.msra.mxu1 %v15005_v48  ;;  %6723 = vmatprep.subr.bf16.mxu0 %v15010_v57  ;;  %v15097_v48 = vld [vmem:[#allocation8 + $0x12ec] ss:$16 sps:$4 sm:$0xff]   ;;  %v15092_v57 = vld [vmem:[#allocation8 + $0x12e0] ss:$16 sps:$4 sm:$0xff]  }
 0x42c   : > { %6809 = vmatprep.subr.bf16.mxu1 %v15013_v54  ;;  %v15095_v54 = vld [vmem:[#allocation8 + $0x12e8] ss:$16 sps:$4 sm:$0xff]  }
 0x42e   : > { %6724 = vmatpush1.bf16.msra.mxu0 %v15008_v59  ;;  %v15100_v59 = vld [vmem:[#allocation8 + $0x1304] ss:$16 sps:$4 sm:$0xff]  }
 0x42f   : > { %6810 = vmatpush1.bf16.msra.mxu1 %v15011_v56  ;;  %6725 = vmatprep.subr.bf16.mxu0 %v15016_v61  ;;  %v15103_v56 = vld [vmem:[#allocation8 + $0x130c] ss:$16 sps:$4 sm:$0xff]   ;;  %v15098_v61 = vld [vmem:[#allocation8 + $0x1300] ss:$16 sps:$4 sm:$0xff]  }
 0x430   : > { %6811 = vmatprep.subr.bf16.mxu1 %v15019_v62  ;;  %v15101_v62 = vld [vmem:[#allocation8 + $0x1308] ss:$16 sps:$4 sm:$0xff]  }
 0x432   : > { %6726 = vmatpush1.bf16.msra.mxu0 %v15014_v63  ;;  %v15106_v63 = vld [vmem:[#allocation8 + $0x1324] ss:$16 sps:$4 sm:$0xff]  }
 0x433   : > { %6812 = vmatpush1.bf16.msra.mxu1 %v15017_v60  ;;  %6727 = vmatprep.subr.bf16.mxu0 %v15022_v1  ;;  %v15109_v60 = vld [vmem:[#allocation8 + $0x132c] ss:$16 sps:$4 sm:$0xff]   ;;  %v15104_v1 = vld [vmem:[#allocation8 + $0x1320] ss:$16 sps:$4 sm:$0xff]  }
 0x434   : > { %6813 = vmatprep.subr.bf16.mxu1 %v15025_v2  ;;  %v15107_v2 = vld [vmem:[#allocation8 + $0x1328] ss:$16 sps:$4 sm:$0xff]  }
 0x436   : > { %6728 = vmatpush1.bf16.msra.mxu0 %v15020_v10  ;;  %v15112_v10 = vld [vmem:[#allocation8 + $0x1344] ss:$16 sps:$4 sm:$0xff]  }
 0x437   : > { %6814 = vmatpush1.bf16.msra.mxu1 %v15023_v3  ;;  %6729 = vmatprep.subr.bf16.mxu0 %v15028_v4  ;;  %v15115_v3 = vld [vmem:[#allocation8 + $0x134c] ss:$16 sps:$4 sm:$0xff]   ;;  %v15110_v4 = vld [vmem:[#allocation8 + $0x1340] ss:$16 sps:$4 sm:$0xff]  }
 0x438   : > { %6815 = vmatprep.subr.bf16.mxu1 %v15031_v27  ;;  %v15113_v27 = vld [vmem:[#allocation8 + $0x1348] ss:$16 sps:$4 sm:$0xff]  }
 0x43a   : > { %6730 = vmatpush1.bf16.msra.mxu0 %v15026_v7  ;;  %v15118_v7 = vld [vmem:[#allocation8 + $0x1364] ss:$16 sps:$4 sm:$0xff]  }
 0x43b   : > { %6816 = vmatpush1.bf16.msra.mxu1 %v15029_v9  ;;  %6731 = vmatprep.subr.bf16.mxu0 %v15034_v35  ;;  %v15121_v9 = vld [vmem:[#allocation8 + $0x136c] ss:$16 sps:$4 sm:$0xff]   ;;  %v15116_v35 = vld [vmem:[#allocation8 + $0x1360] ss:$16 sps:$4 sm:$0xff]  }
 0x43c   : > { %6817 = vmatprep.subr.bf16.mxu1 %v15037_v15  ;;  %v15119_v15 = vld [vmem:[#allocation8 + $0x1368] ss:$16 sps:$4 sm:$0xff]  }
 0x43e   : > { %6732 = vmatpush1.bf16.msra.mxu0 %v15032_v5  ;;  %v15124_v5 = vld [vmem:[#allocation8 + $0x1384] ss:$16 sps:$4 sm:$0xff]  }
 0x43f   : > { %6818 = vmatpush1.bf16.msra.mxu1 %v15035_v8  ;;  %6733 = vmatprep.subr.bf16.mxu0 %v15040_v22  ;;  %v15127_v8 = vld [vmem:[#allocation8 + $0x138c] ss:$16 sps:$4 sm:$0xff]   ;;  %v15122_v22 = vld [vmem:[#allocation8 + $0x1380] ss:$16 sps:$4 sm:$0xff]  }
 0x440   : > { %6819 = vmatprep.subr.bf16.mxu1 %v15043_v16  ;;  %v15125_v16 = vld [vmem:[#allocation8 + $0x1388] ss:$16 sps:$4 sm:$0xff]  }
 0x442   : > { %6734 = vmatpush1.bf16.msra.mxu0 %v15038_v17  ;;  %v15130_v17 = vld [vmem:[#allocation8 + $0x13a4] ss:$16 sps:$4 sm:$0xff]  }
 0x443   : > { %6820 = vmatpush1.bf16.msra.mxu1 %v15041_v19  ;;  %6735 = vmatprep.subr.bf16.mxu0 %v15046_v20  ;;  %v15133_v19 = vld [vmem:[#allocation8 + $0x13ac] ss:$16 sps:$4 sm:$0xff]   ;;  %v15128_v20 = vld [vmem:[#allocation8 + $0x13a0] ss:$16 sps:$4 sm:$0xff]  }
 0x444   : > { %6821 = vmatprep.subr.bf16.mxu1 %v15049_v23  ;;  %v15131_v23 = vld [vmem:[#allocation8 + $0x13a8] ss:$16 sps:$4 sm:$0xff]  }
 0x446   : > { %6736 = vmatpush1.bf16.msra.mxu0 %v15044_v25  ;;  %v15136_v25 = vld [vmem:[#allocation8 + $0x13c4] ss:$16 sps:$4 sm:$0xff]  }
 0x447   : > { %6822 = vmatpush1.bf16.msra.mxu1 %v15047_v26  ;;  %6748 = vmatprep.subr.bf16.mxu0 %v15052_v38  ;;  %v15139_v26 = vld [vmem:[#allocation8 + $0x13cc] ss:$16 sps:$4 sm:$0xff]   ;;  %v15134_v38 = vld [vmem:[#allocation8 + $0x13c0] ss:$16 sps:$4 sm:$0xff]  }
 0x448   : > { %6834 = vmatprep.subr.bf16.mxu1 %v15055_v34  ;;  %v15137_v34 = vld [vmem:[#allocation8 + $0x13c8] ss:$16 sps:$4 sm:$0xff]  }
 0x449   : > { %6738 = vmatmul.mubr.bf16.vlgmr.msra.gmra.mrb[4].mxu0 %v16724_v44 }
 0x44a   : > { %6824 = vmatmul.mubr.bf16.vlgmr.msra.gmra.mrb[4].mxu1 %v16724_v44  ;;  %6749 = vmatpush1.bf16.msra.mxu0 %v15050_v58  ;;  %v15073_v44 = vld [vmem:[#allocation8 + $0x126c] ss:$16 sps:$4 sm:$0xff]   ;;  %v15142_v58 = vld [vmem:[#allocation8 + $0x13e4] ss:$16 sps:$4 sm:$0xff]  }
 0x44b   : > { %6780 = vmatprep.mubr.bf16.mxu0 %v16727_v47  ;;  %6835 = vmatpush1.bf16.msra.mxu1 %v15053_v28  ;;  %v15145_v28 = vld [vmem:[#allocation8 + $0x13ec] ss:$16 sps:$4 sm:$0xff]  }
 0x44c   : > { %6866 = vmatprep.mubr.bf16.mxu1 %v16727_v47  ;;  %6750 = vmatprep.subr.bf16.mxu0 %v15058_v29  ;;  %v15074_v47 = vld [vmem:[#allocation8 + $0x1280] ss:$16 sps:$4 sm:$0xff]  }
 0x44d   : > { %6836 = vmatprep.subr.bf16.mxu1 %v15061_v30  ;;  %v15140_v29 = vld [vmem:[#allocation8 + $0x13e0] ss:$16 sps:$4 sm:$0xff]   ;;  %v15143_v30 = vld [vmem:[#allocation8 + $0x13e8] ss:$16 sps:$4 sm:$0xff]  }
 0x44e   : > { %6751 = vmatpush1.bf16.msra.mxu0 %v15056_v42  ;;  %v15148_v42 = vld [vmem:[#allocation11 + $0x404] ss:$16 sps:$4 sm:$0xff]  }
 0x44f   : > { %6837 = vmatpush1.bf16.msra.mxu1 %v15059_v31  ;;  %6752 = vmatprep.subr.bf16.mxu0 %v15064_v33  ;;  %v15151_v31 = vld [vmem:[#allocation11 + $0x40c] ss:$16 sps:$4 sm:$0xff]   ;;  %v15146_v33 = vld [vmem:[#allocation11 + $0x400] ss:$16 sps:$4 sm:$0xff]  }
 0x450   : > { %6838 = vmatprep.subr.bf16.mxu1 %v15067_v21  ;;  %v15149_v21 = vld [vmem:[#allocation11 + $0x408] ss:$16 sps:$4 sm:$0xff]  }
 0x452   : > { %6753 = vmatpush1.bf16.msra.mxu0 %v15062_v36  ;;  %v15154_v36 = vld [vmem:[#allocation11 + $0x424] ss:$16 sps:$4 sm:$0xff]  }
 0x453   : > { %6839 = vmatpush1.bf16.msra.mxu1 %v15065_v0  ;;  %6754 = vmatprep.subr.bf16.mxu0 %v15070_v37  ;;  %v15157_v0 = vld [vmem:[#allocation11 + $0x42c] ss:$16 sps:$4 sm:$0xff]   ;;  %v15152_v37 = vld [vmem:[#allocation11 + $0x420] ss:$16 sps:$4 sm:$0xff]  }
 0x454   : > { %6840 = vmatprep.subr.bf16.mxu1 %v15073_v44  ;;  %v15155_v44 = vld [vmem:[#allocation11 + $0x428] ss:$16 sps:$4 sm:$0xff]  }
 0x456   : > { %6755 = vmatpush1.bf16.msra.mxu0 %v15068_v39  ;;  %v15160_v39 = vld [vmem:[#allocation11 + $0x444] ss:$16 sps:$4 sm:$0xff]  }
 0x457   : > { %6841 = vmatpush1.bf16.msra.mxu1 %v15071_v6  ;;  %6756 = vmatprep.subr.bf16.mxu0 %v15076_v40  ;;  %v15163_v6 = vld [vmem:[#allocation11 + $0x44c] ss:$16 sps:$4 sm:$0xff]   ;;  %v15158_v40 = vld [vmem:[#allocation11 + $0x440] ss:$16 sps:$4 sm:$0xff]  }
 0x458   : > { %6842 = vmatprep.subr.bf16.mxu1 %v15079_v41  ;;  %v15161_v41 = vld [vmem:[#allocation11 + $0x448] ss:$16 sps:$4 sm:$0xff]  }
 0x45a   : > { %6757 = vmatpush1.bf16.msra.mxu0 %v15074_v47  ;;  %v15166_v47 = vld [vmem:[#allocation11 + $0x464] ss:$16 sps:$4 sm:$0xff]  }
 0x45b   : > { %6843 = vmatpush1.bf16.msra.mxu1 %v15077_v24  ;;  %6758 = vmatprep.subr.bf16.mxu0 %v15082_v43  ;;  %v15169_v24 = vld [vmem:[#allocation11 + $0x46c] ss:$16 sps:$4 sm:$0xff]   ;;  %v15164_v43 = vld [vmem:[#allocation11 + $0x460] ss:$16 sps:$4 sm:$0xff]  }
 0x45c   : > { %6844 = vmatprep.subr.bf16.mxu1 %v15085_v45  ;;  %v15172_v45 = vld [vmem:[#allocation11 + $0x484] ss:$16 sps:$4 sm:$0xff]  }
 0x45e   : > { %6759 = vmatpush1.bf16.msra.mxu0 %v15080_v46  ;;  %v15175_v46 = vld [vmem:[#allocation11 + $0x48c] ss:$16 sps:$4 sm:$0xff]  }
 0x45f   : > { %6845 = vmatpush1.bf16.msra.mxu1 %v15083_v49  ;;  %6760 = vmatprep.subr.bf16.mxu0 %v15088_v51  ;;  %v15170_v49 = vld [vmem:[#allocation11 + $0x480] ss:$16 sps:$4 sm:$0xff]   ;;  %v15173_v51 = vld [vmem:[#allocation11 + $0x488] ss:$16 sps:$4 sm:$0xff]  }
 0x460   : > { %6846 = vmatprep.subr.bf16.mxu1 %v15091_v32  ;;  %v15178_v32 = vld [vmem:[#allocation11 + $0x4a4] ss:$16 sps:$4 sm:$0xff]  }
 0x462   : > { %6761 = vmatpush1.bf16.msra.mxu0 %v15086_v53  ;;  %v15181_v53 = vld [vmem:[#allocation11 + $0x4ac] ss:$16 sps:$4 sm:$0xff]  }
 0x463   : > { %6847 = vmatpush1.bf16.msra.mxu1 %v15089_v55  ;;  %6762 = vmatprep.subr.bf16.mxu0 %v15094_v18  ;;  %v15176_v55 = vld [vmem:[#allocation11 + $0x4a0] ss:$16 sps:$4 sm:$0xff]   ;;  %v15179_v18 = vld [vmem:[#allocation11 + $0x4a8] ss:$16 sps:$4 sm:$0xff]  }
 0x464   : > { %6848 = vmatprep.subr.bf16.mxu1 %v15097_v48  ;;  %v15184_v48 = vld [vmem:[#allocation11 + $0x4c4] ss:$16 sps:$4 sm:$0xff]  }
 0x466   : > { %6763 = vmatpush1.bf16.msra.mxu0 %v15092_v57  ;;  %v15187_v57 = vld [vmem:[#allocation11 + $0x4cc] ss:$16 sps:$4 sm:$0xff]  }
 0x467   : > { %6849 = vmatpush1.bf16.msra.mxu1 %v15095_v54  ;;  %6764 = vmatprep.subr.bf16.mxu0 %v15100_v59  ;;  %v15182_v54 = vld [vmem:[#allocation11 + $0x4c0] ss:$16 sps:$4 sm:$0xff]   ;;  %v15185_v59 = vld [vmem:[#allocation11 + $0x4c8] ss:$16 sps:$4 sm:$0xff]  }
 0x468   : > { %6850 = vmatprep.subr.bf16.mxu1 %v15103_v56  ;;  %v15190_v56 = vld [vmem:[#allocation11 + $0x4e4] ss:$16 sps:$4 sm:$0xff]  }
 0x46a   : > { %6765 = vmatpush1.bf16.msra.mxu0 %v15098_v61  ;;  %v15193_v61 = vld [vmem:[#allocation11 + $0x4ec] ss:$16 sps:$4 sm:$0xff]  }
 0x46b   : > { %6851 = vmatpush1.bf16.msra.mxu1 %v15101_v62  ;;  %6766 = vmatprep.subr.bf16.mxu0 %v15106_v63  ;;  %v15188_v62 = vld [vmem:[#allocation11 + $0x4e0] ss:$16 sps:$4 sm:$0xff]   ;;  %v15191_v63 = vld [vmem:[#allocation11 + $0x4e8] ss:$16 sps:$4 sm:$0xff]  }
 0x46c   : > { %6852 = vmatprep.subr.bf16.mxu1 %v15109_v60  ;;  %v15196_v60 = vld [vmem:[#allocation11 + $0x504] ss:$16 sps:$4 sm:$0xff]  }
 0x46e   : > { %6767 = vmatpush1.bf16.msra.mxu0 %v15104_v1  ;;  %v15199_v1 = vld [vmem:[#allocation11 + $0x50c] ss:$16 sps:$4 sm:$0xff]  }
 0x46f   : > { %6853 = vmatpush1.bf16.msra.mxu1 %v15107_v2  ;;  %6768 = vmatprep.subr.bf16.mxu0 %v15112_v10  ;;  %v15194_v2 = vld [vmem:[#allocation11 + $0x500] ss:$16 sps:$4 sm:$0xff]   ;;  %v15197_v10 = vld [vmem:[#allocation11 + $0x508] ss:$16 sps:$4 sm:$0xff]  }
 0x470   : > { %6854 = vmatprep.subr.bf16.mxu1 %v15115_v3  ;;  %v15200_v3 = vld [vmem:[#allocation11 + $0x520] ss:$16 sps:$4 sm:$0xff]  }
 0x472   : > { %6769 = vmatpush1.bf16.msra.mxu0 %v15110_v4  ;;  %v15202_v4 = vld [vmem:[#allocation11 + $0x524] ss:$16 sps:$4 sm:$0xff]  }
 0x473   : > { %6855 = vmatpush1.bf16.msra.mxu1 %v15113_v27  ;;  %6770 = vmatprep.subr.bf16.mxu0 %v15118_v7  ;;  %v15203_v27 = vld [vmem:[#allocation11 + $0x528] ss:$16 sps:$4 sm:$0xff]   ;;  %v15205_v7 = vld [vmem:[#allocation11 + $0x52c] ss:$16 sps:$4 sm:$0xff]  }
 0x474   : > { %6856 = vmatprep.subr.bf16.mxu1 %v15121_v9  ;;  %v15206_v9 = vld [vmem:[#allocation11 + $0x540] ss:$16 sps:$4 sm:$0xff]  }
 0x476   : > { %6771 = vmatpush1.bf16.msra.mxu0 %v15116_v35  ;;  %v15208_v35 = vld [vmem:[#allocation11 + $0x544] ss:$16 sps:$4 sm:$0xff]  }
 0x477   : > { %6857 = vmatpush1.bf16.msra.mxu1 %v15119_v15  ;;  %6772 = vmatprep.subr.bf16.mxu0 %v15124_v5  ;;  %v15209_v15 = vld [vmem:[#allocation11 + $0x548] ss:$16 sps:$4 sm:$0xff]   ;;  %v15211_v5 = vld [vmem:[#allocation11 + $0x54c] ss:$16 sps:$4 sm:$0xff]  }
 0x478   : > { %6858 = vmatprep.subr.bf16.mxu1 %v15127_v8  ;;  %v15214_v8 = vld [vmem:[#allocation11 + $0x564] ss:$16 sps:$4 sm:$0xff]  }
 0x47a   : > { %6773 = vmatpush1.bf16.msra.mxu0 %v15122_v22  ;;  %v15217_v22 = vld [vmem:[#allocation11 + $0x56c] ss:$16 sps:$4 sm:$0xff]  }
 0x47b   : > { %6859 = vmatpush1.bf16.msra.mxu1 %v15125_v16  ;;  %6774 = vmatprep.subr.bf16.mxu0 %v15130_v17  ;;  %v15212_v16 = vld [vmem:[#allocation11 + $0x560] ss:$16 sps:$4 sm:$0xff]   ;;  %v15215_v17 = vld [vmem:[#allocation11 + $0x568] ss:$16 sps:$4 sm:$0xff]  }
 0x47c   : > { %6860 = vmatprep.subr.bf16.mxu1 %v15133_v19  ;;  %v15220_v19 = vld [vmem:[#allocation11 + $0x584] ss:$16 sps:$4 sm:$0xff]  }
 0x47e   : > { %6775 = vmatpush1.bf16.msra.mxu0 %v15128_v20  ;;  %v15223_v20 = vld [vmem:[#allocation11 + $0x58c] ss:$16 sps:$4 sm:$0xff]  }
 0x47f   : > { %6861 = vmatpush1.bf16.msra.mxu1 %v15131_v23  ;;  %6776 = vmatprep.subr.bf16.mxu0 %v15136_v25  ;;  %v15218_v23 = vld [vmem:[#allocation11 + $0x580] ss:$16 sps:$4 sm:$0xff]   ;;  %v15221_v25 = vld [vmem:[#allocation11 + $0x588] ss:$16 sps:$4 sm:$0xff]  }
 0x480   : > { %6862 = vmatprep.subr.bf16.mxu1 %v15139_v26  ;;  %v15226_v26 = vld [vmem:[#allocation11 + $0x5a4] ss:$16 sps:$4 sm:$0xff]  }
 0x482   : > { %6777 = vmatpush1.bf16.msra.mxu0 %v15134_v38  ;;  %v15229_v38 = vld [vmem:[#allocation11 + $0x5ac] ss:$16 sps:$4 sm:$0xff]  }
 0x483   : > { %6863 = vmatpush1.bf16.msra.mxu1 %v15137_v34  ;;  %6778 = vmatprep.subr.bf16.mxu0 %v15142_v58  ;;  %v15224_v34 = vld [vmem:[#allocation11 + $0x5a0] ss:$16 sps:$4 sm:$0xff]   ;;  %v15227_v58 = vld [vmem:[#allocation11 + $0x5a8] ss:$16 sps:$4 sm:$0xff]  }
 0x484   : > { %6864 = vmatprep.subr.bf16.mxu1 %v15145_v28  ;;  %v15232_v28 = vld [vmem:[#allocation11 + $0x5c4] ss:$16 sps:$4 sm:$0xff]  }
 0x486   : > { %6779 = vmatpush1.bf16.msra.mxu0 %v15140_v29  ;;  %v15235_v29 = vld [vmem:[#allocation11 + $0x5cc] ss:$16 sps:$4 sm:$0xff]  }
 0x487   : > { %6865 = vmatpush1.bf16.msra.mxu1 %v15143_v30  ;;  %7950 = vmatprep.subr.bf16.mxu0 %v15148_v42  ;;  %v15230_v30 = vld [vmem:[#allocation11 + $0x5c0] ss:$16 sps:$4 sm:$0xff]   ;;  %v15233_v42 = vld [vmem:[#allocation11 + $0x5c8] ss:$16 sps:$4 sm:$0xff]  }
 0x488   : > { %8036 = vmatprep.subr.bf16.mxu1 %v15151_v31  ;;  %v15238_v31 = vld [vmem:[#allocation11 + $0x5e4] ss:$16 sps:$4 sm:$0xff]  }
 0x489   : > { %6781 = vmatmul.mubr.bf16.vlgmr.msra.gmra.mrb[4].mxu0 %v16731_v52 }
 0x48a   : > { %6867 = vmatmul.mubr.bf16.vlgmr.msra.gmra.mrb[4].mxu1 %v16731_v52  ;;  %7951 = vmatpush1.bf16.msra.mxu0 %v15146_v33  ;;  %v15167_v52 = vld [vmem:[#allocation11 + $0x468] ss:$16 sps:$4 sm:$0xff]   ;;  %v15241_v33 = vld [vmem:[#allocation11 + $0x5ec] ss:$16 sps:$4 sm:$0xff]  }
 0x48b   : > { %8037 = vmatpush1.bf16.msra.mxu1 %v15149_v21  ;;  %7952 = vmatprep.subr.bf16.mxu0 %v15154_v36  ;;  %v15236_v21 = vld [vmem:[#allocation11 + $0x5e0] ss:$16 sps:$4 sm:$0xff]   ;;  %v15239_v36 = vld [vmem:[#allocation11 + $0x5e8] ss:$16 sps:$4 sm:$0xff]  }
 0x48c   : > { %8038 = vmatprep.subr.bf16.mxu1 %v15157_v0  ;;  %v15245_v0 = vld [vmem:[#allocation11 + $0x604] ss:$16 sps:$4 sm:$0xff]  }
 0x48e   : > { %7953 = vmatpush1.bf16.msra.mxu0 %v15152_v37  ;;  %v15248_v37 = vld [vmem:[#allocation11 + $0x60c] ss:$16 sps:$4 sm:$0xff]  }
 0x48f   : > { %8039 = vmatpush1.bf16.msra.mxu1 %v15155_v44  ;;  %7954 = vmatprep.subr.bf16.mxu0 %v15160_v39  ;;  %v6885_v44 = vld [vmem:[#allocation9] sm:$0xf] }
 0x490   : > { %8040 = vmatprep.subr.bf16.mxu1 %v15163_v6  ;;  %v6890_v39 = vrot.slane %v6885_v44, %v16629_v11  ;;  %v6898_v6 = vrot.slane %v6885_v44, %v16631_v12 }
 0x492   : > { %7955 = vmatpush1.bf16.msra.mxu0 %v15158_v40  ;;  %v6894_v40 = vrot.slane %v6885_v44, %v16633_v13 }
 0x493   : > { %8041 = vmatpush1.bf16.msra.mxu1 %v15161_v41  ;;  %7956 = vmatprep.subr.bf16.mxu0 %v15166_v47  ;;  %v6902_v41 = vrot.slane %v6885_v44, %v16635_v14 }
 0x494   : > { %8042 = vmatprep.subr.bf16.mxu1 %v15169_v24 }
 0x496   : > { %7957 = vmatpush1.bf16.msra.mxu0 %v15164_v43 }
 0x497   : > { %8043 = vmatpush1.bf16.msra.mxu1 %v15167_v52  ;;  %7958 = vmatprep.subr.bf16.mxu0 %v15172_v45 }
 0x498   : > { %8044 = vmatprep.subr.bf16.mxu1 %v15175_v46 }
 0x49a   : > { %7959 = vmatpush1.bf16.msra.mxu0 %v15170_v49 }
 0x49b   : > { %8045 = vmatpush1.bf16.msra.mxu1 %v15173_v51  ;;  %7960 = vmatprep.subr.bf16.mxu0 %v15178_v32 }
 0x49c   : > { %8046 = vmatprep.subr.bf16.mxu1 %v15181_v53 }
 0x49e   : > { %7961 = vmatpush1.bf16.msra.mxu0 %v15176_v55 }
 0x49f   : > { %8047 = vmatpush1.bf16.msra.mxu1 %v15179_v18  ;;  %7962 = vmatprep.subr.bf16.mxu0 %v15184_v48 }
 0x4a0   : > { %8048 = vmatprep.subr.bf16.mxu1 %v15187_v57 }
 0x4a2   : > { %7963 = vmatpush1.bf16.msra.mxu0 %v15182_v54 }
 0x4a3   : > { %8049 = vmatpush1.bf16.msra.mxu1 %v15185_v59  ;;  %7964 = vmatprep.subr.bf16.mxu0 %v15190_v56 }
 0x4a4   : > { %8050 = vmatprep.subr.bf16.mxu1 %v15193_v61 }
 0x4a6   : > { %7965 = vmatpush1.bf16.msra.mxu0 %v15188_v62 }
 0x4a7   : > { %8051 = vmatpush1.bf16.msra.mxu1 %v15191_v63  ;;  %7966 = vmatprep.subr.bf16.mxu0 %v15196_v60 }
 0x4a8   : > { %8052 = vmatprep.subr.bf16.mxu1 %v15199_v1 }
 0x4aa   : > { %7967 = vmatpush1.bf16.msra.mxu0 %v15194_v2 }
 0x4ab   : > { %8053 = vmatpush1.bf16.msra.mxu1 %v15197_v10  ;;  %7968 = vmatprep.subr.bf16.mxu0 %v15202_v4 }
 0x4ac   : > { %8054 = vmatprep.subr.bf16.mxu1 %v15205_v7 }
 0x4ae   : > { %7969 = vmatpush1.bf16.msra.mxu0 %v15200_v3 }
 0x4af   : > { %8055 = vmatpush1.bf16.msra.mxu1 %v15203_v27  ;;  %7970 = vmatprep.subr.bf16.mxu0 %v15208_v35 }
 0x4b0   : > { %8056 = vmatprep.subr.bf16.mxu1 %v15211_v5 }
 0x4b2   : > { %7971 = vmatpush1.bf16.msra.mxu0 %v15206_v9 }
 0x4b3   : > { %8057 = vmatpush1.bf16.msra.mxu1 %v15209_v15  ;;  %7972 = vmatprep.subr.bf16.mxu0 %v15214_v8 }
 0x4b4   : > { %8058 = vmatprep.subr.bf16.mxu1 %v15217_v22 }
 0x4b6   : > { %7973 = vmatpush1.bf16.msra.mxu0 %v15212_v16 }
 0x4b7   : > { %8059 = vmatpush1.bf16.msra.mxu1 %v15215_v17  ;;  %7974 = vmatprep.subr.bf16.mxu0 %v15220_v19 }
 0x4b8   : > { %8060 = vmatprep.subr.bf16.mxu1 %v15223_v20 }
 0x4ba   : > { %7975 = vmatpush1.bf16.msra.mxu0 %v15218_v23 }
 0x4bb   : > { %8061 = vmatpush1.bf16.msra.mxu1 %v15221_v25  ;;  %7976 = vmatprep.subr.bf16.mxu0 %v15226_v26 }
 0x4bc   : > { %8062 = vmatprep.subr.bf16.mxu1 %v15229_v38 }
 0x4be   : > { %7977 = vmatpush1.bf16.msra.mxu0 %v15224_v34 }
 0x4bf   : > { %8063 = vmatpush1.bf16.msra.mxu1 %v15227_v58  ;;  %7978 = vmatprep.subr.bf16.mxu0 %v15232_v28 }
 0x4c0   : > { %8064 = vmatprep.subr.bf16.mxu1 %v15235_v29 }
 0x4c2   : > { %7979 = vmatpush1.bf16.msra.mxu0 %v15230_v30 }
 0x4c3   : > { %8065 = vmatpush1.bf16.msra.mxu1 %v15233_v42  ;;  %7980 = vmatprep.subr.bf16.mxu0 %v15238_v31 }
 0x4c4   : > { %8066 = vmatprep.subr.bf16.mxu1 %v15241_v33 }
 0x4c6   : > { %7981 = vmatpush1.bf16.msra.mxu0 %v15236_v21 }
 0x4c7   : > { %8067 = vmatpush1.bf16.msra.mxu1 %v15239_v36  ;;  %7993 = vmatprep.subr.bf16.mxu0 %v15245_v0 }
 0x4c8   : > { %8079 = vmatprep.subr.bf16.mxu1 %v15248_v37 }
 0x55c   : > { %v6782_v47 = vpop.f32.mrb[4].mxu0 }
 0x55d   : > { %v6907_v24 = vadd.f32 %v6890_v39, %v6782_v47  ;;  %v6868_v43 = vpop.f32.mrb[4].mxu1  ;;  %v6784_v52 = vpop.f32.mrb[5].mxu0 }
 0x55e   : > { %v6909_v45 = vadd.f32 %v6898_v6, %v6868_v43  ;;  %v6908_v46 = vadd.f32 %v6894_v40, %v6784_v52  ;;  %v6870_v49 = vpop.f32.mrb[5].mxu1  ;;  %v6786_v51 = vpop.f32.mrb[6].mxu0 }
 0x55f   : > { %v6915_v32 = vmax.f32 %v6907_v24, 0.0  ;;  %v6910_v53 = vadd.f32 %v6902_v41, %v6870_v49  ;;  %v6911_v55 = vadd.f32 %v6890_v39, %v6786_v51  ;;  %v6872_v18 = vpop.f32.mrb[6].mxu1  ;;  %v6788_v48 = vpop.f32.mrb[7].mxu0 }
 0x560   : > { %v6917_v57 = vmax.f32 %v6909_v45, 0.0  ;;  %v6916_v54 = vmax.f32 %v6908_v46, 0.0  ;;  %v6913_v59 = vadd.f32 %v6898_v6, %v6872_v18  ;;  %v6912_v56 = vadd.f32 %v6894_v40, %v6788_v48  ;;  %v6874_v61 = vpop.f32.mrb[7].mxu1 }
 0x561   : > { %v6918_v62 = vmax.f32 %v6910_v53, 0.0  ;;  %v6919_v63 = vmax.f32 %v6911_v55, 0.0  ;;  %v6914_v60 = vadd.f32 %v6902_v41, %v6874_v61  ;;  %v15243_v53 = vld [vmem:[#allocation11 + $0x600] ss:$16 sps:$4 sm:$0xff]  }
 0x562   : > { %v13659_v1 = vpack.c.bf16 %v6916_v54, %v6915_v32  ;;  %v6921_v2 = vmax.f32 %v6913_v59, 0.0  ;;  %v6920_v10 = vmax.f32 %v6912_v56, 0.0 }
 0x563   : > { %v13660_v3 = vpack.c.bf16 %v6918_v62, %v6917_v57  ;;  %v6922_v4 = vmax.f32 %v6914_v60, 0.0  ;;  %v15246_v57 = vld [vmem:[#allocation11 + $0x608] ss:$16 sps:$4 sm:$0xff]  }
 0x564   : > { %v6947_v27 = vrot.slane %v13659_v1, 7  ;;  %v13661_v7 = vpack.c.bf16 %v6920_v10, %v6919_v63  ;;  %v15256_v10 = vld [vmem:[#allocation11 + $0x62c] ss:$16 sps:$4 sm:$0xff]  }
 0x565   : > { %v6948_v9 = vrot.slane %v13660_v3, 7  ;;  %v13662_v35 = vpack.c.bf16 %v6922_v4, %v6921_v2  ;;  %v15253_v2 = vld [vmem:[#allocation11 + $0x624] ss:$16 sps:$4 sm:$0xff]  }
 0x566   : > { %v6949_v15 = vrot.slane %v6947_v27, 4  ;;  %6963 = vst [vmem:[#allocation3] sm:$0xee] %v6947_v27  ;;  %v6950_v5 = vrot.slane %v13661_v7, 7 }
 0x567   : > { %v6952_v8 = vrot.slane %v6948_v9, 4  ;;  %6964 = vst [vmem:[#allocation3 + $0x8] sm:$0xee] %v6948_v9  ;;  %v6953_v22 = vrot.slane %v13662_v35, 7 }
 0x568   : > { %v16791_v16 = vsel %vm16641_vm6, %v6949_v15, %v6950_v5  ;;  %v6955_v17 = vrot.slane %v6950_v5, 4  ;;  %v15251_v15 = vld [vmem:[#allocation11 + $0x620] ss:$16 sps:$4 sm:$0xff]   ;;  %v15254_v5 = vld [vmem:[#allocation11 + $0x628] ss:$16 sps:$4 sm:$0xff]  }
 0x569   : > { %v16795_v19 = vsel %vm16641_vm6, %v6952_v8, %v6953_v22  ;;  %v6956_v20 = vrot.slane %v6953_v22, 4  ;;  %v15259_v22 = vld [vmem:[#allocation11 + $0x644] ss:$16 sps:$4 sm:$0xff]  }
 0x56a   : > { %6967 = vst [vmem:[#allocation3 + $0x20] sm:$0x11] %v6955_v17  ;;  %v15262_v17 = vld [vmem:[#allocation11 + $0x64c] ss:$16 sps:$4 sm:$0xff]  }
 0x56b   : > { %6968 = vst [vmem:[#allocation3 + $0x28] sm:$0x11] %v6956_v20 }
 0x56d   : > { %v6969_v23 = vld [vmem:[#allocation3] sm:$0xff] }
 0x56e   : > { %v16798_v25 = vcombine.high %v6969_v23, %v16791_v16  ;;  %v16801_v26 = vcombine.low %v6969_v23, %v16791_v16  ;;  %v16803_v38 = vld [vmem:[#allocation3 + $0x8] sm:$0xff]  ;;  %v8938_v34 = vld [vmem:[#allocation3] sm:$0xee] }
 0x56f   : > { %v16807_v58 = vcombine.high %v16803_v38, %v16795_v19  ;;  %v8939_v29 = vld [vmem:[#allocation3 + $0x8] sm:$0xee]  ;;  %v16813_v31 = vcombine.high %v8938_v34, %v16791_v16  ;;  %v16816_v33 = vcombine.low %v8938_v34, %v16791_v16  ;;  %v15260_v34 = vld [vmem:[#allocation11 + $0x648] ss:$16 sps:$4 sm:$0xff]  }
 0x570   : > { %v7273_v50 = vshll.u32 %v16798_v25, 16  ;;  %v7261_v28 = vshll.u32 %v16801_v26, 16  ;;  %v7271_v39 = vshrl.u32 %v16798_v25, 16  ;;  %v7259_v6 = vshrl.u32 %v16801_v26, 16  ;;  %v15257_v23 = vld [vmem:[#allocation11 + $0x640] ss:$16 sps:$4 sm:$0xff]  }
 0x571   : > { %v7101_v30 = vld [vmem:[#allocation3 + $0x20] sm:$0x11]  ;;  %v7297_v42 = vshll.u32 %v16807_v58, 16  ;;  %v16821_v41 = vcombine.high %v8939_v29, %v16795_v19  ;;  %v16824_v52 = vcombine.low %v8939_v29, %v16795_v19  ;;  %v9082_v18 = vrot.slane %v16813_v31, 1 }
 0x572   : > { %v12991_v21 = vcombine.high %v7101_v30, %v7101_v30  ;;  %v7275_v36 = vrot.slane %v7273_v50, 1  ;;  %v12990_v0 = vcombine.low %v7101_v30, %v7101_v30  ;;  %v7263_v37 = vrot.slane %v7261_v28, 1  ;;  %v7102_v44 = vld [vmem:[#allocation3 + $0x28] sm:$0x11]  ;;  %v15268_v28 = vld [vmem:[#allocation11 + $0x66c] ss:$16 sps:$4 sm:$0xff]  }
 0x573   : > { %v12993_v40 = vcombine.high %v7102_v44, %v7102_v44  ;;  %v7299_v43 = vrot.slane %v7297_v42, 1  ;;  %v16826_v51 = vcombine.low %v7102_v44, %v7102_v44  ;;  %v7295_v54 = vshrl.u32 %v16807_v58, 16  ;;  %v15265_v50 = vld [vmem:[#allocation11 + $0x664] ss:$16 sps:$4 sm:$0xff]   ;;  %v9915_v29 = vld [vmem:[#allocation3 + $0x20] sm:$0x33] }
 0x574   : > { %v7278_v47 = vshll.u32 %v12991_v21, 16  ;;  %v7266_v24 = vshll.u32 %v12990_v0, 16  ;;  %v7276_v45 = vor.u32 %v7275_v36, %v7271_v39  ;;  %v7264_v46 = vor.u32 %v7263_v37, %v7259_v6  ;;  %v10948_v30 = vld [vmem:[#allocation3] sm:$0xcc]  ;;  %v15263_v42 = vld [vmem:[#allocation11 + $0x660] ss:$16 sps:$4 sm:$0xff]  }
 0x575   : > { %v7302_v49 = vshll.u32 %v12993_v40, 16  ;;  %v9083_v48 = vrot.slane %v12991_v21, 1  ;;  %v9079_v56 = vrot.slane %v16816_v33, 1  ;;  %v9080_v61 = vrot.slane %v12990_v0, 1  ;;  %v15266_v21 = vld [vmem:[#allocation11 + $0x668] ss:$16 sps:$4 sm:$0xff]  }
 0x576   : > { %v7280_v32 = vrot.slane %v7278_v47, 1  ;;  %v7268_v55 = vrot.slane %v7266_v24, 1  ;;  %v7300_v1 = vor.u32 %v7299_v43, %v7295_v54  ;;  %v9088_v4 = vrot.slane %v16821_v41, 1  ;;  %v15271_v36 = vld [vmem:[#allocation11 + $0x684] ss:$16 sps:$4 sm:$0xff]  }
 0x577   : > { %v7304_v59 = vrot.slane %v7302_v49, 1  ;;  %v16834_v60 = vsel %vm977_vm1, %v9082_v18, %v9083_v48  ;;  %v16837_v3 = vsel %vm977_vm1, %v9079_v56, %v9080_v61  ;;  %v9089_v27 = vrot.slane %v12993_v40, 1  ;;  %v15274_v37 = vld [vmem:[#allocation11 + $0x68c] ss:$16 sps:$4 sm:$0xff]   ;;  %v9916_v44 = vld [vmem:[#allocation3 + $0x28] sm:$0x33] }
 0x578   : > { %v7281_v62 = vsel %vm433_vm0, %v7276_v45, %v7280_v32  ;;  %v7269_v63 = vsel %vm433_vm0, %v7264_v46, %v7268_v55  ;;  %v9085_v7 = vrot.slane %v16824_v52, 1  ;;  %v9086_v9 = vrot.slane %v16826_v51, 1  ;;  %v10949_v6 = vld [vmem:[#allocation3 + $0x8] sm:$0xcc]  ;;  %v15272_v43 = vld [vmem:[#allocation11 + $0x688] ss:$16 sps:$4 sm:$0xff]  }
 0x579   : > { %7982 = vmatprep.mubr.bf16.mxu0 %v7281_v62  ;;  %8068 = vmatprep.mubr.bf16.mxu1 %v7281_v62  ;;  %v7305_v35 = vsel %vm433_vm0, %v7300_v1, %v7304_v59  ;;  %v16844_v8 = vsel %vm977_vm1, %v9088_v4, %v9089_v27  ;;  %v16849_v0 = vcombine.high %v9915_v29, %v9915_v29  ;;  %v15269_v24 = vld [vmem:[#allocation11 + $0x680] ss:$16 sps:$4 sm:$0xff]   ;;  %v15277_v32 = vld [vmem:[#allocation11 + $0x6a4] ss:$16 sps:$4 sm:$0xff]   ;;  %v15278_v56 = vld [vmem:[#allocation11 + $0x6a8] ss:$16 sps:$4 sm:$0xff]  }
 0x57a   : > { %7983 = vmatmul.mubr.bf16.vlgmr.msra.gmra.mrb[8].mxu0 %v7269_v63  ;;  %8069 = vmatmul.mubr.bf16.vlgmr.msra.gmra.mrb[8].mxu1 %v7269_v63  ;;  %v16847_v20 = vsel %vm977_vm1, %v9085_v7, %v9086_v9  ;;  %v13515_v39 = vcombine.high %v10948_v30, %v16791_v16  ;;  %v16852_v40 = vcombine.low %v9915_v29, %v9915_v29  ;;  %v15275_v59 = vld [vmem:[#allocation11 + $0x6a0] ss:$16 sps:$4 sm:$0xff]   ;;  %v15283_v63 = vld [vmem:[#allocation11 + $0x6c4] ss:$16 sps:$4 sm:$0xff]   ;;  %v15286_v1 = vld [vmem:[#allocation11 + $0x6cc] ss:$16 sps:$4 sm:$0xff]  }
 0x57b   : > { %7994 = vmatpush1.bf16.msra.mxu0 %v15243_v53  ;;  %8080 = vmatpush1.bf16.msra.mxu1 %v15246_v57  ;;  %v13514_v47 = vcombine.low %v10948_v30, %v16791_v16  ;;  %v16855_v45 = vcombine.high %v9916_v44, %v9916_v44  ;;  %v11093_v46 = vrot.slane %v16849_v0, 2  ;;  %v13517_v49 = vcombine.high %v10949_v6, %v16795_v19  ;;  %v15280_v53 = vld [vmem:[#allocation11 + $0x6ac] ss:$16 sps:$4 sm:$0xff]   ;;  %v15281_v7 = vld [vmem:[#allocation11 + $0x6c0] ss:$16 sps:$4 sm:$0xff]  }
 0x57c   : > { %8025 = vmatprep.mubr.bf16.mxu0 %v7305_v35  ;;  %8111 = vmatprep.mubr.bf16.mxu1 %v7305_v35  ;;  %v11092_v55 = vrot.slane %v13515_v39, 2  ;;  %v16859_v18 = vcombine.low %v9916_v44, %v9916_v44  ;;  %v13516_v48 = vcombine.low %v10949_v6, %v16795_v19  ;;  %v11090_v54 = vrot.slane %v16852_v40, 2  ;;  %v15284_v9 = vld [vmem:[#allocation11 + $0x6c8] ss:$16 sps:$4 sm:$0xff]   ;;  %v15301_v29 = vld [vmem:[#allocation11 + $0x724] ss:$16 sps:$4 sm:$0xff]  }
 0x57d   : > { %7995 = vmatprep.subr.bf16.mxu0 %v15253_v2  ;;  %8081 = vmatprep.subr.bf16.mxu1 %v15256_v10  ;;  %v11089_v57 = vrot.slane %v13514_v47, 2  ;;  %v11098_v61 = vrot.slane %v13517_v49, 2  ;;  %v11099_v62 = vrot.slane %v16855_v45, 2  ;;  %v15304_v30 = vld [vmem:[#allocation11 + $0x72c] ss:$16 sps:$4 sm:$0xff]  }
 0x57e   : > { %v16863_v16 = vsel %vm1583_vm3, %v11092_v55, %v11093_v46  ;;  %v11095_v4 = vrot.slane %v13516_v48, 2  ;;  %v11096_v27 = vrot.slane %v16859_v18, 2  ;;  %v15305_v44 = vld [vmem:[#allocation11 + $0x740] ss:$16 sps:$4 sm:$0xff]   ;;  %v15308_v39 = vld [vmem:[#allocation11 + $0x748] ss:$16 sps:$4 sm:$0xff]  }
 0x57f   : > { %7996 = vmatpush1.bf16.msra.mxu0 %v15251_v15  ;;  %8082 = vmatpush1.bf16.msra.mxu1 %v15254_v5  ;;  %v16868_v2 = vsel %vm1583_vm3, %v11089_v57, %v11090_v54  ;;  %v16871_v10 = vsel %vm1583_vm3, %v11098_v61, %v11099_v62  ;;  %v15289_v15 = vld [vmem:[#allocation11 + $0x6e4] ss:$16 sps:$4 sm:$0xff]   ;;  %v15292_v5 = vld [vmem:[#allocation11 + $0x6ec] ss:$16 sps:$4 sm:$0xff]   ;;  %v15323_v57 = vld [vmem:[#allocation11 + $0x7a0] ss:$16 sps:$4 sm:$0xff]  }
 0x580   : > { %7997 = vmatprep.subr.bf16.mxu0 %v15259_v22  ;;  %8083 = vmatprep.subr.bf16.mxu1 %v15262_v17  ;;  %v16875_v35 = vsel %vm1583_vm3, %v11095_v4, %v11096_v27  ;;  %v15287_v22 = vld [vmem:[#allocation11 + $0x6e0] ss:$16 sps:$4 sm:$0xff]   ;;  %v15290_v17 = vld [vmem:[#allocation11 + $0x6e8] ss:$16 sps:$4 sm:$0xff]   ;;  %v15313_v6 = vld [vmem:[#allocation11 + $0x764] ss:$16 sps:$4 sm:$0xff]  }
 0x581   : > { %v15316_v47 = vld [vmem:[#allocation11 + $0x76c] ss:$16 sps:$4 sm:$0xff]   ;;  %v15319_v46 = vld [vmem:[#allocation11 + $0x784] ss:$16 sps:$4 sm:$0xff]   ;;  %v15326_v54 = vld [vmem:[#allocation11 + $0x7a8] ss:$16 sps:$4 sm:$0xff]  }
 0x582   : > { %v15322_v49 = vld [vmem:[#allocation11 + $0x78c] ss:$16 sps:$4 sm:$0xff]   ;;  %v15325_v55 = vld [vmem:[#allocation11 + $0x7a4] ss:$16 sps:$4 sm:$0xff]   ;;  %v15329_v62 = vld [vmem:[#allocation11 + $0x7c0] ss:$16 sps:$4 sm:$0xff]  }
 0x583   : > { %7998 = vmatpush1.bf16.msra.mxu0 %v15257_v23  ;;  %8084 = vmatpush1.bf16.msra.mxu1 %v15260_v34  ;;  %v15295_v23 = vld [vmem:[#allocation11 + $0x704] ss:$16 sps:$4 sm:$0xff]   ;;  %v15298_v34 = vld [vmem:[#allocation11 + $0x70c] ss:$16 sps:$4 sm:$0xff]  }
 0x584   : > { %7999 = vmatprep.subr.bf16.mxu0 %v15265_v50  ;;  %8085 = vmatprep.subr.bf16.mxu1 %v15268_v28  ;;  %v15293_v50 = vld [vmem:[#allocation11 + $0x700] ss:$16 sps:$4 sm:$0xff]   ;;  %v15296_v28 = vld [vmem:[#allocation11 + $0x708] ss:$16 sps:$4 sm:$0xff]   ;;  %v15328_v48 = vld [vmem:[#allocation11 + $0x7ac] ss:$16 sps:$4 sm:$0xff]  }
 0x585   : > { %v15334_v61 = vld [vmem:[#allocation11 + $0x7cc] ss:$16 sps:$4 sm:$0xff]   ;;  %v15337_v4 = vld [vmem:[#allocation11 + $0x7e4] ss:$16 sps:$4 sm:$0xff]  }
 0x586   : > { %v15340_v27 = vld [vmem:[#allocation11 + $0x7ec] ss:$16 sps:$4 sm:$0xff]  }
 0x587   : > { %8000 = vmatpush1.bf16.msra.mxu0 %v15263_v42  ;;  %8086 = vmatpush1.bf16.msra.mxu1 %v15266_v21  ;;  %v15299_v42 = vld [vmem:[#allocation11 + $0x720] ss:$16 sps:$4 sm:$0xff]   ;;  %v15302_v21 = vld [vmem:[#allocation11 + $0x728] ss:$16 sps:$4 sm:$0xff]  }
 0x588   : > { %8001 = vmatprep.subr.bf16.mxu0 %v15271_v36  ;;  %8087 = vmatprep.subr.bf16.mxu1 %v15274_v37  ;;  %v15307_v36 = vld [vmem:[#allocation11 + $0x744] ss:$16 sps:$4 sm:$0xff]   ;;  %v15310_v37 = vld [vmem:[#allocation11 + $0x74c] ss:$16 sps:$4 sm:$0xff]  }
 0x58b   : > { %8002 = vmatpush1.bf16.msra.mxu0 %v15269_v24  ;;  %8088 = vmatpush1.bf16.msra.mxu1 %v15272_v43  ;;  %v15311_v24 = vld [vmem:[#allocation11 + $0x760] ss:$16 sps:$4 sm:$0xff]   ;;  %v15314_v43 = vld [vmem:[#allocation11 + $0x768] ss:$16 sps:$4 sm:$0xff]  }
 0x58c   : > { %8003 = vmatprep.subr.bf16.mxu0 %v15277_v32  ;;  %8089 = vmatprep.subr.bf16.mxu1 %v15280_v53  ;;  %v15317_v32 = vld [vmem:[#allocation11 + $0x780] ss:$16 sps:$4 sm:$0xff]   ;;  %v15320_v53 = vld [vmem:[#allocation11 + $0x788] ss:$16 sps:$4 sm:$0xff]  }
 0x58f   : > { %8004 = vmatpush1.bf16.msra.mxu0 %v15275_v59  ;;  %8090 = vmatpush1.bf16.msra.mxu1 %v15278_v56  ;;  %v16879_v59 = vcombine.low %v16803_v38, %v16795_v19  ;;  %v15331_v56 = vld [vmem:[#allocation11 + $0x7c4] ss:$16 sps:$4 sm:$0xff]   ;;  %v15335_v19 = vld [vmem:[#allocation11 + $0x7e0] ss:$16 sps:$4 sm:$0xff]   ;;  %v15338_v38 = vld [vmem:[#allocation11 + $0x7e8] ss:$16 sps:$4 sm:$0xff]  }
 0x590   : > { %8005 = vmatprep.subr.bf16.mxu0 %v15283_v63  ;;  %8091 = vmatprep.subr.bf16.mxu1 %v15286_v1  ;;  %v15332_v63 = vld [vmem:[#allocation11 + $0x7c8] ss:$16 sps:$4 sm:$0xff]  }
 0x591   : > { %v7285_v1 = vshll.u32 %v16879_v59, 16 }
 0x593   : > { %8006 = vmatpush1.bf16.msra.mxu0 %v15281_v7  ;;  %8092 = vmatpush1.bf16.msra.mxu1 %v15284_v9  ;;  %v7290_v7 = vshll.u32 %v16826_v51, 16  ;;  %v7287_v9 = vrot.slane %v7285_v1, 1  ;;  %v15384_v1 = vld [vmem:[#allocation11 + $0xe0] ss:$16 sps:$4 sm:$0xff]  }
 0x594   : > { %8007 = vmatprep.subr.bf16.mxu0 %v15289_v15  ;;  %8093 = vmatprep.subr.bf16.mxu1 %v15292_v5  ;;  %v15344_v15 = vld [vmem:[#allocation11 + $0x4] ss:$16 sps:$4 sm:$0xff]   ;;  %v15347_v5 = vld [vmem:[#allocation11 + $0xc] ss:$16 sps:$4 sm:$0xff]  }
 0x597   : > { %8008 = vmatpush1.bf16.msra.mxu0 %v15287_v22  ;;  %8094 = vmatpush1.bf16.msra.mxu1 %v15290_v17  ;;  %v7283_v22 = vshrl.u32 %v16879_v59, 16  ;;  %v7292_v17 = vrot.slane %v7290_v7, 1  ;;  %v15395_v7 = vld [vmem:[#allocation11 + $0x10c] ss:$16 sps:$4 sm:$0xff]  }
 0x598   : > { %8009 = vmatprep.subr.bf16.mxu0 %v15295_v23  ;;  %8095 = vmatprep.subr.bf16.mxu1 %v15298_v34  ;;  %v15342_v34 = vld [vmem:[#allocation11] ss:$16 sps:$4 sm:$0xff]  }
 0x599   : > { %v7288_v23 = vor.u32 %v7287_v9, %v7283_v22  ;;  %v15398_v9 = vld [vmem:[#allocation11 + $0x124] ss:$16 sps:$4 sm:$0xff]   ;;  %v15399_v22 = vld [vmem:[#allocation11 + $0x128] ss:$16 sps:$4 sm:$0xff]  }
 0x59b   : > { %8010 = vmatpush1.bf16.msra.mxu0 %v15293_v50  ;;  %8096 = vmatpush1.bf16.msra.mxu1 %v15296_v28  ;;  %v15345_v50 = vld [vmem:[#allocation11 + $0x8] ss:$16 sps:$4 sm:$0xff]   ;;  %v7293_v51 = vsel %vm433_vm0, %v7288_v23, %v7292_v17  ;;  %v15350_v28 = vld [vmem:[#allocation11 + $0x24] ss:$16 sps:$4 sm:$0xff]   ;;  %v15407_v23 = vld [vmem:[#allocation11 + $0x14c] ss:$16 sps:$4 sm:$0xff]  }
 0x59c   : > { %8011 = vmatprep.subr.bf16.mxu0 %v15301_v29  ;;  %8097 = vmatprep.subr.bf16.mxu1 %v15304_v30  ;;  %v15353_v29 = vld [vmem:[#allocation11 + $0x2c] ss:$16 sps:$4 sm:$0xff]   ;;  %v15348_v30 = vld [vmem:[#allocation11 + $0x20] ss:$16 sps:$4 sm:$0xff]   ;;  %v15404_v17 = vld [vmem:[#allocation11 + $0x144] ss:$16 sps:$4 sm:$0xff]  }
 0x59f   : > { %8012 = vmatpush1.bf16.msra.mxu0 %v15299_v42  ;;  %8098 = vmatpush1.bf16.msra.mxu1 %v15302_v21  ;;  %v15351_v42 = vld [vmem:[#allocation11 + $0x28] ss:$16 sps:$4 sm:$0xff]   ;;  %v15356_v21 = vld [vmem:[#allocation11 + $0x44] ss:$16 sps:$4 sm:$0xff]  }
 0x5a0   : > { %8013 = vmatprep.subr.bf16.mxu0 %v15307_v36  ;;  %8099 = vmatprep.subr.bf16.mxu1 %v15310_v37  ;;  %v15359_v36 = vld [vmem:[#allocation11 + $0x4c] ss:$16 sps:$4 sm:$0xff]   ;;  %v15354_v37 = vld [vmem:[#allocation11 + $0x40] ss:$16 sps:$4 sm:$0xff]  }
 0x5a3   : > { %8014 = vmatpush1.bf16.msra.mxu0 %v15305_v44  ;;  %8100 = vmatpush1.bf16.msra.mxu1 %v15308_v39  ;;  %v15357_v44 = vld [vmem:[#allocation11 + $0x48] ss:$16 sps:$4 sm:$0xff]   ;;  %v15362_v39 = vld [vmem:[#allocation11 + $0x64] ss:$16 sps:$4 sm:$0xff]  }
 0x5a4   : > { %8015 = vmatprep.subr.bf16.mxu0 %v15313_v6  ;;  %8101 = vmatprep.subr.bf16.mxu1 %v15316_v47  ;;  %v15365_v6 = vld [vmem:[#allocation11 + $0x6c] ss:$16 sps:$4 sm:$0xff]   ;;  %v15360_v47 = vld [vmem:[#allocation11 + $0x60] ss:$16 sps:$4 sm:$0xff]  }
 0x5a7   : > { %8016 = vmatpush1.bf16.msra.mxu0 %v15311_v24  ;;  %8102 = vmatpush1.bf16.msra.mxu1 %v15314_v43  ;;  %v15363_v24 = vld [vmem:[#allocation11 + $0x68] ss:$16 sps:$4 sm:$0xff]   ;;  %v15368_v43 = vld [vmem:[#allocation11 + $0x84] ss:$16 sps:$4 sm:$0xff]  }
 0x5a8   : > { %8017 = vmatprep.subr.bf16.mxu0 %v15319_v46  ;;  %8103 = vmatprep.subr.bf16.mxu1 %v15322_v49  ;;  %v15366_v46 = vld [vmem:[#allocation11 + $0x80] ss:$16 sps:$4 sm:$0xff]   ;;  %v15369_v49 = vld [vmem:[#allocation11 + $0x88] ss:$16 sps:$4 sm:$0xff]  }
 0x5ab   : > { %8018 = vmatpush1.bf16.msra.mxu0 %v15317_v32  ;;  %8104 = vmatpush1.bf16.msra.mxu1 %v15320_v53  ;;  %v15374_v32 = vld [vmem:[#allocation11 + $0xa4] ss:$16 sps:$4 sm:$0xff]   ;;  %v15377_v53 = vld [vmem:[#allocation11 + $0xac] ss:$16 sps:$4 sm:$0xff]  }
 0x5ac   : > { %8019 = vmatprep.subr.bf16.mxu0 %v15325_v55  ;;  %8105 = vmatprep.subr.bf16.mxu1 %v15328_v48  ;;  %v15372_v55 = vld [vmem:[#allocation11 + $0xa0] ss:$16 sps:$4 sm:$0xff]   ;;  %v15375_v48 = vld [vmem:[#allocation11 + $0xa8] ss:$16 sps:$4 sm:$0xff]  }
 0x5af   : > { %8020 = vmatpush1.bf16.msra.mxu0 %v15323_v57  ;;  %8106 = vmatpush1.bf16.msra.mxu1 %v15326_v54  ;;  %v15380_v57 = vld [vmem:[#allocation11 + $0xc4] ss:$16 sps:$4 sm:$0xff]   ;;  %v15383_v54 = vld [vmem:[#allocation11 + $0xcc] ss:$16 sps:$4 sm:$0xff]  }
 0x5b0   : > { %8021 = vmatprep.subr.bf16.mxu0 %v15331_v56  ;;  %8107 = vmatprep.subr.bf16.mxu1 %v15334_v61  ;;  %v15378_v56 = vld [vmem:[#allocation11 + $0xc0] ss:$16 sps:$4 sm:$0xff]   ;;  %v15381_v61 = vld [vmem:[#allocation11 + $0xc8] ss:$16 sps:$4 sm:$0xff]  }
 0x5b3   : > { %8022 = vmatpush1.bf16.msra.mxu0 %v15329_v62  ;;  %8108 = vmatpush1.bf16.msra.mxu1 %v15332_v63  ;;  %v15386_v62 = vld [vmem:[#allocation11 + $0xe4] ss:$16 sps:$4 sm:$0xff]   ;;  %v15389_v63 = vld [vmem:[#allocation11 + $0xec] ss:$16 sps:$4 sm:$0xff]  }
 0x5b4   : > { %8023 = vmatprep.subr.bf16.mxu0 %v15337_v4  ;;  %8109 = vmatprep.subr.bf16.mxu1 %v15340_v27  ;;  %v15387_v4 = vld [vmem:[#allocation11 + $0xe8] ss:$16 sps:$4 sm:$0xff]   ;;  %v15392_v27 = vld [vmem:[#allocation11 + $0x104] ss:$16 sps:$4 sm:$0xff]  }
 0x5b7   : > { %8024 = vmatpush1.bf16.msra.mxu0 %v15335_v19  ;;  %8110 = vmatpush1.bf16.msra.mxu1 %v15338_v38  ;;  %v15390_v19 = vld [vmem:[#allocation11 + $0x100] ss:$16 sps:$4 sm:$0xff]   ;;  %v15393_v38 = vld [vmem:[#allocation11 + $0x108] ss:$16 sps:$4 sm:$0xff]  }
 0x5b8   : > { %8766 = vmatprep.subr.bf16.mxu0 %v15344_v15  ;;  %8852 = vmatprep.subr.bf16.mxu1 %v15347_v5  ;;  %v15401_v15 = vld [vmem:[#allocation11 + $0x12c] ss:$16 sps:$4 sm:$0xff]   ;;  %v15396_v5 = vld [vmem:[#allocation11 + $0x120] ss:$16 sps:$4 sm:$0xff]  }
 0x5ba   : > { %8026 = vmatmul.mubr.bf16.vlgmr.msra.gmra.mrb[8].mxu0 %v7293_v51  ;;  %8112 = vmatmul.mubr.bf16.vlgmr.msra.gmra.mrb[8].mxu1 %v7293_v51  ;;  %v15410_v51 = vld [vmem:[#allocation11 + $0x164] ss:$16 sps:$4 sm:$0xff]  }
 0x5bb   : > { %8767 = vmatpush1.bf16.msra.mxu0 %v15342_v34  ;;  %8798 = vmatprep.mubr.bf16.mxu0 %v16798_v25  ;;  %v15402_v34 = vld [vmem:[#allocation11 + $0x140] ss:$16 sps:$4 sm:$0xff]  }
 0x5bc   : > { %8853 = vmatpush1.bf16.msra.mxu1 %v15345_v50  ;;  %8884 = vmatprep.mubr.bf16.mxu1 %v16798_v25  ;;  %v15371_v25 = vld [vmem:[#allocation11 + $0x8c] ss:$16 sps:$4 sm:$0xff]   ;;  %v15405_v50 = vld [vmem:[#allocation11 + $0x148] ss:$16 sps:$4 sm:$0xff]  }
 0x5bd   : > { %8768 = vmatprep.subr.bf16.mxu0 %v15350_v28  ;;  %8854 = vmatprep.subr.bf16.mxu1 %v15353_v29  ;;  %v15413_v28 = vld [vmem:[#allocation11 + $0x16c] ss:$16 sps:$4 sm:$0xff]   ;;  %v15408_v29 = vld [vmem:[#allocation11 + $0x160] ss:$16 sps:$4 sm:$0xff]  }
 0x5bf   : > { %8769 = vmatpush1.bf16.msra.mxu0 %v15348_v30  ;;  %v15411_v30 = vld [vmem:[#allocation11 + $0x168] ss:$16 sps:$4 sm:$0xff]  }
 0x5c0   : > { %8855 = vmatpush1.bf16.msra.mxu1 %v15351_v42  ;;  %8770 = vmatprep.subr.bf16.mxu0 %v15356_v21  ;;  %v15416_v42 = vld [vmem:[#allocation11 + $0x184] ss:$16 sps:$4 sm:$0xff]   ;;  %v15419_v21 = vld [vmem:[#allocation11 + $0x18c] ss:$16 sps:$4 sm:$0xff]  }
 0x5c1   : > { %8856 = vmatprep.subr.bf16.mxu1 %v15359_v36  ;;  %v15414_v36 = vld [vmem:[#allocation11 + $0x180] ss:$16 sps:$4 sm:$0xff]  }
 0x5c3   : > { %8771 = vmatpush1.bf16.msra.mxu0 %v15354_v37  ;;  %v15417_v37 = vld [vmem:[#allocation11 + $0x188] ss:$16 sps:$4 sm:$0xff]  }
 0x5c4   : > { %8857 = vmatpush1.bf16.msra.mxu1 %v15357_v44  ;;  %8772 = vmatprep.subr.bf16.mxu0 %v15362_v39  ;;  %v15422_v44 = vld [vmem:[#allocation11 + $0x1a4] ss:$16 sps:$4 sm:$0xff]   ;;  %v15425_v39 = vld [vmem:[#allocation11 + $0x1ac] ss:$16 sps:$4 sm:$0xff]  }
 0x5c5   : > { %8858 = vmatprep.subr.bf16.mxu1 %v15365_v6  ;;  %v15420_v6 = vld [vmem:[#allocation11 + $0x1a0] ss:$16 sps:$4 sm:$0xff]  }
 0x5c7   : > { %8773 = vmatpush1.bf16.msra.mxu0 %v15360_v47  ;;  %v15423_v47 = vld [vmem:[#allocation11 + $0x1a8] ss:$16 sps:$4 sm:$0xff]  }
 0x5c8   : > { %8859 = vmatpush1.bf16.msra.mxu1 %v15363_v24  ;;  %8774 = vmatprep.subr.bf16.mxu0 %v15368_v43  ;;  %v15428_v24 = vld [vmem:[#allocation11 + $0x1c4] ss:$16 sps:$4 sm:$0xff]   ;;  %v15431_v43 = vld [vmem:[#allocation11 + $0x1cc] ss:$16 sps:$4 sm:$0xff]  }
 0x5c9   : > { %8860 = vmatprep.subr.bf16.mxu1 %v15371_v25  ;;  %v15426_v25 = vld [vmem:[#allocation11 + $0x1c0] ss:$16 sps:$4 sm:$0xff]  }
 0x5cb   : > { %8775 = vmatpush1.bf16.msra.mxu0 %v15366_v46  ;;  %v15429_v46 = vld [vmem:[#allocation11 + $0x1c8] ss:$16 sps:$4 sm:$0xff]  }
 0x5cc   : > { %8861 = vmatpush1.bf16.msra.mxu1 %v15369_v49  ;;  %8776 = vmatprep.subr.bf16.mxu0 %v15374_v32  ;;  %v15434_v49 = vld [vmem:[#allocation11 + $0x1e4] ss:$16 sps:$4 sm:$0xff]   ;;  %v15437_v32 = vld [vmem:[#allocation11 + $0x1ec] ss:$16 sps:$4 sm:$0xff]  }
 0x5cd   : > { %8862 = vmatprep.subr.bf16.mxu1 %v15377_v53  ;;  %v15432_v53 = vld [vmem:[#allocation11 + $0x1e0] ss:$16 sps:$4 sm:$0xff]  }
 0x5cf   : > { %8777 = vmatpush1.bf16.msra.mxu0 %v15372_v55  ;;  %v15435_v55 = vld [vmem:[#allocation11 + $0x1e8] ss:$16 sps:$4 sm:$0xff]  }
 0x5d0   : > { %8863 = vmatpush1.bf16.msra.mxu1 %v15375_v48  ;;  %8778 = vmatprep.subr.bf16.mxu0 %v15380_v57  ;;  %v15440_v48 = vld [vmem:[#allocation11 + $0x204] ss:$16 sps:$4 sm:$0xff]   ;;  %v15443_v57 = vld [vmem:[#allocation11 + $0x20c] ss:$16 sps:$4 sm:$0xff]  }
 0x5d1   : > { %8864 = vmatprep.subr.bf16.mxu1 %v15383_v54  ;;  %v15438_v54 = vld [vmem:[#allocation11 + $0x200] ss:$16 sps:$4 sm:$0xff]  }
 0x5d3   : > { %8779 = vmatpush1.bf16.msra.mxu0 %v15378_v56  ;;  %v15441_v56 = vld [vmem:[#allocation11 + $0x208] ss:$16 sps:$4 sm:$0xff]  }
 0x5d4   : > { %8865 = vmatpush1.bf16.msra.mxu1 %v15381_v61  ;;  %8780 = vmatprep.subr.bf16.mxu0 %v15386_v62  ;;  %v15446_v61 = vld [vmem:[#allocation11 + $0x224] ss:$16 sps:$4 sm:$0xff]   ;;  %v15449_v62 = vld [vmem:[#allocation11 + $0x22c] ss:$16 sps:$4 sm:$0xff]  }
 0x5d5   : > { %8866 = vmatprep.subr.bf16.mxu1 %v15389_v63  ;;  %v15444_v63 = vld [vmem:[#allocation11 + $0x220] ss:$16 sps:$4 sm:$0xff]  }
 0x5d7   : > { %8781 = vmatpush1.bf16.msra.mxu0 %v15384_v1  ;;  %v15447_v1 = vld [vmem:[#allocation11 + $0x228] ss:$16 sps:$4 sm:$0xff]  }
 0x5d8   : > { %8867 = vmatpush1.bf16.msra.mxu1 %v15387_v4  ;;  %8782 = vmatprep.subr.bf16.mxu0 %v15392_v27  ;;  %v15452_v4 = vld [vmem:[#allocation11 + $0x244] ss:$16 sps:$4 sm:$0xff]   ;;  %v15455_v27 = vld [vmem:[#allocation11 + $0x24c] ss:$16 sps:$4 sm:$0xff]  }
 0x5d9   : > { %8868 = vmatprep.subr.bf16.mxu1 %v15395_v7  ;;  %v15450_v7 = vld [vmem:[#allocation11 + $0x240] ss:$16 sps:$4 sm:$0xff]  }
 0x5db   : > { %8783 = vmatpush1.bf16.msra.mxu0 %v15390_v19  ;;  %v15453_v19 = vld [vmem:[#allocation11 + $0x248] ss:$16 sps:$4 sm:$0xff]  }
 0x5dc   : > { %8869 = vmatpush1.bf16.msra.mxu1 %v15393_v38  ;;  %8784 = vmatprep.subr.bf16.mxu0 %v15398_v9  ;;  %v15458_v38 = vld [vmem:[#allocation11 + $0x264] ss:$16 sps:$4 sm:$0xff]   ;;  %v15456_v9 = vld [vmem:[#allocation11 + $0x260] ss:$16 sps:$4 sm:$0xff]  }
 0x5dd   : > { %8870 = vmatprep.subr.bf16.mxu1 %v15401_v15  ;;  %v15459_v15 = vld [vmem:[#allocation11 + $0x268] ss:$16 sps:$4 sm:$0xff]  }
 0x5df   : > { %8785 = vmatpush1.bf16.msra.mxu0 %v15396_v5  ;;  %v15464_v5 = vld [vmem:[#allocation11 + $0x284] ss:$16 sps:$4 sm:$0xff]  }
 0x5e0   : > { %8871 = vmatpush1.bf16.msra.mxu1 %v15399_v22  ;;  %8786 = vmatprep.subr.bf16.mxu0 %v15404_v17  ;;  %v15467_v22 = vld [vmem:[#allocation11 + $0x28c] ss:$16 sps:$4 sm:$0xff]   ;;  %v15465_v17 = vld [vmem:[#allocation11 + $0x288] ss:$16 sps:$4 sm:$0xff]  }
 0x5e1   : > { %8872 = vmatprep.subr.bf16.mxu1 %v15407_v23  ;;  %v15470_v23 = vld [vmem:[#allocation11 + $0x2a4] ss:$16 sps:$4 sm:$0xff]  }
 0x5e3   : > { %8787 = vmatpush1.bf16.msra.mxu0 %v15402_v34  ;;  %v15473_v34 = vld [vmem:[#allocation11 + $0x2ac] ss:$16 sps:$4 sm:$0xff]  }
 0x5e4   : > { %8873 = vmatpush1.bf16.msra.mxu1 %v15405_v50  ;;  %8788 = vmatprep.subr.bf16.mxu0 %v15410_v51  ;;  %v15468_v50 = vld [vmem:[#allocation11 + $0x2a0] ss:$16 sps:$4 sm:$0xff]   ;;  %v15471_v51 = vld [vmem:[#allocation11 + $0x2a8] ss:$16 sps:$4 sm:$0xff]  }
 0x5e5   : > { %8874 = vmatprep.subr.bf16.mxu1 %v15413_v28  ;;  %v15476_v28 = vld [vmem:[#allocation11 + $0x2c4] ss:$16 sps:$4 sm:$0xff]  }
 0x5e7   : > { %8789 = vmatpush1.bf16.msra.mxu0 %v15408_v29  ;;  %v15479_v29 = vld [vmem:[#allocation11 + $0x2cc] ss:$16 sps:$4 sm:$0xff]  }
 0x5e8   : > { %8875 = vmatpush1.bf16.msra.mxu1 %v15411_v30  ;;  %8790 = vmatprep.subr.bf16.mxu0 %v15416_v42  ;;  %v15474_v30 = vld [vmem:[#allocation11 + $0x2c0] ss:$16 sps:$4 sm:$0xff]   ;;  %v15477_v42 = vld [vmem:[#allocation11 + $0x2c8] ss:$16 sps:$4 sm:$0xff]  }
 0x5e9   : > { %8876 = vmatprep.subr.bf16.mxu1 %v15419_v21  ;;  %v15482_v21 = vld [vmem:[#allocation11 + $0x2e4] ss:$16 sps:$4 sm:$0xff]  }
 0x5eb   : > { %8791 = vmatpush1.bf16.msra.mxu0 %v15414_v36  ;;  %v15485_v36 = vld [vmem:[#allocation11 + $0x2ec] ss:$16 sps:$4 sm:$0xff]  }
 0x5ec   : > { %8877 = vmatpush1.bf16.msra.mxu1 %v15417_v37  ;;  %8792 = vmatprep.subr.bf16.mxu0 %v15422_v44  ;;  %v15480_v37 = vld [vmem:[#allocation11 + $0x2e0] ss:$16 sps:$4 sm:$0xff]   ;;  %v15483_v44 = vld [vmem:[#allocation11 + $0x2e8] ss:$16 sps:$4 sm:$0xff]  }
 0x5ed   : > { %8878 = vmatprep.subr.bf16.mxu1 %v15425_v39  ;;  %v15488_v39 = vld [vmem:[#allocation11 + $0x304] ss:$16 sps:$4 sm:$0xff]  }
 0x5ef   : > { %8793 = vmatpush1.bf16.msra.mxu0 %v15420_v6  ;;  %v15491_v6 = vld [vmem:[#allocation11 + $0x30c] ss:$16 sps:$4 sm:$0xff]  }
 0x5f0   : > { %8879 = vmatpush1.bf16.msra.mxu1 %v15423_v47  ;;  %8794 = vmatprep.subr.bf16.mxu0 %v15428_v24  ;;  %v15486_v47 = vld [vmem:[#allocation11 + $0x300] ss:$16 sps:$4 sm:$0xff]   ;;  %v15489_v24 = vld [vmem:[#allocation11 + $0x308] ss:$16 sps:$4 sm:$0xff]  }
 0x5f1   : > { %8880 = vmatprep.subr.bf16.mxu1 %v15431_v43  ;;  %v15494_v43 = vld [vmem:[#allocation11 + $0x324] ss:$16 sps:$4 sm:$0xff]  }
 0x5f3   : > { %8795 = vmatpush1.bf16.msra.mxu0 %v15426_v25  ;;  %v15497_v25 = vld [vmem:[#allocation11 + $0x32c] ss:$16 sps:$4 sm:$0xff]  }
 0x5f4   : > { %8881 = vmatpush1.bf16.msra.mxu1 %v15429_v46  ;;  %8796 = vmatprep.subr.bf16.mxu0 %v15434_v49  ;;  %v15492_v46 = vld [vmem:[#allocation11 + $0x320] ss:$16 sps:$4 sm:$0xff]   ;;  %v15495_v49 = vld [vmem:[#allocation11 + $0x328] ss:$16 sps:$4 sm:$0xff]  }
 0x5f5   : > { %8882 = vmatprep.subr.bf16.mxu1 %v15437_v32  ;;  %v15500_v32 = vld [vmem:[#allocation11 + $0x344] ss:$16 sps:$4 sm:$0xff]  }
 0x5f7   : > { %8797 = vmatpush1.bf16.msra.mxu0 %v15432_v53  ;;  %v15503_v53 = vld [vmem:[#allocation11 + $0x34c] ss:$16 sps:$4 sm:$0xff]  }
 0x5f8   : > { %8883 = vmatpush1.bf16.msra.mxu1 %v15435_v55  ;;  %8809 = vmatprep.subr.bf16.mxu0 %v15440_v48  ;;  %v15498_v55 = vld [vmem:[#allocation11 + $0x340] ss:$16 sps:$4 sm:$0xff]   ;;  %v15501_v48 = vld [vmem:[#allocation11 + $0x348] ss:$16 sps:$4 sm:$0xff]  }
 0x5f9   : > { %8895 = vmatprep.subr.bf16.mxu1 %v15443_v57  ;;  %v15506_v57 = vld [vmem:[#allocation11 + $0x364] ss:$16 sps:$4 sm:$0xff]  }
 0x5fa   : > { %8799 = vmatmul.mubr.bf16.vlgmr.msra.gmra.mrb[8].mxu0 %v16801_v26 }
 0x5fb   : > { %8885 = vmatmul.mubr.bf16.vlgmr.msra.gmra.mrb[8].mxu1 %v16801_v26  ;;  %8810 = vmatpush1.bf16.msra.mxu0 %v15438_v54  ;;  %v15461_v26 = vld [vmem:[#allocation11 + $0x26c] ss:$16 sps:$4 sm:$0xff]  }
 0x5fc   : > { %8841 = vmatprep.mubr.bf16.mxu0 %v16807_v58  ;;  %8896 = vmatpush1.bf16.msra.mxu1 %v15441_v56  ;;  %v15509_v54 = vld [vmem:[#allocation11 + $0x36c] ss:$16 sps:$4 sm:$0xff]   ;;  %v15504_v56 = vld [vmem:[#allocation11 + $0x360] ss:$16 sps:$4 sm:$0xff]  }
 0x5fd   : > { %8927 = vmatprep.mubr.bf16.mxu1 %v16807_v58  ;;  %8811 = vmatprep.subr.bf16.mxu0 %v15446_v61  ;;  %v15462_v58 = vld [vmem:[#allocation11 + $0x280] ss:$16 sps:$4 sm:$0xff]   ;;  %v15507_v61 = vld [vmem:[#allocation11 + $0x368] ss:$16 sps:$4 sm:$0xff]  }
 0x5fe   : > { %8897 = vmatprep.subr.bf16.mxu1 %v15449_v62  ;;  %v15512_v62 = vld [vmem:[#allocation11 + $0x384] ss:$16 sps:$4 sm:$0xff]  }
 0x5ff   : > { %8812 = vmatpush1.bf16.msra.mxu0 %v15444_v63  ;;  %v15515_v63 = vld [vmem:[#allocation11 + $0x38c] ss:$16 sps:$4 sm:$0xff]  }
 0x600   : > { %8898 = vmatpush1.bf16.msra.mxu1 %v15447_v1  ;;  %8813 = vmatprep.subr.bf16.mxu0 %v15452_v4  ;;  %v15510_v1 = vld [vmem:[#allocation11 + $0x380] ss:$16 sps:$4 sm:$0xff]   ;;  %v15513_v4 = vld [vmem:[#allocation11 + $0x388] ss:$16 sps:$4 sm:$0xff]  }
 0x601   : > { %8899 = vmatprep.subr.bf16.mxu1 %v15455_v27  ;;  %v15518_v27 = vld [vmem:[#allocation11 + $0x3a4] ss:$16 sps:$4 sm:$0xff]  }
 0x603   : > { %8814 = vmatpush1.bf16.msra.mxu0 %v15450_v7  ;;  %v15521_v7 = vld [vmem:[#allocation11 + $0x3ac] ss:$16 sps:$4 sm:$0xff]  }
 0x604   : > { %8900 = vmatpush1.bf16.msra.mxu1 %v15453_v19  ;;  %8815 = vmatprep.subr.bf16.mxu0 %v15458_v38  ;;  %v15516_v19 = vld [vmem:[#allocation11 + $0x3a0] ss:$16 sps:$4 sm:$0xff]   ;;  %v15519_v38 = vld [vmem:[#allocation11 + $0x3a8] ss:$16 sps:$4 sm:$0xff]  }
 0x605   : > { %8901 = vmatprep.subr.bf16.mxu1 %v15461_v26  ;;  %v15524_v26 = vld [vmem:[#allocation11 + $0x3c4] ss:$16 sps:$4 sm:$0xff]  }
 0x607   : > { %8816 = vmatpush1.bf16.msra.mxu0 %v15456_v9  ;;  %v15527_v9 = vld [vmem:[#allocation11 + $0x3cc] ss:$16 sps:$4 sm:$0xff]  }
 0x608   : > { %8902 = vmatpush1.bf16.msra.mxu1 %v15459_v15  ;;  %8817 = vmatprep.subr.bf16.mxu0 %v15464_v5  ;;  %v15522_v15 = vld [vmem:[#allocation11 + $0x3c0] ss:$16 sps:$4 sm:$0xff]   ;;  %v15525_v5 = vld [vmem:[#allocation11 + $0x3c8] ss:$16 sps:$4 sm:$0xff]  }
 0x609   : > { %8903 = vmatprep.subr.bf16.mxu1 %v15467_v22  ;;  %v15530_v22 = vld [vmem:[#allocation11 + $0x3e4] ss:$16 sps:$4 sm:$0xff]  }
 0x60b   : > { %8818 = vmatpush1.bf16.msra.mxu0 %v15462_v58  ;;  %v15533_v58 = vld [vmem:[#allocation11 + $0x3ec] ss:$16 sps:$4 sm:$0xff]  }
 0x60c   : > { %8904 = vmatpush1.bf16.msra.mxu1 %v15465_v17  ;;  %8819 = vmatprep.subr.bf16.mxu0 %v15470_v23  ;;  %v15528_v17 = vld [vmem:[#allocation11 + $0x3e0] ss:$16 sps:$4 sm:$0xff]   ;;  %v15531_v23 = vld [vmem:[#allocation11 + $0x3e8] ss:$16 sps:$4 sm:$0xff]  }
 0x60d   : > { %8905 = vmatprep.subr.bf16.mxu1 %v15473_v34  ;;  %v15536_v34 = vld [vmem:[#allocation11 + $0x804] ss:$16 sps:$4 sm:$0xff]  }
 0x60f   : > { %8820 = vmatpush1.bf16.msra.mxu0 %v15468_v50  ;;  %v15539_v50 = vld [vmem:[#allocation11 + $0x80c] ss:$16 sps:$4 sm:$0xff]  }
 0x610   : > { %8906 = vmatpush1.bf16.msra.mxu1 %v15471_v51  ;;  %8821 = vmatprep.subr.bf16.mxu0 %v15476_v28  ;;  %v15534_v51 = vld [vmem:[#allocation11 + $0x800] ss:$16 sps:$4 sm:$0xff]   ;;  %v15537_v28 = vld [vmem:[#allocation11 + $0x808] ss:$16 sps:$4 sm:$0xff]  }
 0x611   : > { %8907 = vmatprep.subr.bf16.mxu1 %v15479_v29  ;;  %v15542_v29 = vld [vmem:[#allocation11 + $0x824] ss:$16 sps:$4 sm:$0xff]  }
 0x613   : > { %8822 = vmatpush1.bf16.msra.mxu0 %v15474_v30  ;;  %v15545_v30 = vld [vmem:[#allocation11 + $0x82c] ss:$16 sps:$4 sm:$0xff]  }
 0x614   : > { %8908 = vmatpush1.bf16.msra.mxu1 %v15477_v42  ;;  %8823 = vmatprep.subr.bf16.mxu0 %v15482_v21  ;;  %v15540_v42 = vld [vmem:[#allocation11 + $0x820] ss:$16 sps:$4 sm:$0xff]   ;;  %v15543_v21 = vld [vmem:[#allocation11 + $0x828] ss:$16 sps:$4 sm:$0xff]  }
 0x615   : > { %8909 = vmatprep.subr.bf16.mxu1 %v15485_v36  ;;  %v15548_v36 = vld [vmem:[#allocation11 + $0x844] ss:$16 sps:$4 sm:$0xff]  }
 0x617   : > { %8824 = vmatpush1.bf16.msra.mxu0 %v15480_v37  ;;  %v15551_v37 = vld [vmem:[#allocation11 + $0x84c] ss:$16 sps:$4 sm:$0xff]  }
 0x618   : > { %8910 = vmatpush1.bf16.msra.mxu1 %v15483_v44  ;;  %8825 = vmatprep.subr.bf16.mxu0 %v15488_v39  ;;  %v15546_v44 = vld [vmem:[#allocation11 + $0x840] ss:$16 sps:$4 sm:$0xff]   ;;  %v15549_v39 = vld [vmem:[#allocation11 + $0x848] ss:$16 sps:$4 sm:$0xff]  }
 0x619   : > { %8911 = vmatprep.subr.bf16.mxu1 %v15491_v6  ;;  %v15554_v6 = vld [vmem:[#allocation11 + $0x864] ss:$16 sps:$4 sm:$0xff]  }
 0x61b   : > { %8826 = vmatpush1.bf16.msra.mxu0 %v15486_v47  ;;  %v15552_v47 = vld [vmem:[#allocation11 + $0x860] ss:$16 sps:$4 sm:$0xff]  }
 0x61c   : > { %8912 = vmatpush1.bf16.msra.mxu1 %v15489_v24  ;;  %8827 = vmatprep.subr.bf16.mxu0 %v15494_v43  ;;  %v15555_v24 = vld [vmem:[#allocation11 + $0x868] ss:$16 sps:$4 sm:$0xff]   ;;  %v15560_v43 = vld [vmem:[#allocation11 + $0x884] ss:$16 sps:$4 sm:$0xff]  }
 0x61d   : > { %8913 = vmatprep.subr.bf16.mxu1 %v15497_v25  ;;  %v15563_v25 = vld [vmem:[#allocation11 + $0x88c] ss:$16 sps:$4 sm:$0xff]  }
 0x61f   : > { %8828 = vmatpush1.bf16.msra.mxu0 %v15492_v46  ;;  %v15561_v46 = vld [vmem:[#allocation11 + $0x888] ss:$16 sps:$4 sm:$0xff]  }
 0x620   : > { %8914 = vmatpush1.bf16.msra.mxu1 %v15495_v49  ;;  %8829 = vmatprep.subr.bf16.mxu0 %v15500_v32  ;;  %v15566_v49 = vld [vmem:[#allocation11 + $0x8a4] ss:$16 sps:$4 sm:$0xff]   ;;  %v15569_v32 = vld [vmem:[#allocation11 + $0x8ac] ss:$16 sps:$4 sm:$0xff]  }
 0x621   : > { %8915 = vmatprep.subr.bf16.mxu1 %v15503_v53  ;;  %v15564_v53 = vld [vmem:[#allocation11 + $0x8a0] ss:$16 sps:$4 sm:$0xff]  }
 0x623   : > { %8830 = vmatpush1.bf16.msra.mxu0 %v15498_v55  ;;  %v15567_v55 = vld [vmem:[#allocation11 + $0x8a8] ss:$16 sps:$4 sm:$0xff]  }
 0x624   : > { %8916 = vmatpush1.bf16.msra.mxu1 %v15501_v48  ;;  %8831 = vmatprep.subr.bf16.mxu0 %v15506_v57  ;;  %v15572_v48 = vld [vmem:[#allocation11 + $0x8c4] ss:$16 sps:$4 sm:$0xff]   ;;  %v15575_v57 = vld [vmem:[#allocation11 + $0x8cc] ss:$16 sps:$4 sm:$0xff]  }
 0x625   : > { %8917 = vmatprep.subr.bf16.mxu1 %v15509_v54  ;;  %v15570_v54 = vld [vmem:[#allocation11 + $0x8c0] ss:$16 sps:$4 sm:$0xff]  }
 0x627   : > { %8832 = vmatpush1.bf16.msra.mxu0 %v15504_v56  ;;  %v15573_v56 = vld [vmem:[#allocation11 + $0x8c8] ss:$16 sps:$4 sm:$0xff]  }
 0x628   : > { %8918 = vmatpush1.bf16.msra.mxu1 %v15507_v61  ;;  %8833 = vmatprep.subr.bf16.mxu0 %v15512_v62  ;;  %v15578_v61 = vld [vmem:[#allocation11 + $0x8e4] ss:$16 sps:$4 sm:$0xff]   ;;  %v15581_v62 = vld [vmem:[#allocation11 + $0x8ec] ss:$16 sps:$4 sm:$0xff]  }
 0x629   : > { %8919 = vmatprep.subr.bf16.mxu1 %v15515_v63  ;;  %v15576_v63 = vld [vmem:[#allocation11 + $0x8e0] ss:$16 sps:$4 sm:$0xff]  }
 0x62b   : > { %8834 = vmatpush1.bf16.msra.mxu0 %v15510_v1  ;;  %v15579_v1 = vld [vmem:[#allocation11 + $0x8e8] ss:$16 sps:$4 sm:$0xff]  }
 0x62c   : > { %8920 = vmatpush1.bf16.msra.mxu1 %v15513_v4  ;;  %8835 = vmatprep.subr.bf16.mxu0 %v15518_v27  ;;  %v15584_v4 = vld [vmem:[#allocation11 + $0x904] ss:$16 sps:$4 sm:$0xff]   ;;  %v15587_v27 = vld [vmem:[#allocation11 + $0x90c] ss:$16 sps:$4 sm:$0xff]  }
 0x62d   : > { %8921 = vmatprep.subr.bf16.mxu1 %v15521_v7  ;;  %v15582_v7 = vld [vmem:[#allocation11 + $0x900] ss:$16 sps:$4 sm:$0xff]  }
 0x62f   : > { %8836 = vmatpush1.bf16.msra.mxu0 %v15516_v19  ;;  %v15585_v19 = vld [vmem:[#allocation11 + $0x908] ss:$16 sps:$4 sm:$0xff]  }
 0x630   : > { %8922 = vmatpush1.bf16.msra.mxu1 %v15519_v38  ;;  %8837 = vmatprep.subr.bf16.mxu0 %v15524_v26  ;;  %v15590_v38 = vld [vmem:[#allocation11 + $0x924] ss:$16 sps:$4 sm:$0xff]   ;;  %v15593_v26 = vld [vmem:[#allocation11 + $0x92c] ss:$16 sps:$4 sm:$0xff]  }
 0x631   : > { %8923 = vmatprep.subr.bf16.mxu1 %v15527_v9  ;;  %v15588_v9 = vld [vmem:[#allocation11 + $0x920] ss:$16 sps:$4 sm:$0xff]  }
 0x633   : > { %8838 = vmatpush1.bf16.msra.mxu0 %v15522_v15  ;;  %v15591_v15 = vld [vmem:[#allocation11 + $0x928] ss:$16 sps:$4 sm:$0xff]  }
 0x634   : > { %8924 = vmatpush1.bf16.msra.mxu1 %v15525_v5  ;;  %8839 = vmatprep.subr.bf16.mxu0 %v15530_v22  ;;  %v15596_v5 = vld [vmem:[#allocation11 + $0x944] ss:$16 sps:$4 sm:$0xff]   ;;  %v15599_v22 = vld [vmem:[#allocation11 + $0x94c] ss:$16 sps:$4 sm:$0xff]  }
 0x635   : > { %8925 = vmatprep.subr.bf16.mxu1 %v15533_v58  ;;  %v15594_v58 = vld [vmem:[#allocation11 + $0x940] ss:$16 sps:$4 sm:$0xff]  }
 0x637   : > { %8840 = vmatpush1.bf16.msra.mxu0 %v15528_v17  ;;  %v15597_v17 = vld [vmem:[#allocation11 + $0x948] ss:$16 sps:$4 sm:$0xff]  }
 0x638   : > { %8926 = vmatpush1.bf16.msra.mxu1 %v15531_v23  ;;  %9735 = vmatprep.subr.bf16.mxu0 %v15536_v34  ;;  %v15602_v23 = vld [vmem:[#allocation11 + $0x964] ss:$16 sps:$4 sm:$0xff]   ;;  %v15605_v34 = vld [vmem:[#allocation11 + $0x96c] ss:$16 sps:$4 sm:$0xff]  }
 0x639   : > { %9821 = vmatprep.subr.bf16.mxu1 %v15539_v50  ;;  %v15600_v50 = vld [vmem:[#allocation11 + $0x960] ss:$16 sps:$4 sm:$0xff]  }
 0x63a   : > { %8842 = vmatmul.mubr.bf16.vlgmr.msra.gmra.mrb[8].mxu0 %v16879_v59 }
 0x63b   : > { %8928 = vmatmul.mubr.bf16.vlgmr.msra.gmra.mrb[8].mxu1 %v16879_v59  ;;  %9736 = vmatpush1.bf16.msra.mxu0 %v15534_v51  ;;  %v15557_v59 = vld [vmem:[#allocation11 + $0x86c] ss:$16 sps:$4 sm:$0xff]   ;;  %v15603_v51 = vld [vmem:[#allocation11 + $0x968] ss:$16 sps:$4 sm:$0xff]  }
 0x63c   : > { %9767 = vmatprep.mubr.bf16.mxu0 %v16834_v60  ;;  %9822 = vmatpush1.bf16.msra.mxu1 %v15537_v28  ;;  %v15608_v28 = vld [vmem:[#allocation11 + $0x984] ss:$16 sps:$4 sm:$0xff]  }
 0x63d   : > { %9853 = vmatprep.mubr.bf16.mxu1 %v16834_v60  ;;  %9737 = vmatprep.subr.bf16.mxu0 %v15542_v29  ;;  %v15558_v60 = vld [vmem:[#allocation11 + $0x880] ss:$16 sps:$4 sm:$0xff]   ;;  %v15611_v29 = vld [vmem:[#allocation11 + $0x98c] ss:$16 sps:$4 sm:$0xff]  }
 0x63e   : > { %9823 = vmatprep.subr.bf16.mxu1 %v15545_v30  ;;  %v15606_v30 = vld [vmem:[#allocation11 + $0x980] ss:$16 sps:$4 sm:$0xff]  }
 0x63f   : > { %9738 = vmatpush1.bf16.msra.mxu0 %v15540_v42  ;;  %v15609_v42 = vld [vmem:[#allocation11 + $0x988] ss:$16 sps:$4 sm:$0xff]  }
 0x640   : > { %9824 = vmatpush1.bf16.msra.mxu1 %v15543_v21  ;;  %9739 = vmatprep.subr.bf16.mxu0 %v15548_v36  ;;  %v15614_v21 = vld [vmem:[#allocation11 + $0x9a4] ss:$16 sps:$4 sm:$0xff]   ;;  %v15617_v36 = vld [vmem:[#allocation11 + $0x9ac] ss:$16 sps:$4 sm:$0xff]  }
 0x641   : > { %9825 = vmatprep.subr.bf16.mxu1 %v15551_v37  ;;  %v15612_v37 = vld [vmem:[#allocation11 + $0x9a0] ss:$16 sps:$4 sm:$0xff]  }
 0x643   : > { %9740 = vmatpush1.bf16.msra.mxu0 %v15546_v44  ;;  %v15615_v44 = vld [vmem:[#allocation11 + $0x9a8] ss:$16 sps:$4 sm:$0xff]  }
 0x644   : > { %9826 = vmatpush1.bf16.msra.mxu1 %v15549_v39  ;;  %9741 = vmatprep.subr.bf16.mxu0 %v15554_v6  ;;  %v15620_v39 = vld [vmem:[#allocation11 + $0x9c4] ss:$16 sps:$4 sm:$0xff]   ;;  %v15623_v6 = vld [vmem:[#allocation11 + $0x9cc] ss:$16 sps:$4 sm:$0xff]  }
 0x645   : > { %9827 = vmatprep.subr.bf16.mxu1 %v15557_v59  ;;  %v15618_v59 = vld [vmem:[#allocation11 + $0x9c0] ss:$16 sps:$4 sm:$0xff]  }
 0x647   : > { %9742 = vmatpush1.bf16.msra.mxu0 %v15552_v47  ;;  %v15621_v47 = vld [vmem:[#allocation11 + $0x9c8] ss:$16 sps:$4 sm:$0xff]  }
 0x648   : > { %9828 = vmatpush1.bf16.msra.mxu1 %v15555_v24  ;;  %9743 = vmatprep.subr.bf16.mxu0 %v15560_v43  ;;  %v15626_v24 = vld [vmem:[#allocation11 + $0x9e4] ss:$16 sps:$4 sm:$0xff]   ;;  %v15629_v43 = vld [vmem:[#allocation11 + $0x9ec] ss:$16 sps:$4 sm:$0xff]  }
 0x649   : > { %9829 = vmatprep.subr.bf16.mxu1 %v15563_v25  ;;  %v15624_v25 = vld [vmem:[#allocation11 + $0x9e0] ss:$16 sps:$4 sm:$0xff]  }
 0x64b   : > { %9744 = vmatpush1.bf16.msra.mxu0 %v15558_v60  ;;  %v15627_v60 = vld [vmem:[#allocation11 + $0x9e8] ss:$16 sps:$4 sm:$0xff]  }
 0x64c   : > { %9830 = vmatpush1.bf16.msra.mxu1 %v15561_v46  ;;  %9745 = vmatprep.subr.bf16.mxu0 %v15566_v49  ;;  %v15632_v46 = vld [vmem:[#allocation11 + $0xa04] ss:$16 sps:$4 sm:$0xff]   ;;  %v15635_v49 = vld [vmem:[#allocation11 + $0xa0c] ss:$16 sps:$4 sm:$0xff]  }
 0x64d   : > { %9831 = vmatprep.subr.bf16.mxu1 %v15569_v32  ;;  %v15630_v32 = vld [vmem:[#allocation11 + $0xa00] ss:$16 sps:$4 sm:$0xff]  }
 0x64f   : > { %9746 = vmatpush1.bf16.msra.mxu0 %v15564_v53  ;;  %v15633_v53 = vld [vmem:[#allocation11 + $0xa08] ss:$16 sps:$4 sm:$0xff]  }
 0x650   : > { %9832 = vmatpush1.bf16.msra.mxu1 %v15567_v55  ;;  %9747 = vmatprep.subr.bf16.mxu0 %v15572_v48  ;;  %v15638_v55 = vld [vmem:[#allocation11 + $0xa24] ss:$16 sps:$4 sm:$0xff]   ;;  %v15641_v48 = vld [vmem:[#allocation11 + $0xa2c] ss:$16 sps:$4 sm:$0xff]  }
 0x651   : > { %9833 = vmatprep.subr.bf16.mxu1 %v15575_v57  ;;  %v15636_v57 = vld [vmem:[#allocation11 + $0xa20] ss:$16 sps:$4 sm:$0xff]  }
 0x653   : > { %9748 = vmatpush1.bf16.msra.mxu0 %v15570_v54  ;;  %v15639_v54 = vld [vmem:[#allocation11 + $0xa28] ss:$16 sps:$4 sm:$0xff]  }
 0x654   : > { %9834 = vmatpush1.bf16.msra.mxu1 %v15573_v56  ;;  %9749 = vmatprep.subr.bf16.mxu0 %v15578_v61  ;;  %v15644_v56 = vld [vmem:[#allocation11 + $0xa44] ss:$16 sps:$4 sm:$0xff]   ;;  %v15647_v61 = vld [vmem:[#allocation11 + $0xa4c] ss:$16 sps:$4 sm:$0xff]  }
 0x655   : > { %9835 = vmatprep.subr.bf16.mxu1 %v15581_v62  ;;  %v15642_v62 = vld [vmem:[#allocation11 + $0xa40] ss:$16 sps:$4 sm:$0xff]  }
 0x657   : > { %9750 = vmatpush1.bf16.msra.mxu0 %v15576_v63  ;;  %v15645_v63 = vld [vmem:[#allocation11 + $0xa48] ss:$16 sps:$4 sm:$0xff]  }
 0x658   : > { %9836 = vmatpush1.bf16.msra.mxu1 %v15579_v1  ;;  %9751 = vmatprep.subr.bf16.mxu0 %v15584_v4  ;;  %v15650_v1 = vld [vmem:[#allocation11 + $0xa64] ss:$16 sps:$4 sm:$0xff]   ;;  %v15648_v4 = vld [vmem:[#allocation11 + $0xa60] ss:$16 sps:$4 sm:$0xff]  }
 0x659   : > { %9837 = vmatprep.subr.bf16.mxu1 %v15587_v27  ;;  %v15651_v27 = vld [vmem:[#allocation11 + $0xa68] ss:$16 sps:$4 sm:$0xff]  }
 0x65b   : > { %9752 = vmatpush1.bf16.msra.mxu0 %v15582_v7  ;;  %v15656_v7 = vld [vmem:[#allocation11 + $0xa84] ss:$16 sps:$4 sm:$0xff]  }
 0x65c   : > { %9838 = vmatpush1.bf16.msra.mxu1 %v15585_v19  ;;  %9753 = vmatprep.subr.bf16.mxu0 %v15590_v38  ;;  %v15659_v19 = vld [vmem:[#allocation11 + $0xa8c] ss:$16 sps:$4 sm:$0xff]   ;;  %v15657_v38 = vld [vmem:[#allocation11 + $0xa88] ss:$16 sps:$4 sm:$0xff]  }
 0x65d   : > { %9839 = vmatprep.subr.bf16.mxu1 %v15593_v26  ;;  %v15662_v26 = vld [vmem:[#allocation11 + $0xaa4] ss:$16 sps:$4 sm:$0xff]  }
 0x65f   : > { %9754 = vmatpush1.bf16.msra.mxu0 %v15588_v9  ;;  %v15665_v9 = vld [vmem:[#allocation11 + $0xaac] ss:$16 sps:$4 sm:$0xff]  }
 0x660   : > { %9840 = vmatpush1.bf16.msra.mxu1 %v15591_v15  ;;  %9755 = vmatprep.subr.bf16.mxu0 %v15596_v5  ;;  %v15660_v15 = vld [vmem:[#allocation11 + $0xaa0] ss:$16 sps:$4 sm:$0xff]   ;;  %v15663_v5 = vld [vmem:[#allocation11 + $0xaa8] ss:$16 sps:$4 sm:$0xff]  }
 0x661   : > { %9841 = vmatprep.subr.bf16.mxu1 %v15599_v22  ;;  %v15668_v22 = vld [vmem:[#allocation11 + $0xac4] ss:$16 sps:$4 sm:$0xff]  }
 0x663   : > { %9756 = vmatpush1.bf16.msra.mxu0 %v15594_v58  ;;  %v15671_v58 = vld [vmem:[#allocation11 + $0xacc] ss:$16 sps:$4 sm:$0xff]  }
 0x664   : > { %9842 = vmatpush1.bf16.msra.mxu1 %v15597_v17  ;;  %9757 = vmatprep.subr.bf16.mxu0 %v15602_v23  ;;  %v15666_v17 = vld [vmem:[#allocation11 + $0xac0] ss:$16 sps:$4 sm:$0xff]   ;;  %v15669_v23 = vld [vmem:[#allocation11 + $0xac8] ss:$16 sps:$4 sm:$0xff]  }
 0x665   : > { %9843 = vmatprep.subr.bf16.mxu1 %v15605_v34  ;;  %v15674_v34 = vld [vmem:[#allocation11 + $0xae4] ss:$16 sps:$4 sm:$0xff]  }
 0x667   : > { %9758 = vmatpush1.bf16.msra.mxu0 %v15600_v50  ;;  %v15677_v50 = vld [vmem:[#allocation11 + $0xaec] ss:$16 sps:$4 sm:$0xff]  }
 0x668   : > { %9844 = vmatpush1.bf16.msra.mxu1 %v15603_v51  ;;  %9759 = vmatprep.subr.bf16.mxu0 %v15608_v28  ;;  %v15672_v51 = vld [vmem:[#allocation11 + $0xae0] ss:$16 sps:$4 sm:$0xff]   ;;  %v15675_v28 = vld [vmem:[#allocation11 + $0xae8] ss:$16 sps:$4 sm:$0xff]  }
 0x669   : > { %9845 = vmatprep.subr.bf16.mxu1 %v15611_v29  ;;  %v15680_v29 = vld [vmem:[#allocation11 + $0xb04] ss:$16 sps:$4 sm:$0xff]  }
 0x66b   : > { %9760 = vmatpush1.bf16.msra.mxu0 %v15606_v30  ;;  %v15683_v30 = vld [vmem:[#allocation11 + $0xb0c] ss:$16 sps:$4 sm:$0xff]  }
 0x66c   : > { %9846 = vmatpush1.bf16.msra.mxu1 %v15609_v42  ;;  %9761 = vmatprep.subr.bf16.mxu0 %v15614_v21  ;;  %v15678_v42 = vld [vmem:[#allocation11 + $0xb00] ss:$16 sps:$4 sm:$0xff]   ;;  %v15681_v21 = vld [vmem:[#allocation11 + $0xb08] ss:$16 sps:$4 sm:$0xff]  }
 0x66d   : > { %9847 = vmatprep.subr.bf16.mxu1 %v15617_v36  ;;  %v15686_v36 = vld [vmem:[#allocation11 + $0xb24] ss:$16 sps:$4 sm:$0xff]  }
 0x66f   : > { %9762 = vmatpush1.bf16.msra.mxu0 %v15612_v37  ;;  %v15689_v37 = vld [vmem:[#allocation11 + $0xb2c] ss:$16 sps:$4 sm:$0xff]  }
 0x670   : > { %9848 = vmatpush1.bf16.msra.mxu1 %v15615_v44  ;;  %9763 = vmatprep.subr.bf16.mxu0 %v15620_v39  ;;  %v15684_v44 = vld [vmem:[#allocation11 + $0xb20] ss:$16 sps:$4 sm:$0xff]   ;;  %v15687_v39 = vld [vmem:[#allocation11 + $0xb28] ss:$16 sps:$4 sm:$0xff]  }
 0x671   : > { %9849 = vmatprep.subr.bf16.mxu1 %v15623_v6  ;;  %v15692_v6 = vld [vmem:[#allocation11 + $0xb44] ss:$16 sps:$4 sm:$0xff]  }
 0x673   : > { %9764 = vmatpush1.bf16.msra.mxu0 %v15618_v59  ;;  %v15695_v59 = vld [vmem:[#allocation11 + $0xb4c] ss:$16 sps:$4 sm:$0xff]  }
 0x674   : > { %9850 = vmatpush1.bf16.msra.mxu1 %v15621_v47  ;;  %9765 = vmatprep.subr.bf16.mxu0 %v15626_v24  ;;  %v15690_v47 = vld [vmem:[#allocation11 + $0xb40] ss:$16 sps:$4 sm:$0xff]   ;;  %v15693_v24 = vld [vmem:[#allocation11 + $0xb48] ss:$16 sps:$4 sm:$0xff]  }
 0x675   : > { %9851 = vmatprep.subr.bf16.mxu1 %v15629_v43  ;;  %v15698_v43 = vld [vmem:[#allocation11 + $0xb64] ss:$16 sps:$4 sm:$0xff]  }
 0x677   : > { %9766 = vmatpush1.bf16.msra.mxu0 %v15624_v25  ;;  %v15701_v25 = vld [vmem:[#allocation11 + $0xb6c] ss:$16 sps:$4 sm:$0xff]  }
 0x678   : > { %9852 = vmatpush1.bf16.msra.mxu1 %v15627_v60  ;;  %9778 = vmatprep.subr.bf16.mxu0 %v15632_v46  ;;  %v15696_v60 = vld [vmem:[#allocation11 + $0xb60] ss:$16 sps:$4 sm:$0xff]   ;;  %v15699_v46 = vld [vmem:[#allocation11 + $0xb68] ss:$16 sps:$4 sm:$0xff]  }
 0x679   : > { %9864 = vmatprep.subr.bf16.mxu1 %v15635_v49  ;;  %v15704_v49 = vld [vmem:[#allocation11 + $0xb84] ss:$16 sps:$4 sm:$0xff]  }
 0x67a   : > { %9768 = vmatmul.mubr.bf16.vlgmr.msra.gmra.mrb[8].mxu0 %v16837_v3 }
 0x67b   : > { %9854 = vmatmul.mubr.bf16.vlgmr.msra.gmra.mrb[8].mxu1 %v16837_v3  ;;  %9779 = vmatpush1.bf16.msra.mxu0 %v15630_v32  ;;  %v15653_v3 = vld [vmem:[#allocation11 + $0xa6c] ss:$16 sps:$4 sm:$0xff]  }
 0x67c   : > { %9810 = vmatprep.mubr.bf16.mxu0 %v16844_v8  ;;  %9865 = vmatpush1.bf16.msra.mxu1 %v15633_v53  ;;  %v15707_v32 = vld [vmem:[#allocation11 + $0xb8c] ss:$16 sps:$4 sm:$0xff]   ;;  %v15702_v53 = vld [vmem:[#allocation11 + $0xb80] ss:$16 sps:$4 sm:$0xff]  }
 0x67d   : > { %9896 = vmatprep.mubr.bf16.mxu1 %v16844_v8  ;;  %9780 = vmatprep.subr.bf16.mxu0 %v15638_v55  ;;  %v15654_v8 = vld [vmem:[#allocation11 + $0xa80] ss:$16 sps:$4 sm:$0xff]   ;;  %v15705_v55 = vld [vmem:[#allocation11 + $0xb88] ss:$16 sps:$4 sm:$0xff]  }
 0x67e   : > { %9866 = vmatprep.subr.bf16.mxu1 %v15641_v48  ;;  %v15710_v48 = vld [vmem:[#allocation11 + $0xba4] ss:$16 sps:$4 sm:$0xff]  }
 0x67f   : > { %9781 = vmatpush1.bf16.msra.mxu0 %v15636_v57  ;;  %v15713_v57 = vld [vmem:[#allocation11 + $0xbac] ss:$16 sps:$4 sm:$0xff]  }
 0x680   : > { %9867 = vmatpush1.bf16.msra.mxu1 %v15639_v54  ;;  %9782 = vmatprep.subr.bf16.mxu0 %v15644_v56  ;;  %v15708_v54 = vld [vmem:[#allocation11 + $0xba0] ss:$16 sps:$4 sm:$0xff]   ;;  %v15711_v56 = vld [vmem:[#allocation11 + $0xba8] ss:$16 sps:$4 sm:$0xff]  }
 0x681   : > { %9868 = vmatprep.subr.bf16.mxu1 %v15647_v61  ;;  %v15716_v61 = vld [vmem:[#allocation11 + $0xbc4] ss:$16 sps:$4 sm:$0xff]  }
 0x683   : > { %9783 = vmatpush1.bf16.msra.mxu0 %v15642_v62  ;;  %v15719_v62 = vld [vmem:[#allocation11 + $0xbcc] ss:$16 sps:$4 sm:$0xff]  }
 0x684   : > { %9869 = vmatpush1.bf16.msra.mxu1 %v15645_v63  ;;  %9784 = vmatprep.subr.bf16.mxu0 %v15650_v1  ;;  %v15714_v63 = vld [vmem:[#allocation11 + $0xbc0] ss:$16 sps:$4 sm:$0xff]   ;;  %v10082_v1 = vshrl.u32 %v16849_v0, 16 }
 0x685   : > { %9870 = vmatprep.subr.bf16.mxu1 %v15653_v3  ;;  %v10085_v3 = vshll.u32 %v16849_v0, 16  ;;  %v15731_v0 = vld [vmem:[#allocation11 + $0xc0c] ss:$16 sps:$4 sm:$0xff]  }
 0x687   : > { %9785 = vmatpush1.bf16.msra.mxu0 %v15648_v4  ;;  %v15717_v4 = vld [vmem:[#allocation11 + $0xbc8] ss:$16 sps:$4 sm:$0xff]  }
 0x688   : > { %9871 = vmatpush1.bf16.msra.mxu1 %v15651_v27  ;;  %9786 = vmatprep.subr.bf16.mxu0 %v15656_v7  ;;  %v15722_v27 = vld [vmem:[#allocation11 + $0xbe4] ss:$16 sps:$4 sm:$0xff]   ;;  %v15725_v7 = vld [vmem:[#allocation11 + $0xbec] ss:$16 sps:$4 sm:$0xff]  }
 0x689   : > { %9872 = vmatprep.subr.bf16.mxu1 %v15659_v19  ;;  %v10074_v19 = vshrl.u32 %v16813_v31, 16 }
 0x68b   : > { %9787 = vmatpush1.bf16.msra.mxu0 %v15654_v8  ;;  %v10077_v8 = vshll.u32 %v16813_v31, 16 }
 0x68c   : > { %9873 = vmatpush1.bf16.msra.mxu1 %v15657_v38  ;;  %9788 = vmatprep.subr.bf16.mxu0 %v15662_v26  ;;  %v15720_v38 = vld [vmem:[#allocation11 + $0xbe0] ss:$16 sps:$4 sm:$0xff]   ;;  %v10084_v26 = vrot.slane %v10082_v1, 1 }
 0x68d   : > { %9874 = vmatprep.subr.bf16.mxu1 %v15665_v9  ;;  %v10087_v9 = vrot.slane %v10085_v3, 2  ;;  %v15775_v1 = vld [vmem:[#allocation11 + $0xd00] ss:$16 sps:$4 sm:$0xff]   ;;  %v15778_v3 = vld [vmem:[#allocation11 + $0xd08] ss:$16 sps:$4 sm:$0xff]  }
 0x68f   : > { %9789 = vmatpush1.bf16.msra.mxu0 %v15660_v15  ;;  %v15723_v15 = vld [vmem:[#allocation11 + $0xbe8] ss:$16 sps:$4 sm:$0xff]  }
 0x690   : > { %9875 = vmatpush1.bf16.msra.mxu1 %v15663_v5  ;;  %9790 = vmatprep.subr.bf16.mxu0 %v15668_v22  ;;  %v15728_v5 = vld [vmem:[#allocation11 + $0xc04] ss:$16 sps:$4 sm:$0xff]   ;;  %v10076_v22 = vrot.slane %v10074_v19, 1  ;;  %v15784_v19 = vld [vmem:[#allocation11 + $0xd28] ss:$16 sps:$4 sm:$0xff]  }
 0x691   : > { %9876 = vmatprep.subr.bf16.mxu1 %v15671_v58  ;;  %v10079_v58 = vrot.slane %v10077_v8, 2  ;;  %v15789_v8 = vld [vmem:[#allocation11 + $0xd44] ss:$16 sps:$4 sm:$0xff]  }
 0x693   : > { %9791 = vmatpush1.bf16.msra.mxu0 %v15666_v17  ;;  %v15726_v17 = vld [vmem:[#allocation11 + $0xc00] ss:$16 sps:$4 sm:$0xff]   ;;  %v10080_v31 = vor.u32 %v10079_v58, %v10076_v22  ;;  %v15796_v22 = vld [vmem:[#allocation11 + $0xd68] ss:$16 sps:$4 sm:$0xff]   ;;  %v15801_v58 = vld [vmem:[#allocation11 + $0xd84] ss:$16 sps:$4 sm:$0xff]  }
 0x694   : > { %9877 = vmatpush1.bf16.msra.mxu1 %v15669_v23  ;;  %9792 = vmatprep.subr.bf16.mxu0 %v15674_v34  ;;  %v10088_v23 = vor.u32 %v10087_v9, %v10084_v26  ;;  %v15729_v34 = vld [vmem:[#allocation11 + $0xc08] ss:$16 sps:$4 sm:$0xff]   ;;  %v15787_v26 = vld [vmem:[#allocation11 + $0xd40] ss:$16 sps:$4 sm:$0xff]  }
 0x695   : > { %9878 = vmatprep.subr.bf16.mxu1 %v15677_v50  ;;  %v15735_v50 = vld [vmem:[#allocation11 + $0xc24] ss:$16 sps:$4 sm:$0xff]   ;;  %v15790_v9 = vld [vmem:[#allocation11 + $0xd48] ss:$16 sps:$4 sm:$0xff]  }
 0x697   : > { %9793 = vmatpush1.bf16.msra.mxu0 %v15672_v51  ;;  %v15738_v51 = vld [vmem:[#allocation11 + $0xc2c] ss:$16 sps:$4 sm:$0xff]  }
 0x698   : > { %9879 = vmatpush1.bf16.msra.mxu1 %v15675_v28  ;;  %9794 = vmatprep.subr.bf16.mxu0 %v15680_v29  ;;  %v10089_v28 = vsel %vm1273_vm2, %v10080_v31, %v10088_v23  ;;  %v15733_v29 = vld [vmem:[#allocation11 + $0xc20] ss:$16 sps:$4 sm:$0xff]   ;;  %v15807_v31 = vld [vmem:[#allocation11 + $0xda4] ss:$16 sps:$4 sm:$0xff]  }
 0x699   : > { %9880 = vmatprep.subr.bf16.mxu1 %v15683_v30  ;;  %v15736_v30 = vld [vmem:[#allocation11 + $0xc28] ss:$16 sps:$4 sm:$0xff]   ;;  %v15799_v23 = vld [vmem:[#allocation11 + $0xd80] ss:$16 sps:$4 sm:$0xff]  }
 0x69b   : > { %9795 = vmatpush1.bf16.msra.mxu0 %v15678_v42  ;;  %v15741_v42 = vld [vmem:[#allocation11 + $0xc44] ss:$16 sps:$4 sm:$0xff]  }
 0x69c   : > { %9881 = vmatpush1.bf16.msra.mxu1 %v15681_v21  ;;  %9796 = vmatprep.subr.bf16.mxu0 %v15686_v36  ;;  %v15744_v21 = vld [vmem:[#allocation11 + $0xc4c] ss:$16 sps:$4 sm:$0xff]   ;;  %v15739_v36 = vld [vmem:[#allocation11 + $0xc40] ss:$16 sps:$4 sm:$0xff]  }
 0x69d   : > { %9882 = vmatprep.subr.bf16.mxu1 %v15689_v37  ;;  %v15742_v37 = vld [vmem:[#allocation11 + $0xc48] ss:$16 sps:$4 sm:$0xff]  }
 0x69f   : > { %9797 = vmatpush1.bf16.msra.mxu0 %v15684_v44  ;;  %v15747_v44 = vld [vmem:[#allocation11 + $0xc64] ss:$16 sps:$4 sm:$0xff]  }
 0x6a0   : > { %9883 = vmatpush1.bf16.msra.mxu1 %v15687_v39  ;;  %9798 = vmatprep.subr.bf16.mxu0 %v15692_v6  ;;  %v15745_v39 = vld [vmem:[#allocation11 + $0xc60] ss:$16 sps:$4 sm:$0xff]   ;;  %v15748_v6 = vld [vmem:[#allocation11 + $0xc68] ss:$16 sps:$4 sm:$0xff]  }
 0x6a1   : > { %9884 = vmatprep.subr.bf16.mxu1 %v15695_v59  ;;  %v15753_v59 = vld [vmem:[#allocation11 + $0xc84] ss:$16 sps:$4 sm:$0xff]  }
 0x6a3   : > { %9799 = vmatpush1.bf16.msra.mxu0 %v15690_v47  ;;  %v15756_v47 = vld [vmem:[#allocation11 + $0xc8c] ss:$16 sps:$4 sm:$0xff]  }
 0x6a4   : > { %9885 = vmatpush1.bf16.msra.mxu1 %v15693_v24  ;;  %9800 = vmatprep.subr.bf16.mxu0 %v15698_v43  ;;  %v15751_v24 = vld [vmem:[#allocation11 + $0xc80] ss:$16 sps:$4 sm:$0xff]   ;;  %v15754_v43 = vld [vmem:[#allocation11 + $0xc88] ss:$16 sps:$4 sm:$0xff]  }
 0x6a5   : > { %9886 = vmatprep.subr.bf16.mxu1 %v15701_v25  ;;  %v15759_v25 = vld [vmem:[#allocation11 + $0xca4] ss:$16 sps:$4 sm:$0xff]  }
 0x6a7   : > { %9801 = vmatpush1.bf16.msra.mxu0 %v15696_v60  ;;  %v15762_v60 = vld [vmem:[#allocation11 + $0xcac] ss:$16 sps:$4 sm:$0xff]  }
 0x6a8   : > { %9887 = vmatpush1.bf16.msra.mxu1 %v15699_v46  ;;  %9802 = vmatprep.subr.bf16.mxu0 %v15704_v49  ;;  %v15757_v46 = vld [vmem:[#allocation11 + $0xca0] ss:$16 sps:$4 sm:$0xff]   ;;  %v15760_v49 = vld [vmem:[#allocation11 + $0xca8] ss:$16 sps:$4 sm:$0xff]  }
 0x6a9   : > { %9888 = vmatprep.subr.bf16.mxu1 %v15707_v32  ;;  %v15765_v32 = vld [vmem:[#allocation11 + $0xcc4] ss:$16 sps:$4 sm:$0xff]  }
 0x6ab   : > { %9803 = vmatpush1.bf16.msra.mxu0 %v15702_v53  ;;  %v15768_v53 = vld [vmem:[#allocation11 + $0xccc] ss:$16 sps:$4 sm:$0xff]  }
 0x6ac   : > { %9889 = vmatpush1.bf16.msra.mxu1 %v15705_v55  ;;  %9804 = vmatprep.subr.bf16.mxu0 %v15710_v48  ;;  %v15763_v55 = vld [vmem:[#allocation11 + $0xcc0] ss:$16 sps:$4 sm:$0xff]   ;;  %v15766_v48 = vld [vmem:[#allocation11 + $0xcc8] ss:$16 sps:$4 sm:$0xff]  }
 0x6ad   : > { %9890 = vmatprep.subr.bf16.mxu1 %v15713_v57  ;;  %v15771_v57 = vld [vmem:[#allocation11 + $0xce4] ss:$16 sps:$4 sm:$0xff]  }
 0x6af   : > { %9805 = vmatpush1.bf16.msra.mxu0 %v15708_v54  ;;  %v15774_v54 = vld [vmem:[#allocation11 + $0xcec] ss:$16 sps:$4 sm:$0xff]  }
 0x6b0   : > { %9891 = vmatpush1.bf16.msra.mxu1 %v15711_v56  ;;  %9806 = vmatprep.subr.bf16.mxu0 %v15716_v61  ;;  %v15769_v56 = vld [vmem:[#allocation11 + $0xce0] ss:$16 sps:$4 sm:$0xff]   ;;  %v15772_v61 = vld [vmem:[#allocation11 + $0xce8] ss:$16 sps:$4 sm:$0xff]  }
 0x6b1   : > { %9892 = vmatprep.subr.bf16.mxu1 %v15719_v62  ;;  %v15777_v62 = vld [vmem:[#allocation11 + $0xd04] ss:$16 sps:$4 sm:$0xff]  }
 0x6b3   : > { %9807 = vmatpush1.bf16.msra.mxu0 %v15714_v63  ;;  %v15780_v63 = vld [vmem:[#allocation11 + $0xd0c] ss:$16 sps:$4 sm:$0xff]  }
 0x6b4   : > { %9893 = vmatpush1.bf16.msra.mxu1 %v15717_v4  ;;  %9808 = vmatprep.subr.bf16.mxu0 %v15722_v27  ;;  %v15783_v4 = vld [vmem:[#allocation11 + $0xd24] ss:$16 sps:$4 sm:$0xff]   ;;  %v15786_v27 = vld [vmem:[#allocation11 + $0xd2c] ss:$16 sps:$4 sm:$0xff]  }
 0x6b5   : > { %9894 = vmatprep.subr.bf16.mxu1 %v15725_v7  ;;  %v15781_v7 = vld [vmem:[#allocation11 + $0xd20] ss:$16 sps:$4 sm:$0xff]  }
 0x6b7   : > { %9809 = vmatpush1.bf16.msra.mxu0 %v15720_v38  ;;  %v15792_v38 = vld [vmem:[#allocation11 + $0xd4c] ss:$16 sps:$4 sm:$0xff]  }
 0x6b8   : > { %9895 = vmatpush1.bf16.msra.mxu1 %v15723_v15  ;;  %10768 = vmatprep.subr.bf16.mxu0 %v15728_v5  ;;  %v15795_v15 = vld [vmem:[#allocation11 + $0xd64] ss:$16 sps:$4 sm:$0xff]   ;;  %v15798_v5 = vld [vmem:[#allocation11 + $0xd6c] ss:$16 sps:$4 sm:$0xff]  }
 0x6b9   : > { %10854 = vmatprep.subr.bf16.mxu1 %v15731_v0  ;;  %v15793_v0 = vld [vmem:[#allocation11 + $0xd60] ss:$16 sps:$4 sm:$0xff]  }
 0x6ba   : > { %9811 = vmatmul.mubr.bf16.vlgmr.msra.gmra.mrb[8].mxu0 %v16847_v20 }
 0x6bb   : > { %9897 = vmatmul.mubr.bf16.vlgmr.msra.gmra.mrb[8].mxu1 %v16847_v20  ;;  %10769 = vmatpush1.bf16.msra.mxu0 %v15726_v17  ;;  %v15750_v20 = vld [vmem:[#allocation11 + $0xc6c] ss:$16 sps:$4 sm:$0xff]  }
 0x6bc   : > { %10800 = vmatprep.mubr.bf16.mxu0 %v10089_v28  ;;  %10855 = vmatpush1.bf16.msra.mxu1 %v15729_v34  ;;  %v15804_v17 = vld [vmem:[#allocation11 + $0xd8c] ss:$16 sps:$4 sm:$0xff]   ;;  %v15802_v34 = vld [vmem:[#allocation11 + $0xd88] ss:$16 sps:$4 sm:$0xff]  }
 0x6bd   : > { %10886 = vmatprep.mubr.bf16.mxu1 %v10089_v28  ;;  %10770 = vmatprep.subr.bf16.mxu0 %v15735_v50  ;;  %v15810_v50 = vld [vmem:[#allocation11 + $0xdac] ss:$16 sps:$4 sm:$0xff]   ;;  %v15808_v28 = vld [vmem:[#allocation11 + $0xda8] ss:$16 sps:$4 sm:$0xff]  }
 0x6be   : > { %10856 = vmatprep.subr.bf16.mxu1 %v15738_v51  ;;  %v15805_v51 = vld [vmem:[#allocation11 + $0xda0] ss:$16 sps:$4 sm:$0xff]  }
 0x6bf   : > { %10771 = vmatpush1.bf16.msra.mxu0 %v15733_v29  ;;  %v15813_v29 = vld [vmem:[#allocation11 + $0xdc4] ss:$16 sps:$4 sm:$0xff]  }
 0x6c0   : > { %10857 = vmatpush1.bf16.msra.mxu1 %v15736_v30  ;;  %10772 = vmatprep.subr.bf16.mxu0 %v15741_v42  ;;  %v15816_v30 = vld [vmem:[#allocation11 + $0xdcc] ss:$16 sps:$4 sm:$0xff]   ;;  %v10065_v42 = vshrl.u32 %v16852_v40, 16 }
 0x6c1   : > { %10858 = vmatprep.subr.bf16.mxu1 %v15744_v21  ;;  %v10068_v21 = vshll.u32 %v16852_v40, 16  ;;  %v10108_v40 = vshrl.u32 %v16821_v41, 16 }
 0x6c3   : > { %10773 = vmatpush1.bf16.msra.mxu0 %v15739_v36  ;;  %v15811_v36 = vld [vmem:[#allocation11 + $0xdc0] ss:$16 sps:$4 sm:$0xff]  }
 0x6c4   : > { %10859 = vmatpush1.bf16.msra.mxu1 %v15742_v37  ;;  %10774 = vmatprep.subr.bf16.mxu0 %v15747_v44  ;;  %v10057_v37 = vshrl.u32 %v16816_v33, 16  ;;  %v10060_v44 = vshll.u32 %v16816_v33, 16 }
 0x6c5   : > { %10860 = vmatprep.subr.bf16.mxu1 %v15750_v20  ;;  %v10116_v20 = vshrl.u32 %v16855_v45, 16 }
 0x6c6   : > { %v10062_v33 = vrot.slane %v10060_v44, 2  ;;  %v15867_v44 = vld [vmem:[#allocation11 + $0xee0] ss:$16 sps:$4 sm:$0xff]  }
 0x6c7   : > { %10775 = vmatpush1.bf16.msra.mxu0 %v15745_v39  ;;  %v10119_v39 = vshll.u32 %v16855_v45, 16  ;;  %v15820_v45 = vld [vmem:[#allocation11 + $0xde8] ss:$16 sps:$4 sm:$0xff]  }
 0x6c8   : > { %10861 = vmatpush1.bf16.msra.mxu1 %v15748_v6  ;;  %10776 = vmatprep.subr.bf16.mxu0 %v15753_v59  ;;  %v15814_v6 = vld [vmem:[#allocation11 + $0xdc8] ss:$16 sps:$4 sm:$0xff]   ;;  %v15819_v59 = vld [vmem:[#allocation11 + $0xde4] ss:$16 sps:$4 sm:$0xff]  }
 0x6c9   : > { %10862 = vmatprep.subr.bf16.mxu1 %v15756_v47  ;;  %v15822_v47 = vld [vmem:[#allocation11 + $0xdec] ss:$16 sps:$4 sm:$0xff]  }
 0x6cb   : > { %10777 = vmatpush1.bf16.msra.mxu0 %v15751_v24  ;;  %v10067_v24 = vrot.slane %v10065_v42, 1  ;;  %v15861_v42 = vld [vmem:[#allocation11 + $0xec0] ss:$16 sps:$4 sm:$0xff]  }
 0x6cc   : > { %10863 = vmatpush1.bf16.msra.mxu1 %v15754_v43  ;;  %10778 = vmatprep.subr.bf16.mxu0 %v15759_v25  ;;  %v10070_v43 = vrot.slane %v10068_v21, 2  ;;  %v10111_v25 = vshll.u32 %v16821_v41, 16  ;;  %v15827_v41 = vld [vmem:[#allocation11 + $0xe08] ss:$16 sps:$4 sm:$0xff]  }
 0x6cd   : > { %10864 = vmatprep.subr.bf16.mxu1 %v15762_v60  ;;  %v15817_v60 = vld [vmem:[#allocation11 + $0xde0] ss:$16 sps:$4 sm:$0xff]   ;;  %v15864_v21 = vld [vmem:[#allocation11 + $0xec8] ss:$16 sps:$4 sm:$0xff]  }
 0x6cf   : > { %10779 = vmatpush1.bf16.msra.mxu0 %v15757_v46  ;;  %v10059_v46 = vrot.slane %v10057_v37, 1  ;;  %v15872_v37 = vld [vmem:[#allocation11 + $0xeec] ss:$16 sps:$4 sm:$0xff]  }
 0x6d0   : > { %10865 = vmatpush1.bf16.msra.mxu1 %v15760_v49  ;;  %10780 = vmatprep.subr.bf16.mxu0 %v15765_v32  ;;  %v10118_v49 = vrot.slane %v10116_v20, 1  ;;  %v10121_v32 = vrot.slane %v10119_v39, 2  ;;  %v15870_v20 = vld [vmem:[#allocation11 + $0xee8] ss:$16 sps:$4 sm:$0xff]   ;;  %v15875_v39 = vld [vmem:[#allocation11 + $0xf04] ss:$16 sps:$4 sm:$0xff]  }
 0x6d1   : > { %10866 = vmatprep.subr.bf16.mxu1 %v15768_v53  ;;  %v15826_v53 = vld [vmem:[#allocation11 + $0xe04] ss:$16 sps:$4 sm:$0xff]  }
 0x6d3   : > { %10781 = vmatpush1.bf16.msra.mxu0 %v15763_v55  ;;  %v10071_v55 = vor.u32 %v10070_v43, %v10067_v24  ;;  %v15881_v24 = vld [vmem:[#allocation11 + $0xf24] ss:$16 sps:$4 sm:$0xff]   ;;  %v15884_v43 = vld [vmem:[#allocation11 + $0xf2c] ss:$16 sps:$4 sm:$0xff]  }
 0x6d4   : > { %10867 = vmatpush1.bf16.msra.mxu1 %v15766_v48  ;;  %10782 = vmatprep.subr.bf16.mxu0 %v15771_v57  ;;  %v15829_v48 = vld [vmem:[#allocation11 + $0xe0c] ss:$16 sps:$4 sm:$0xff]   ;;  %v10110_v57 = vrot.slane %v10108_v40, 1  ;;  %v15879_v40 = vld [vmem:[#allocation11 + $0xf20] ss:$16 sps:$4 sm:$0xff]  }
 0x6d5   : > { %10868 = vmatprep.subr.bf16.mxu1 %v15774_v54  ;;  %v10113_v54 = vrot.slane %v10111_v25, 2  ;;  %v15882_v25 = vld [vmem:[#allocation11 + $0xf28] ss:$16 sps:$4 sm:$0xff]  }
 0x6d7   : > { %10783 = vmatpush1.bf16.msra.mxu0 %v15769_v56  ;;  %v10063_v56 = vor.u32 %v10062_v33, %v10059_v46  ;;  %v15890_v46 = vld [vmem:[#allocation11 + $0xf4c] ss:$16 sps:$4 sm:$0xff]   ;;  %v15885_v33 = vld [vmem:[#allocation11 + $0xf40] ss:$16 sps:$4 sm:$0xff]  }
 0x6d8   : > { %10869 = vmatpush1.bf16.msra.mxu1 %v15772_v61  ;;  %10784 = vmatprep.subr.bf16.mxu0 %v15777_v62  ;;  %v15824_v61 = vld [vmem:[#allocation11 + $0xe00] ss:$16 sps:$4 sm:$0xff]   ;;  %v10122_v62 = vor.u32 %v10121_v32, %v10118_v49  ;;  %v15888_v49 = vld [vmem:[#allocation11 + $0xf48] ss:$16 sps:$4 sm:$0xff]   ;;  %v15893_v32 = vld [vmem:[#allocation11 + $0xf64] ss:$16 sps:$4 sm:$0xff]  }
 0x6d9   : > { %10870 = vmatprep.subr.bf16.mxu1 %v15780_v63  ;;  %v10072_v63 = vsel %vm1273_vm2, %v10063_v56, %v10071_v55  ;;  %v15894_v55 = vld [vmem:[#allocation11 + $0xf68] ss:$16 sps:$4 sm:$0xff]  }
 0x6da   : > { %v15900_v56 = vld [vmem:[#allocation11 + $0xf88] ss:$16 sps:$4 sm:$0xff]  }
 0x6db   : > { %10785 = vmatpush1.bf16.msra.mxu0 %v15775_v1  ;;  %v10114_v1 = vor.u32 %v10113_v54, %v10110_v57  ;;  %v15902_v57 = vld [vmem:[#allocation11 + $0xf8c] ss:$16 sps:$4 sm:$0xff]   ;;  %v15897_v54 = vld [vmem:[#allocation11 + $0xf80] ss:$16 sps:$4 sm:$0xff]  }
 0x6dc   : > { %10871 = vmatpush1.bf16.msra.mxu1 %v15778_v3  ;;  %10786 = vmatprep.subr.bf16.mxu0 %v15783_v4  ;;  %v15833_v3 = vld [vmem:[#allocation11 + $0xe24] ss:$16 sps:$4 sm:$0xff]   ;;  %v15836_v4 = vld [vmem:[#allocation11 + $0xe2c] ss:$16 sps:$4 sm:$0xff]  }
 0x6dd   : > { %10872 = vmatprep.subr.bf16.mxu1 %v15786_v27  ;;  %v10123_v27 = vsel %vm1273_vm2, %v10114_v1, %v10122_v62  ;;  %v15908_v62 = vld [vmem:[#allocation11 + $0xfac] ss:$16 sps:$4 sm:$0xff]   ;;  %v15911_v1 = vld [vmem:[#allocation11 + $0xfc4] ss:$16 sps:$4 sm:$0xff]  }
 0x6df   : > { %10787 = vmatpush1.bf16.msra.mxu0 %v15781_v7  ;;  %v15831_v7 = vld [vmem:[#allocation11 + $0xe20] ss:$16 sps:$4 sm:$0xff]  }
 0x6e0   : > { %10873 = vmatpush1.bf16.msra.mxu1 %v15784_v19  ;;  %10788 = vmatprep.subr.bf16.mxu0 %v15789_v8  ;;  %v15834_v19 = vld [vmem:[#allocation11 + $0xe28] ss:$16 sps:$4 sm:$0xff]   ;;  %v15839_v8 = vld [vmem:[#allocation11 + $0xe44] ss:$16 sps:$4 sm:$0xff]  }
 0x6e1   : > { %10874 = vmatprep.subr.bf16.mxu1 %v15792_v38  ;;  %v15842_v38 = vld [vmem:[#allocation11 + $0xe4c] ss:$16 sps:$4 sm:$0xff]  }
 0x6e3   : > { %10789 = vmatpush1.bf16.msra.mxu0 %v15787_v26  ;;  %v15837_v26 = vld [vmem:[#allocation11 + $0xe40] ss:$16 sps:$4 sm:$0xff]  }
 0x6e4   : > { %10875 = vmatpush1.bf16.msra.mxu1 %v15790_v9  ;;  %10790 = vmatprep.subr.bf16.mxu0 %v15795_v15  ;;  %v15840_v9 = vld [vmem:[#allocation11 + $0xe48] ss:$16 sps:$4 sm:$0xff]   ;;  %v15845_v15 = vld [vmem:[#allocation11 + $0xe64] ss:$16 sps:$4 sm:$0xff]  }
 0x6e5   : > { %10876 = vmatprep.subr.bf16.mxu1 %v15798_v5  ;;  %v15848_v5 = vld [vmem:[#allocation11 + $0xe6c] ss:$16 sps:$4 sm:$0xff]  }
 0x6e7   : > { %10791 = vmatpush1.bf16.msra.mxu0 %v15793_v0  ;;  %v15843_v0 = vld [vmem:[#allocation11 + $0xe60] ss:$16 sps:$4 sm:$0xff]  }
 0x6e8   : > { %10877 = vmatpush1.bf16.msra.mxu1 %v15796_v22  ;;  %10792 = vmatprep.subr.bf16.mxu0 %v15801_v58  ;;  %v15846_v22 = vld [vmem:[#allocation11 + $0xe68] ss:$16 sps:$4 sm:$0xff]   ;;  %v15851_v58 = vld [vmem:[#allocation11 + $0xe84] ss:$16 sps:$4 sm:$0xff]  }
 0x6e9   : > { %10878 = vmatprep.subr.bf16.mxu1 %v15804_v17  ;;  %v15854_v17 = vld [vmem:[#allocation11 + $0xe8c] ss:$16 sps:$4 sm:$0xff]  }
 0x6eb   : > { %10793 = vmatpush1.bf16.msra.mxu0 %v15799_v23  ;;  %v15849_v23 = vld [vmem:[#allocation11 + $0xe80] ss:$16 sps:$4 sm:$0xff]  }
 0x6ec   : > { %10879 = vmatpush1.bf16.msra.mxu1 %v15802_v34  ;;  %10794 = vmatprep.subr.bf16.mxu0 %v15807_v31  ;;  %v15852_v34 = vld [vmem:[#allocation11 + $0xe88] ss:$16 sps:$4 sm:$0xff]   ;;  %v15857_v31 = vld [vmem:[#allocation11 + $0xea4] ss:$16 sps:$4 sm:$0xff]  }
 0x6ed   : > { %10880 = vmatprep.subr.bf16.mxu1 %v15810_v50  ;;  %v15860_v50 = vld [vmem:[#allocation11 + $0xeac] ss:$16 sps:$4 sm:$0xff]  }
 0x6ef   : > { %10795 = vmatpush1.bf16.msra.mxu0 %v15805_v51  ;;  %v15855_v51 = vld [vmem:[#allocation11 + $0xea0] ss:$16 sps:$4 sm:$0xff]  }
 0x6f0   : > { %10881 = vmatpush1.bf16.msra.mxu1 %v15808_v28  ;;  %10796 = vmatprep.subr.bf16.mxu0 %v15813_v29  ;;  %v15858_v28 = vld [vmem:[#allocation11 + $0xea8] ss:$16 sps:$4 sm:$0xff]   ;;  %v15863_v29 = vld [vmem:[#allocation11 + $0xec4] ss:$16 sps:$4 sm:$0xff]  }
 0x6f1   : > { %10882 = vmatprep.subr.bf16.mxu1 %v15816_v30  ;;  %v15866_v30 = vld [vmem:[#allocation11 + $0xecc] ss:$16 sps:$4 sm:$0xff]  }
 0x6f3   : > { %10797 = vmatpush1.bf16.msra.mxu0 %v15811_v36  ;;  %v15869_v36 = vld [vmem:[#allocation11 + $0xee4] ss:$16 sps:$4 sm:$0xff]  }
 0x6f4   : > { %10883 = vmatpush1.bf16.msra.mxu1 %v15814_v6  ;;  %10798 = vmatprep.subr.bf16.mxu0 %v15819_v59  ;;  %v15878_v6 = vld [vmem:[#allocation11 + $0xf0c] ss:$16 sps:$4 sm:$0xff]   ;;  %v15873_v59 = vld [vmem:[#allocation11 + $0xf00] ss:$16 sps:$4 sm:$0xff]  }
 0x6f5   : > { %10884 = vmatprep.subr.bf16.mxu1 %v15822_v47  ;;  %v15876_v47 = vld [vmem:[#allocation11 + $0xf08] ss:$16 sps:$4 sm:$0xff]  }
 0x6f7   : > { %10799 = vmatpush1.bf16.msra.mxu0 %v15817_v60  ;;  %v15887_v60 = vld [vmem:[#allocation11 + $0xf44] ss:$16 sps:$4 sm:$0xff]  }
 0x6f8   : > { %10885 = vmatpush1.bf16.msra.mxu1 %v15820_v45  ;;  %10811 = vmatprep.subr.bf16.mxu0 %v15826_v53  ;;  %v15896_v45 = vld [vmem:[#allocation11 + $0xf6c] ss:$16 sps:$4 sm:$0xff]   ;;  %v15891_v53 = vld [vmem:[#allocation11 + $0xf60] ss:$16 sps:$4 sm:$0xff]  }
 0x6f9   : > { %10897 = vmatprep.subr.bf16.mxu1 %v15829_v48  ;;  %v15899_v48 = vld [vmem:[#allocation11 + $0xf84] ss:$16 sps:$4 sm:$0xff]  }
 0x6fa   : > { %10801 = vmatmul.mubr.bf16.vlgmr.msra.gmra.mrb[8].mxu0 %v10072_v63 }
 0x6fb   : > { %10887 = vmatmul.mubr.bf16.vlgmr.msra.gmra.mrb[8].mxu1 %v10072_v63  ;;  %10812 = vmatpush1.bf16.msra.mxu0 %v15824_v61  ;;  %v15905_v61 = vld [vmem:[#allocation11 + $0xfa4] ss:$16 sps:$4 sm:$0xff]   ;;  %v15906_v63 = vld [vmem:[#allocation11 + $0xfa8] ss:$16 sps:$4 sm:$0xff]  }
 0x6fc   : > { %10843 = vmatprep.mubr.bf16.mxu0 %v10123_v27  ;;  %10898 = vmatpush1.bf16.msra.mxu1 %v15827_v41  ;;  %v15903_v41 = vld [vmem:[#allocation11 + $0xfa0] ss:$16 sps:$4 sm:$0xff]  }
 0x6fd   : > { %10929 = vmatprep.mubr.bf16.mxu1 %v10123_v27  ;;  %10813 = vmatprep.subr.bf16.mxu0 %v15833_v3  ;;  %v15914_v3 = vld [vmem:[#allocation11 + $0xfcc] ss:$16 sps:$4 sm:$0xff]   ;;  %v10102_v27 = vshll.u32 %v16859_v18, 16 }
 0x6fe   : > { %10899 = vmatprep.subr.bf16.mxu1 %v15836_v4  ;;  %v10099_v4 = vshrl.u32 %v16859_v18, 16  ;;  %v15918_v18 = vld [vmem:[#allocation11 + $0xfe8] ss:$16 sps:$4 sm:$0xff]  }
 0x6ff   : > { %10814 = vmatpush1.bf16.msra.mxu0 %v15831_v7  ;;  %v15909_v7 = vld [vmem:[#allocation11 + $0xfc0] ss:$16 sps:$4 sm:$0xff]  }
 0x700   : > { %10900 = vmatpush1.bf16.msra.mxu1 %v15834_v19  ;;  %10815 = vmatprep.subr.bf16.mxu0 %v15839_v8  ;;  %v10091_v19 = vshrl.u32 %v16824_v52, 16  ;;  %v10094_v8 = vshll.u32 %v16824_v52, 16 }
 0x701   : > { %10901 = vmatprep.subr.bf16.mxu1 %v15842_v38  ;;  %v15912_v38 = vld [vmem:[#allocation11 + $0xfc8] ss:$16 sps:$4 sm:$0xff]  }
 0x703   : > { %10816 = vmatpush1.bf16.msra.mxu0 %v15837_v26  ;;  %v15917_v26 = vld [vmem:[#allocation11 + $0xfe4] ss:$16 sps:$4 sm:$0xff]  }
 0x704   : > { %10902 = vmatpush1.bf16.msra.mxu1 %v15840_v9  ;;  %10817 = vmatprep.subr.bf16.mxu0 %v15845_v15  ;;  %v15920_v9 = vld [vmem:[#allocation11 + $0xfec] ss:$16 sps:$4 sm:$0xff]   ;;  %v10101_v15 = vrot.slane %v10099_v4, 1  ;;  %v15984_v4 = vld [vmem:[#allocation11 + $0x1144] ss:$16 sps:$4 sm:$0xff]  }
 0x705   : > { %10903 = vmatprep.subr.bf16.mxu1 %v15848_v5  ;;  %v10104_v5 = vrot.slane %v10102_v27, 2  ;;  %v15987_v27 = vld [vmem:[#allocation11 + $0x114c] ss:$16 sps:$4 sm:$0xff]  }
 0x707   : > { %10818 = vmatpush1.bf16.msra.mxu0 %v15843_v0  ;;  %v15915_v0 = vld [vmem:[#allocation11 + $0xfe0] ss:$16 sps:$4 sm:$0xff]  }
 0x708   : > { %10904 = vmatpush1.bf16.msra.mxu1 %v15846_v22  ;;  %10819 = vmatprep.subr.bf16.mxu0 %v15851_v58  ;;  %v10093_v22 = vrot.slane %v10091_v19, 1  ;;  %v10096_v58 = vrot.slane %v10094_v8, 2  ;;  %v15985_v19 = vld [vmem:[#allocation11 + $0x1148] ss:$16 sps:$4 sm:$0xff]   ;;  %v15990_v8 = vld [vmem:[#allocation11 + $0x1164] ss:$16 sps:$4 sm:$0xff]  }
 0x709   : > { %10905 = vmatprep.subr.bf16.mxu1 %v15854_v17  ;;  %v15924_v17 = vld [vmem:[#allocation11 + $0x1004] ss:$16 sps:$4 sm:$0xff]  }
 0x70a   : > { %v10097_v52 = vor.u32 %v10096_v58, %v10093_v22  ;;  %v15997_v22 = vld [vmem:[#allocation11 + $0x1188] ss:$16 sps:$4 sm:$0xff]   ;;  %v16002_v58 = vld [vmem:[#allocation11 + $0x11a4] ss:$16 sps:$4 sm:$0xff]  }
 0x70b   : > { %10820 = vmatpush1.bf16.msra.mxu0 %v15849_v23  ;;  %v10105_v23 = vor.u32 %v10104_v5, %v10101_v15  ;;  %v15996_v15 = vld [vmem:[#allocation11 + $0x1184] ss:$16 sps:$4 sm:$0xff]   ;;  %v15999_v5 = vld [vmem:[#allocation11 + $0x118c] ss:$16 sps:$4 sm:$0xff]  }
 0x70c   : > { %10906 = vmatpush1.bf16.msra.mxu1 %v15852_v34  ;;  %10821 = vmatprep.subr.bf16.mxu0 %v15857_v31  ;;  %v15927_v34 = vld [vmem:[#allocation11 + $0x100c] ss:$16 sps:$4 sm:$0xff]   ;;  %v15922_v31 = vld [vmem:[#allocation11 + $0x1000] ss:$16 sps:$4 sm:$0xff]  }
 0x70d   : > { %10907 = vmatprep.subr.bf16.mxu1 %v15860_v50  ;;  %v15925_v50 = vld [vmem:[#allocation11 + $0x1008] ss:$16 sps:$4 sm:$0xff]  }
 0x70f   : > { %10822 = vmatpush1.bf16.msra.mxu0 %v15855_v51  ;;  %v10106_v51 = vsel %vm1273_vm2, %v10097_v52, %v10105_v23  ;;  %v16003_v23 = vld [vmem:[#allocation11 + $0x11a8] ss:$16 sps:$4 sm:$0xff]   ;;  %v16011_v52 = vld [vmem:[#allocation11 + $0x11cc] ss:$16 sps:$4 sm:$0xff]  }
 0x710   : > { %10908 = vmatpush1.bf16.msra.mxu1 %v15858_v28  ;;  %10823 = vmatprep.subr.bf16.mxu0 %v15863_v29  ;;  %v15930_v28 = vld [vmem:[#allocation11 + $0x1024] ss:$16 sps:$4 sm:$0xff]   ;;  %v15933_v29 = vld [vmem:[#allocation11 + $0x102c] ss:$16 sps:$4 sm:$0xff]  }
 0x711   : > { %10909 = vmatprep.subr.bf16.mxu1 %v15866_v30  ;;  %v15928_v30 = vld [vmem:[#allocation11 + $0x1020] ss:$16 sps:$4 sm:$0xff]  }
 0x713   : > { %10824 = vmatpush1.bf16.msra.mxu0 %v15861_v42  ;;  %v15931_v42 = vld [vmem:[#allocation11 + $0x1028] ss:$16 sps:$4 sm:$0xff]  }
 0x714   : > { %10910 = vmatpush1.bf16.msra.mxu1 %v15864_v21  ;;  %10825 = vmatprep.subr.bf16.mxu0 %v15869_v36  ;;  %v15936_v21 = vld [vmem:[#allocation11 + $0x1044] ss:$16 sps:$4 sm:$0xff]   ;;  %v15939_v36 = vld [vmem:[#allocation11 + $0x104c] ss:$16 sps:$4 sm:$0xff]  }
 0x715   : > { %10911 = vmatprep.subr.bf16.mxu1 %v15872_v37  ;;  %v15934_v37 = vld [vmem:[#allocation11 + $0x1040] ss:$16 sps:$4 sm:$0xff]  }
 0x717   : > { %10826 = vmatpush1.bf16.msra.mxu0 %v15867_v44  ;;  %v15937_v44 = vld [vmem:[#allocation11 + $0x1048] ss:$16 sps:$4 sm:$0xff]  }
 0x718   : > { %10912 = vmatpush1.bf16.msra.mxu1 %v15870_v20  ;;  %10827 = vmatprep.subr.bf16.mxu0 %v15875_v39  ;;  %v15942_v20 = vld [vmem:[#allocation11 + $0x1064] ss:$16 sps:$4 sm:$0xff]   ;;  %v15945_v39 = vld [vmem:[#allocation11 + $0x106c] ss:$16 sps:$4 sm:$0xff]  }
 0x719   : > { %10913 = vmatprep.subr.bf16.mxu1 %v15878_v6  ;;  %v15940_v6 = vld [vmem:[#allocation11 + $0x1060] ss:$16 sps:$4 sm:$0xff]  }
 0x71b   : > { %10828 = vmatpush1.bf16.msra.mxu0 %v15873_v59  ;;  %v15943_v59 = vld [vmem:[#allocation11 + $0x1068] ss:$16 sps:$4 sm:$0xff]  }
 0x71c   : > { %10914 = vmatpush1.bf16.msra.mxu1 %v15876_v47  ;;  %10829 = vmatprep.subr.bf16.mxu0 %v15881_v24  ;;  %v15948_v47 = vld [vmem:[#allocation11 + $0x1084] ss:$16 sps:$4 sm:$0xff]   ;;  %v15951_v24 = vld [vmem:[#allocation11 + $0x108c] ss:$16 sps:$4 sm:$0xff]  }
 0x71d   : > { %10915 = vmatprep.subr.bf16.mxu1 %v15884_v43  ;;  %v15949_v43 = vld [vmem:[#allocation11 + $0x1088] ss:$16 sps:$4 sm:$0xff]  }
 0x71f   : > { %10830 = vmatpush1.bf16.msra.mxu0 %v15879_v40  ;;  %v15954_v40 = vld [vmem:[#allocation11 + $0x10a4] ss:$16 sps:$4 sm:$0xff]  }
 0x720   : > { %10916 = vmatpush1.bf16.msra.mxu1 %v15882_v25  ;;  %10831 = vmatprep.subr.bf16.mxu0 %v15887_v60  ;;  %v15957_v25 = vld [vmem:[#allocation11 + $0x10ac] ss:$16 sps:$4 sm:$0xff]   ;;  %v15952_v60 = vld [vmem:[#allocation11 + $0x10a0] ss:$16 sps:$4 sm:$0xff]  }
 0x721   : > { %10917 = vmatprep.subr.bf16.mxu1 %v15890_v46  ;;  %v15955_v46 = vld [vmem:[#allocation11 + $0x10a8] ss:$16 sps:$4 sm:$0xff]  }
 0x723   : > { %10832 = vmatpush1.bf16.msra.mxu0 %v15885_v33  ;;  %v15960_v33 = vld [vmem:[#allocation11 + $0x10c4] ss:$16 sps:$4 sm:$0xff]  }
 0x724   : > { %10918 = vmatpush1.bf16.msra.mxu1 %v15888_v49  ;;  %10833 = vmatprep.subr.bf16.mxu0 %v15893_v32  ;;  %v15963_v49 = vld [vmem:[#allocation11 + $0x10cc] ss:$16 sps:$4 sm:$0xff]   ;;  %v15958_v32 = vld [vmem:[#allocation11 + $0x10c0] ss:$16 sps:$4 sm:$0xff]  }
 0x725   : > { %10919 = vmatprep.subr.bf16.mxu1 %v15896_v45  ;;  %v15961_v45 = vld [vmem:[#allocation11 + $0x10c8] ss:$16 sps:$4 sm:$0xff]  }
 0x727   : > { %10834 = vmatpush1.bf16.msra.mxu0 %v15891_v53  ;;  %v15966_v53 = vld [vmem:[#allocation11 + $0x10e4] ss:$16 sps:$4 sm:$0xff]  }
 0x728   : > { %10920 = vmatpush1.bf16.msra.mxu1 %v15894_v55  ;;  %10835 = vmatprep.subr.bf16.mxu0 %v15899_v48  ;;  %v15969_v55 = vld [vmem:[#allocation11 + $0x10ec] ss:$16 sps:$4 sm:$0xff]   ;;  %v15964_v48 = vld [vmem:[#allocation11 + $0x10e0] ss:$16 sps:$4 sm:$0xff]  }
 0x729   : > { %10921 = vmatprep.subr.bf16.mxu1 %v15902_v57  ;;  %v15967_v57 = vld [vmem:[#allocation11 + $0x10e8] ss:$16 sps:$4 sm:$0xff]  }
 0x72b   : > { %10836 = vmatpush1.bf16.msra.mxu0 %v15897_v54  ;;  %v15972_v54 = vld [vmem:[#allocation11 + $0x1104] ss:$16 sps:$4 sm:$0xff]  }
 0x72c   : > { %10922 = vmatpush1.bf16.msra.mxu1 %v15900_v56  ;;  %10837 = vmatprep.subr.bf16.mxu0 %v15905_v61  ;;  %v15975_v56 = vld [vmem:[#allocation11 + $0x110c] ss:$16 sps:$4 sm:$0xff]   ;;  %v15970_v61 = vld [vmem:[#allocation11 + $0x1100] ss:$16 sps:$4 sm:$0xff]  }
 0x72d   : > { %10923 = vmatprep.subr.bf16.mxu1 %v15908_v62  ;;  %v15973_v62 = vld [vmem:[#allocation11 + $0x1108] ss:$16 sps:$4 sm:$0xff]  }
 0x72f   : > { %10838 = vmatpush1.bf16.msra.mxu0 %v15903_v41  ;;  %v15978_v41 = vld [vmem:[#allocation11 + $0x1124] ss:$16 sps:$4 sm:$0xff]  }
 0x730   : > { %10924 = vmatpush1.bf16.msra.mxu1 %v15906_v63  ;;  %10839 = vmatprep.subr.bf16.mxu0 %v15911_v1  ;;  %v15981_v63 = vld [vmem:[#allocation11 + $0x112c] ss:$16 sps:$4 sm:$0xff]   ;;  %v15976_v1 = vld [vmem:[#allocation11 + $0x1120] ss:$16 sps:$4 sm:$0xff]  }
 0x731   : > { %10925 = vmatprep.subr.bf16.mxu1 %v15914_v3  ;;  %v15979_v3 = vld [vmem:[#allocation11 + $0x1128] ss:$16 sps:$4 sm:$0xff]  }
 0x733   : > { %10840 = vmatpush1.bf16.msra.mxu0 %v15909_v7  ;;  %v15982_v7 = vld [vmem:[#allocation11 + $0x1140] ss:$16 sps:$4 sm:$0xff]  }
 0x734   : > { %10926 = vmatpush1.bf16.msra.mxu1 %v15912_v38  ;;  %10841 = vmatprep.subr.bf16.mxu0 %v15917_v26  ;;  %v15993_v38 = vld [vmem:[#allocation11 + $0x116c] ss:$16 sps:$4 sm:$0xff]   ;;  %v15988_v26 = vld [vmem:[#allocation11 + $0x1160] ss:$16 sps:$4 sm:$0xff]  }
 0x735   : > { %10927 = vmatprep.subr.bf16.mxu1 %v15920_v9  ;;  %v15991_v9 = vld [vmem:[#allocation11 + $0x1168] ss:$16 sps:$4 sm:$0xff]  }
 0x737   : > { %10842 = vmatpush1.bf16.msra.mxu0 %v15915_v0  ;;  %v15994_v0 = vld [vmem:[#allocation11 + $0x1180] ss:$16 sps:$4 sm:$0xff]  }
 0x738   : > { %10928 = vmatpush1.bf16.msra.mxu1 %v15918_v18  ;;  %11745 = vmatprep.subr.bf16.mxu0 %v15924_v17  ;;  %v16005_v18 = vld [vmem:[#allocation11 + $0x11ac] ss:$16 sps:$4 sm:$0xff]   ;;  %v16000_v17 = vld [vmem:[#allocation11 + $0x11a0] ss:$16 sps:$4 sm:$0xff]  }
 0x739   : > { %11831 = vmatprep.subr.bf16.mxu1 %v15927_v34  ;;  %v16008_v34 = vld [vmem:[#allocation11 + $0x11c4] ss:$16 sps:$4 sm:$0xff]  }
 0x73a   : > { %10844 = vmatmul.mubr.bf16.vlgmr.msra.gmra.mrb[8].mxu0 %v10106_v51 }
 0x73b   : > { %10930 = vmatmul.mubr.bf16.vlgmr.msra.gmra.mrb[8].mxu1 %v10106_v51  ;;  %11746 = vmatpush1.bf16.msra.mxu0 %v15922_v31  ;;  %v16006_v31 = vld [vmem:[#allocation11 + $0x11c0] ss:$16 sps:$4 sm:$0xff]   ;;  %v16014_v51 = vld [vmem:[#allocation11 + $0x11e4] ss:$16 sps:$4 sm:$0xff]  }
 0x73c   : > { %11777 = vmatprep.mubr.bf16.mxu0 %v16863_v16  ;;  %11832 = vmatpush1.bf16.msra.mxu1 %v15925_v50  ;;  %v16009_v50 = vld [vmem:[#allocation11 + $0x11c8] ss:$16 sps:$4 sm:$0xff]  }
 0x73d   : > { %11863 = vmatprep.mubr.bf16.mxu1 %v16863_v16  ;;  %11747 = vmatprep.subr.bf16.mxu0 %v15930_v28  ;;  %v15946_v16 = vld [vmem:[#allocation11 + $0x1080] ss:$16 sps:$4 sm:$0xff]   ;;  %v16017_v28 = vld [vmem:[#allocation11 + $0x11ec] ss:$16 sps:$4 sm:$0xff]  }
 0x73e   : > { %11833 = vmatprep.subr.bf16.mxu1 %v15933_v29  ;;  %v16012_v29 = vld [vmem:[#allocation11 + $0x11e0] ss:$16 sps:$4 sm:$0xff]  }
 0x73f   : > { %11748 = vmatpush1.bf16.msra.mxu0 %v15928_v30  ;;  %v16015_v30 = vld [vmem:[#allocation11 + $0x11e8] ss:$16 sps:$4 sm:$0xff]  }
 0x740   : > { %11834 = vmatpush1.bf16.msra.mxu1 %v15931_v42  ;;  %11749 = vmatprep.subr.bf16.mxu0 %v15936_v21  ;;  %v16020_v42 = vld [vmem:[#allocation11 + $0x1204] ss:$16 sps:$4 sm:$0xff]   ;;  %v16023_v21 = vld [vmem:[#allocation11 + $0x120c] ss:$16 sps:$4 sm:$0xff]  }
 0x741   : > { %11835 = vmatprep.subr.bf16.mxu1 %v15939_v36  ;;  %v16018_v36 = vld [vmem:[#allocation11 + $0x1200] ss:$16 sps:$4 sm:$0xff]  }
 0x743   : > { %11750 = vmatpush1.bf16.msra.mxu0 %v15934_v37  ;;  %v16021_v37 = vld [vmem:[#allocation11 + $0x1208] ss:$16 sps:$4 sm:$0xff]  }
 0x744   : > { %11836 = vmatpush1.bf16.msra.mxu1 %v15937_v44  ;;  %11751 = vmatprep.subr.bf16.mxu0 %v15942_v20  ;;  %v16026_v44 = vld [vmem:[#allocation11 + $0x1224] ss:$16 sps:$4 sm:$0xff]   ;;  %v16029_v20 = vld [vmem:[#allocation11 + $0x122c] ss:$16 sps:$4 sm:$0xff]  }
 0x745   : > { %11837 = vmatprep.subr.bf16.mxu1 %v15945_v39  ;;  %v16024_v39 = vld [vmem:[#allocation11 + $0x1220] ss:$16 sps:$4 sm:$0xff]  }
 0x747   : > { %11752 = vmatpush1.bf16.msra.mxu0 %v15940_v6  ;;  %v16027_v6 = vld [vmem:[#allocation11 + $0x1228] ss:$16 sps:$4 sm:$0xff]  }
 0x748   : > { %11838 = vmatpush1.bf16.msra.mxu1 %v15943_v59  ;;  %11753 = vmatprep.subr.bf16.mxu0 %v15948_v47  ;;  %v16032_v59 = vld [vmem:[#allocation11 + $0x1244] ss:$16 sps:$4 sm:$0xff]   ;;  %v16035_v47 = vld [vmem:[#allocation11 + $0x124c] ss:$16 sps:$4 sm:$0xff]  }
 0x749   : > { %11839 = vmatprep.subr.bf16.mxu1 %v15951_v24  ;;  %v16030_v24 = vld [vmem:[#allocation11 + $0x1240] ss:$16 sps:$4 sm:$0xff]  }
 0x74b   : > { %11754 = vmatpush1.bf16.msra.mxu0 %v15946_v16  ;;  %v16033_v16 = vld [vmem:[#allocation11 + $0x1248] ss:$16 sps:$4 sm:$0xff]  }
 0x74c   : > { %11840 = vmatpush1.bf16.msra.mxu1 %v15949_v43  ;;  %11755 = vmatprep.subr.bf16.mxu0 %v15954_v40  ;;  %v16038_v43 = vld [vmem:[#allocation11 + $0x1264] ss:$16 sps:$4 sm:$0xff]   ;;  %v16036_v40 = vld [vmem:[#allocation11 + $0x1260] ss:$16 sps:$4 sm:$0xff]  }
 0x74d   : > { %11841 = vmatprep.subr.bf16.mxu1 %v15957_v25  ;;  %v16039_v25 = vld [vmem:[#allocation11 + $0x1268] ss:$16 sps:$4 sm:$0xff]  }
 0x74f   : > { %11756 = vmatpush1.bf16.msra.mxu0 %v15952_v60  ;;  %v16044_v60 = vld [vmem:[#allocation11 + $0x1284] ss:$16 sps:$4 sm:$0xff]  }
 0x750   : > { %11842 = vmatpush1.bf16.msra.mxu1 %v15955_v46  ;;  %11757 = vmatprep.subr.bf16.mxu0 %v15960_v33  ;;  %v16047_v46 = vld [vmem:[#allocation11 + $0x128c] ss:$16 sps:$4 sm:$0xff]   ;;  %v16045_v33 = vld [vmem:[#allocation11 + $0x1288] ss:$16 sps:$4 sm:$0xff]  }
 0x751   : > { %11843 = vmatprep.subr.bf16.mxu1 %v15963_v49  ;;  %v16050_v49 = vld [vmem:[#allocation11 + $0x12a4] ss:$16 sps:$4 sm:$0xff]  }
 0x753   : > { %11758 = vmatpush1.bf16.msra.mxu0 %v15958_v32  ;;  %v16053_v32 = vld [vmem:[#allocation11 + $0x12ac] ss:$16 sps:$4 sm:$0xff]  }
 0x754   : > { %11844 = vmatpush1.bf16.msra.mxu1 %v15961_v45  ;;  %11759 = vmatprep.subr.bf16.mxu0 %v15966_v53  ;;  %v16048_v45 = vld [vmem:[#allocation11 + $0x12a0] ss:$16 sps:$4 sm:$0xff]   ;;  %v16051_v53 = vld [vmem:[#allocation11 + $0x12a8] ss:$16 sps:$4 sm:$0xff]  }
 0x755   : > { %11845 = vmatprep.subr.bf16.mxu1 %v15969_v55  ;;  %v16056_v55 = vld [vmem:[#allocation11 + $0x12c4] ss:$16 sps:$4 sm:$0xff]  }
 0x757   : > { %11760 = vmatpush1.bf16.msra.mxu0 %v15964_v48  ;;  %v16059_v48 = vld [vmem:[#allocation11 + $0x12cc] ss:$16 sps:$4 sm:$0xff]  }
 0x758   : > { %11846 = vmatpush1.bf16.msra.mxu1 %v15967_v57  ;;  %11761 = vmatprep.subr.bf16.mxu0 %v15972_v54  ;;  %v16054_v57 = vld [vmem:[#allocation11 + $0x12c0] ss:$16 sps:$4 sm:$0xff]   ;;  %v16057_v54 = vld [vmem:[#allocation11 + $0x12c8] ss:$16 sps:$4 sm:$0xff]  }
 0x759   : > { %11847 = vmatprep.subr.bf16.mxu1 %v15975_v56  ;;  %v16062_v56 = vld [vmem:[#allocation11 + $0x12e4] ss:$16 sps:$4 sm:$0xff]  }
 0x75b   : > { %11762 = vmatpush1.bf16.msra.mxu0 %v15970_v61  ;;  %v16065_v61 = vld [vmem:[#allocation11 + $0x12ec] ss:$16 sps:$4 sm:$0xff]  }
 0x75c   : > { %11848 = vmatpush1.bf16.msra.mxu1 %v15973_v62  ;;  %11763 = vmatprep.subr.bf16.mxu0 %v15978_v41  ;;  %v16060_v62 = vld [vmem:[#allocation11 + $0x12e0] ss:$16 sps:$4 sm:$0xff]   ;;  %v16063_v41 = vld [vmem:[#allocation11 + $0x12e8] ss:$16 sps:$4 sm:$0xff]  }
 0x75d   : > { %11849 = vmatprep.subr.bf16.mxu1 %v15981_v63  ;;  %v16068_v63 = vld [vmem:[#allocation11 + $0x1304] ss:$16 sps:$4 sm:$0xff]  }
 0x75f   : > { %11764 = vmatpush1.bf16.msra.mxu0 %v15976_v1  ;;  %v16071_v1 = vld [vmem:[#allocation11 + $0x130c] ss:$16 sps:$4 sm:$0xff]  }
 0x760   : > { %11850 = vmatpush1.bf16.msra.mxu1 %v15979_v3  ;;  %11765 = vmatprep.subr.bf16.mxu0 %v15984_v4  ;;  %v16066_v3 = vld [vmem:[#allocation11 + $0x1300] ss:$16 sps:$4 sm:$0xff]   ;;  %v16069_v4 = vld [vmem:[#allocation11 + $0x1308] ss:$16 sps:$4 sm:$0xff]  }
 0x761   : > { %11851 = vmatprep.subr.bf16.mxu1 %v15987_v27  ;;  %v16074_v27 = vld [vmem:[#allocation11 + $0x1324] ss:$16 sps:$4 sm:$0xff]  }
 0x763   : > { %11766 = vmatpush1.bf16.msra.mxu0 %v15982_v7  ;;  %v16077_v7 = vld [vmem:[#allocation11 + $0x132c] ss:$16 sps:$4 sm:$0xff]  }
 0x764   : > { %11852 = vmatpush1.bf16.msra.mxu1 %v15985_v19  ;;  %11767 = vmatprep.subr.bf16.mxu0 %v15990_v8  ;;  %v16072_v19 = vld [vmem:[#allocation11 + $0x1320] ss:$16 sps:$4 sm:$0xff]   ;;  %v16075_v8 = vld [vmem:[#allocation11 + $0x1328] ss:$16 sps:$4 sm:$0xff]  }
 0x765   : > { %11853 = vmatprep.subr.bf16.mxu1 %v15993_v38  ;;  %v16080_v38 = vld [vmem:[#allocation11 + $0x1344] ss:$16 sps:$4 sm:$0xff]  }
 0x767   : > { %11768 = vmatpush1.bf16.msra.mxu0 %v15988_v26  ;;  %v16083_v26 = vld [vmem:[#allocation11 + $0x134c] ss:$16 sps:$4 sm:$0xff]  }
 0x768   : > { %11854 = vmatpush1.bf16.msra.mxu1 %v15991_v9  ;;  %11769 = vmatprep.subr.bf16.mxu0 %v15996_v15  ;;  %v16078_v9 = vld [vmem:[#allocation11 + $0x1340] ss:$16 sps:$4 sm:$0xff]   ;;  %v16081_v15 = vld [vmem:[#allocation11 + $0x1348] ss:$16 sps:$4 sm:$0xff]  }
 0x769   : > { %11855 = vmatprep.subr.bf16.mxu1 %v15999_v5  ;;  %v16086_v5 = vld [vmem:[#allocation11 + $0x1364] ss:$16 sps:$4 sm:$0xff]  }
 0x76b   : > { %11770 = vmatpush1.bf16.msra.mxu0 %v15994_v0  ;;  %v16089_v0 = vld [vmem:[#allocation11 + $0x136c] ss:$16 sps:$4 sm:$0xff]  }
 0x76c   : > { %11856 = vmatpush1.bf16.msra.mxu1 %v15997_v22  ;;  %11771 = vmatprep.subr.bf16.mxu0 %v16002_v58  ;;  %v16084_v22 = vld [vmem:[#allocation11 + $0x1360] ss:$16 sps:$4 sm:$0xff]   ;;  %v16087_v58 = vld [vmem:[#allocation11 + $0x1368] ss:$16 sps:$4 sm:$0xff]  }
 0x76d   : > { %11857 = vmatprep.subr.bf16.mxu1 %v16005_v18  ;;  %v16092_v18 = vld [vmem:[#allocation11 + $0x1384] ss:$16 sps:$4 sm:$0xff]  }
 0x76f   : > { %11772 = vmatpush1.bf16.msra.mxu0 %v16000_v17  ;;  %v16095_v17 = vld [vmem:[#allocation11 + $0x138c] ss:$16 sps:$4 sm:$0xff]  }
 0x770   : > { %11858 = vmatpush1.bf16.msra.mxu1 %v16003_v23  ;;  %11773 = vmatprep.subr.bf16.mxu0 %v16008_v34  ;;  %v16090_v23 = vld [vmem:[#allocation11 + $0x1380] ss:$16 sps:$4 sm:$0xff]   ;;  %v16093_v34 = vld [vmem:[#allocation11 + $0x1388] ss:$16 sps:$4 sm:$0xff]  }
 0x771   : > { %11859 = vmatprep.subr.bf16.mxu1 %v16011_v52  ;;  %v16098_v52 = vld [vmem:[#allocation11 + $0x13a4] ss:$16 sps:$4 sm:$0xff]  }
 0x773   : > { %11774 = vmatpush1.bf16.msra.mxu0 %v16006_v31  ;;  %v16101_v31 = vld [vmem:[#allocation11 + $0x13ac] ss:$16 sps:$4 sm:$0xff]  }
 0x774   : > { %11860 = vmatpush1.bf16.msra.mxu1 %v16009_v50  ;;  %11775 = vmatprep.subr.bf16.mxu0 %v16014_v51  ;;  %v16096_v50 = vld [vmem:[#allocation11 + $0x13a0] ss:$16 sps:$4 sm:$0xff]   ;;  %v16099_v51 = vld [vmem:[#allocation11 + $0x13a8] ss:$16 sps:$4 sm:$0xff]  }
 0x775   : > { %11861 = vmatprep.subr.bf16.mxu1 %v16017_v28  ;;  %v16104_v28 = vld [vmem:[#allocation11 + $0x13c4] ss:$16 sps:$4 sm:$0xff]  }
 0x777   : > { %11776 = vmatpush1.bf16.msra.mxu0 %v16012_v29  ;;  %v16107_v29 = vld [vmem:[#allocation11 + $0x13cc] ss:$16 sps:$4 sm:$0xff]  }
 0x778   : > { %11862 = vmatpush1.bf16.msra.mxu1 %v16015_v30  ;;  %11788 = vmatprep.subr.bf16.mxu0 %v16020_v42  ;;  %v16102_v30 = vld [vmem:[#allocation11 + $0x13c0] ss:$16 sps:$4 sm:$0xff]   ;;  %v16105_v42 = vld [vmem:[#allocation11 + $0x13c8] ss:$16 sps:$4 sm:$0xff]  }
 0x779   : > { %11874 = vmatprep.subr.bf16.mxu1 %v16023_v21  ;;  %v16110_v21 = vld [vmem:[#allocation11 + $0x13e4] ss:$16 sps:$4 sm:$0xff]  }
 0x77a   : > { %11778 = vmatmul.mubr.bf16.vlgmr.msra.gmra.mrb[8].mxu0 %v16868_v2 }
 0x77b   : > { %11864 = vmatmul.mubr.bf16.vlgmr.msra.gmra.mrb[8].mxu1 %v16868_v2  ;;  %11789 = vmatpush1.bf16.msra.mxu0 %v16018_v36  ;;  %v16041_v2 = vld [vmem:[#allocation11 + $0x126c] ss:$16 sps:$4 sm:$0xff]  }
 0x77c   : > { %11820 = vmatprep.mubr.bf16.mxu0 %v16871_v10  ;;  %11875 = vmatpush1.bf16.msra.mxu1 %v16021_v37  ;;  %v16113_v36 = vld [vmem:[#allocation11 + $0x13ec] ss:$16 sps:$4 sm:$0xff]   ;;  %v16108_v37 = vld [vmem:[#allocation11 + $0x13e0] ss:$16 sps:$4 sm:$0xff]  }
 0x77d   : > { %11906 = vmatprep.mubr.bf16.mxu1 %v16871_v10  ;;  %11790 = vmatprep.subr.bf16.mxu0 %v16026_v44  ;;  %v16042_v10 = vld [vmem:[#allocation11 + $0x1280] ss:$16 sps:$4 sm:$0xff]   ;;  %v16111_v44 = vld [vmem:[#allocation11 + $0x13e8] ss:$16 sps:$4 sm:$0xff]  }
 0x77e   : > { %11876 = vmatprep.subr.bf16.mxu1 %v16029_v20  ;;  %v11925_v20 = vld [vmem:[#allocation12] sm:$0xf] }
 0x77f   : > { %11791 = vmatpush1.bf16.msra.mxu0 %v16024_v39  ;;  %v11930_v39 = vrot.slane %v11925_v20, %v16629_v11 }
 0x780   : > { %11877 = vmatpush1.bf16.msra.mxu1 %v16027_v6  ;;  %11792 = vmatprep.subr.bf16.mxu0 %v16032_v59  ;;  %v11938_v6 = vrot.slane %v11925_v20, %v16631_v12  ;;  %v11934_v59 = vrot.slane %v11925_v20, %v16633_v13 }
 0x781   : > { %11878 = vmatprep.subr.bf16.mxu1 %v16035_v47  ;;  %v11942_v47 = vrot.slane %v11925_v20, %v16635_v14 }
 0x783   : > { %11793 = vmatpush1.bf16.msra.mxu0 %v16030_v24 }
 0x784   : > { %11879 = vmatpush1.bf16.msra.mxu1 %v16033_v16  ;;  %11794 = vmatprep.subr.bf16.mxu0 %v16038_v43 }
 0x785   : > { %11880 = vmatprep.subr.bf16.mxu1 %v16041_v2 }
 0x787   : > { %11795 = vmatpush1.bf16.msra.mxu0 %v16036_v40 }
 0x788   : > { %11881 = vmatpush1.bf16.msra.mxu1 %v16039_v25  ;;  %11796 = vmatprep.subr.bf16.mxu0 %v16044_v60 }
 0x789   : > { %11882 = vmatprep.subr.bf16.mxu1 %v16047_v46 }
 0x78b   : > { %11797 = vmatpush1.bf16.msra.mxu0 %v16042_v10 }
 0x78c   : > { %11883 = vmatpush1.bf16.msra.mxu1 %v16045_v33  ;;  %11798 = vmatprep.subr.bf16.mxu0 %v16050_v49 }
 0x78d   : > { %11884 = vmatprep.subr.bf16.mxu1 %v16053_v32 }
 0x78f   : > { %11799 = vmatpush1.bf16.msra.mxu0 %v16048_v45 }
 0x790   : > { %11885 = vmatpush1.bf16.msra.mxu1 %v16051_v53  ;;  %11800 = vmatprep.subr.bf16.mxu0 %v16056_v55 }
 0x791   : > { %11886 = vmatprep.subr.bf16.mxu1 %v16059_v48 }
 0x793   : > { %11801 = vmatpush1.bf16.msra.mxu0 %v16054_v57 }
 0x794   : > { %11887 = vmatpush1.bf16.msra.mxu1 %v16057_v54  ;;  %11802 = vmatprep.subr.bf16.mxu0 %v16062_v56 }
 0x795   : > { %11888 = vmatprep.subr.bf16.mxu1 %v16065_v61 }
 0x797   : > { %11803 = vmatpush1.bf16.msra.mxu0 %v16060_v62 }
 0x798   : > { %11889 = vmatpush1.bf16.msra.mxu1 %v16063_v41  ;;  %11804 = vmatprep.subr.bf16.mxu0 %v16068_v63 }
 0x799   : > { %11890 = vmatprep.subr.bf16.mxu1 %v16071_v1 }
 0x79b   : > { %11805 = vmatpush1.bf16.msra.mxu0 %v16066_v3 }
 0x79c   : > { %11891 = vmatpush1.bf16.msra.mxu1 %v16069_v4  ;;  %11806 = vmatprep.subr.bf16.mxu0 %v16074_v27 }
 0x79d   : > { %11892 = vmatprep.subr.bf16.mxu1 %v16077_v7 }
 0x79f   : > { %11807 = vmatpush1.bf16.msra.mxu0 %v16072_v19 }
 0x7a0   : > { %11893 = vmatpush1.bf16.msra.mxu1 %v16075_v8  ;;  %11808 = vmatprep.subr.bf16.mxu0 %v16080_v38 }
 0x7a1   : > { %11894 = vmatprep.subr.bf16.mxu1 %v16083_v26 }
 0x7a3   : > { %11809 = vmatpush1.bf16.msra.mxu0 %v16078_v9 }
 0x7a4   : > { %11895 = vmatpush1.bf16.msra.mxu1 %v16081_v15  ;;  %11810 = vmatprep.subr.bf16.mxu0 %v16086_v5 }
 0x7a5   : > { %11896 = vmatprep.subr.bf16.mxu1 %v16089_v0 }
 0x7a7   : > { %11811 = vmatpush1.bf16.msra.mxu0 %v16084_v22 }
 0x7a8   : > { %11897 = vmatpush1.bf16.msra.mxu1 %v16087_v58  ;;  %11812 = vmatprep.subr.bf16.mxu0 %v16092_v18 }
 0x7a9   : > { %11898 = vmatprep.subr.bf16.mxu1 %v16095_v17 }
 0x7ab   : > { %11813 = vmatpush1.bf16.msra.mxu0 %v16090_v23 }
 0x7ac   : > { %11899 = vmatpush1.bf16.msra.mxu1 %v16093_v34  ;;  %11814 = vmatprep.subr.bf16.mxu0 %v16098_v52 }
 0x7ad   : > { %11900 = vmatprep.subr.bf16.mxu1 %v16101_v31 }
 0x7af   : > { %11815 = vmatpush1.bf16.msra.mxu0 %v16096_v50 }
 0x7b0   : > { %11901 = vmatpush1.bf16.msra.mxu1 %v16099_v51  ;;  %11816 = vmatprep.subr.bf16.mxu0 %v16104_v28 }
 0x7b1   : > { %11902 = vmatprep.subr.bf16.mxu1 %v16107_v29 }
 0x7b3   : > { %11817 = vmatpush1.bf16.msra.mxu0 %v16102_v30 }
 0x7b4   : > { %11903 = vmatpush1.bf16.msra.mxu1 %v16105_v42  ;;  %11818 = vmatprep.subr.bf16.mxu0 %v16110_v21 }
 0x7b5   : > { %11904 = vmatprep.subr.bf16.mxu1 %v16113_v36 }
 0x7b7   : > { %11819 = vmatpush1.bf16.msra.mxu0 %v16108_v37 }
 0x7b8   : > { %11905 = vmatpush1.bf16.msra.mxu1 %v16111_v44 }
 0x7ba   : > { %11821 = vmatmul.mubr.bf16.vlgmr.msra.gmra.mrb[8].mxu0 %v16875_v35 }
 0x7bb   : > { %11907 = vmatmul.mubr.bf16.vlgmr.msra.gmra.mrb[8].mxu1 %v16875_v35 }
 0x88d   : > { %v11822_v24 = vpop.f32.mrb[8].mxu0 }
 0x88e   : > { %v11947_v16 = vadd.f32 %v11930_v39, %v11822_v24  ;;  %v11908_v43 = vpop.f32.mrb[8].mxu1  ;;  %v11824_v2 = vpop.f32.mrb[9].mxu0 }
 0x88f   : > { %v11949_v40 = vadd.f32 %v11938_v6, %v11908_v43  ;;  %v11948_v25 = vadd.f32 %v11934_v59, %v11824_v2  ;;  %v11910_v60 = vpop.f32.mrb[9].mxu1  ;;  %v11826_v46 = vpop.f32.mrb[10].mxu0 }
 0x890   : > { %v11955_v35 = vmax.f32 %v11947_v16, 0.0  ;;  %v11950_v10 = vadd.f32 %v11942_v47, %v11910_v60  ;;  %v11951_v33 = vadd.f32 %v11930_v39, %v11826_v46  ;;  %v11912_v11 = vpop.f32.mrb[10].mxu1  ;;  %v11828_v49 = vpop.f32.mrb[11].mxu0 }
 0x891   : > { %v11957_v12 = vmax.f32 %v11949_v40, 0.0  ;;  %v11956_v32 = vmax.f32 %v11948_v25, 0.0  ;;  %v11953_v13 = vadd.f32 %v11938_v6, %v11912_v11  ;;  %v11952_v45 = vadd.f32 %v11934_v59, %v11828_v49  ;;  %v11914_v53 = vpop.f32.mrb[11].mxu1 }
 0x892   : > { %v11958_v14 = vmax.f32 %v11950_v10, 0.0  ;;  %v11959_v55 = vmax.f32 %v11951_v33, 0.0  ;;  %v11954_v48 = vadd.f32 %v11942_v47, %v11914_v53  ;;  %11997 = sbr.rel (!%p16979_p2) target bundleno = 2209 (0x8a1), region = 76 }
 0x893   : > { %v13663_v57 = vpack.c.bf16 %v11956_v32, %v11955_v35  ;;  %v11961_v54 = vmax.f32 %v11953_v13, 0.0  ;;  %v11960_v56 = vmax.f32 %v11952_v45, 0.0 }
 0x894   : > { %v13664_v61 = vpack.c.bf16 %v11958_v14, %v11957_v12  ;;  %v11962_v62 = vmax.f32 %v11954_v48, 0.0 }
 0x895   : > { %11987 = vst [vmem:[%s349_s24] sm:$0xff] %v13663_v57  ;;  %v13665_v41 = vpack.c.bf16 %v11960_v56, %v11959_v55 }
 0x896   : > { %11988 = vst [vmem:[%s349_s24 + $0x8] sm:$0xff] %v13664_v61  ;;  %v13666_v63 = vpack.c.bf16 %v11962_v62, %v11961_v54 }
 0x897   : > { %11989 = vst [vmem:[%s349_s24 + $0x10] sm:$0xff] %v13665_v41 }
 0x898   : > { %11990 = vst [vmem:[%s349_s24 + $0x18] sm:$0xff] %v13666_v63 }
 0x89c   : > { %v12013_v1 = vld [vmem:[%s349_s24] sm:$0xff] }
 0x89d   : > { %v12015_v3 = vld [vmem:[%s349_s24 + $0x8] sm:$0xff]  ;;  %12014 = vst [vmem:[%s12000_s12] sm:$0xff] %v12013_v1 }
 0x89e   : > { %v12017_v4 = vld [vmem:[%s349_s24 + $0x10] sm:$0xff]  ;;  %12016 = vst [vmem:[%s12000_s12 + $0x8] sm:$0xff] %v12015_v3 }
 0x89f   : > { %v12019_v27 = vld [vmem:[%s349_s24 + $0x18] sm:$0xff]  ;;  %12018 = vst [vmem:[%s12000_s12 + $0x20] sm:$0xff] %v12017_v4 }
 0x8a0   : > { %12020 = vst [vmem:[%s12000_s12 + $0x28] sm:$0xff] %v12019_v27 }
 0x8a1 PF: > { %p18_p3 = scmp.ge.s32.totalorder %s16387_s28, 4   ;;  %s16980_s24 = smov %s16317_s25 }
 0x8a2   : > { %s16981_s25 = smov %s16395_s8  ;;  %s16982_s26 = smov %s16387_s28 }
 0x8a3   :  { %20 = sbr.rel (!%p18_p3) target bundleno = 8 (0x8), region = 138 }
 0x8aa   :  { %12036 = vsyncpa [#allocation5], 1 }
 0x8ab   :  { %12038 = vsyncpa [#allocation5 + $0x1], 1 }
 0x8ac   :  { %12039 = vsyncpa [#allocation7], 1 }
 0x8ad   :  { %12040 = vsyncpa [#allocation10], 1 }
 0x8ae   :  { %12041 = vsyncpa [#allocation13], 1 }

</bundles_post_ra>
